<compile_context>
chip_gen: v7x
topology: tpu7x:2x2x1
jax: 0.10.0
libtpu: 0.0.40
codegen_flags: <defaults>
</compile_context>

<pallas_src>
import jax
import jax.numpy as jnp
from jax import lax
from jax.experimental import pallas as pl
from jax.experimental.pallas import tpu as pltpu

_EPS = 1e-5
_INV_SQRT2 = 0.7071067811865476
_LANES = 128


def _gelu(x):
    # Exact (erf-based) GELU matching torch.nn.GELU() default.
    # erf via Abramowitz & Stegun 7.1.26 (|abs err| < 1.5e-7).  The 1/(1+p|z|)
    # term uses the EUP's approximate reciprocal plus one Newton refinement:
    # full f32 accuracy while keeping the divide off the busier VPU path.
    p = 0.3275911
    a1, a2, a3, a4, a5 = (0.254829592, -0.284496736, 1.421413741,
                          -1.453152027, 1.061405429)
    z = x * _INV_SQRT2
    az = jnp.abs(z)
    d = 1.0 + p * az
    r = pl.reciprocal(d, approx=True)
    t = r * (2.0 - d * r)                      # one Newton step -> ~f32 exact
    poly = ((((a5 * t + a4) * t + a3) * t + a2) * t + a1) * t
    erf_az = 1.0 - poly * jnp.exp(-az * az)
    erf_z = jnp.where(z >= 0.0, erf_az, -erf_az)
    return 0.5 * x * (1.0 + erf_z)


def _instance_norm(x):
    # x: (H*W, C) for one sample.  Per-channel stats over the full spatial
    # extent, biased variance, eps=1e-5.  Single-pass statistics
    # (var = E[x^2] - E[x]^2) -> one elementwise sweep instead of two.
    inv_hw = 1.0 / x.shape[0]
    mean = jnp.sum(x, axis=0, keepdims=True) * inv_hw
    mean_sq = jnp.sum(x * x, axis=0, keepdims=True) * inv_hw
    var = mean_sq - mean * mean
    return (x - mean) * lax.rsqrt(var + _EPS)


def _conv3x3(pad_ref, x, w_ref, b_ref, h, w):
    # "same" 3x3 / stride-1 conv.  The zero-halo padded activation lives in the
    # shared VMEM scratch (halo zeroed once per grid step in the kernel
    # prologue); each call only (over)writes the interior.  Each tap is a
    # lane-dense (H*W, C) x (C, C) MXU matmul accumulated in f32.
    hw, c = x.shape
    cout = w_ref.shape[-1]
    pad_ref[1:h + 1, 1:w + 1, :] = x.reshape(h, w, c)
    acc = jnp.zeros((hw, cout), jnp.float32)
    for kh in range(3):
        for kw in range(3):
            patch = pad_ref[kh:kh + h, kw:kw + w, :].reshape(hw, c)
            acc = acc + jnp.dot(patch, w_ref[kh * 3 + kw],
                                preferred_element_type=jnp.float32)
    return acc + b_ref[...]                     # (1, cout) broadcast


def _resblock_kernel(x_ref, w1_ref, b1_ref, w2_ref, b2_ref, o_ref, pad_ref):
    _, h, w, c = x_ref.shape

    # Zero only the 1-pixel halo of the shared padded scratch (no full-slab
    # zero fill; both convs fully overwrite the interior).  Done every grid
    # step -- NOT under pl.when(program_id == 0) -- so it stays correct when
    # the "parallel" batch axis is sharded across TensorCores (each core has
    # its own scratch and may never see step 0).
    zrow = jnp.zeros((1, w + 2, c), jnp.float32)
    pad_ref[0:1, :, :] = zrow
    pad_ref[h + 1:h + 2, :, :] = zrow
    zcol = jnp.zeros((h + 2, 1, c), jnp.float32)
    pad_ref[:, 0:1, :] = zcol
    pad_ref[:, w + 1:w + 2, :] = zcol

    x = x_ref[...].reshape(h * w, c)
    out = _gelu(_instance_norm(x))                        # n0 + act0
    out = _conv3x3(pad_ref, out, w1_ref, b1_ref, h, w)    # conv1
    out = _gelu(_instance_norm(out))                      # n1 + act1
    out = _conv3x3(pad_ref, out, w2_ref, b2_ref, h, w)    # conv2
    # Identity projection: re-read the VMEM-resident input block for the
    # residual instead of keeping a second full-size value live across both
    # convs (lower vreg/VMEM pressure).
    o_ref[...] = (out + x_ref[...].reshape(h * w, c)).reshape(1, h, w, c)


def resblock_forward(x_nchw, w1, b1, w2, b2):
    """x_nchw: (N, C_in, H, W); w*: (C_out, C_in, 3, 3) PyTorch OIHW; b*: (C_out,)."""
    n, cin, h, w = x_nchw.shape
    cout = w1.shape[0]
    assert cout == cin, "default ResBlock config uses the identity projection"
    # TODO(synk): non-default configs (out_ch != in_ch 1x1 projection, stride or
    # dilation != 1) are not implemented by this kernel.

    cp = ((max(cin, 1) + _LANES - 1) // _LANES) * _LANES  # pad C to 128-multiple

    # NHWC + channel padding to a full lane tile: lane-dense stores/elementwise,
    # and every conv tap contracts a full 128-wide K on the MXU.  Padded
    # channels are exact zeros end-to-end (norm/GELU/conv/residual preserve 0).
    x = jnp.transpose(x_nchw, (0, 2, 3, 1)).astype(jnp.float32)
    x = jnp.pad(x, ((0, 0), (0, 0), (0, 0), (0, cp - cin)))

    def prep_w(wt):                                        # OIHW -> (9, cp, cp)
        k = jnp.transpose(wt, (2, 3, 1, 0)).astype(jnp.float32)   # KH,KW,Ci,Co
        k = jnp.pad(k, ((0, 0), (0, 0),
                        (0, cp - k.shape[2]), (0, cp - k.shape[3])))
        return k.reshape(9, cp, cp)

    def prep_b(bt):
        return jnp.pad(bt.astype(jnp.float32), (0, cp - bt.shape[0])).reshape(1, cp)

    w1k, w2k = prep_w(w1), prep_w(w2)
    b1k, b2k = prep_b(b1), prep_b(b2)

    grid_spec = pltpu.PrefetchScalarGridSpec(
        num_scalar_prefetch=0,
        # One sample per grid step: InstanceNorm statistics need the whole HxW
        # of a sample, so N is the only safely grid-able axis.
        grid=(n,),
        in_specs=[
            pl.BlockSpec((1, h, w, cp), lambda i: (i, 0, 0, 0)),
            pl.BlockSpec((9, cp, cp), lambda i: (0, 0, 0)),
            pl.BlockSpec((1, cp), lambda i: (0, 0)),
            pl.BlockSpec((9, cp, cp), lambda i: (0, 0, 0)),
            pl.BlockSpec((1, cp), lambda i: (0, 0)),
        ],
        out_specs=pl.BlockSpec((1, h, w, cp), lambda i: (i, 0, 0, 0)),
        # Single shared padded-activation scratch serves both convs (Cin==Cout).
        scratch_shapes=[pltpu.VMEM((h + 2, w + 2, cp), jnp.float32)],
    )

    out_nhwc = pl.pallas_call(
        _resblock_kernel,
        out_shape=jax.ShapeDtypeStruct((n, h, w, cp), jnp.float32),
        grid_spec=grid_spec,
        compiler_params=pltpu.CompilerParams(
            # Batch axis is embarrassingly parallel -> shards across both
            # TensorCores on v7x; harmless on single-TC v5e/v6e.
            dimension_semantics=("parallel",),
            # Explicit scoped-VMEM budget (defaults are only 16/32 MiB);
            # 48 MiB is valid on every generation incl. v7x's 64 MiB VMEM.
            vmem_limit_bytes=48 * 1024 * 1024,
        ),
    )(x, w1k, b1k, w2k, b2k)

    return jnp.transpose(out_nhwc[..., :cout], (0, 3, 1, 2))      # back to NCHW


# ----- pure-JAX reference (mirrors the PyTorch module, NCHW) -----------------
def _reference(x, w1, b1, w2, b2):
    def inorm(v):
        m = v.mean(axis=(2, 3), keepdims=True)
        var = ((v - m) ** 2).mean(axis=(2, 3), keepdims=True)
        return (v - m) / jnp.sqrt(var + _EPS)

    def gelu(v):
        return 0.5 * v * (1.0 + jax.scipy.special.erf(v * _INV_SQRT2))

    def conv(v, wgt, b):
        o = lax.conv_general_dilated(v, wgt, (1, 1), ((1, 1), (1, 1)),
                                     dimension_numbers=("NCHW", "OIHW", "NCHW"))
        return o + b[None, :, None, None]

    residual = x
    out = conv(gelu(inorm(x)), w1, b1)
    out = conv(gelu(inorm(out)), w2, b2)
    return out + residual


if __name__ == "__main__":
    N, C, H, W = 2, 4, 16, 16
    key = jax.random.PRNGKey(0)
    kx, k1, k2, k3, k4 = jax.random.split(key, 5)

    x = jax.random.normal(kx, (N, C, H, W), jnp.float32)
    # deterministic synthetic parameters (Conv2d shapes: (out_ch, in_ch, 3, 3))
    w1 = 0.2 * jax.random.normal(k1, (C, C, 3, 3), jnp.float32)
    b1 = 0.1 * jax.random.normal(k2, (C,), jnp.float32)
    w2 = 0.2 * jax.random.normal(k3, (C, C, 3, 3), jnp.float32)
    b2 = 0.1 * jax.random.normal(k4, (C,), jnp.float32)

    out = resblock_forward(x, w1, b1, w2, b2)
    out = jax.block_until_ready(out)

    ref = jax.block_until_ready(_reference(x, w1, b1, w2, b2))
    assert out.shape == (N, C, H, W)
    assert jnp.allclose(out, ref, atol=1e-3, rtol=1e-3), (
        float(jnp.max(jnp.abs(out - ref))))

    print("KERNEL_OK")
</pallas_src>

<mosaic_0001>
module attributes {stable_mosaic.version = 11 : i64} {
  func.func @_resblock_kernel(%arg0: i32, %arg1: memref<1x16x16x128xf32, #tpu.memory_space<vmem>>, %arg2: memref<9x128x128xf32, #tpu.memory_space<vmem>>, %arg3: memref<1x128xf32, #tpu.memory_space<vmem>>, %arg4: memref<9x128x128xf32, #tpu.memory_space<vmem>>, %arg5: memref<1x128xf32, #tpu.memory_space<vmem>>, %arg6: memref<1x16x16x128xf32, #tpu.memory_space<vmem>>, %arg7: memref<18x18x128xf32, #tpu.memory_space<vmem>>) attributes {dimension_semantics = [#tpu.dimension_semantics<parallel>], iteration_bounds = array<i64: 2>, scalar_prefetch = 0 : i64, scratch_operands = 1 : i64, tpu.core_type = #tpu.core_type<tc>, window_params = [{transform_indices = @transform_0, window_bounds = array<i64: 1, 16, 16, 128>}, {pipeline_mode = #tpu.pipeline_mode<synchronous>, transform_indices = @transform_1, window_bounds = array<i64: 9, 128, 128>}, {pipeline_mode = #tpu.pipeline_mode<synchronous>, transform_indices = @transform_2, window_bounds = array<i64: 1, 128>}, {pipeline_mode = #tpu.pipeline_mode<synchronous>, transform_indices = @transform_3, window_bounds = array<i64: 9, 128, 128>}, {pipeline_mode = #tpu.pipeline_mode<synchronous>, transform_indices = @transform_4, window_bounds = array<i64: 1, 128>}, {transform_indices = @transform_5, window_bounds = array<i64: 1, 16, 16, 128>}]} {
    %cst = arith.constant 0.000000e+00 : f32
    %0 = vector.broadcast %cst : f32 to vector<1x18x128xf32>
    %c0 = arith.constant 0 : index
    %c0_0 = arith.constant 0 : index
    %c0_1 = arith.constant 0 : index
    %1 = vector.load %arg7[%c0, %c0_0, %c0_1] : memref<18x18x128xf32, #tpu.memory_space<vmem>>, vector<1x18x128xf32>
    tpu.vector_store %arg7[%c0, %c0_0, %c0_1], %0 {strides = array<i32>} : memref<18x18x128xf32, #tpu.memory_space<vmem>>, vector<1x18x128xf32>,
    %c17 = arith.constant 17 : index
    %c0_2 = arith.constant 0 : index
    %c0_3 = arith.constant 0 : index
    %2 = vector.load %arg7[%c17, %c0_2, %c0_3] : memref<18x18x128xf32, #tpu.memory_space<vmem>>, vector<1x18x128xf32>
    tpu.vector_store %arg7[%c17, %c0_2, %c0_3], %0 {strides = array<i32>} : memref<18x18x128xf32, #tpu.memory_space<vmem>>, vector<1x18x128xf32>,
    %cst_4 = arith.constant 0.000000e+00 : f32
    %3 = vector.broadcast %cst_4 : f32 to vector<18x1x128xf32>
    %c0_5 = arith.constant 0 : index
    %c0_6 = arith.constant 0 : index
    %c0_7 = arith.constant 0 : index
    %4 = vector.load %arg7[%c0_5, %c0_6, %c0_7] : memref<18x18x128xf32, #tpu.memory_space<vmem>>, vector<18x1x128xf32>
    tpu.vector_store %arg7[%c0_5, %c0_6, %c0_7], %3 {strides = array<i32>} : memref<18x18x128xf32, #tpu.memory_space<vmem>>, vector<18x1x128xf32>,
    %c0_8 = arith.constant 0 : index
    %c17_9 = arith.constant 17 : index
    %c0_10 = arith.constant 0 : index
    %5 = vector.load %arg7[%c0_8, %c17_9, %c0_10] : memref<18x18x128xf32, #tpu.memory_space<vmem>>, vector<18x1x128xf32>
    tpu.vector_store %arg7[%c0_8, %c17_9, %c0_10], %3 {strides = array<i32>} : memref<18x18x128xf32, #tpu.memory_space<vmem>>, vector<18x1x128xf32>,
    %c0_11 = arith.constant 0 : index
    %c0_12 = arith.constant 0 : index
    %c0_13 = arith.constant 0 : index
    %c0_14 = arith.constant 0 : index
    %6 = vector.load %arg1[%c0_11, %c0_12, %c0_13, %c0_14] : memref<1x16x16x128xf32, #tpu.memory_space<vmem>>, vector<1x16x16x128xf32>
    %7 = vector.shape_cast %6 : vector<1x16x16x128xf32> to vector<256x128xf32>
    %cst_15 = arith.constant dense<0.000000e+00> : vector<128xf32>
    %8 = vector.multi_reduction <add>, %7, %cst_15 [0] : vector<256x128xf32> to vector<128xf32>
    %9 = vector.shape_cast %8 : vector<128xf32> to vector<1x128xf32>
    %cst_16 = arith.constant 3.906250e-03 : f32
    %10 = vector.broadcast %cst_16 : f32 to vector<1x128xf32>
    %11 = arith.mulf %9, %10 : vector<1x128xf32>
    %12 = arith.mulf %7, %7 : vector<256x128xf32>
    %cst_17 = arith.constant dense<0.000000e+00> : vector<128xf32>
    %13 = vector.multi_reduction <add>, %12, %cst_17 [0] : vector<256x128xf32> to vector<128xf32>
    %14 = vector.shape_cast %13 : vector<128xf32> to vector<1x128xf32>
    %cst_18 = arith.constant 3.906250e-03 : f32
    %15 = vector.broadcast %cst_18 : f32 to vector<1x128xf32>
    %16 = arith.mulf %14, %15 : vector<1x128xf32>
    %17 = arith.mulf %11, %11 : vector<1x128xf32>
    %18 = arith.subf %16, %17 : vector<1x128xf32>
    %19 = vector.broadcast %11 : vector<1x128xf32> to vector<256x128xf32>
    %20 = arith.subf %7, %19 : vector<256x128xf32>
    %cst_19 = arith.constant 9.99999974E-6 : f32
    %21 = vector.broadcast %cst_19 : f32 to vector<1x128xf32>
    %22 = arith.addf %18, %21 : vector<1x128xf32>
    %23 = math.rsqrt %22 : vector<1x128xf32>
    %24 = vector.broadcast %23 : vector<1x128xf32> to vector<256x128xf32>
    %25 = arith.mulf %20, %24 : vector<256x128xf32>
    %cst_20 = arith.constant 0.707106769 : f32
    %26 = vector.broadcast %cst_20 : f32 to vector<256x128xf32>
    %27 = arith.mulf %25, %26 : vector<256x128xf32>
    %28 = math.absf %27 : vector<256x128xf32>
    %cst_21 = arith.constant 0.327591091 : f32
    %29 = vector.broadcast %cst_21 : f32 to vector<256x128xf32>
    %30 = arith.mulf %29, %28 : vector<256x128xf32>
    %cst_22 = arith.constant 1.000000e+00 : f32
    %31 = vector.broadcast %cst_22 : f32 to vector<256x128xf32>
    %32 = arith.addf %31, %30 : vector<256x128xf32>
    %33 = tpu.reciprocal %32 {approx = true} : vector<256x128xf32> -> vector<256x128xf32>
    %34 = arith.mulf %32, %33 : vector<256x128xf32>
    %cst_23 = arith.constant 2.000000e+00 : f32
    %35 = vector.broadcast %cst_23 : f32 to vector<256x128xf32>
    %36 = arith.subf %35, %34 : vector<256x128xf32>
    %37 = arith.mulf %33, %36 : vector<256x128xf32>
    %cst_24 = arith.constant 1.06140542 : f32
    %38 = vector.broadcast %cst_24 : f32 to vector<256x128xf32>
    %39 = arith.mulf %38, %37 : vector<256x128xf32>
    %cst_25 = arith.constant -1.45315206 : f32
    %40 = vector.broadcast %cst_25 : f32 to vector<256x128xf32>
    %41 = arith.addf %39, %40 : vector<256x128xf32>
    %42 = arith.mulf %41, %37 : vector<256x128xf32>
    %cst_26 = arith.constant 1.42141378 : f32
    %43 = vector.broadcast %cst_26 : f32 to vector<256x128xf32>
    %44 = arith.addf %42, %43 : vector<256x128xf32>
    %45 = arith.mulf %44, %37 : vector<256x128xf32>
    %cst_27 = arith.constant -0.284496725 : f32
    %46 = vector.broadcast %cst_27 : f32 to vector<256x128xf32>
    %47 = arith.addf %45, %46 : vector<256x128xf32>
    %48 = arith.mulf %47, %37 : vector<256x128xf32>
    %cst_28 = arith.constant 0.254829586 : f32
    %49 = vector.broadcast %cst_28 : f32 to vector<256x128xf32>
    %50 = arith.addf %48, %49 : vector<256x128xf32>
    %51 = arith.mulf %50, %37 : vector<256x128xf32>
    %cst_29 = arith.constant 0.000000e+00 : f32
    %52 = vector.broadcast %cst_29 : f32 to vector<256x128xf32>
    %53 = arith.subf %52, %28 : vector<256x128xf32>
    %54 = arith.mulf %53, %28 : vector<256x128xf32>
    %55 = math.exp %54 : vector<256x128xf32>
    %56 = arith.mulf %51, %55 : vector<256x128xf32>
    %cst_30 = arith.constant 1.000000e+00 : f32
    %57 = vector.broadcast %cst_30 : f32 to vector<256x128xf32>
    %58 = arith.subf %57, %56 : vector<256x128xf32>
    %cst_31 = arith.constant 0.000000e+00 : f32
    %59 = vector.broadcast %cst_31 : f32 to vector<256x128xf32>
    %60 = arith.cmpf oge, %27, %59 : vector<256x128xf32>
    %cst_32 = arith.constant 0.000000e+00 : f32
    %61 = vector.broadcast %cst_32 : f32 to vector<256x128xf32>
    %62 = arith.subf %61, %58 : vector<256x128xf32>
    %63 = arith.select %60, %58, %62 : vector<256x128xi1>, vector<256x128xf32>
    %cst_33 = arith.constant 5.000000e-01 : f32
    %64 = vector.broadcast %cst_33 : f32 to vector<256x128xf32>
    %65 = arith.mulf %64, %25 : vector<256x128xf32>
    %cst_34 = arith.constant 1.000000e+00 : f32
    %66 = vector.broadcast %cst_34 : f32 to vector<256x128xf32>
    %67 = arith.addf %66, %63 : vector<256x128xf32>
    %68 = arith.mulf %65, %67 : vector<256x128xf32>
    %69 = vector.shape_cast %68 : vector<256x128xf32> to vector<16x16x128xf32>
    %c1 = arith.constant 1 : index
    %c1_35 = arith.constant 1 : index
    %c0_36 = arith.constant 0 : index
    %70 = vector.load %arg7[%c1, %c1_35, %c0_36] : memref<18x18x128xf32, #tpu.memory_space<vmem>>, vector<16x16x128xf32>
    tpu.vector_store %arg7[%c1, %c1_35, %c0_36], %69 {strides = array<i32>} : memref<18x18x128xf32, #tpu.memory_space<vmem>>, vector<16x16x128xf32>,
    %cst_37 = arith.constant 0.000000e+00 : f32
    %71 = vector.broadcast %cst_37 : f32 to vector<256x128xf32>
    %c0_38 = arith.constant 0 : index
    %c0_39 = arith.constant 0 : index
    %c0_40 = arith.constant 0 : index
    %72 = vector.load %arg7[%c0_38, %c0_39, %c0_40] : memref<18x18x128xf32, #tpu.memory_space<vmem>>, vector<16x16x128xf32>
    %73 = vector.shape_cast %72 : vector<16x16x128xf32> to vector<256x128xf32>
    %c0_41 = arith.constant 0 : index
    %c0_42 = arith.constant 0 : index
    %c0_43 = arith.constant 0 : index
    %74 = vector.load %arg2[%c0_41, %c0_42, %c0_43] : memref<9x128x128xf32, #tpu.memory_space<vmem>>, vector<1x128x128xf32>
    %75 = vector.shape_cast %74 : vector<1x128x128xf32> to vector<128x128xf32>
    %cst_44 = arith.constant dense<0.000000e+00> : vector<256x128xf32>
    %76 = tpu.matmul %73, %75, %cst_44 {dimension_numbers = #tpu.dot_dimension_numbers<[1], [0], [0], [1], [0, 0, 1, 1], [], []>} : vector<256x128xf32>, vector<128x128xf32>, vector<256x128xf32> -> vector<256x128xf32>
    %77 = arith.addf %71, %76 : vector<256x128xf32>
    %c0_45 = arith.constant 0 : index
    %c1_46 = arith.constant 1 : index
    %c0_47 = arith.constant 0 : index
    %78 = vector.load %arg7[%c0_45, %c1_46, %c0_47] : memref<18x18x128xf32, #tpu.memory_space<vmem>>, vector<16x16x128xf32>
    %79 = vector.shape_cast %78 : vector<16x16x128xf32> to vector<256x128xf32>
    %c1_48 = arith.constant 1 : index
    %c0_49 = arith.constant 0 : index
    %c0_50 = arith.constant 0 : index
    %80 = vector.load %arg2[%c1_48, %c0_49, %c0_50] : memref<9x128x128xf32, #tpu.memory_space<vmem>>, vector<1x128x128xf32>
    %81 = vector.shape_cast %80 : vector<1x128x128xf32> to vector<128x128xf32>
    %cst_51 = arith.constant dense<0.000000e+00> : vector<256x128xf32>
    %82 = tpu.matmul %79, %81, %cst_51 {dimension_numbers = #tpu.dot_dimension_numbers<[1], [0], [0], [1], [0, 0, 1, 1], [], []>} : vector<256x128xf32>, vector<128x128xf32>, vector<256x128xf32> -> vector<256x128xf32>
    %83 = arith.addf %77, %82 : vector<256x128xf32>
    %c0_52 = arith.constant 0 : index
    %c2 = arith.constant 2 : index
    %c0_53 = arith.constant 0 : index
    %84 = vector.load %arg7[%c0_52, %c2, %c0_53] : memref<18x18x128xf32, #tpu.memory_space<vmem>>, vector<16x16x128xf32>
    %85 = vector.shape_cast %84 : vector<16x16x128xf32> to vector<256x128xf32>
    %c2_54 = arith.constant 2 : index
    %c0_55 = arith.constant 0 : index
    %c0_56 = arith.constant 0 : index
    %86 = vector.load %arg2[%c2_54, %c0_55, %c0_56] : memref<9x128x128xf32, #tpu.memory_space<vmem>>, vector<1x128x128xf32>
    %87 = vector.shape_cast %86 : vector<1x128x128xf32> to vector<128x128xf32>
    %cst_57 = arith.constant dense<0.000000e+00> : vector<256x128xf32>
    %88 = tpu.matmul %85, %87, %cst_57 {dimension_numbers = #tpu.dot_dimension_numbers<[1], [0], [0], [1], [0, 0, 1, 1], [], []>} : vector<256x128xf32>, vector<128x128xf32>, vector<256x128xf32> -> vector<256x128xf32>
    %89 = arith.addf %83, %88 : vector<256x128xf32>
    %c1_58 = arith.constant 1 : index
    %c0_59 = arith.constant 0 : index
    %c0_60 = arith.constant 0 : index
    %90 = vector.load %arg7[%c1_58, %c0_59, %c0_60] : memref<18x18x128xf32, #tpu.memory_space<vmem>>, vector<16x16x128xf32>
    %91 = vector.shape_cast %90 : vector<16x16x128xf32> to vector<256x128xf32>
    %c3 = arith.constant 3 : index
    %c0_61 = arith.constant 0 : index
    %c0_62 = arith.constant 0 : index
    %92 = vector.load %arg2[%c3, %c0_61, %c0_62] : memref<9x128x128xf32, #tpu.memory_space<vmem>>, vector<1x128x128xf32>
    %93 = vector.shape_cast %92 : vector<1x128x128xf32> to vector<128x128xf32>
    %cst_63 = arith.constant dense<0.000000e+00> : vector<256x128xf32>
    %94 = tpu.matmul %91, %93, %cst_63 {dimension_numbers = #tpu.dot_dimension_numbers<[1], [0], [0], [1], [0, 0, 1, 1], [], []>} : vector<256x128xf32>, vector<128x128xf32>, vector<256x128xf32> -> vector<256x128xf32>
    %95 = arith.addf %89, %94 : vector<256x128xf32>
    %c1_64 = arith.constant 1 : index
    %c1_65 = arith.constant 1 : index
    %c0_66 = arith.constant 0 : index
    %96 = vector.load %arg7[%c1_64, %c1_65, %c0_66] : memref<18x18x128xf32, #tpu.memory_space<vmem>>, vector<16x16x128xf32>
    %97 = vector.shape_cast %96 : vector<16x16x128xf32> to vector<256x128xf32>
    %c4 = arith.constant 4 : index
    %c0_67 = arith.constant 0 : index
    %c0_68 = arith.constant 0 : index
    %98 = vector.load %arg2[%c4, %c0_67, %c0_68] : memref<9x128x128xf32, #tpu.memory_space<vmem>>, vector<1x128x128xf32>
    %99 = vector.shape_cast %98 : vector<1x128x128xf32> to vector<128x128xf32>
    %cst_69 = arith.constant dense<0.000000e+00> : vector<256x128xf32>
    %100 = tpu.matmul %97, %99, %cst_69 {dimension_numbers = #tpu.dot_dimension_numbers<[1], [0], [0], [1], [0, 0, 1, 1], [], []>} : vector<256x128xf32>, vector<128x128xf32>, vector<256x128xf32> -> vector<256x128xf32>
    %101 = arith.addf %95, %100 : vector<256x128xf32>
    %c1_70 = arith.constant 1 : index
    %c2_71 = arith.constant 2 : index
    %c0_72 = arith.constant 0 : index
    %102 = vector.load %arg7[%c1_70, %c2_71, %c0_72] : memref<18x18x128xf32, #tpu.memory_space<vmem>>, vector<16x16x128xf32>
    %103 = vector.shape_cast %102 : vector<16x16x128xf32> to vector<256x128xf32>
    %c5 = arith.constant 5 : index
    %c0_73 = arith.constant 0 : index
    %c0_74 = arith.constant 0 : index
    %104 = vector.load %arg2[%c5, %c0_73, %c0_74] : memref<9x128x128xf32, #tpu.memory_space<vmem>>, vector<1x128x128xf32>
    %105 = vector.shape_cast %104 : vector<1x128x128xf32> to vector<128x128xf32>
    %cst_75 = arith.constant dense<0.000000e+00> : vector<256x128xf32>
    %106 = tpu.matmul %103, %105, %cst_75 {dimension_numbers = #tpu.dot_dimension_numbers<[1], [0], [0], [1], [0, 0, 1, 1], [], []>} : vector<256x128xf32>, vector<128x128xf32>, vector<256x128xf32> -> vector<256x128xf32>
    %107 = arith.addf %101, %106 : vector<256x128xf32>
    %c2_76 = arith.constant 2 : index
    %c0_77 = arith.constant 0 : index
    %c0_78 = arith.constant 0 : index
    %108 = vector.load %arg7[%c2_76, %c0_77, %c0_78] : memref<18x18x128xf32, #tpu.memory_space<vmem>>, vector<16x16x128xf32>
    %109 = vector.shape_cast %108 : vector<16x16x128xf32> to vector<256x128xf32>
    %c6 = arith.constant 6 : index
    %c0_79 = arith.constant 0 : index
    %c0_80 = arith.constant 0 : index
    %110 = vector.load %arg2[%c6, %c0_79, %c0_80] : memref<9x128x128xf32, #tpu.memory_space<vmem>>, vector<1x128x128xf32>
    %111 = vector.shape_cast %110 : vector<1x128x128xf32> to vector<128x128xf32>
    %cst_81 = arith.constant dense<0.000000e+00> : vector<256x128xf32>
    %112 = tpu.matmul %109, %111, %cst_81 {dimension_numbers = #tpu.dot_dimension_numbers<[1], [0], [0], [1], [0, 0, 1, 1], [], []>} : vector<256x128xf32>, vector<128x128xf32>, vector<256x128xf32> -> vector<256x128xf32>
    %113 = arith.addf %107, %112 : vector<256x128xf32>
    %c2_82 = arith.constant 2 : index
    %c1_83 = arith.constant 1 : index
    %c0_84 = arith.constant 0 : index
    %114 = vector.load %arg7[%c2_82, %c1_83, %c0_84] : memref<18x18x128xf32, #tpu.memory_space<vmem>>, vector<16x16x128xf32>
    %115 = vector.shape_cast %114 : vector<16x16x128xf32> to vector<256x128xf32>
    %c7 = arith.constant 7 : index
    %c0_85 = arith.constant 0 : index
    %c0_86 = arith.constant 0 : index
    %116 = vector.load %arg2[%c7, %c0_85, %c0_86] : memref<9x128x128xf32, #tpu.memory_space<vmem>>, vector<1x128x128xf32>
    %117 = vector.shape_cast %116 : vector<1x128x128xf32> to vector<128x128xf32>
    %cst_87 = arith.constant dense<0.000000e+00> : vector<256x128xf32>
    %118 = tpu.matmul %115, %117, %cst_87 {dimension_numbers = #tpu.dot_dimension_numbers<[1], [0], [0], [1], [0, 0, 1, 1], [], []>} : vector<256x128xf32>, vector<128x128xf32>, vector<256x128xf32> -> vector<256x128xf32>
    %119 = arith.addf %113, %118 : vector<256x128xf32>
    %c2_88 = arith.constant 2 : index
    %c2_89 = arith.constant 2 : index
    %c0_90 = arith.constant 0 : index
    %120 = vector.load %arg7[%c2_88, %c2_89, %c0_90] : memref<18x18x128xf32, #tpu.memory_space<vmem>>, vector<16x16x128xf32>
    %121 = vector.shape_cast %120 : vector<16x16x128xf32> to vector<256x128xf32>
    %c8 = arith.constant 8 : index
    %c0_91 = arith.constant 0 : index
    %c0_92 = arith.constant 0 : index
    %122 = vector.load %arg2[%c8, %c0_91, %c0_92] : memref<9x128x128xf32, #tpu.memory_space<vmem>>, vector<1x128x128xf32>
    %123 = vector.shape_cast %122 : vector<1x128x128xf32> to vector<128x128xf32>
    %cst_93 = arith.constant dense<0.000000e+00> : vector<256x128xf32>
    %124 = tpu.matmul %121, %123, %cst_93 {dimension_numbers = #tpu.dot_dimension_numbers<[1], [0], [0], [1], [0, 0, 1, 1], [], []>} : vector<256x128xf32>, vector<128x128xf32>, vector<256x128xf32> -> vector<256x128xf32>
    %125 = arith.addf %119, %124 : vector<256x128xf32>
    %c0_94 = arith.constant 0 : index
    %c0_95 = arith.constant 0 : index
    %126 = vector.load %arg3[%c0_94, %c0_95] : memref<1x128xf32, #tpu.memory_space<vmem>>, vector<1x128xf32>
    %127 = vector.broadcast %126 : vector<1x128xf32> to vector<256x128xf32>
    %128 = arith.addf %125, %127 : vector<256x128xf32>
    %cst_96 = arith.constant dense<0.000000e+00> : vector<128xf32>
    %129 = vector.multi_reduction <add>, %128, %cst_96 [0] : vector<256x128xf32> to vector<128xf32>
    %130 = vector.shape_cast %129 : vector<128xf32> to vector<1x128xf32>
    %cst_97 = arith.constant 3.906250e-03 : f32
    %131 = vector.broadcast %cst_97 : f32 to vector<1x128xf32>
    %132 = arith.mulf %130, %131 : vector<1x128xf32>
    %133 = arith.mulf %128, %128 : vector<256x128xf32>
    %cst_98 = arith.constant dense<0.000000e+00> : vector<128xf32>
    %134 = vector.multi_reduction <add>, %133, %cst_98 [0] : vector<256x128xf32> to vector<128xf32>
    %135 = vector.shape_cast %134 : vector<128xf32> to vector<1x128xf32>
    %cst_99 = arith.constant 3.906250e-03 : f32
    %136 = vector.broadcast %cst_99 : f32 to vector<1x128xf32>
    %137 = arith.mulf %135, %136 : vector<1x128xf32>
    %138 = arith.mulf %132, %132 : vector<1x128xf32>
    %139 = arith.subf %137, %138 : vector<1x128xf32>
    %140 = vector.broadcast %132 : vector<1x128xf32> to vector<256x128xf32>
    %141 = arith.subf %128, %140 : vector<256x128xf32>
    %cst_100 = arith.constant 9.99999974E-6 : f32
    %142 = vector.broadcast %cst_100 : f32 to vector<1x128xf32>
    %143 = arith.addf %139, %142 : vector<1x128xf32>
    %144 = math.rsqrt %143 : vector<1x128xf32>
    %145 = vector.broadcast %144 : vector<1x128xf32> to vector<256x128xf32>
    %146 = arith.mulf %141, %145 : vector<256x128xf32>
    %cst_101 = arith.constant 0.707106769 : f32
    %147 = vector.broadcast %cst_101 : f32 to vector<256x128xf32>
    %148 = arith.mulf %146, %147 : vector<256x128xf32>
    %149 = math.absf %148 : vector<256x128xf32>
    %cst_102 = arith.constant 0.327591091 : f32
    %150 = vector.broadcast %cst_102 : f32 to vector<256x128xf32>
    %151 = arith.mulf %150, %149 : vector<256x128xf32>
    %cst_103 = arith.constant 1.000000e+00 : f32
    %152 = vector.broadcast %cst_103 : f32 to vector<256x128xf32>
    %153 = arith.addf %152, %151 : vector<256x128xf32>
    %154 = tpu.reciprocal %153 {approx = true} : vector<256x128xf32> -> vector<256x128xf32>
    %155 = arith.mulf %153, %154 : vector<256x128xf32>
    %cst_104 = arith.constant 2.000000e+00 : f32
    %156 = vector.broadcast %cst_104 : f32 to vector<256x128xf32>
    %157 = arith.subf %156, %155 : vector<256x128xf32>
    %158 = arith.mulf %154, %157 : vector<256x128xf32>
    %cst_105 = arith.constant 1.06140542 : f32
    %159 = vector.broadcast %cst_105 : f32 to vector<256x128xf32>
    %160 = arith.mulf %159, %158 : vector<256x128xf32>
    %cst_106 = arith.constant -1.45315206 : f32
    %161 = vector.broadcast %cst_106 : f32 to vector<256x128xf32>
    %162 = arith.addf %160, %161 : vector<256x128xf32>
    %163 = arith.mulf %162, %158 : vector<256x128xf32>
    %cst_107 = arith.constant 1.42141378 : f32
    %164 = vector.broadcast %cst_107 : f32 to vector<256x128xf32>
    %165 = arith.addf %163, %164 : vector<256x128xf32>
    %166 = arith.mulf %165, %158 : vector<256x128xf32>
    %cst_108 = arith.constant -0.284496725 : f32
    %167 = vector.broadcast %cst_108 : f32 to vector<256x128xf32>
    %168 = arith.addf %166, %167 : vector<256x128xf32>
    %169 = arith.mulf %168, %158 : vector<256x128xf32>
    %cst_109 = arith.constant 0.254829586 : f32
    %170 = vector.broadcast %cst_109 : f32 to vector<256x128xf32>
    %171 = arith.addf %169, %170 : vector<256x128xf32>
    %172 = arith.mulf %171, %158 : vector<256x128xf32>
    %cst_110 = arith.constant 0.000000e+00 : f32
    %173 = vector.broadcast %cst_110 : f32 to vector<256x128xf32>
    %174 = arith.subf %173, %149 : vector<256x128xf32>
    %175 = arith.mulf %174, %149 : vector<256x128xf32>
    %176 = math.exp %175 : vector<256x128xf32>
    %177 = arith.mulf %172, %176 : vector<256x128xf32>
    %cst_111 = arith.constant 1.000000e+00 : f32
    %178 = vector.broadcast %cst_111 : f32 to vector<256x128xf32>
    %179 = arith.subf %178, %177 : vector<256x128xf32>
    %cst_112 = arith.constant 0.000000e+00 : f32
    %180 = vector.broadcast %cst_112 : f32 to vector<256x128xf32>
    %181 = arith.cmpf oge, %148, %180 : vector<256x128xf32>
    %cst_113 = arith.constant 0.000000e+00 : f32
    %182 = vector.broadcast %cst_113 : f32 to vector<256x128xf32>
    %183 = arith.subf %182, %179 : vector<256x128xf32>
    %184 = arith.select %181, %179, %183 : vector<256x128xi1>, vector<256x128xf32>
    %cst_114 = arith.constant 5.000000e-01 : f32
    %185 = vector.broadcast %cst_114 : f32 to vector<256x128xf32>
    %186 = arith.mulf %185, %146 : vector<256x128xf32>
    %cst_115 = arith.constant 1.000000e+00 : f32
    %187 = vector.broadcast %cst_115 : f32 to vector<256x128xf32>
    %188 = arith.addf %187, %184 : vector<256x128xf32>
    %189 = arith.mulf %186, %188 : vector<256x128xf32>
    %190 = vector.shape_cast %189 : vector<256x128xf32> to vector<16x16x128xf32>
    %c1_116 = arith.constant 1 : index
    %c1_117 = arith.constant 1 : index
    %c0_118 = arith.constant 0 : index
    %191 = vector.load %arg7[%c1_116, %c1_117, %c0_118] : memref<18x18x128xf32, #tpu.memory_space<vmem>>, vector<16x16x128xf32>
    tpu.vector_store %arg7[%c1_116, %c1_117, %c0_118], %190 {strides = array<i32>} : memref<18x18x128xf32, #tpu.memory_space<vmem>>, vector<16x16x128xf32>,
    %cst_119 = arith.constant 0.000000e+00 : f32
    %192 = vector.broadcast %cst_119 : f32 to vector<256x128xf32>
    %c0_120 = arith.constant 0 : index
    %c0_121 = arith.constant 0 : index
    %c0_122 = arith.constant 0 : index
    %193 = vector.load %arg7[%c0_120, %c0_121, %c0_122] : memref<18x18x128xf32, #tpu.memory_space<vmem>>, vector<16x16x128xf32>
    %194 = vector.shape_cast %193 : vector<16x16x128xf32> to vector<256x128xf32>
    %c0_123 = arith.constant 0 : index
    %c0_124 = arith.constant 0 : index
    %c0_125 = arith.constant 0 : index
    %195 = vector.load %arg4[%c0_123, %c0_124, %c0_125] : memref<9x128x128xf32, #tpu.memory_space<vmem>>, vector<1x128x128xf32>
    %196 = vector.shape_cast %195 : vector<1x128x128xf32> to vector<128x128xf32>
    %cst_126 = arith.constant dense<0.000000e+00> : vector<256x128xf32>
    %197 = tpu.matmul %194, %196, %cst_126 {dimension_numbers = #tpu.dot_dimension_numbers<[1], [0], [0], [1], [0, 0, 1, 1], [], []>} : vector<256x128xf32>, vector<128x128xf32>, vector<256x128xf32> -> vector<256x128xf32>
    %198 = arith.addf %192, %197 : vector<256x128xf32>
    %c0_127 = arith.constant 0 : index
    %c1_128 = arith.constant 1 : index
    %c0_129 = arith.constant 0 : index
    %199 = vector.load %arg7[%c0_127, %c1_128, %c0_129] : memref<18x18x128xf32, #tpu.memory_space<vmem>>, vector<16x16x128xf32>
    %200 = vector.shape_cast %199 : vector<16x16x128xf32> to vector<256x128xf32>
    %c1_130 = arith.constant 1 : index
    %c0_131 = arith.constant 0 : index
    %c0_132 = arith.constant 0 : index
    %201 = vector.load %arg4[%c1_130, %c0_131, %c0_132] : memref<9x128x128xf32, #tpu.memory_space<vmem>>, vector<1x128x128xf32>
    %202 = vector.shape_cast %201 : vector<1x128x128xf32> to vector<128x128xf32>
    %cst_133 = arith.constant dense<0.000000e+00> : vector<256x128xf32>
    %203 = tpu.matmul %200, %202, %cst_133 {dimension_numbers = #tpu.dot_dimension_numbers<[1], [0], [0], [1], [0, 0, 1, 1], [], []>} : vector<256x128xf32>, vector<128x128xf32>, vector<256x128xf32> -> vector<256x128xf32>
    %204 = arith.addf %198, %203 : vector<256x128xf32>
    %c0_134 = arith.constant 0 : index
    %c2_135 = arith.constant 2 : index
    %c0_136 = arith.constant 0 : index
    %205 = vector.load %arg7[%c0_134, %c2_135, %c0_136] : memref<18x18x128xf32, #tpu.memory_space<vmem>>, vector<16x16x128xf32>
    %206 = vector.shape_cast %205 : vector<16x16x128xf32> to vector<256x128xf32>
    %c2_137 = arith.constant 2 : index
    %c0_138 = arith.constant 0 : index
    %c0_139 = arith.constant 0 : index
    %207 = vector.load %arg4[%c2_137, %c0_138, %c0_139] : memref<9x128x128xf32, #tpu.memory_space<vmem>>, vector<1x128x128xf32>
    %208 = vector.shape_cast %207 : vector<1x128x128xf32> to vector<128x128xf32>
    %cst_140 = arith.constant dense<0.000000e+00> : vector<256x128xf32>
    %209 = tpu.matmul %206, %208, %cst_140 {dimension_numbers = #tpu.dot_dimension_numbers<[1], [0], [0], [1], [0, 0, 1, 1], [], []>} : vector<256x128xf32>, vector<128x128xf32>, vector<256x128xf32> -> vector<256x128xf32>
    %210 = arith.addf %204, %209 : vector<256x128xf32>
    %c1_141 = arith.constant 1 : index
    %c0_142 = arith.constant 0 : index
    %c0_143 = arith.constant 0 : index
    %211 = vector.load %arg7[%c1_141, %c0_142, %c0_143] : memref<18x18x128xf32, #tpu.memory_space<vmem>>, vector<16x16x128xf32>
    %212 = vector.shape_cast %211 : vector<16x16x128xf32> to vector<256x128xf32>
    %c3_144 = arith.constant 3 : index
    %c0_145 = arith.constant 0 : index
    %c0_146 = arith.constant 0 : index
    %213 = vector.load %arg4[%c3_144, %c0_145, %c0_146] : memref<9x128x128xf32, #tpu.memory_space<vmem>>, vector<1x128x128xf32>
    %214 = vector.shape_cast %213 : vector<1x128x128xf32> to vector<128x128xf32>
    %cst_147 = arith.constant dense<0.000000e+00> : vector<256x128xf32>
    %215 = tpu.matmul %212, %214, %cst_147 {dimension_numbers = #tpu.dot_dimension_numbers<[1], [0], [0], [1], [0, 0, 1, 1], [], []>} : vector<256x128xf32>, vector<128x128xf32>, vector<256x128xf32> -> vector<256x128xf32>
    %216 = arith.addf %210, %215 : vector<256x128xf32>
    %c1_148 = arith.constant 1 : index
    %c1_149 = arith.constant 1 : index
    %c0_150 = arith.constant 0 : index
    %217 = vector.load %arg7[%c1_148, %c1_149, %c0_150] : memref<18x18x128xf32, #tpu.memory_space<vmem>>, vector<16x16x128xf32>
    %218 = vector.shape_cast %217 : vector<16x16x128xf32> to vector<256x128xf32>
    %c4_151 = arith.constant 4 : index
    %c0_152 = arith.constant 0 : index
    %c0_153 = arith.constant 0 : index
    %219 = vector.load %arg4[%c4_151, %c0_152, %c0_153] : memref<9x128x128xf32, #tpu.memory_space<vmem>>, vector<1x128x128xf32>
    %220 = vector.shape_cast %219 : vector<1x128x128xf32> to vector<128x128xf32>
    %cst_154 = arith.constant dense<0.000000e+00> : vector<256x128xf32>
    %221 = tpu.matmul %218, %220, %cst_154 {dimension_numbers = #tpu.dot_dimension_numbers<[1], [0], [0], [1], [0, 0, 1, 1], [], []>} : vector<256x128xf32>, vector<128x128xf32>, vector<256x128xf32> -> vector<256x128xf32>
    %222 = arith.addf %216, %221 : vector<256x128xf32>
    %c1_155 = arith.constant 1 : index
    %c2_156 = arith.constant 2 : index
    %c0_157 = arith.constant 0 : index
    %223 = vector.load %arg7[%c1_155, %c2_156, %c0_157] : memref<18x18x128xf32, #tpu.memory_space<vmem>>, vector<16x16x128xf32>
    %224 = vector.shape_cast %223 : vector<16x16x128xf32> to vector<256x128xf32>
    %c5_158 = arith.constant 5 : index
    %c0_159 = arith.constant 0 : index
    %c0_160 = arith.constant 0 : index
    %225 = vector.load %arg4[%c5_158, %c0_159, %c0_160] : memref<9x128x128xf32, #tpu.memory_space<vmem>>, vector<1x128x128xf32>
    %226 = vector.shape_cast %225 : vector<1x128x128xf32> to vector<128x128xf32>
    %cst_161 = arith.constant dense<0.000000e+00> : vector<256x128xf32>
    %227 = tpu.matmul %224, %226, %cst_161 {dimension_numbers = #tpu.dot_dimension_numbers<[1], [0], [0], [1], [0, 0, 1, 1], [], []>} : vector<256x128xf32>, vector<128x128xf32>, vector<256x128xf32> -> vector<256x128xf32>
    %228 = arith.addf %222, %227 : vector<256x128xf32>
    %c2_162 = arith.constant 2 : index
    %c0_163 = arith.constant 0 : index
    %c0_164 = arith.constant 0 : index
    %229 = vector.load %arg7[%c2_162, %c0_163, %c0_164] : memref<18x18x128xf32, #tpu.memory_space<vmem>>, vector<16x16x128xf32>
    %230 = vector.shape_cast %229 : vector<16x16x128xf32> to vector<256x128xf32>
    %c6_165 = arith.constant 6 : index
    %c0_166 = arith.constant 0 : index
    %c0_167 = arith.constant 0 : index
    %231 = vector.load %arg4[%c6_165, %c0_166, %c0_167] : memref<9x128x128xf32, #tpu.memory_space<vmem>>, vector<1x128x128xf32>
    %232 = vector.shape_cast %231 : vector<1x128x128xf32> to vector<128x128xf32>
    %cst_168 = arith.constant dense<0.000000e+00> : vector<256x128xf32>
    %233 = tpu.matmul %230, %232, %cst_168 {dimension_numbers = #tpu.dot_dimension_numbers<[1], [0], [0], [1], [0, 0, 1, 1], [], []>} : vector<256x128xf32>, vector<128x128xf32>, vector<256x128xf32> -> vector<256x128xf32>
    %234 = arith.addf %228, %233 : vector<256x128xf32>
    %c2_169 = arith.constant 2 : index
    %c1_170 = arith.constant 1 : index
    %c0_171 = arith.constant 0 : index
    %235 = vector.load %arg7[%c2_169, %c1_170, %c0_171] : memref<18x18x128xf32, #tpu.memory_space<vmem>>, vector<16x16x128xf32>
    %236 = vector.shape_cast %235 : vector<16x16x128xf32> to vector<256x128xf32>
    %c7_172 = arith.constant 7 : index
    %c0_173 = arith.constant 0 : index
    %c0_174 = arith.constant 0 : index
    %237 = vector.load %arg4[%c7_172, %c0_173, %c0_174] : memref<9x128x128xf32, #tpu.memory_space<vmem>>, vector<1x128x128xf32>
    %238 = vector.shape_cast %237 : vector<1x128x128xf32> to vector<128x128xf32>
    %cst_175 = arith.constant dense<0.000000e+00> : vector<256x128xf32>
    %239 = tpu.matmul %236, %238, %cst_175 {dimension_numbers = #tpu.dot_dimension_numbers<[1], [0], [0], [1], [0, 0, 1, 1], [], []>} : vector<256x128xf32>, vector<128x128xf32>, vector<256x128xf32> -> vector<256x128xf32>
    %240 = arith.addf %234, %239 : vector<256x128xf32>
    %c2_176 = arith.constant 2 : index
    %c2_177 = arith.constant 2 : index
    %c0_178 = arith.constant 0 : index
    %241 = vector.load %arg7[%c2_176, %c2_177, %c0_178] : memref<18x18x128xf32, #tpu.memory_space<vmem>>, vector<16x16x128xf32>
    %242 = vector.shape_cast %241 : vector<16x16x128xf32> to vector<256x128xf32>
    %c8_179 = arith.constant 8 : index
    %c0_180 = arith.constant 0 : index
    %c0_181 = arith.constant 0 : index
    %243 = vector.load %arg4[%c8_179, %c0_180, %c0_181] : memref<9x128x128xf32, #tpu.memory_space<vmem>>, vector<1x128x128xf32>
    %244 = vector.shape_cast %243 : vector<1x128x128xf32> to vector<128x128xf32>
    %cst_182 = arith.constant dense<0.000000e+00> : vector<256x128xf32>
    %245 = tpu.matmul %242, %244, %cst_182 {dimension_numbers = #tpu.dot_dimension_numbers<[1], [0], [0], [1], [0, 0, 1, 1], [], []>} : vector<256x128xf32>, vector<128x128xf32>, vector<256x128xf32> -> vector<256x128xf32>
    %246 = arith.addf %240, %245 : vector<256x128xf32>
    %c0_183 = arith.constant 0 : index
    %c0_184 = arith.constant 0 : index
    %247 = vector.load %arg5[%c0_183, %c0_184] : memref<1x128xf32, #tpu.memory_space<vmem>>, vector<1x128xf32>
    %248 = vector.broadcast %247 : vector<1x128xf32> to vector<256x128xf32>
    %249 = arith.addf %246, %248 : vector<256x128xf32>
    %c0_185 = arith.constant 0 : index
    %c0_186 = arith.constant 0 : index
    %c0_187 = arith.constant 0 : index
    %c0_188 = arith.constant 0 : index
    %250 = vector.load %arg1[%c0_185, %c0_186, %c0_187, %c0_188] : memref<1x16x16x128xf32, #tpu.memory_space<vmem>>, vector<1x16x16x128xf32>
    %251 = vector.shape_cast %250 : vector<1x16x16x128xf32> to vector<256x128xf32>
    %252 = arith.addf %249, %251 : vector<256x128xf32>
    %253 = vector.shape_cast %252 : vector<256x128xf32> to vector<1x16x16x128xf32>
    %c0_189 = arith.constant 0 : index
    %c0_190 = arith.constant 0 : index
    %c0_191 = arith.constant 0 : index
    %c0_192 = arith.constant 0 : index
    %254 = vector.load %arg6[%c0_189, %c0_190, %c0_191, %c0_192] : memref<1x16x16x128xf32, #tpu.memory_space<vmem>>, vector<1x16x16x128xf32>
    tpu.vector_store %arg6[%c0_189, %c0_190, %c0_191, %c0_192], %253 {strides = array<i32>} : memref<1x16x16x128xf32, #tpu.memory_space<vmem>>, vector<1x16x16x128xf32>,
    return
  }
  func.func @transform_0(%arg0: i32) -> (i32, i32, i32, i32) {
    %c0_i32 = arith.constant 0 : i32
    %c0_i32_0 = arith.constant 0 : i32
    %c0_i32_1 = arith.constant 0 : i32
    %c0_i32_2 = arith.constant 0 : i32
    return %arg0, %c0_i32, %c0_i32_0, %c0_i32_1 : i32, i32, i32, i32
  }
  func.func @transform_1(%arg0: i32) -> (i32, i32, i32) {
    %c0_i32 = arith.constant 0 : i32
    %c0_i32_0 = arith.constant 0 : i32
    %c0_i32_1 = arith.constant 0 : i32
    %c0_i32_2 = arith.constant 0 : i32
    return %c0_i32, %c0_i32_0, %c0_i32_1 : i32, i32, i32
  }
  func.func @transform_2(%arg0: i32) -> (i32, i32) {
    %c0_i32 = arith.constant 0 : i32
    %c0_i32_0 = arith.constant 0 : i32
    %c0_i32_1 = arith.constant 0 : i32
    return %c0_i32, %c0_i32_0 : i32, i32
  }
  func.func @transform_3(%arg0: i32) -> (i32, i32, i32) {
    %c0_i32 = arith.constant 0 : i32
    %c0_i32_0 = arith.constant 0 : i32
    %c0_i32_1 = arith.constant 0 : i32
    %c0_i32_2 = arith.constant 0 : i32
    return %c0_i32, %c0_i32_0, %c0_i32_1 : i32, i32, i32
  }
  func.func @transform_4(%arg0: i32) -> (i32, i32) {
    %c0_i32 = arith.constant 0 : i32
    %c0_i32_0 = arith.constant 0 : i32
    %c0_i32_1 = arith.constant 0 : i32
    return %c0_i32, %c0_i32_0 : i32, i32
  }
  func.func @transform_5(%arg0: i32) -> (i32, i32, i32, i32) {
    %c0_i32 = arith.constant 0 : i32
    %c0_i32_0 = arith.constant 0 : i32
    %c0_i32_1 = arith.constant 0 : i32
    %c0_i32_2 = arith.constant 0 : i32
    return %arg0, %c0_i32, %c0_i32_0, %c0_i32_1 : i32, i32, i32, i32
  }
}

</mosaic_0001>

<bundles_post_ra>
// kernel: tpu_custom_call.1
= control target key start
LH: loop header
LB: loop body
LE: loop exit
PB: predicated region body
PF: predicated region fallthrough
CT: control target
= control target key end

     0   :  { %10 = vsyncpa [#allocation4], 0  ;;  %s16081_s0 = inlined_call_operand.hbm [shape: f32[2,16,16,128], index: 0, kind: input, shape index: {}]   ;;  %s16082_s1 = inlined_call_operand.hbm [shape: f32[9,128,128], index: 1, kind: input, shape index: {}]   ;;  %s16083_s2 = inlined_call_operand.vmem [shape: f32[1,128], index: 2, kind: input, shape index: {}]   ;;  %s16084_s3 = inlined_call_operand.hbm [shape: f32[9,128,128], index: 3, kind: input, shape index: {}]   ;;  %s16085_s4 = inlined_call_operand.vmem [shape: f32[1,128], index: 4, kind: input, shape index: {}]   ;;  %s16086_s5 = inlined_call_operand.hbm [shape: f32[2,16,16,128], index: 5, kind: output, shape index: {}]  }
   0x1   :  { %12 = vsyncpa [#allocation4 + $0x1], 0 }
   0x2   :  { %13 = vsyncpa [#allocation7], 0 }
   0x3   :  { %14 = vsyncpa [#allocation5], 0 }
   0x4   :  { %16 = vsyncpa [#allocation5 + $0x1], 0  ;;  %s12240_s18 = smov 0   ;;  %s12242_s19 = smov 0  }
   0x5   :  { %s12244_s20 = smov 0   ;;  %s12246_s21 = smov 0  }
   0x6 LB: > { %s12261_s22 = sadd.s32 4294967295, %s12199_s21   ;;  %s8279_s23 = sadd.s32 4294967294, %s12199_s21   ;;  %s12199_s21 = sphi %s12246_s21, %s16935_s21   ;;  %s12195_s20 = sphi %s12244_s20, %s16934_s20   ;;  %s12191_s19 = sphi %s12242_s19, %s16933_s19   ;;  %s12187_s18 = sphi %s12240_s18, %s16932_s18  }
   0x7   : > { %p42_p0 = scmp.ne.s32.totalorder %s12191_s19, %s12187_s18  ;;  %p16087_p1 = scmp.eq.s32.totalorder %s12261_s22, 0 }
   0x8   : > { %p156_p3 = scmp.eq.s32.totalorder %s8279_s23, 1  ;;  %p8280_p5 = scmp.ge.s32.totalorder %s12199_s21, 1 }
   0x9   : > { %p12270_p4 = por %p16087_p1, %p42_p0  ;;  %p163_p7 = scmp.lt.s32.totalorder %s12199_s21, 3 }
   0xa   : > { %p12275_p6 = por %p156_p3, %p42_p0  ;;  %s12201_s27 = smov [#allocation6]  }
   0xb   : > { %s16357_s24 = scalar_select %p12270_p4, 1, 0 }
   0xc   : > { %s16358_s25 = scalar_select %p12275_p6, 1, 0 }
   0xd   : > { %p12280_p8 = pnand %p8280_p5, %p163_p7  ;;  %s175_s28 = sshll.u32 %s12201_s27, 4  ;;  %s12284_s28 = int_to_ptr.vmem [resolvable:$true] %s175_s28 }
   0xe   : > { %s12202_s30 = smov [#allocation8]   ;;  %s12043_s9 = scalar_lea.hbm %s16082_s1, 18432 }
   0xf   : > { %p11705_p9 = pneg %p12280_p8  ;;  %s191_s6 = sshll.u32 %s12202_s30, 4  ;;  %s12295_s6 = int_to_ptr.vmem [resolvable:$true] %s191_s6 }
  0x10   : > { %p12044_p12 = scmp.ne.s32.totalorder %s16082_s1, %s12043_s9  ;;  %p12050_p5 = scmp.lt.u32.totalorder %s12043_s9, %s16082_s1 }
  0x11   : > { %p12291_p11 = pnand %p11705_p9, %p16087_p1 }
  0x13   : > { %p12045_p13 = pneg %p12291_p11 }
  0x15   : > { %p12046_p0 = pnand %p12045_p13, %p12044_p12 }
  0x17   : > { %p12047_p3 = pneg %p12046_p0 }
  0x19   : > { %p12052_p7 = pnand %p12050_p5, %p12047_p3 }
  0x1b   : > { %12055 = shalt.err (!%p12052_p7)
}
  0x1c   : > { %s12056_s14 = scalar_lea.vmem %s12284_s28, 18432  ;;  %p12064_p2 = scmp.lt.s32.totalorder %s12284_s28, %s12284_s28 }
  0x1d   : > { %p12057_p9 = scmp.ne.s32.totalorder %s12284_s28, %s12056_s14  ;;  %p12065_p12 = scmp.lt.s32.totalorder %s12056_s14, %s12056_s14 }
  0x1f   : > { %p12059_p10 = pnand %p12057_p9, %p12045_p13  ;;  %p12066_p0 = por %p12065_p12, %p12064_p2 }
  0x21   : > { %p12060_p1 = pneg %p12059_p10 }
  0x23   : > { %p12067_p6 = pnand %p12066_p0, %p12060_p1 }
  0x25   : > { %12070 = shalt.err (!%p12067_p6)
}
  0x26   : > { %s12203_s15 = smov 128   ;;  %s12204_s16 = smov 8  }
  0x27   : > { %11708 = dma.hbm_to_vmem [thread:$0]  (!%p12291_p11), %s16082_s1, 18432, %s12284_s28, [#allocation7], %s12203_s15, %s12203_s15, %s12204_s16  }
  0x28   : > { %s12071_s7 = scalar_lea.hbm %s16084_s3, 18432 }
  0x29   : > { %p12072_p1 = scmp.ne.s32.totalorder %s16084_s3, %s12071_s7  ;;  %p12078_p10 = scmp.lt.u32.totalorder %s12071_s7, %s16084_s3 }
  0x2b   : > { %p12074_p2 = pnand %p12072_p1, %p12045_p13 }
  0x2d   : > { %p12075_p6 = pneg %p12074_p2 }
  0x2f   : > { %p12080_p3 = pnand %p12078_p10, %p12075_p6 }
  0x31   : > { %12083 = shalt.err (!%p12080_p3)
}
  0x32   : > { %s12084_s28 = scalar_lea.vmem %s12295_s6, 18432  ;;  %p12092_p12 = scmp.lt.s32.totalorder %s12295_s6, %s12295_s6 }
  0x33   : > { %p12085_p5 = scmp.ne.s32.totalorder %s12295_s6, %s12084_s28  ;;  %p12093_p0 = scmp.lt.s32.totalorder %s12084_s28, %s12084_s28 }
  0x35   : > { %p12087_p7 = pnand %p12085_p5, %p12045_p13  ;;  %p12094_p1 = por %p12093_p0, %p12092_p12 }
  0x37   : > { %p12088_p9 = pneg %p12087_p7 }
  0x39   : > { %p12095_p2 = pnand %p12094_p1, %p12088_p9 }
  0x3b   : > { %12098 = shalt.err (!%p12095_p2)
}
  0x3c   : > { %11711 = dma.hbm_to_vmem [thread:$0]  (!%p12291_p11), %s16084_s3, 18432, %s12295_s6, [#allocation7], %s12203_s15, %s12203_s15, %s12204_s16  }
  0x3d   : > { %s12356_s29 = sadd.s32 1, %s12199_s21   ;;  %s29_s14 = sadd.s32 1, %s12195_s20 }
  0x3e   : > { %s26_s17 = ssub.s32 %s12199_s21, %s12356_s29  ;;  %p36_p13 = scmp.ne.s32.totalorder %s12195_s20, %s12191_s19 }
  0x3f   : > { %p27_p6 = scmp.eq.s32.totalorder %s26_s17, 0  ;;  %p37_p10 = scmp.eq.s32.totalorder %s12199_s21, 0 }
  0x40   : > { %p16361_p3 = scmp.eq.s32.totalorder %s12261_s22, 1  ;;  %p11722_p7 = scmp.lt.s32.totalorder %s12199_s21, 2 }
  0x41   : > { %s12372_s27 = scalar_select %p27_p6, %s12195_s20, %s29_s14  }
  0x42   : > { %p12366_p5 = por %p16361_p3, %p36_p13  ;;  %p38_p9 = por %p37_p10, %p36_p13 }
  0x43   : > { %s208_s30 = sand.u32 1, %s12195_s20   ;;  %s8299_s6 = sshll.u32 %s12199_s21, 12 }
  0x44   : > { %s16362_s23 = scalar_select %p12366_p5, 1, 0 }
  0x45   : > { %s8284_s7 = sshll.u32 %s208_s30, 8  ;;  %s12379_s10 = scalar_lea.hbm %s16081_s0, %s8299_s6 }
  0x46   : > { %s212_s11 = scalar_lea.vmem [#allocation3], %s8284_s7  ;;  %p12383_p11 = pnand %p11722_p7, %p38_p9 }
  0x47   : > { %s219_s28 = sshll.u32 %s212_s11, 4  ;;  %s12387_s13 = scalar_lea.sflag [#allocation4], %s208_s30  ;;  %s12381_s28 = int_to_ptr.vmem [resolvable:$true] %s219_s28 }
  0x48   : > { %s12099_s14 = scalar_lea.hbm %s12379_s10, 4096  ;;  %p12101_p0 = pneg %p12383_p11 }
  0x49   : > { %p12100_p12 = scmp.ne.s32.totalorder %s12379_s10, %s12099_s14  ;;  %s12104_s6 = scalar_lea.hbm %s16081_s0, 8192 }
  0x4a   : > { %p12105_p13 = scmp.lt.u32.totalorder %s12379_s10, %s16081_s0  ;;  %p12106_p6 = scmp.lt.u32.totalorder %s12104_s6, %s12099_s14 }
  0x4b   : > { %p12102_p1 = pnand %p12101_p0, %p12100_p12  ;;  %p12108_p3 = scmp.lt.u32.totalorder %s12099_s14, %s12379_s10 }
  0x4c   : > { %p12107_p10 = por %p12106_p6, %p12105_p13 }
  0x4d   : > { %p12103_p2 = pneg %p12102_p1 }
  0x4e   : > { %p12109_p7 = por %p12108_p3, %p12107_p10 }
  0x50   : > { %p12110_p9 = pnand %p12109_p7, %p12103_p2 }
  0x52   : > { %12113 = shalt.err (!%p12110_p9)
}
  0x53   : > { %s12114_s30 = scalar_lea.vmem %s12381_s28, 4096  ;;  %s12205_s11 = smov [#allocation3]  }
  0x54   : > { %p12115_p12 = scmp.ne.s32.totalorder %s12381_s28, %s12114_s30  ;;  %s12119_s17 = sshll.u32 %s12205_s11, 4  ;;  %s12120_s17 = int_to_ptr.vmem [resolvable:$false] %s12119_s17 }
  0x55   : > { %s12121_s7 = scalar_lea.vmem %s12120_s17, 8192  ;;  %p12122_p4 = scmp.lt.s32.totalorder %s12381_s28, %s12120_s17 }
  0x56   : > { %p12117_p1 = pnand %p12115_p12, %p12101_p0  ;;  %p12123_p13 = scmp.lt.s32.totalorder %s12121_s7, %s12114_s30 }
  0x58   : > { %p12118_p5 = pneg %p12117_p1  ;;  %p12124_p6 = por %p12123_p13, %p12122_p4 }
  0x5a   : > { %p12125_p10 = pnand %p12124_p6, %p12118_p5 }
  0x5c   : > { %12128 = shalt.err (!%p12125_p10)
}
  0x5d   : > { %11715 = dma.hbm_to_vmem [thread:$0]  (!%p12383_p11), %s12379_s10, 4096, %s12381_s28, %s12387_s13, %s12203_s15, %s12203_s15, %s12204_s16  }
  0x5e   : > { %231 = sbr.rel (%p12280_p8) target bundleno = 2328 (0x918), region = 40 }
  0x65   : > { %s12421_s14 = sand.u32 1, %s12191_s19   ;;  %p16364_p4 = scmp.ne.s32.totalorder %s16357_s24, 0 }
  0x66   : > { %s8288_s6 = sshll.u32 %s12421_s14, 8  ;;  %s234_s8 = scalar_lea.sflag [#allocation4], %s12421_s14 }
  0x67   : > { %s12427_s12 = scalar_lea.vmem [#allocation3], %s8288_s6 }
  0x68   : > { %12174 = dma.done.wait (%p16364_p4), %s234_s8, 4096  }
  0x69   : > { %12176 = vsyncadd (%p16364_p4), %s234_s8, 4294963200  ;;  %p16365_p5 = scmp.eq.s32.totalorder %s12261_s22, 0 }
  0x6b   : > { %12178 = dma.done.wait (%p16365_p5), [#allocation7], 36864   ;;  %p16366_p8 = pmov %p16365_p5 }
  0x6c   : > { %v12206_v0 = vmov 0.0   ;;  %v1565_v1 = vld [vmem:[#allocation6 + $0x80] sm:$0xff]  ;;  %v1566_v2 = vld [vmem:[#allocation6 + $0x88] sm:$0xff]  ;;  %v1567_v3 = vld [vmem:[#allocation6 + $0x90] sm:$0xff]  ;;  %s15937_s10 = scalar_lea.vmem [#allocation9], %s8288_s6  ;;  %s8300_s28 = sshll.u32 %s12261_s22, 12 }
  0x6d   : > { %12180 = vsyncadd (%p16366_p8), [#allocation7], 4294930432  ;;  %272 = vst [vmem:[#allocation2] sm:$0xff] %v12206_v0  ;;  %v10605_v4 = vpack.c.bf16 %v1566_v2, %v1565_v1  ;;  %v1568_v5 = vld [vmem:[#allocation6 + $0x98] sm:$0xff]  ;;  %v1569_v7 = vld [vmem:[#allocation6 + $0xa0] sm:$0xff]  ;;  %s8187_s13 = sshll.u32 %s15937_s10, 4  ;;  %s16033_s11 = scalar_lea.hbm %s16086_s5, %s8300_s28  ;;  %s16035_s13 = int_to_ptr.vmem [resolvable:$true] %s8187_s13 }
  0x6e   : > { %273 = vst [vmem:[#allocation2 + $0x8] sm:$0xff] %v12206_v0  ;;  %274 = vst [vmem:[#allocation2 + $0x10] sm:$0x3] %v12206_v0  ;;  %v10609_v6 = vpack.c.bf16 %v1568_v5, %v1567_v3  ;;  %v1570_v8 = vld [vmem:[#allocation6 + $0xa8] sm:$0xff]  ;;  %v1571_v11 = vld [vmem:[#allocation6 + $0xb0] sm:$0xff]  ;;  %s8174_s22 = scalar_lea.sflag [#allocation5], %s12421_s14 }
  0x6f   : > { %276 = vst [vmem:[#allocation2 + $0x198] sm:$0xff] %v12206_v0  ;;  %277 = vst [vmem:[#allocation2 + $0x1a0] sm:$0xff] %v12206_v0  ;;  %10606 = vmatprep.subr.bf16.mxu0 %v10605_v4  ;;  %v10613_v9 = vpack.c.bf16 %v1570_v8, %v1569_v7  ;;  %v1572_v12 = vld [vmem:[#allocation6 + $0xb8] sm:$0xff]  ;;  %v12438_v13 = vld [vmem:[%s12427_s12] sm:$0xff]  ;;  %s12129_s17 = scalar_lea.vmem %s16035_s13, 4096  ;;  %p16929_p0 = scmp.ne.s32.totalorder %s16362_s23, 0 }
  0x70   : > { %278 = vst [vmem:[#allocation2 + $0x1a8] sm:$0x3] %v12206_v0  ;;  %280 = vst [vmem:[#allocation2 + $0x18] sm:$0x1] %v12206_v0  ;;  %10608 = vmatpush3.bf16.msra.mxu0 %v10605_v4  ;;  %v12441_v14 = vld [vmem:[%s12427_s12 + $0x8] sm:$0xff]  ;;  %v12444_v15 = vld [vmem:[%s12427_s12 + $0x10] sm:$0xff]  ;;  %v385_v16 = vmul.f32 %v12438_v13, %v12438_v13  ;;  %v10617_v20 = vpack.c.bf16 %v1572_v12, %v1571_v11  ;;  %p12130_p11 = scmp.ne.s32.totalorder %s16035_s13, %s12129_s17 }
  0x71   : > { %281 = vst [vmem:[#allocation2 + $0x30] sm:$0x1] %v12206_v0  ;;  %282 = vst [vmem:[#allocation2 + $0x48] sm:$0x1] %v12206_v0  ;;  %10610 = vmatprep.subr.bf16.mxu0 %v10609_v6  ;;  %v12449_v17 = vld [vmem:[%s12427_s12 + $0x18] sm:$0xff]  ;;  %v347_v18 = vadd.f32 %v12441_v14, %v12438_v13  ;;  %v386_v19 = vmul.f32 %v12441_v14, %v12441_v14  ;;  %v387_v21 = vmul.f32 %v12444_v15, %v12444_v15  ;;  %v1573_v22 = vld [vmem:[#allocation6 + $0xc0] sm:$0xff] }
  0x72   : > { %283 = vst [vmem:[#allocation2 + $0x60] sm:$0x1] %v12206_v0  ;;  %284 = vst [vmem:[#allocation2 + $0x78] sm:$0x1] %v12206_v0  ;;  %v1574_v23 = vld [vmem:[#allocation6 + $0xc8] sm:$0xff]  ;;  %v12458_v24 = vld [vmem:[%s12427_s12 + $0x20] sm:$0xff]  ;;  %v388_v26 = vmul.f32 %v12449_v17, %v12449_v17  ;;  %p12131_p2 = pnand %p12130_p11, %p16929_p0 }
  0x73   : > { %285 = vst [vmem:[#allocation2 + $0x90] sm:$0x1] %v12206_v0  ;;  %286 = vst [vmem:[#allocation2 + $0xa8] sm:$0x1] %v12206_v0  ;;  %v348_v25 = vadd.f32 %v347_v18, %v12444_v15  ;;  %v417_v27 = vadd.f32 %v386_v19, %v385_v16  ;;  %v12464_v28 = vld [vmem:[%s12427_s12 + $0x28] sm:$0xff]  ;;  %v10621_v30 = vpack.c.bf16 %v1574_v23, %v1573_v22  ;;  %v1575_v33 = vld [vmem:[#allocation6 + $0xd0] sm:$0xff] }
  0x74   : > { %287 = vst [vmem:[#allocation2 + $0xc0] sm:$0x1] %v12206_v0  ;;  %288 = vst [vmem:[#allocation2 + $0xd8] sm:$0x1] %v12206_v0  ;;  %10612 = vmatpush3.bf16.msra.mxu0 %v10609_v6  ;;  %v389_v31 = vmul.f32 %v12458_v24, %v12458_v24  ;;  %v1576_v34 = vld [vmem:[#allocation6 + $0xd8] sm:$0xff]  ;;  %v12470_v35 = vld [vmem:[%s12427_s12 + $0x30] sm:$0xff]  ;;  %v390_v37 = vmul.f32 %v12464_v28, %v12464_v28  ;;  %p12132_p3 = pneg %p12131_p2 }
  0x75   : > { %289 = vst [vmem:[#allocation2 + $0xf0] sm:$0x1] %v12206_v0  ;;  %290 = vst [vmem:[#allocation2 + $0x108] sm:$0x1] %v12206_v0  ;;  %v1532_v10 = vld [vmem:[#allocation2 + $0x1] sm:$0xff]  ;;  %10614 = vmatprep.subr.bf16.mxu0 %v10613_v9  ;;  %v349_v29 = vadd.f32 %v348_v25, %v12449_v17  ;;  %v418_v32 = vadd.f32 %v417_v27, %v387_v21  ;;  %v10625_v41 = vpack.c.bf16 %v1576_v34, %v1575_v33  ;;  %v1577_v44 = vld [vmem:[#allocation6 + $0xe0] sm:$0xff] }
  0x76   : > { %291 = vst [vmem:[#allocation2 + $0x120] sm:$0x1] %v12206_v0  ;;  %292 = vst [vmem:[#allocation2 + $0x138] sm:$0x1] %v12206_v0  ;;  %9197 = vmatprep.mubr.f32.mxu0 %v1532_v10  ;;  %v12476_v39 = vld [vmem:[%s12427_s12 + $0x38] sm:$0xff]  ;;  %v391_v42 = vmul.f32 %v12470_v35, %v12470_v35  ;;  %v1578_v45 = vld [vmem:[#allocation6 + $0xe8] sm:$0xff] }
  0x77   : > { %293 = vst [vmem:[#allocation2 + $0x150] sm:$0x1] %v12206_v0  ;;  %294 = vst [vmem:[#allocation2 + $0x168] sm:$0x1] %v12206_v0  ;;  %v350_v36 = vadd.f32 %v349_v29, %v12458_v24  ;;  %v419_v38 = vadd.f32 %v418_v32, %v388_v26  ;;  %v12482_v46 = vld [vmem:[%s12427_s12 + $0x40] sm:$0xff]  ;;  %v392_v48 = vmul.f32 %v12476_v39, %v12476_v39  ;;  %v12488_v50 = vld [vmem:[%s12427_s12 + $0x48] sm:$0xff] }
  0x78   : > { %295 = vst [vmem:[#allocation2 + $0x180] sm:$0x1] %v12206_v0  ;;  %298 = vst [vmem:[#allocation2 + $0x29] sm:$0x1] %v12206_v0  ;;  %10616 = vmatpush3.bf16.msra.mxu0 %v10613_v9  ;;  %v10629_v52 = vpack.c.bf16 %v1578_v45, %v1577_v44  ;;  %v393_v53 = vmul.f32 %v12482_v46, %v12482_v46  ;;  %v1579_v55 = vld [vmem:[#allocation6 + $0xf0] sm:$0xff]  ;;  %v1580_v56 = vld [vmem:[#allocation6 + $0xf8] sm:$0xff]  ;;  %v394_v59 = vmul.f32 %v12488_v50, %v12488_v50 }
  0x79   : > { %299 = vst [vmem:[#allocation2 + $0x41] sm:$0x1] %v12206_v0  ;;  %300 = vst [vmem:[#allocation2 + $0x59] sm:$0x1] %v12206_v0  ;;  %10618 = vmatprep.subr.bf16.mxu0 %v10617_v20  ;;  %v351_v40 = vadd.f32 %v350_v36, %v12464_v28  ;;  %v420_v43 = vadd.f32 %v419_v38, %v389_v31  ;;  %v12494_v57 = vld [vmem:[%s12427_s12 + $0x50] sm:$0xff]  ;;  %v12500_v61 = vld [vmem:[%s12427_s12 + $0x58] sm:$0xff]  ;;  %v10633_v63 = vpack.c.bf16 %v1580_v56, %v1579_v55 }
  0x7a   : > { %301 = vst [vmem:[#allocation2 + $0x71] sm:$0x1] %v12206_v0  ;;  %302 = vst [vmem:[#allocation2 + $0x89] sm:$0x1] %v12206_v0  ;;  %v1516_v2 = vld [vmem:[#allocation6] sm:$0xff]  ;;  %v1517_v3 = vld [vmem:[#allocation6 + $0x8] sm:$0xff]  ;;  %v396_v6 = vmul.f32 %v12500_v61, %v12500_v61 }
  0x7b   : > { %303 = vst [vmem:[#allocation2 + $0xa1] sm:$0x1] %v12206_v0  ;;  %304 = vst [vmem:[#allocation2 + $0xb9] sm:$0x1] %v12206_v0  ;;  %v352_v47 = vadd.f32 %v351_v40, %v12470_v35  ;;  %v421_v49 = vadd.f32 %v420_v43, %v390_v37  ;;  %v12506_v4 = vld [vmem:[%s12427_s12 + $0x60] sm:$0xff]  ;;  %v12512_v8 = vld [vmem:[%s12427_s12 + $0x68] sm:$0xff]  ;;  %v10637_v10 = vpack.c.bf16 %v1517_v3, %v1516_v2 }
  0x7c   : > { %305 = vst [vmem:[#allocation2 + $0xd1] sm:$0x1] %v12206_v0  ;;  %306 = vst [vmem:[#allocation2 + $0xe9] sm:$0x1] %v12206_v0  ;;  %10620 = vmatpush3.bf16.msra.mxu0 %v10617_v20  ;;  %v397_v11 = vmul.f32 %v12506_v4, %v12506_v4  ;;  %v12518_v16 = vld [vmem:[%s12427_s12 + $0x70] sm:$0xff]  ;;  %v398_v19 = vmul.f32 %v12512_v8, %v12512_v8  ;;  %v1533_v21 = vld [vmem:[#allocation2 + $0x9] sm:$0xff] }
  0x7d   : > { %307 = vst [vmem:[#allocation2 + $0x101] sm:$0x1] %v12206_v0  ;;  %308 = vst [vmem:[#allocation2 + $0x119] sm:$0x1] %v12206_v0  ;;  %10622 = vmatprep.subr.bf16.mxu0 %v10621_v30  ;;  %v353_v51 = vadd.f32 %v352_v47, %v12476_v39  ;;  %v422_v54 = vadd.f32 %v421_v49, %v391_v42  ;;  %v12524_v22 = vld [vmem:[%s12427_s12 + $0x78] sm:$0xff]  ;;  %v399_v25 = vmul.f32 %v12518_v16, %v12518_v16  ;;  %v12530_v27 = vld [vmem:[%s12427_s12 + $0x80] sm:$0xff] }
  0x7e   : > { %309 = vst [vmem:[#allocation2 + $0x131] sm:$0x1] %v12206_v0  ;;  %310 = vst [vmem:[#allocation2 + $0x149] sm:$0x1] %v12206_v0  ;;  %v1519_v31 = vld [vmem:[#allocation6 + $0x18] sm:$0xff]  ;;  %v400_v32 = vmul.f32 %v12524_v22, %v12524_v22  ;;  %v12536_v36 = vld [vmem:[%s12427_s12 + $0x88] sm:$0xff]  ;;  %v401_v38 = vmul.f32 %v12530_v27, %v12530_v27 }
  0x7f   : > { %311 = vst [vmem:[#allocation2 + $0x161] sm:$0x1] %v12206_v0  ;;  %312 = vst [vmem:[#allocation2 + $0x179] sm:$0x1] %v12206_v0  ;;  %v354_v58 = vadd.f32 %v353_v51, %v12482_v46  ;;  %v423_v60 = vadd.f32 %v422_v54, %v392_v48  ;;  %v402_v43 = vmul.f32 %v12536_v36, %v12536_v36  ;;  %v12548_v45 = vld [vmem:[%s12427_s12 + $0x98] sm:$0xff]  ;;  %v335_v51 = vld [vmem:[%s12427_s12 + $0xa0] sm:$0xff] }
  0x80   : > { %313 = vst [vmem:[#allocation2 + $0x191] sm:$0x1] %v12206_v0  ;;  %279 = vst [vmem:[#allocation2] sm:$0x1] %v12206_v0  ;;  %10624 = vmatpush3.bf16.msra.mxu0 %v10621_v30  ;;  %v1518_v30 = vld [vmem:[#allocation6 + $0x10] sm:$0xff]  ;;  %v1520_v55 = vld [vmem:[#allocation6 + $0x20] sm:$0xff] }
  0x81   : > { %296 = vst [vmem:[#allocation2 + $0x198] sm:$0x1] %v12206_v0  ;;  %297 = vst [vmem:[#allocation2 + $0x11] sm:$0x1] %v12206_v0  ;;  %10626 = vmatprep.subr.bf16.mxu0 %v10625_v41  ;;  %v355_v62 = vadd.f32 %v354_v58, %v12488_v50  ;;  %v424_v1 = vadd.f32 %v423_v60, %v393_v53  ;;  %v10641_v34 = vpack.c.bf16 %v1519_v31, %v1518_v30  ;;  %v1521_v56 = vld [vmem:[#allocation6 + $0x28] sm:$0xff]  ;;  %v342_v31 = vld [vmem:[%s12427_s12 + $0xd8] sm:$0xff] }
  0x82   : > { %314 = vst [vmem:[#allocation2 + $0x1a9] sm:$0x1] %v12206_v0  ;;  %v395_v0 = vmul.f32 %v12494_v57, %v12494_v57  ;;  %16367 = vst [vmem:[#allocation13_spill] sm:$0xff] %v12530_v27  ;;  %v404_v53 = vmul.f32 %v12548_v45, %v12548_v45  ;;  %v336_v58 = vld [vmem:[%s12427_s12 + $0xa8] sm:$0xff]  ;;  %v10645_v60 = vpack.c.bf16 %v1521_v56, %v1520_v55  ;;  %s12207_s7 = smov [#allocation9]  }
  0x83   : > { %v356_v5 = vadd.f32 %v355_v62, %v12494_v57  ;;  %v425_v7 = vadd.f32 %v424_v1, %v394_v59  ;;  %16368 = vst [vmem:[#allocation14_spill] sm:$0xff] %v12536_v36  ;;  %16370 = vst [vmem:[#allocation16_spill] sm:$0xff] %v12548_v45  ;;  %v405_v62 = vmul.f32 %v335_v51, %v335_v51  ;;  %s12133_s6 = sshll.u32 %s12207_s7, 4  ;;  %s12134_s6 = int_to_ptr.vmem [resolvable:$false] %s12133_s6 }
  0x84   : > { %10628 = vmatpush3.bf16.msra.mxu0 %v10625_v41  ;;  %v12542_v41 = vld [vmem:[%s12427_s12 + $0x90] sm:$0xff]  ;;  %v406_v2 = vmul.f32 %v336_v58, %v336_v58  ;;  %s12135_s8 = scalar_lea.vmem %s12134_s6, 8192  ;;  %p12136_p7 = scmp.lt.s32.totalorder %s16035_s13, %s12134_s6 }
  0x85   : > { %10630 = vmatprep.subr.bf16.mxu0 %v10629_v52  ;;  %v357_v9 = vadd.f32 %v356_v5, %v12500_v61  ;;  %v426_v12 = vadd.f32 %v425_v7, %v395_v0  ;;  %16369 = vst [vmem:[#allocation15_spill] sm:$0xff] %v12542_v41  ;;  %v403_v48 = vmul.f32 %v12542_v41, %v12542_v41  ;;  %v337_v0 = vld [vmem:[%s12427_s12 + $0xb0] sm:$0xff]  ;;  %v338_v5 = vld [vmem:[%s12427_s12 + $0xb8] sm:$0xff]  ;;  %p12137_p9 = scmp.lt.s32.totalorder %s12135_s8, %s12129_s17 }
  0x86   : > { %v407_v7 = vmul.f32 %v337_v0, %v337_v0 }
  0x87   : > { %v358_v18 = vadd.f32 %v357_v9, %v12506_v4  ;;  %v427_v20 = vadd.f32 %v426_v12, %v396_v6  ;;  %v408_v12 = vmul.f32 %v338_v5, %v338_v5  ;;  %p12138_p12 = por %p12137_p9, %p12136_p7 }
  0x88   : > { %10632 = vmatpush3.bf16.msra.mxu0 %v10629_v52 }
  0x89   : > { %10634 = vmatprep.subr.bf16.mxu0 %v10633_v63  ;;  %v359_v23 = vadd.f32 %v358_v18, %v12512_v8  ;;  %v428_v26 = vadd.f32 %v427_v20, %v397_v11  ;;  %p12139_p1 = pnand %p12138_p12, %p12132_p3 }
  0x8b   : > { %v360_v29 = vadd.f32 %v359_v23, %v12518_v16  ;;  %v429_v33 = vadd.f32 %v428_v26, %v398_v19  ;;  %v340_v19 = vld [vmem:[%s12427_s12 + $0xc8] sm:$0xff] }
  0x8c   : > { %10636 = vmatpush3.bf16.msra.mxu0 %v10633_v63 }
  0x8d   : > { %10638 = vmatprep.subr.bf16.mxu0 %v10637_v10  ;;  %v361_v37 = vadd.f32 %v360_v29, %v12524_v22  ;;  %v430_v40 = vadd.f32 %v429_v33, %v399_v25  ;;  %v341_v25 = vld [vmem:[%s12427_s12 + $0xd0] sm:$0xff]  ;;  %v410_v29 = vmul.f32 %v340_v19, %v340_v19 }
  0x8e   : > { %v411_v33 = vmul.f32 %v341_v25, %v341_v25 }
  0x8f   : > { %9198 = vmatmul.mubr.f32.vlgmr.msra.gmra.mrb[0].mxu0 %v1533_v21  ;;  %v362_v42 = vadd.f32 %v361_v37, %v12530_v27  ;;  %v431_v44 = vadd.f32 %v430_v40, %v400_v32  ;;  %v343_v37 = vld [vmem:[%s12427_s12 + $0xe0] sm:$0xff]  ;;  %v412_v40 = vmul.f32 %v342_v31, %v342_v31 }
  0x90   : > { %10640 = vmatpush3.bf16.msra.mxu0 %v10637_v10  ;;  %v339_v10 = vld [vmem:[%s12427_s12 + $0xc0] sm:$0xff] }
  0x91   : > { %10642 = vmatprep.subr.bf16.mxu0 %v10641_v34  ;;  %v363_v47 = vadd.f32 %v362_v42, %v12536_v36  ;;  %v432_v49 = vadd.f32 %v431_v44, %v401_v38  ;;  %v409_v21 = vmul.f32 %v339_v10, %v339_v10 }
  0x93   : > { %v364_v52 = vadd.f32 %v363_v47, %v12542_v41  ;;  %v433_v54 = vadd.f32 %v432_v49, %v402_v43  ;;  %v344_v43 = vld [vmem:[%s12427_s12 + $0xe8] sm:$0xff]  ;;  %v413_v47 = vmul.f32 %v343_v37, %v343_v37  ;;  %v345_v49 = vld [vmem:[%s12427_s12 + $0xf0] sm:$0xff] }
  0x94   : > { %10644 = vmatpush3.bf16.msra.mxu0 %v10641_v34  ;;  %v415_v56 = vmul.f32 %v345_v49, %v345_v49 }
  0x95   : > { %v365_v59 = vadd.f32 %v364_v52, %v12548_v45  ;;  %v434_v63 = vadd.f32 %v433_v54, %v403_v48  ;;  %10646 = vmatprep.subr.bf16.mxu0 %v10645_v60  ;;  %v414_v52 = vmul.f32 %v344_v43, %v344_v43  ;;  %v346_v54 = vld [vmem:[%s12427_s12 + $0xf8] sm:$0xff] }
  0x97   : > { %v366_v1 = vadd.f32 %v365_v59, %v335_v51  ;;  %v435_v3 = vadd.f32 %v434_v63, %v404_v53 }
  0x98   : > { %10648 = vmatpush3.bf16.msra.mxu0 %v10645_v60  ;;  %v416_v60 = vmul.f32 %v346_v54, %v346_v54 }
  0x99   : > { %v367_v6 = vadd.f32 %v366_v1, %v336_v58  ;;  %v436_v9 = vadd.f32 %v435_v3, %v405_v62 }
  0x9b   : > { %v368_v11 = vadd.f32 %v367_v6, %v337_v0  ;;  %v437_v18 = vadd.f32 %v436_v9, %v406_v2 }
  0x9d   : > { %v369_v20 = vadd.f32 %v368_v11, %v338_v5  ;;  %v438_v23 = vadd.f32 %v437_v18, %v407_v7 }
  0x9f   : > { %v370_v26 = vadd.f32 %v369_v20, %v339_v10  ;;  %v439_v30 = vadd.f32 %v438_v23, %v408_v12 }
  0xa1   : > { %v371_v32 = vadd.f32 %v370_v26, %v340_v19  ;;  %v440_v34 = vadd.f32 %v439_v30, %v409_v21  ;;  %v1522_v30 = vld [vmem:[#allocation6 + $0x30] sm:$0xff] }
  0xa3   : > { %v372_v38 = vadd.f32 %v371_v32, %v341_v25  ;;  %v441_v42 = vadd.f32 %v440_v34, %v410_v29 }
  0xa5   : > { %v373_v44 = vadd.f32 %v372_v38, %v342_v31  ;;  %v442_v48 = vadd.f32 %v441_v42, %v411_v33  ;;  %v1523_v31 = vld [vmem:[#allocation6 + $0x38] sm:$0xff] }
  0xa6   : > { %v10649_v32 = vpack.c.bf16 %v1523_v31, %v1522_v30 }
  0xa7   : > { %v374_v51 = vadd.f32 %v373_v44, %v343_v37  ;;  %v443_v53 = vadd.f32 %v442_v48, %v412_v40 }
  0xa8   : > { %10650 = vmatprep.subr.bf16.mxu0 %v10649_v32 }
  0xa9   : > { %v375_v55 = vadd.f32 %v374_v51, %v344_v43  ;;  %v444_v58 = vadd.f32 %v443_v53, %v413_v47  ;;  %10652 = vmatpush3.bf16.msra.mxu0 %v10649_v32 }
  0xab   : > { %v376_v59 = vadd.f32 %v375_v55, %v345_v49  ;;  %v445_v62 = vadd.f32 %v444_v58, %v414_v52 }
  0xad   : > { %v377_v63 = vadd.f32 %v376_v59, %v346_v54  ;;  %v446_v0 = vadd.f32 %v445_v62, %v415_v56 }
  0xaf   : > { %v378_v1 = vrot.slane %v377_v63, 4  ;;  %v447_v2 = vadd.f32 %v446_v0, %v416_v60 }
  0xb1   : > { %v379_v3 = vadd.f32 %v378_v1, %v377_v63  ;;  %v448_v5 = vrot.slane %v447_v2, 4 }
  0xb3   : > { %v380_v6 = vrot.slane %v379_v3, 2  ;;  %v449_v7 = vadd.f32 %v448_v5, %v447_v2 }
  0xb5   : > { %v381_v9 = vadd.f32 %v380_v6, %v379_v3  ;;  %v450_v10 = vrot.slane %v449_v7, 2 }
  0xb7   : > { %v382_v11 = vrot.slane %v381_v9, 1  ;;  %v451_v12 = vadd.f32 %v450_v10, %v449_v7 }
  0xb9   : > { %v383_v18 = vadd.f32 %v382_v11, %v381_v9  ;;  %v452_v19 = vrot.slane %v451_v12, 1 }
  0xbb   : > { %v12569_v20 = vmul.f32 0.00390625, %v383_v18  ;;  %v453_v21 = vadd.f32 %v452_v19, %v451_v12 }
  0xbd   : > { %v455_v23 = vmul.f32 %v12569_v20, %v12569_v20  ;;  %v454_v25 = vmul.f32 0.00390625, %v453_v21  ;;  %v457_v33 = vsub.f32 %v12438_v13, %v12569_v20  ;;  %v458_v34 = vsub.f32 %v12441_v14, %v12569_v20 }
  0xbe   : > { %v459_v37 = vsub.f32 %v12444_v15, %v12569_v20  ;;  %v460_v38 = vsub.f32 %v12449_v17, %v12569_v20  ;;  %v461_v14 = vsub.f32 %v12458_v24, %v12569_v20  ;;  %v462_v49 = vsub.f32 %v12464_v28, %v12569_v20 }
  0xbf   : > { %v456_v26 = vsub.f32 %v454_v25, %v455_v23  ;;  %v463_v24 = vsub.f32 %v12470_v35, %v12569_v20  ;;  %v464_v53 = vsub.f32 %v12476_v39, %v12569_v20  ;;  %v465_v28 = vsub.f32 %v12482_v46, %v12569_v20 }
  0xc0   : > { %v466_v46 = vsub.f32 %v12488_v50, %v12569_v20 }
  0xc1   : > { %v489_v29 = vadd.f32 1e-05, %v456_v26 }
  0xc3   : > { %11765 = vrsqrt.f32 %v489_v29 }
  0xcd   : > { %v12581_v40 = vpop.eup %11765 }
  0xce   : > { %v491_v42 = vmul.f32 %v12581_v40, %v457_v33  ;;  %v12585_v43 = vmul.f32 %v12581_v40, %v458_v34  ;;  %v12588_v44 = vmul.f32 %v12581_v40, %v459_v37  ;;  %v12591_v13 = vmul.f32 %v12581_v40, %v460_v38 }
  0xcf   : > { %v12617_v56 = vmul.f32 %v12581_v40, %v461_v14  ;;  %v12622_v1 = vmul.f32 %v12581_v40, %v462_v49  ;;  %v12625_v7 = vmul.f32 %v12581_v40, %v463_v24  ;;  %v12652_v33 = vmul.f32 %v12581_v40, %v464_v53 }
  0xd0   : > { %v12595_v15 = vmul.f32 0.70710677, %v491_v42  ;;  %v12598_v17 = vmul.f32 0.70710677, %v12585_v43  ;;  %v12601_v47 = vmul.f32 0.70710677, %v12588_v44 }
  0xd1   : > { %v12604_v48 = vmul.f32 0.70710677, %v12591_v13  ;;  %v12634_v11 = vmul.f32 0.70710677, %v12617_v56  ;;  %v12642_v26 = vmul.f32 0.70710677, %v12622_v1 }
  0xd2   : > { %v555_v51 = vand.u32 2147483647, %v12595_v15  ;;  %v556_v52 = vand.u32 2147483647, %v12598_v17  ;;  %v557_v54 = vand.u32 2147483647, %v12601_v47 }
  0xd3   : > { %v558_v55 = vand.u32 2147483647, %v12604_v48  ;;  %v559_v25 = vand.u32 2147483647, %v12634_v11  ;;  %v12646_v30 = vmul.f32 0.5, %v491_v42  ;;  %vm1259_vm0 = vcmp.ge.f32.partialorder %v12595_v15, 0.0 }
  0xd4   : > { %v587_v58 = vmul.f32 0.3275911, %v555_v51  ;;  %v1067_v59 = vsub.f32 0.0, %v555_v51  ;;  %v588_v60 = vmul.f32 0.3275911, %v556_v52  ;;  %v1068_v62 = vsub.f32 0.0, %v556_v52 }
  0xd5   : > { %v589_v63 = vmul.f32 0.3275911, %v557_v54  ;;  %v1069_v0 = vsub.f32 0.0, %v557_v54  ;;  %v1070_v35 = vsub.f32 0.0, %v558_v55  ;;  %v590_v5 = vmul.f32 0.3275911, %v558_v55 }
  0xd6   : > { %v619_v39 = vadd.f32 1.0, %v587_v58  ;;  %v1099_v2 = vmul.f32 %v1067_v59, %v555_v51  ;;  %v620_v3 = vadd.f32 1.0, %v588_v60  ;;  %v1100_v6 = vmul.f32 %v1068_v62, %v556_v52 }
  0xd7   : > { %v12631_v10 = vadd.f32 1.0, %v589_v63  ;;  %v1101_v19 = vmul.f32 %v1069_v0, %v557_v54  ;;  %v1102_v21 = vmul.f32 %v1070_v35, %v558_v55  ;;  %v12638_v23 = vadd.f32 1.0, %v590_v5 }
  0xd8   : > { %11767 = vrcp.f32 %v619_v39  ;;  %v1131_v18 = vmul.f32 1.442695, %v1099_v2  ;;  %v1133_v31 = vmul.f32 1.442695, %v1100_v6  ;;  %v12649_v32 = vmul.f32 0.70710677, %v12625_v7 }
  0xd9   : > { %11769 = vrcp.f32 %v620_v3  ;;  %v591_v34 = vmul.f32 0.3275911, %v559_v25  ;;  %v1071_v37 = vsub.f32 0.0, %v559_v25  ;;  %v560_v38 = vand.u32 2147483647, %v12642_v26 }
  0xda   : > { %11771 = vrcp.f32 %v12631_v10  ;;  %v1135_v14 = vmul.f32 1.442695, %v1101_v19  ;;  %v1137_v49 = vmul.f32 1.442695, %v1102_v21  ;;  %v561_v51 = vand.u32 2147483647, %v12649_v32 }
  0xdb   : > { %11773 = vpow2.f32 %v1131_v18  ;;  %v623_v42 = vadd.f32 1.0, %v591_v34  ;;  %v1103_v52 = vmul.f32 %v1071_v37, %v559_v25  ;;  %v592_v24 = vmul.f32 0.3275911, %v560_v38 }
  0xdc   : > { %11775 = vrcp.f32 %v12638_v23  ;;  %v1072_v54 = vsub.f32 0.0, %v560_v38  ;;  %v593_v53 = vmul.f32 0.3275911, %v561_v51  ;;  %v1073_v55 = vsub.f32 0.0, %v561_v51 }
  0xdd   : > { %11777 = vpow2.f32 %v1133_v31  ;;  %v12659_v58 = vmul.f32 0.5, %v12585_v43  ;;  %v12661_v59 = vadd.f32 1.0, %v592_v24  ;;  %v12664_v60 = vmul.f32 0.70710677, %v12652_v33 }
  0xde   : > { %11779 = vrcp.f32 %v623_v42  ;;  %v1139_v62 = vmul.f32 1.442695, %v1103_v52  ;;  %v1104_v63 = vmul.f32 %v1072_v54, %v560_v38  ;;  %v12666_v0 = vadd.f32 1.0, %v593_v53 }
  0xdf   : > { %11781 = vpow2.f32 %v1135_v14  ;;  %v1105_v2 = vmul.f32 %v1073_v55, %v561_v51  ;;  %v562_v5 = vand.u32 2147483647, %v12664_v60  ;;  %v12670_v6 = vmul.f32 %v12581_v40, %v465_v28 }
  0xe0   : > { %11783 = vpow2.f32 %v1137_v49  ;;  %v12673_v19 = vmul.f32 0.5, %v12588_v44  ;;  %v1141_v21 = vmul.f32 1.442695, %v1104_v63  ;;  %v12678_v38 = vmul.f32 0.5, %v12591_v13 }
  0xe1   : > { %16371 = vst [vmem:[#allocation17_spill] sm:$0xff] %v12670_v6  ;;  %11785 = vrcp.f32 %v12661_v59  ;;  %v594_v31 = vmul.f32 0.3275911, %v562_v5  ;;  %v1074_v34 = vsub.f32 0.0, %v562_v5  ;;  %v12681_v28 = vmul.f32 0.70710677, %v12670_v6 }
  0xe2   : > { %v11768_v35 = vpop.eup %11767  ;;  %11787 = vrcp.f32 %v12666_v0  ;;  %v1143_v44 = vmul.f32 1.442695, %v1105_v2  ;;  %vm1260_vm1 = vcmp.ge.f32.partialorder %v12598_v17, 0.0  ;;  %vm1261_vm2 = vcmp.ge.f32.partialorder %v12601_v47, 0.0 }
  0xe3   : > { %v11770_v43 = vpop.eup %11769  ;;  %v683_v18 = vmul.f32 %v11768_v35, %v619_v39  ;;  %11789 = vpow2.f32 %v1139_v62  ;;  %16372 = vst [vmem:[#allocation18_spill] sm:$0xff] %v12681_v28  ;;  %v12683_v49 = vadd.f32 1.0, %v594_v31  ;;  %v1106_v51 = vmul.f32 %v1074_v34, %v562_v5 }
  0xe4   : > { %v684_v25 = vmul.f32 %v11770_v43, %v620_v3  ;;  %v11772_v39 = vpop.eup %11771  ;;  %11791 = vpow2.f32 %v1141_v21  ;;  %v563_v13 = vand.u32 2147483647, %v12681_v28  ;;  %v12698_v62 = vmul.f32 %v12581_v40, %v466_v46 }
  0xe5   : > { %v715_v37 = vsub.f32 2.0, %v683_v18  ;;  %v12685_v52 = vpop.eup %11773  ;;  %v685_v24 = vmul.f32 %v11772_v39, %v12631_v10  ;;  %11793 = vrcp.f32 %v12683_v49  ;;  %v1145_v55 = vmul.f32 1.442695, %v1106_v51 }
  0xe6   : > { %v716_v14 = vsub.f32 2.0, %v684_v25  ;;  %v11776_v54 = vpop.eup %11775  ;;  %16373 = vst [vmem:[#allocation19_spill] sm:$0xff] %v12698_v62  ;;  %v595_v5 = vmul.f32 0.3275911, %v563_v13  ;;  %11795 = vpow2.f32 %v1143_v44  ;;  %v1075_v21 = vsub.f32 0.0, %v563_v13 }
  0xe7   : > { %v12687_v3 = vmul.f32 %v11768_v35, %v715_v37  ;;  %v12700_v63 = vpop.eup %11777  ;;  %v717_v10 = vsub.f32 2.0, %v685_v24  ;;  %v686_v2 = vmul.f32 %v11776_v54, %v12638_v23  ;;  %v12706_v25 = vmul.f32 0.70710677, %v12698_v62 }
  0xe8   : > { %v12691_v53 = vmul.f32 %v11770_v43, %v716_v14  ;;  %v11780_v18 = vpop.eup %11779  ;;  %v12715_v23 = vmul.f32 0.5, %v12617_v56  ;;  %11797 = vpow2.f32 %v1145_v55  ;;  %v12717_v24 = vadd.f32 1.0, %v595_v5 }
  0xe9   : > { %v779_v35 = vmul.f32 1.0614054, %v12687_v3  ;;  %16374 = vst [vmem:[#allocation20_spill] sm:$0xff] %v12706_v25  ;;  %v12708_v50 = vpop.eup %11781  ;;  %v12710_v31 = vmul.f32 %v11772_v39, %v717_v10  ;;  %v718_v34 = vsub.f32 2.0, %v686_v2  ;;  %v687_v37 = vmul.f32 %v11780_v18, %v623_v42 }
  0xea   : > { %v780_v43 = vmul.f32 1.0614054, %v12691_v53  ;;  %v12712_v14 = vpop.eup %11783  ;;  %v12725_v2 = vmul.f32 %v1075_v21, %v563_v13  ;;  %v12728_v56 = vand.u32 2147483647, %v12706_v25  ;;  %11799 = vrcp.f32 %v12717_v24 }
  0xeb   : > { %v811_v46 = vadd.f32 -1.4531521, %v779_v35  ;;  %v11786_v44 = vpop.eup %11785  ;;  %v781_v12 = vmul.f32 1.0614054, %v12710_v31  ;;  %v12721_v9 = vmul.f32 %v11776_v54, %v718_v34  ;;  %v719_v39 = vsub.f32 2.0, %v687_v37 }
  0xec   : > { %v812_v51 = vadd.f32 -1.4531521, %v780_v43  ;;  %v11788_v35 = vpop.eup %11787  ;;  %v688_v10 = vmul.f32 %v11786_v44, %v12661_v59  ;;  %vm1262_vm3 = vcmp.ge.f32.partialorder %v12604_v48, 0.0  ;;  %vm1263_vm4 = vcmp.ge.f32.partialorder %v12634_v11, 0.0 }
  0xed   : > { %v843_v29 = vmul.f32 %v811_v46, %v12687_v3  ;;  %v12730_v55 = vpop.eup %11789  ;;  %v813_v43 = vadd.f32 -1.4531521, %v781_v12  ;;  %v782_v46 = vmul.f32 1.0614054, %v12721_v9  ;;  %v12733_v62 = vmul.f32 %v11780_v18, %v719_v39 }
  0xee   : > { %v844_v42 = vmul.f32 %v812_v51, %v12691_v53  ;;  %v720_v34 = vsub.f32 2.0, %v688_v10  ;;  %v689_v37 = vmul.f32 %v11788_v35, %v12666_v0  ;;  %v12737_v59 = vpop.eup %11791  ;;  %vm1264_vm5 = vcmp.ge.f32.partialorder %v12642_v26, 0.0 }
  0xef   : > { %v875_v5 = vadd.f32 1.4214138, %v843_v29  ;;  %v845_v21 = vmul.f32 %v813_v43, %v12710_v31  ;;  %v814_v51 = vadd.f32 -1.4531521, %v782_v46  ;;  %v783_v29 = vmul.f32 1.0614054, %v12733_v62  ;;  %v11794_v12 = vpop.eup %11793 }
  0xf0   : > { %v876_v54 = vadd.f32 1.4214138, %v844_v42  ;;  %v12743_v18 = vmul.f32 %v11786_v44, %v720_v34  ;;  %v721_v39 = vsub.f32 2.0, %v689_v37  ;;  %v12746_v42 = vmul.f32 0.3275911, %v12728_v56 }
  0xf1   : > { %v907_v13 = vmul.f32 %v875_v5, %v12687_v3  ;;  %v877_v10 = vadd.f32 1.4214138, %v845_v21  ;;  %v846_v28 = vmul.f32 %v814_v51, %v12721_v9  ;;  %v815_v6 = vadd.f32 -1.4531521, %v783_v29  ;;  %v12749_v5 = vpop.eup %11795 }
  0xf2   : > { %v908_v25 = vmul.f32 %v876_v54, %v12691_v53  ;;  %v784_v46 = vmul.f32 1.0614054, %v12743_v18  ;;  %v12752_v45 = vmul.f32 %v11788_v35, %v721_v39  ;;  %v690_v54 = vmul.f32 %v11794_v12, %v12683_v49  ;;  %v12758_v21 = vpop.eup %11797 }
  0xf3   : > { %v939_v0 = vadd.f32 -0.28449672, %v907_v13  ;;  %v909_v34 = vmul.f32 %v877_v10, %v12710_v31  ;;  %v878_v37 = vadd.f32 1.4214138, %v846_v28  ;;  %v847_v13 = vmul.f32 %v815_v6, %v12733_v62 }
  0xf4   : > { %v940_v43 = vadd.f32 -0.28449672, %v908_v25  ;;  %v816_v25 = vadd.f32 -1.4531521, %v784_v46  ;;  %v785_v29 = vmul.f32 1.0614054, %v12752_v45  ;;  %v16376_v26 = vsub.f32 %v12500_v61, %v12569_v20 }
  0xf5   : > { %v971_v44 = vmul.f32 %v939_v0, %v12687_v3  ;;  %v722_v35 = vsub.f32 2.0, %v690_v54  ;;  %v941_v49 = vadd.f32 -0.28449672, %v909_v34  ;;  %v910_v0 = vmul.f32 %v878_v37, %v12721_v9 }
  0xf6   : > { %v972_v51 = vmul.f32 %v940_v43, %v12691_v53  ;;  %v879_v10 = vadd.f32 1.4214138, %v847_v13  ;;  %v848_v6 = vmul.f32 %v816_v25, %v12743_v18  ;;  %v817_v41 = vadd.f32 -1.4531521, %v785_v29 }
  0xf7   : > { %v1003_v39 = vadd.f32 0.2548296, %v971_v44  ;;  %v12766_v36 = vmul.f32 %v11794_v12, %v722_v35  ;;  %v973_v43 = vmul.f32 %v941_v49, %v12710_v31  ;;  %v942_v46 = vadd.f32 -0.28449672, %v910_v0  ;;  %v12771_v44 = vpop.eup %11799 }
  0xf8   : > { %v1004_v28 = vadd.f32 0.2548296, %v972_v51  ;;  %v911_v54 = vmul.f32 %v879_v10, %v12733_v62  ;;  %v880_v37 = vadd.f32 1.4214138, %v848_v6  ;;  %v849_v13 = vmul.f32 %v817_v41, %v12752_v45 }
  0xf9   : > { %v1035_v27 = vmul.f32 %v1003_v39, %v12687_v3  ;;  %v786_v51 = vmul.f32 1.0614054, %v12766_v36  ;;  %v1005_v25 = vadd.f32 0.2548296, %v973_v43  ;;  %v974_v3 = vmul.f32 %v942_v46, %v12721_v9 }
  0xfa   : > { %v1036_v34 = vmul.f32 %v1004_v28, %v12691_v53  ;;  %v943_v29 = vadd.f32 -0.28449672, %v911_v54  ;;  %v912_v39 = vmul.f32 %v880_v37, %v12743_v18  ;;  %v881_v53 = vadd.f32 1.4214138, %v849_v13 }
  0xfb   : > { %v1195_v12 = vmul.f32 %v12685_v52, %v1035_v27  ;;  %v818_v49 = vadd.f32 -1.4531521, %v786_v51  ;;  %v1037_v10 = vmul.f32 %v1005_v25, %v12710_v31  ;;  %v1006_v41 = vadd.f32 0.2548296, %v974_v3 }
  0xfc   : > { %v1196_v35 = vmul.f32 %v12700_v63, %v1036_v34  ;;  %v975_v28 = vmul.f32 %v943_v29, %v12733_v62  ;;  %v944_v27 = vadd.f32 -0.28449672, %v912_v39  ;;  %v913_v52 = vmul.f32 %v881_v53, %v12752_v45 }
  0xfd   : > { %v1227_v0 = vsub.f32 1.0, %v1195_v12  ;;  %v850_v63 = vmul.f32 %v818_v49, %v12766_v36  ;;  %v1197_v46 = vmul.f32 %v12708_v50, %v1037_v10  ;;  %v1038_v54 = vmul.f32 %v1006_v41, %v12721_v9 }
  0xfe   : > { %v1228_v6 = vsub.f32 1.0, %v1196_v35  ;;  %v1007_v34 = vadd.f32 0.2548296, %v975_v28  ;;  %v976_v31 = vmul.f32 %v944_v27, %v12743_v18  ;;  %v945_v13 = vadd.f32 -0.28449672, %v913_v52 }
  0xff   : > { %v1291_v43 = vsub.f32 0.0, %v1227_v0  ;;  %v882_v51 = vadd.f32 1.4214138, %v850_v63  ;;  %v1229_v25 = vsub.f32 1.0, %v1197_v46  ;;  %v1198_v3 = vmul.f32 %v12712_v14, %v1038_v54 }
 0x100   : > { %v1292_v37 = vsub.f32 0.0, %v1228_v6  ;;  %v1039_v29 = vmul.f32 %v1007_v34, %v12733_v62  ;;  %v1008_v50 = vadd.f32 0.2548296, %v976_v31  ;;  %v977_v39 = vmul.f32 %v945_v13, %v12752_v45 }
 0x101   : > { %v1323_v12 = vsel %vm1259_vm0, %v1227_v0, %v1291_v43  ;;  %v1293_v49 = vsub.f32 0.0, %v1229_v25  ;;  %v1230_v10 = vsub.f32 1.0, %v1198_v3  ;;  %v914_v62 = vmul.f32 %v882_v51, %v12766_v36 }
 0x102   : > { %v1387_v35 = vadd.f32 1.0, %v1323_v12  ;;  %v1324_v9 = vsel %vm1260_vm1, %v1228_v6, %v1292_v37  ;;  %v1199_v15 = vmul.f32 %v12730_v55, %v1039_v29  ;;  %v1040_v14 = vmul.f32 %v1008_v50, %v12743_v18 }
 0x103   : > { %v1388_v53 = vadd.f32 1.0, %v1324_v9  ;;  %v1009_v41 = vadd.f32 0.2548296, %v977_v39  ;;  %v1325_v17 = vsel %vm1261_vm2, %v1229_v25, %v1293_v49  ;;  %v1294_v6 = vsub.f32 0.0, %v1230_v10 }
 0x104   : > { %v1419_v0 = vmul.f32 %v1387_v35, %v12646_v30  ;;  %v1231_v27 = vsub.f32 1.0, %v1199_v15  ;;  %v1389_v52 = vadd.f32 1.0, %v1325_v17  ;;  %v1200_v63 = vmul.f32 %v12737_v59, %v1040_v14 }
 0x105   : > { %v1420_v28 = vmul.f32 %v1388_v53, %v12659_v58  ;;  %v1041_v55 = vmul.f32 %v1009_v41, %v12752_v45  ;;  %v946_v30 = vadd.f32 -0.28449672, %v914_v62  ;;  %v1326_v18 = vsel %vm1262_vm3, %v1230_v10, %v1294_v6 }
 0x106   : > { %1452 = vst [vmem:[#allocation2 + $0x19] sm:$0xff] %v1419_v0  ;;  %9200 = vmatprep.mubr.f32.mxu0 %v1419_v0  ;;  %v1295_v43 = vsub.f32 0.0, %v1231_v27  ;;  %v691_v47 = vmul.f32 %v12771_v44, %v12717_v24  ;;  %v628_v58 = vadd.f32 1.0, %v12746_v42  ;;  %v1421_v46 = vmul.f32 %v1389_v52, %v12673_v19 }
 0x107   : > { %1453 = vst [vmem:[#allocation2 + $0x21] sm:$0xff] %v1420_v28  ;;  %9201 = vmatmul.mubr.f32.gmra.mrb[2].mxu0 %v1420_v28  ;;  %v1390_v54 = vadd.f32 1.0, %v1326_v18  ;;  %v1232_v34 = vsub.f32 1.0, %v1200_v63  ;;  %v1201_v59 = vmul.f32 %v12749_v5, %v1041_v55  ;;  %v978_v37 = vmul.f32 %v946_v30, %v12766_v36 }
 0x108   : > { %v1327_v45 = vsel %vm1263_vm4, %v1231_v27, %v1295_v43  ;;  %v723_v31 = vsub.f32 2.0, %v691_v47  ;;  %11801 = vrcp.f32 %v628_v58  ;;  %1454 = vst [vmem:[#allocation2 + $0x31] sm:$0xff] %v1421_v46  ;;  %9203 = vmatprep.mubr.f32.mxu0 %v1421_v46  ;;  %v1360_v19 = vmul.f32 0.5, %v12622_v1 }
 0x109   : > { %v1422_v48 = vmul.f32 %v1390_v54, %v12678_v38  ;;  %v1391_v24 = vadd.f32 1.0, %v1327_v45  ;;  %v1296_v13 = vsub.f32 0.0, %v1232_v34  ;;  %v1233_v42 = vsub.f32 1.0, %v1201_v59 }
 0x10a   : > { %vm1265_vm6 = vcmp.ge.f32.partialorder %v12649_v32, 0.0  ;;  %v1010_v51 = vadd.f32 0.2548296, %v978_v37  ;;  %v12821_v5 = vmul.f32 %v12771_v44, %v723_v31  ;;  %v1361_v38 = vmul.f32 0.5, %v12625_v7  ;;  %v16378_v37 = vld [vmem:[#allocation13_spill] sm:$0xff] }
 0x10b   : > { %1455 = vst [vmem:[#allocation2 + $0x39] sm:$0xff] %v1422_v48  ;;  %9204 = vmatmul.mubr.f32.gmra.mrb[4].mxu0 %v1422_v48  ;;  %v1423_v11 = vmul.f32 %v1391_v24, %v12715_v23  ;;  %v1328_v12 = vsel %vm1264_vm5, %v1232_v34, %v1296_v13  ;;  %v1297_v25 = vsub.f32 0.0, %v1233_v42  ;;  %v1147_v32 = vmul.f32 1.442695, %v12725_v2 }
 0x10c   : > { %v1392_v3 = vadd.f32 1.0, %v1328_v12  ;;  %v1042_v29 = vmul.f32 %v1010_v51, %v12766_v36  ;;  %v787_v1 = vmul.f32 1.0614054, %v12821_v5  ;;  %v16375_v35 = vsub.f32 %v12494_v57, %v12569_v20  ;;  %v1525_v51 = vld [vmem:[#allocation6 + $0x48] sm:$0xff] }
 0x10d   : > { %1456 = vst [vmem:[#allocation2 + $0x49] sm:$0xff] %v1423_v11  ;;  %9206 = vmatprep.mubr.f32.mxu0 %v1423_v11  ;;  %v1329_v44 = vsel %vm1265_vm6, %v1233_v42, %v1297_v25  ;;  %v12840_v7 = vmul.f32 %v12581_v40, %v16376_v26  ;;  %v16377_v36 = vsub.f32 %v12506_v4, %v12569_v20  ;;  %vm1266_vm7 = vcmp.ge.f32.partialorder %v12664_v60, 0.0  ;;  %v16380_v11 = vld [vmem:[#allocation15_spill] sm:$0xff] }
 0x10e   : > { %v12834_v23 = vmul.f32 %v12581_v40, %v16375_v35  ;;  %v1424_v9 = vmul.f32 %v1392_v3, %v1360_v19  ;;  %v1393_v50 = vadd.f32 1.0, %v1329_v44  ;;  %v1202_v39 = vmul.f32 %v12758_v21, %v1042_v29  ;;  %v1524_v19 = vld [vmem:[#allocation6 + $0x40] sm:$0xff]  ;;  %v16381_v29 = vld [vmem:[#allocation16_spill] sm:$0xff] }
 0x10f   : > { %v12846_v2 = vmul.f32 %v12581_v40, %v16377_v36  ;;  %v819_v57 = vadd.f32 -1.4531521, %v787_v1  ;;  %v470_v61 = vsub.f32 %v12512_v8, %v12569_v20  ;;  %v12856_v15 = vmul.f32 0.70710677, %v12840_v7  ;;  %v16382_v44 = vld [vmem:[#allocation17_spill] sm:$0xff] }
 0x110   : > { %v12850_v53 = vmul.f32 0.70710677, %v12834_v23  ;;  %1457 = vst [vmem:[#allocation2 + $0x51] sm:$0xff] %v1424_v9  ;;  %9207 = vmatmul.mubr.f32.gmra.mrb[6].mxu0 %v1424_v9  ;;  %v1425_v49 = vmul.f32 %v1393_v50, %v1361_v38  ;;  %v1234_v10 = vsub.f32 1.0, %v1202_v39  ;;  %11803 = vpow2.f32 %v1147_v32  ;;  %v16383_v50 = vld [vmem:[#allocation18_spill] sm:$0xff] }
 0x111   : > { %v851_v4 = vmul.f32 %v819_v57, %v12821_v5  ;;  %v12861_v0 = vmul.f32 0.70710677, %v12846_v2  ;;  %v1076_v62 = vsub.f32 0.0, %v12728_v56  ;;  %v566_v28 = vand.u32 2147483647, %v12856_v15 }
 0x112   : > { %v565_v21 = vand.u32 2147483647, %v12850_v53  ;;  %v11802_v14 = vpop.eup %11801  ;;  %1458 = vst [vmem:[#allocation2 + $0x61] sm:$0xff] %v1425_v49  ;;  %9209 = vmatprep.mubr.f32.mxu0 %v1425_v49  ;;  %v1298_v8 = vsub.f32 0.0, %v1234_v10  ;;  %v1362_v17 = vmul.f32 0.5, %v12652_v33  ;;  %v471_v30 = vsub.f32 %v12518_v16, %v12569_v20 }
 0x113   : > { %v883_v41 = vadd.f32 1.4214138, %v851_v4  ;;  %v692_v6 = vmul.f32 %v11802_v14, %v628_v58  ;;  %v12867_v60 = vand.u32 2147483647, %v12861_v0  ;;  %v598_v55 = vmul.f32 0.3275911, %v566_v28 }
 0x114   : > { %v597_v27 = vmul.f32 0.3275911, %v565_v21  ;;  %v1330_v52 = vsel %vm1266_vm7, %v1234_v10, %v1298_v8  ;;  %v472_v46 = vsub.f32 %v12524_v22, %v12569_v20  ;;  %v1108_v33 = vmul.f32 %v1076_v62, %v12728_v56  ;;  %v16379_v22 = vld [vmem:[#allocation14_spill] sm:$0xff]  ;;  %v16384_v8 = vld [vmem:[#allocation19_spill] sm:$0xff] }
 0x115   : > { %v915_v63 = vmul.f32 %v883_v41, %v12821_v5  ;;  %v1394_v18 = vadd.f32 1.0, %v1330_v52  ;;  %v724_v43 = vsub.f32 2.0, %v692_v6  ;;  %v630_v58 = vadd.f32 1.0, %v598_v55 }
 0x116   : > { %v629_v47 = vadd.f32 1.0, %v597_v27  ;;  %v599_v34 = vmul.f32 0.3275911, %v12867_v60  ;;  %v473_v31 = vsub.f32 %v16378_v37, %v12569_v20  ;;  %v474_v24 = vsub.f32 %v16379_v22, %v12569_v20 }
 0x117   : > { %v947_v54 = vadd.f32 -0.28449672, %v915_v63  ;;  %v1426_v59 = vmul.f32 %v1394_v18, %v1362_v17  ;;  %v12876_v45 = vmul.f32 %v11802_v14, %v724_v43  ;;  %v1077_v13 = vsub.f32 0.0, %v565_v21 }
 0x118   : > { %11805 = vrcp.f32 %v629_v47  ;;  %v12881_v48 = vadd.f32 1.0, %v599_v34  ;;  %v1078_v42 = vsub.f32 0.0, %v566_v28  ;;  %v475_v12 = vsub.f32 %v16380_v11, %v12569_v20 }
 0x119   : > { %v979_v16 = vmul.f32 %v947_v54, %v12821_v5  ;;  %11807 = vrcp.f32 %v630_v58  ;;  %1459 = vst [vmem:[#allocation2 + $0x69] sm:$0xff] %v1426_v59  ;;  %9210 = vmatmul.mubr.f32.gmra.mrb[8].mxu0 %v1426_v59  ;;  %v788_v56 = vmul.f32 1.0614054, %v12876_v45  ;;  %v1149_v38 = vmul.f32 1.442695, %v1108_v33 }
 0x11a   : > { %v12889_v3 = vmul.f32 %v12581_v40, %v470_v61  ;;  %v476_v1 = vsub.f32 %v16381_v29, %v12569_v20  ;;  %v11804_v32 = vpop.eup %11803  ;;  %v1363_v35 = vmul.f32 0.5, %v16382_v44  ;;  %11809 = vrcp.f32 %v12881_v48  ;;  %v16385_v44 = vld [vmem:[#allocation20_spill] sm:$0xff] }
 0x11b   : > { %v1011_v25 = vadd.f32 0.2548296, %v979_v16  ;;  %v820_v26 = vadd.f32 -1.4531521, %v788_v56  ;;  %v12896_v36 = vmul.f32 %v12581_v40, %v471_v30  ;;  %vm1267_vm8 = vcmp.ge.f32.partialorder %v16383_v50, 0.0 }
 0x11c   : > { %v12901_v39 = vmul.f32 0.70710677, %v12889_v3  ;;  %v10653_v57 = vpack.c.bf16 %v1525_v51, %v1524_v19  ;;  %v1109_v49 = vmul.f32 %v1077_v13, %v565_v21  ;;  %v1110_v10 = vmul.f32 %v1078_v42, %v566_v28 }
 0x11d   : > { %v1043_v9 = vmul.f32 %v1011_v25, %v12821_v5  ;;  %v852_v61 = vmul.f32 %v820_v26, %v12876_v45  ;;  %v12905_v4 = vmul.f32 0.70710677, %v12896_v36  ;;  %11811 = vpow2.f32 %v1149_v38 }
 0x11e   : > { %v12908_v41 = vmul.f32 0.5, %v16384_v8  ;;  %v568_v5 = vand.u32 2147483647, %v12901_v39  ;;  %10654 = vmatprep.subr.bf16.mxu0 %v10653_v57  ;;  %v12912_v17 = vmul.f32 0.5, %v12834_v23  ;;  %v12918_v21 = vmul.f32 %v12581_v40, %v472_v46 }
 0x11f   : > { %v1203_v14 = vmul.f32 %v11804_v32, %v1043_v9  ;;  %v884_v62 = vadd.f32 1.4214138, %v852_v61  ;;  %v12915_v6 = vand.u32 2147483647, %v12905_v4  ;;  %10656 = vmatpush3.bf16.msra.mxu0 %v10653_v57  ;;  %v12921_v27 = vmul.f32 0.5, %v12840_v7 }
 0x120   : > { %v1079_v52 = vsub.f32 0.0, %v12867_v60  ;;  %v600_v63 = vmul.f32 0.3275911, %v568_v5  ;;  %v1151_v18 = vmul.f32 1.442695, %v1109_v49  ;;  %v1080_v59 = vsub.f32 0.0, %v568_v5 }
 0x121   : > { %v1235_v28 = vsub.f32 1.0, %v1203_v14  ;;  %v916_v30 = vmul.f32 %v884_v62, %v12876_v45  ;;  %v1153_v23 = vmul.f32 1.442695, %v1110_v10  ;;  %v601_v43 = vmul.f32 0.3275911, %v12915_v6 }
 0x122   : > { %v11806_v55 = vpop.eup %11805  ;;  %v632_v46 = vadd.f32 1.0, %v600_v63  ;;  %v12927_v7 = vmul.f32 0.70710677, %v12918_v21  ;;  %v1111_v51 = vmul.f32 %v1079_v52, %v12867_v60  ;;  %vm1268_vm9 = vcmp.ge.f32.partialorder %v16385_v44, 0.0 }
 0x123   : > { %v11808_v54 = vpop.eup %11807  ;;  %v1299_v33 = vsub.f32 0.0, %v1235_v28  ;;  %v693_v34 = vmul.f32 %v11806_v55, %v629_v47  ;;  %v948_v16 = vadd.f32 -0.28449672, %v916_v30  ;;  %v633_v13 = vadd.f32 1.0, %v601_v43 }
 0x124   : > { %v694_v56 = vmul.f32 %v11808_v54, %v630_v58  ;;  %11813 = vrcp.f32 %v632_v46  ;;  %v11810_v25 = vpop.eup %11809  ;;  %v1112_v9 = vmul.f32 %v1080_v59, %v568_v5  ;;  %v570_v60 = vand.u32 2147483647, %v12927_v7 }
 0x125   : > { %v1331_v42 = vsel %vm1267_vm8, %v1235_v28, %v1299_v33  ;;  %v725_v19 = vsub.f32 2.0, %v693_v34  ;;  %v980_v32 = vmul.f32 %v948_v16, %v12876_v45  ;;  %11815 = vrcp.f32 %v633_v13 }
 0x126   : > { %v1395_v38 = vadd.f32 1.0, %v1331_v42  ;;  %v726_v47 = vsub.f32 2.0, %v694_v56  ;;  %11817 = vpow2.f32 %v1151_v18  ;;  %v695_v26 = vmul.f32 %v11810_v25, %v12881_v48 }
 0x127   : > { %v12934_v58 = vmul.f32 %v11806_v55, %v725_v19  ;;  %v1012_v57 = vadd.f32 0.2548296, %v980_v32  ;;  %v11812_v49 = vpop.eup %11811  ;;  %11819 = vpow2.f32 %v1153_v23  ;;  %v1155_v8 = vmul.f32 1.442695, %v1111_v51 }
 0x128   : > { %v1427_v50 = vmul.f32 %v1395_v38, %v1363_v35  ;;  %v12937_v61 = vmul.f32 %v11808_v54, %v726_v47  ;;  %v727_v14 = vsub.f32 2.0, %v695_v26  ;;  %v1081_v48 = vsub.f32 0.0, %v12915_v6 }
 0x129   : > { %v789_v10 = vmul.f32 1.0614054, %v12934_v58  ;;  %v1044_v62 = vmul.f32 %v1012_v57, %v12876_v45  ;;  %v602_v35 = vmul.f32 0.3275911, %v570_v60  ;;  %v1157_v63 = vmul.f32 1.442695, %v1112_v9 }
 0x12a   : > { %1460 = vst [vmem:[#allocation2 + $0x79] sm:$0xff] %v1427_v50  ;;  %9212 = vmatprep.mubr.f32.mxu0 %v1427_v50  ;;  %v790_v28 = vmul.f32 1.0614054, %v12937_v61  ;;  %v12944_v52 = vmul.f32 %v11810_v25, %v727_v14  ;;  %v12950_v55 = vmul.f32 %v12581_v40, %v473_v31  ;;  %v12953_v23 = vmul.f32 0.5, %v12846_v2 }
 0x12b   : > { %v821_v5 = vadd.f32 -1.4531521, %v789_v10  ;;  %v1204_v30 = vmul.f32 %v11812_v49, %v1044_v62  ;;  %v12955_v45 = vadd.f32 1.0, %v602_v35  ;;  %11821 = vpow2.f32 %v1155_v8 }
 0x12c   : > { %v822_v18 = vadd.f32 -1.4531521, %v790_v28  ;;  %v791_v54 = vmul.f32 1.0614054, %v12944_v52  ;;  %v12960_v33 = vmul.f32 0.70710677, %v12950_v55  ;;  %v1113_v31 = vmul.f32 %v1081_v48, %v12915_v6 }
 0x12d   : > { %v853_v43 = vmul.f32 %v821_v5, %v12934_v58  ;;  %v1236_v34 = vsub.f32 1.0, %v1204_v30  ;;  %11823 = vrcp.f32 %v12955_v45  ;;  %v1082_v38 = vsub.f32 0.0, %v570_v60  ;;  %v1527_v30 = vld [vmem:[#allocation6 + $0x58] sm:$0xff] }
 0x12e   : > { %v854_v37 = vmul.f32 %v822_v18, %v12937_v61  ;;  %v11814_v59 = vpop.eup %11813  ;;  %v823_v16 = vadd.f32 -1.4531521, %v791_v54  ;;  %11825 = vpow2.f32 %v1157_v63  ;;  %v12966_v56 = vand.u32 2147483647, %v12960_v33 }
 0x12f   : > { %v885_v2 = vadd.f32 1.4214138, %v853_v43  ;;  %v11816_v42 = vpop.eup %11815  ;;  %v1300_v19 = vsub.f32 0.0, %v1236_v34  ;;  %v696_v25 = vmul.f32 %v11814_v59, %v632_v46  ;;  %v1159_v10 = vmul.f32 1.442695, %v1113_v31 }
 0x130   : > { %v886_v51 = vadd.f32 1.4214138, %v854_v37  ;;  %v11818_v32 = vpop.eup %11817  ;;  %v855_v26 = vmul.f32 %v823_v16, %v12944_v52  ;;  %v697_v6 = vmul.f32 %v11816_v42, %v633_v13  ;;  %v603_v9 = vmul.f32 0.3275911, %v12966_v56  ;;  %v1526_v13 = vld [vmem:[#allocation6 + $0x50] sm:$0xff] }
 0x131   : > { %v917_v47 = vmul.f32 %v885_v2, %v12934_v58  ;;  %v1332_v50 = vsel %vm1268_vm9, %v1236_v34, %v1300_v19  ;;  %v728_v49 = vsub.f32 2.0, %v696_v25  ;;  %v11820_v14 = vpop.eup %11819  ;;  %v1114_v5 = vmul.f32 %v1082_v38, %v570_v60 }
 0x132   : > { %v918_v57 = vmul.f32 %v886_v51, %v12937_v61  ;;  %v1396_v8 = vadd.f32 1.0, %v1332_v50  ;;  %v887_v46 = vadd.f32 1.4214138, %v855_v26  ;;  %v729_v28 = vsub.f32 2.0, %v697_v6 }
 0x133   : > { %v949_v62 = vadd.f32 -0.28449672, %v917_v47  ;;  %v12974_v35 = vmul.f32 %v11814_v59, %v728_v49  ;;  %v12976_v63 = vadd.f32 1.0, %v603_v9  ;;  %vm1269_vm10 = vcmp.ge.f32.partialorder %v12850_v53, 0.0 }
 0x134   : > { %v950_v48 = vadd.f32 -0.28449672, %v918_v57  ;;  %v1428_v44 = vmul.f32 %v1396_v8, %v12908_v41  ;;  %v919_v43 = vmul.f32 %v887_v46, %v12944_v52  ;;  %v12981_v54 = vmul.f32 %v11816_v42, %v729_v28 }
 0x135   : > { %v981_v18 = vmul.f32 %v949_v62, %v12934_v58  ;;  %v792_v37 = vmul.f32 1.0614054, %v12974_v35  ;;  %11827 = vrcp.f32 %v12976_v63  ;;  %v12991_v60 = vmul.f32 %v12581_v40, %v474_v24  ;;  %v11822_v41 = vpop.eup %11821 }
 0x136   : > { %v982_v34 = vmul.f32 %v950_v48, %v12937_v61  ;;  %1461 = vst [vmem:[#allocation2 + $0x81] sm:$0xff] %v1428_v44  ;;  %9213 = vmatmul.mubr.f32.gmra.mrb[10].mxu0 %v1428_v44  ;;  %vm1270_vm11 = vcmp.ge.f32.partialorder %v12856_v15, 0.0  ;;  %v951_v59 = vadd.f32 -0.28449672, %v919_v43  ;;  %v793_v2 = vmul.f32 1.0614054, %v12981_v54 }
 0x137   : > { %v1013_v31 = vadd.f32 0.2548296, %v981_v18  ;;  %v10657_v16 = vpack.c.bf16 %v1527_v30, %v1526_v13  ;;  %v11824_v42 = vpop.eup %11823  ;;  %v824_v51 = vadd.f32 -1.4531521, %v792_v37  ;;  %11829 = vpow2.f32 %v1159_v10 }
 0x138   : > { %v1014_v19 = vadd.f32 0.2548296, %v982_v34  ;;  %v1161_v25 = vmul.f32 1.442695, %v1114_v5  ;;  %v12995_v38 = vpop.eup %11825  ;;  %v983_v24 = vmul.f32 %v951_v59, %v12944_v52  ;;  %v825_v47 = vadd.f32 -1.4531521, %v793_v2 }
 0x139   : > { %v1045_v22 = vmul.f32 %v1013_v31, %v12934_v58  ;;  %v698_v26 = vmul.f32 %v11824_v42, %v12955_v45  ;;  %10658 = vmatprep.subr.bf16.mxu0 %v10657_v16  ;;  %vm1271_vm12 = vcmp.ge.f32.partialorder %v12861_v0, 0.0  ;;  %v856_v9 = vmul.f32 %v824_v51, %v12974_v35 }
 0x13a   : > { %v1046_v6 = vmul.f32 %v1014_v19, %v12937_v61  ;;  %v13004_v50 = vmul.f32 0.70710677, %v12991_v60  ;;  %v13010_v58 = vmul.f32 %v12581_v40, %v475_v12  ;;  %10660 = vmatpush3.bf16.msra.mxu0 %v10657_v16  ;;  %v1015_v49 = vadd.f32 0.2548296, %v983_v24 }
 0x13b   : > { %v1205_v57 = vmul.f32 %v11818_v32, %v1045_v22  ;;  %v857_v45 = vmul.f32 %v825_v47, %v12981_v54  ;;  %v730_v10 = vsub.f32 2.0, %v698_v26  ;;  %v888_v8 = vadd.f32 1.4214138, %v856_v9 }
 0x13c   : > { %v1206_v61 = vmul.f32 %v11820_v14, %v1046_v6  ;;  %v1083_v62 = vsub.f32 0.0, %v12966_v56  ;;  %v13015_v46 = vand.u32 2147483647, %v13004_v50  ;;  %v1047_v48 = vmul.f32 %v1015_v49, %v12944_v52 }
 0x13d   : > { %v1237_v28 = vsub.f32 1.0, %v1205_v57  ;;  %v889_v11 = vadd.f32 1.4214138, %v857_v45  ;;  %v13018_v5 = vmul.f32 %v11824_v42, %v730_v10  ;;  %v920_v32 = vmul.f32 %v888_v8, %v12974_v35  ;;  %v12025_v8 = vld [vmem:[%s12427_s12 + $0xa0] sm:$0xff] }
 0x13e   : > { %v1238_v12 = vsub.f32 1.0, %v1206_v61  ;;  %11831 = vpow2.f32 %v1161_v25  ;;  %v604_v13 = vmul.f32 0.3275911, %v13015_v46  ;;  %v1207_v14 = vmul.f32 %v11822_v41, %v1047_v48 }
 0x13f   : > { %v1301_v30 = vsub.f32 0.0, %v1237_v28  ;;  %v921_v44 = vmul.f32 %v889_v11, %v12981_v54  ;;  %v794_v18 = vmul.f32 1.0614054, %v13018_v5  ;;  %v11828_v43 = vpop.eup %11827  ;;  %v952_v37 = vadd.f32 -0.28449672, %v920_v32 }
 0x140   : > { %v1302_v34 = vsub.f32 0.0, %v1238_v12  ;;  %v1115_v52 = vmul.f32 %v1083_v62, %v12966_v56  ;;  %v13025_v31 = vadd.f32 1.0, %v604_v13  ;;  %v1239_v2 = vsub.f32 1.0, %v1207_v14 }
 0x141   : > { %v1333_v59 = vsel %vm1269_vm10, %v1237_v28, %v1301_v30  ;;  %v953_v16 = vadd.f32 -0.28449672, %v921_v44  ;;  %v826_v42 = vadd.f32 -1.4531521, %v794_v18  ;;  %v11830_v19 = vpop.eup %11829  ;;  %v984_v25 = vmul.f32 %v952_v37, %v12974_v35 }
 0x142   : > { %v1397_v51 = vadd.f32 1.0, %v1333_v59  ;;  %v1334_v41 = vsel %vm1270_vm11, %v1238_v12, %v1302_v34  ;;  %v699_v22 = vmul.f32 %v11828_v43, %v12976_v63  ;;  %v1303_v47 = vsub.f32 0.0, %v1239_v2 }
 0x143   : > { %v1398_v24 = vadd.f32 1.0, %v1334_v41  ;;  %v985_v56 = vmul.f32 %v953_v16, %v12981_v54  ;;  %v858_v53 = vmul.f32 %v826_v42, %v13018_v5  ;;  %v1016_v6 = vadd.f32 0.2548296, %v984_v25 }
 0x144   : > { %v1429_v26 = vmul.f32 %v1397_v51, %v12912_v17  ;;  %v731_v9 = vsub.f32 2.0, %v699_v22  ;;  %11833 = vrcp.f32 %v13025_v31  ;;  %v1335_v57 = vsel %vm1271_vm12, %v1239_v2, %v1303_v47 }
 0x145   : > { %v1430_v15 = vmul.f32 %v1398_v24, %v12921_v27  ;;  %v1017_v49 = vadd.f32 0.2548296, %v985_v56  ;;  %v890_v63 = vadd.f32 1.4214138, %v858_v53  ;;  %v1399_v45 = vadd.f32 1.0, %v1335_v57 }
 0x146   : > { %1462 = vst [vmem:[#allocation2 + $0x91] sm:$0xff] %v1429_v26  ;;  %9215 = vmatprep.mubr.f32.mxu0 %v1429_v26  ;;  %v1048_v10 = vmul.f32 %v1016_v6, %v12974_v35  ;;  %v13041_v61 = vmul.f32 %v11828_v43, %v731_v9  ;;  %v477_v17 = vsub.f32 %v12025_v8, %v12569_v20  ;;  %v1368_v62 = vmul.f32 0.5, %v12889_v3 }
 0x147   : > { %1463 = vst [vmem:[#allocation2 + $0x99] sm:$0xff] %v1430_v15  ;;  %9216 = vmatmul.mubr.f32.gmra.mrb[12].mxu0 %v1430_v15  ;;  %v1049_v27 = vmul.f32 %v1017_v49, %v12981_v54  ;;  %v922_v0 = vmul.f32 %v890_v63, %v13018_v5  ;;  %v13049_v28 = vmul.f32 0.70710677, %v13010_v58  ;;  %v1431_v11 = vmul.f32 %v1399_v45, %v12953_v23  ;;  %v12026_v45 = vld [vmem:[%s12427_s12 + $0xa8] sm:$0xff] }
 0x148   : > { %v11832_v48 = vpop.eup %11831  ;;  %v1208_v35 = vmul.f32 %v12995_v38, %v1048_v10  ;;  %v1369_v12 = vmul.f32 0.5, %v12896_v36  ;;  %v795_v32 = vmul.f32 1.0614054, %v13041_v61  ;;  %v1163_v14 = vmul.f32 1.442695, %v1115_v52 }
 0x149   : > { %v1209_v13 = vmul.f32 %v11830_v19, %v1049_v27  ;;  %v954_v30 = vadd.f32 -0.28449672, %v922_v0  ;;  %v13056_v3 = vand.u32 2147483647, %v13049_v28  ;;  %1464 = vst [vmem:[#allocation2 + $0xa9] sm:$0xff] %v1431_v11  ;;  %9218 = vmatprep.mubr.f32.mxu0 %v1431_v11  ;;  %vm1272_vm13 = vcmp.ge.f32.partialorder %v12901_v39, 0.0 }
 0x14a   : > { %v1240_v54 = vsub.f32 1.0, %v1208_v35  ;;  %v827_v44 = vadd.f32 -1.4531521, %v795_v32  ;;  %v13063_v23 = vmul.f32 %v12581_v40, %v476_v1  ;;  %vm1273_vm14 = vcmp.ge.f32.partialorder %v12905_v4, 0.0 }
 0x14b   : > { %v1241_v36 = vsub.f32 1.0, %v1209_v13  ;;  %v986_v38 = vmul.f32 %v954_v30, %v13018_v5  ;;  %v605_v18 = vmul.f32 0.3275911, %v13056_v3  ;;  %v1084_v37 = vsub.f32 0.0, %v13015_v46 }
 0x14c   : > { %v1304_v43 = vsub.f32 0.0, %v1240_v54  ;;  %v859_v34 = vmul.f32 %v827_v44, %v13041_v61  ;;  %v13071_v52 = vmul.f32 0.70710677, %v13063_v23  ;;  %11835 = vpow2.f32 %v1163_v14 }
 0x14d   : > { %v1305_v59 = vsub.f32 0.0, %v1241_v36  ;;  %v1018_v29 = vadd.f32 0.2548296, %v986_v38  ;;  %v637_v1 = vadd.f32 1.0, %v605_v18  ;;  %v13079_v51 = vmul.f32 %v12581_v40, %v477_v17 }
 0x14e   : > { %v11834_v2 = vpop.eup %11833  ;;  %v1336_v16 = vsel %vm1272_vm13, %v1240_v54, %v1304_v43  ;;  %v891_v42 = vadd.f32 1.4214138, %v859_v34  ;;  %v13076_v19 = vand.u32 2147483647, %v13071_v52  ;;  %v1116_v39 = vmul.f32 %v1084_v37, %v13015_v46  ;;  %v1529_v34 = vld [vmem:[#allocation6 + $0x68] sm:$0xff] }
 0x14f   : > { %v1400_v41 = vadd.f32 1.0, %v1336_v16  ;;  %v1337_v25 = vsel %vm1273_vm14, %v1241_v36, %v1305_v59  ;;  %v1050_v22 = vmul.f32 %v1018_v29, %v13018_v5  ;;  %v700_v24 = vmul.f32 %v11834_v2, %v13025_v31 }
 0x150   : > { %v1401_v47 = vadd.f32 1.0, %v1337_v25  ;;  %v923_v56 = vmul.f32 %v891_v42, %v13041_v61  ;;  %11837 = vrcp.f32 %v637_v1  ;;  %v606_v9 = vmul.f32 0.3275911, %v13076_v19 }
 0x151   : > { %v1432_v53 = vmul.f32 %v1400_v41, %v1368_v62  ;;  %v1210_v26 = vmul.f32 %v11832_v48, %v1050_v22  ;;  %v732_v6 = vsub.f32 2.0, %v700_v24  ;;  %v13093_v49 = vmul.f32 0.70710677, %v13079_v51  ;;  %v12027_v41 = vld [vmem:[%s12427_s12 + $0xb0] sm:$0xff] }
 0x152   : > { %v1433_v15 = vmul.f32 %v1401_v47, %v1369_v12  ;;  %v955_v57 = vadd.f32 -0.28449672, %v923_v56  ;;  %v13090_v31 = vadd.f32 1.0, %v606_v9  ;;  %vm1274_vm15 = vcmp.ge.f32.partialorder %v12927_v7, 0.0 }
 0x153   : > { %1465 = vst [vmem:[#allocation2 + $0xb1] sm:$0xff] %v1432_v53  ;;  %9219 = vmatmul.mubr.f32.gmra.mrb[14].mxu0 %v1432_v53  ;;  %v1242_v4 = vsub.f32 1.0, %v1210_v26  ;;  %v13088_v5 = vmul.f32 %v11834_v2, %v732_v6  ;;  %v1165_v63 = vmul.f32 1.442695, %v1116_v39  ;;  %v478_v10 = vsub.f32 %v12026_v45, %v12569_v20 }
 0x154   : > { %1466 = vst [vmem:[#allocation2 + $0xc1] sm:$0xff] %v1433_v15  ;;  %9221 = vmatprep.mubr.f32.mxu0 %v1433_v15  ;;  %v987_v46 = vmul.f32 %v955_v57, %v13041_v61  ;;  %11839 = vrcp.f32 %v13090_v31  ;;  %v575_v62 = vand.u32 2147483647, %v13093_v49  ;;  %v1370_v27 = vmul.f32 0.5, %v12918_v21  ;;  %v12028_v57 = vld [vmem:[%s12427_s12 + $0xb8] sm:$0xff] }
 0x155   : > { %v1306_v8 = vsub.f32 0.0, %v1242_v4  ;;  %v796_v17 = vmul.f32 1.0614054, %v13088_v5  ;;  %v13104_v48 = vmul.f32 %v12581_v40, %v478_v10  ;;  %v1085_v12 = vsub.f32 0.0, %v13056_v3 }
 0x156   : > { %v1019_v0 = vadd.f32 0.2548296, %v987_v46  ;;  %v11836_v7 = vpop.eup %11835  ;;  %v607_v32 = vmul.f32 0.3275911, %v575_v62  ;;  %v1371_v14 = vmul.f32 0.5, %v12950_v55  ;;  %vm1275_vm0 = vcmp.ge.f32.partialorder %v12960_v33, 0.0 }
 0x157   : > { %v1338_v11 = vsel %vm1274_vm15, %v1242_v4, %v1306_v8  ;;  %v828_v35 = vadd.f32 -1.4531521, %v796_v17  ;;  %v13110_v54 = vmul.f32 0.70710677, %v13104_v48  ;;  %11841 = vpow2.f32 %v1165_v63  ;;  %v1528_v55 = vld [vmem:[#allocation6 + $0x60] sm:$0xff] }
 0x158   : > { %v1402_v13 = vadd.f32 1.0, %v1338_v11  ;;  %v1051_v30 = vmul.f32 %v1019_v0, %v13041_v61  ;;  %v13114_v44 = vadd.f32 1.0, %v607_v32  ;;  %v1086_v43 = vsub.f32 0.0, %v13076_v19 }
 0x159   : > { %v860_v21 = vmul.f32 %v828_v35, %v13088_v5  ;;  %v13118_v61 = vand.u32 2147483647, %v13110_v54  ;;  %v1117_v29 = vmul.f32 %v1085_v12, %v13056_v3  ;;  %v1087_v16 = vsub.f32 0.0, %v575_v62 }
 0x15a   : > { %v11838_v36 = vpop.eup %11837  ;;  %v1434_v38 = vmul.f32 %v1402_v13, %v1370_v27  ;;  %v1211_v18 = vmul.f32 %v11836_v7, %v1051_v30  ;;  %11843 = vrcp.f32 %v13114_v44  ;;  %v479_v25 = vsub.f32 %v12027_v41, %v12569_v20 }
 0x15b   : > { %v892_v37 = vadd.f32 1.4214138, %v860_v21  ;;  %v701_v59 = vmul.f32 %v11838_v36, %v637_v1  ;;  %v608_v42 = vmul.f32 0.3275911, %v13118_v61  ;;  %v13127_v24 = vmul.f32 0.5, %v12991_v60 }
 0x15c   : > { %1467 = vst [vmem:[#allocation2 + $0xc9] sm:$0xff] %v1434_v38  ;;  %9222 = vmatmul.mubr.f32.gmra.mrb[16].mxu0 %v1434_v38  ;;  %v1243_v2 = vsub.f32 1.0, %v1211_v18  ;;  %v10661_v47 = vpack.c.bf16 %v1529_v34, %v1528_v55  ;;  %v1118_v56 = vmul.f32 %v1086_v43, %v13076_v19  ;;  %v13133_v53 = vmul.f32 %v12581_v40, %v479_v25 }
 0x15d   : > { %v924_v22 = vmul.f32 %v892_v37, %v13088_v5  ;;  %v733_v1 = vsub.f32 2.0, %v701_v59  ;;  %v13130_v39 = vadd.f32 1.0, %v608_v42  ;;  %v1167_v15 = vmul.f32 1.442695, %v1117_v29  ;;  %v12029_v42 = vld [vmem:[%s12427_s12 + $0xc0] sm:$0xff] }
 0x15e   : > { %v1307_v3 = vsub.f32 0.0, %v1243_v2  ;;  %v11840_v26 = vpop.eup %11839  ;;  %10662 = vmatprep.subr.bf16.mxu0 %v10661_v47  ;;  %v480_v60 = vsub.f32 %v12028_v57, %v12569_v20  ;;  %v1119_v19 = vmul.f32 %v1087_v16, %v575_v62  ;;  %v13146_v8 = vmul.f32 0.70710677, %v13133_v53 }
 0x15f   : > { %v956_v6 = vadd.f32 -0.28449672, %v924_v22  ;;  %v13135_v9 = vmul.f32 %v11838_v36, %v733_v1  ;;  %v702_v46 = vmul.f32 %v11840_v26, %v13090_v31  ;;  %11845 = vrcp.f32 %v13130_v39  ;;  %10664 = vmatpush3.bf16.msra.mxu0 %v10661_v47 }
 0x160   : > { %v1339_v4 = vsel %vm1275_vm0, %v1243_v2, %v1307_v3  ;;  %vm1276_vm1 = vcmp.ge.f32.partialorder %v13004_v50, 0.0  ;;  %v13150_v17 = vmul.f32 0.5, %v13010_v58  ;;  %v1169_v27 = vmul.f32 1.442695, %v1118_v56 }
 0x161   : > { %v1403_v63 = vadd.f32 1.0, %v1339_v4  ;;  %v988_v45 = vmul.f32 %v956_v6, %v13088_v5  ;;  %v797_v10 = vmul.f32 1.0614054, %v13135_v9  ;;  %v734_v33 = vsub.f32 2.0, %v702_v46  ;;  %v11842_v62 = vpop.eup %11841 }
 0x162   : > { %v13153_v31 = vmul.f32 %v12581_v40, %v480_v60  ;;  %v577_v35 = vand.u32 2147483647, %v13146_v8  ;;  %v13159_v32 = vmul.f32 0.5, %v13063_v23  ;;  %v1171_v13 = vmul.f32 1.442695, %v1119_v19 }
 0x163   : > { %v1435_v0 = vmul.f32 %v1403_v63, %v1371_v14  ;;  %v1020_v7 = vadd.f32 0.2548296, %v988_v45  ;;  %v829_v11 = vadd.f32 -1.4531521, %v797_v10  ;;  %v13156_v12 = vmul.f32 %v11840_v26, %v734_v33 }
 0x164   : > { %v13162_v58 = vmul.f32 0.70710677, %v13153_v31  ;;  %v11844_v30 = vpop.eup %11843  ;;  %11847 = vpow2.f32 %v1167_v15  ;;  %v609_v36 = vmul.f32 0.3275911, %v577_v35  ;;  %v1088_v23 = vsub.f32 0.0, %v13118_v61 }
 0x165   : > { %1468 = vst [vmem:[#allocation2 + $0xd9] sm:$0xff] %v1435_v0  ;;  %9224 = vmatprep.mubr.f32.mxu0 %v1435_v0  ;;  %v1052_v21 = vmul.f32 %v1020_v7, %v13088_v5  ;;  %v861_v14 = vmul.f32 %v829_v11, %v13135_v9  ;;  %v798_v38 = vmul.f32 1.0614054, %v13156_v12  ;;  %v703_v18 = vmul.f32 %v11844_v30, %v13114_v44 }
 0x166   : > { %v13170_v43 = vand.u32 2147483647, %v13162_v58  ;;  %11849 = vpow2.f32 %v1169_v27  ;;  %v641_v37 = vadd.f32 1.0, %v609_v36  ;;  %v481_v44 = vsub.f32 %v12029_v42, %v12569_v20 }
 0x167   : > { %v1212_v55 = vmul.f32 %v11842_v62, %v1052_v21  ;;  %v893_v34 = vadd.f32 1.4214138, %v861_v14  ;;  %v830_v59 = vadd.f32 -1.4531521, %v798_v38  ;;  %v735_v5 = vsub.f32 2.0, %v703_v18 }
 0x168   : > { %11851 = vpow2.f32 %v1171_v13  ;;  %v610_v29 = vmul.f32 0.3275911, %v13170_v43  ;;  %v1120_v1 = vmul.f32 %v1088_v23, %v13118_v61  ;;  %v1089_v6 = vsub.f32 0.0, %v577_v35  ;;  %v12030_v13 = vld [vmem:[%s12427_s12 + $0xc8] sm:$0xff] }
 0x169   : > { %v1244_v2 = vsub.f32 1.0, %v1212_v55  ;;  %v925_v16 = vmul.f32 %v893_v34, %v13135_v9  ;;  %11853 = vrcp.f32 %v641_v37  ;;  %v11846_v41 = vpop.eup %11845  ;;  %v862_v25 = vmul.f32 %v830_v59, %v13156_v12 }
 0x16a   : > { %v13177_v22 = vmul.f32 %v11844_v30, %v735_v5  ;;  %v642_v47 = vadd.f32 1.0, %v610_v29  ;;  %v704_v26 = vmul.f32 %v11846_v41, %v13130_v39  ;;  %v13183_v60 = vmul.f32 0.5, %v13079_v51 }
 0x16b   : > { %v1308_v3 = vsub.f32 0.0, %v1244_v2  ;;  %v957_v56 = vadd.f32 -0.28449672, %v925_v16  ;;  %v894_v15 = vadd.f32 1.4214138, %v862_v25  ;;  %v13189_v19 = vmul.f32 %v12581_v40, %v481_v44 }
 0x16c   : > { %v799_v57 = vmul.f32 1.0614054, %v13177_v22  ;;  %11855 = vrcp.f32 %v642_v47  ;;  %v736_v61 = vsub.f32 2.0, %v704_v26  ;;  %vm1277_vm2 = vcmp.ge.f32.partialorder %v13049_v28, 0.0 }
 0x16d   : > { %v1340_v4 = vsel %vm1276_vm1, %v1244_v2, %v1308_v3  ;;  %v989_v46 = vmul.f32 %v957_v56, %v13135_v9  ;;  %v926_v39 = vmul.f32 %v894_v15, %v13156_v12  ;;  %v1173_v10 = vmul.f32 1.442695, %v1120_v1 }
 0x16e   : > { %v1404_v63 = vadd.f32 1.0, %v1340_v4  ;;  %v831_v45 = vadd.f32 -1.4531521, %v799_v57  ;;  %v11848_v51 = vpop.eup %11847  ;;  %v13193_v27 = vmul.f32 %v11846_v41, %v736_v61  ;;  %v1121_v50 = vmul.f32 %v1089_v6, %v577_v35 }
 0x16f   : > { %v1021_v33 = vadd.f32 0.2548296, %v989_v46  ;;  %v13196_v62 = vmul.f32 0.70710677, %v13189_v19  ;;  %v958_v7 = vadd.f32 -0.28449672, %v926_v39  ;;  %v482_v30 = vsub.f32 %v12030_v13, %v12569_v20 }
 0x170   : > { %v1436_v0 = vmul.f32 %v1404_v63, %v13127_v24  ;;  %v863_v11 = vmul.f32 %v831_v45, %v13177_v22  ;;  %v11850_v21 = vpop.eup %11849  ;;  %v800_v36 = vmul.f32 1.0614054, %v13193_v27  ;;  %v1090_v38 = vsub.f32 0.0, %v13170_v43  ;;  %v12031_v45 = vld [vmem:[%s12427_s12 + $0xd0] sm:$0xff] }
 0x171   : > { %v1053_v14 = vmul.f32 %v1021_v33, %v13135_v9  ;;  %v13206_v35 = vand.u32 2147483647, %v13196_v62  ;;  %v990_v24 = vmul.f32 %v958_v7, %v13156_v12  ;;  %11857 = vpow2.f32 %v1173_v10 }
 0x172   : > { %v11852_v18 = vpop.eup %11851  ;;  %1469 = vst [vmem:[#allocation2 + $0xe1] sm:$0xff] %v1436_v0  ;;  %9225 = vmatmul.mubr.f32.gmra.mrb[18].mxu0 %v1436_v0  ;;  %v895_v23 = vadd.f32 1.4214138, %v863_v11  ;;  %v13210_v55 = vmul.f32 %v12581_v40, %v482_v30  ;;  %vm1278_vm3 = vcmp.ge.f32.partialorder %v13071_v52, 0.0  ;;  %v832_v9 = vadd.f32 -1.4531521, %v800_v36 }
 0x173   : > { %v11854_v34 = vpop.eup %11853  ;;  %v1213_v59 = vmul.f32 %v11848_v51, %v1053_v14  ;;  %v1175_v5 = vmul.f32 1.442695, %v1121_v50  ;;  %v611_v29 = vmul.f32 0.3275911, %v13206_v35  ;;  %v1022_v2 = vadd.f32 0.2548296, %v990_v24 }
 0x174   : > { %v927_v16 = vmul.f32 %v895_v23, %v13177_v22  ;;  %v705_v42 = vmul.f32 %v11854_v34, %v641_v37  ;;  %v13216_v44 = vmul.f32 0.70710677, %v13210_v55  ;;  %v864_v25 = vmul.f32 %v832_v9, %v13193_v27 }
 0x175   : > { %v1245_v41 = vsub.f32 1.0, %v1213_v59  ;;  %v1122_v1 = vmul.f32 %v1090_v38, %v13170_v43  ;;  %v643_v3 = vadd.f32 1.0, %v611_v29  ;;  %v1054_v26 = vmul.f32 %v1022_v2, %v13156_v12 }
 0x176   : > { %v11856_v56 = vpop.eup %11855  ;;  %v959_v6 = vadd.f32 -0.28449672, %v927_v16  ;;  %v737_v15 = vsub.f32 2.0, %v705_v42  ;;  %v13222_v57 = vand.u32 2147483647, %v13216_v44  ;;  %v483_v43 = vsub.f32 %v12031_v45, %v12569_v20 }
 0x177   : > { %v1309_v4 = vsub.f32 0.0, %v1245_v41  ;;  %v896_v37 = vadd.f32 1.4214138, %v864_v25  ;;  %v706_v46 = vmul.f32 %v11856_v56, %v642_v47  ;;  %11859 = vrcp.f32 %v643_v3 }
 0x178   : > { %v1214_v61 = vmul.f32 %v11850_v21, %v1054_v26  ;;  %v991_v63 = vmul.f32 %v959_v6, %v13177_v22  ;;  %v13225_v39 = vmul.f32 %v11854_v34, %v737_v15  ;;  %v612_v33 = vmul.f32 0.3275911, %v13222_v57 }
 0x179   : > { %v1341_v12 = vsel %vm1277_vm2, %v1245_v41, %v1309_v4  ;;  %v928_v10 = vmul.f32 %v896_v37, %v13193_v27  ;;  %v738_v51 = vsub.f32 2.0, %v706_v46  ;;  %v1091_v30 = vsub.f32 0.0, %v13206_v35 }
 0x17a   : > { %v1405_v50 = vadd.f32 1.0, %v1341_v12  ;;  %v1246_v0 = vsub.f32 1.0, %v1214_v61  ;;  %v1023_v47 = vadd.f32 0.2548296, %v991_v63  ;;  %v801_v7 = vmul.f32 1.0614054, %v13225_v39 }
 0x17b   : > { %v960_v11 = vadd.f32 -0.28449672, %v928_v10  ;;  %v13234_v13 = vmul.f32 %v11856_v56, %v738_v51  ;;  %v644_v21 = vadd.f32 1.0, %v612_v33  ;;  %v11858_v14 = vpop.eup %11857  ;;  %v1177_v59 = vmul.f32 1.442695, %v1122_v1 }
 0x17c   : > { %v1437_v28 = vmul.f32 %v1405_v50, %v13150_v17  ;;  %v1310_v36 = vsub.f32 0.0, %v1246_v0  ;;  %v1055_v38 = vmul.f32 %v1023_v47, %v13177_v22  ;;  %v833_v24 = vadd.f32 -1.4531521, %v801_v7 }
 0x17d   : > { %v992_v23 = vmul.f32 %v960_v11, %v13193_v27  ;;  %v802_v34 = vmul.f32 1.0614054, %v13234_v13  ;;  %11861 = vrcp.f32 %v644_v21  ;;  %v1123_v22 = vmul.f32 %v1091_v30, %v13206_v35 }
 0x17e   : > { %1470 = vst [vmem:[#allocation2 + $0xf1] sm:$0xff] %v1437_v28  ;;  %9227 = vmatprep.mubr.f32.mxu0 %v1437_v28  ;;  %v1342_v9 = vsel %vm1278_vm3, %v1246_v0, %v1310_v36  ;;  %v1215_v29 = vmul.f32 %v11852_v18, %v1055_v38  ;;  %v865_v2 = vmul.f32 %v833_v24, %v13225_v39  ;;  %11863 = vpow2.f32 %v1175_v5 }
 0x17f   : > { %v1406_v17 = vadd.f32 1.0, %v1342_v9  ;;  %v1024_v16 = vadd.f32 0.2548296, %v992_v23  ;;  %v834_v42 = vadd.f32 -1.4531521, %v802_v34  ;;  %vm1279_vm4 = vcmp.ge.f32.partialorder %v13093_v49, 0.0 }
 0x180   : > { %v1247_v41 = vsub.f32 1.0, %v1215_v29  ;;  %v897_v25 = vadd.f32 1.4214138, %v865_v2  ;;  %v13247_v1 = vmul.f32 %v12581_v40, %v483_v43  ;;  %11865 = vpow2.f32 %v1177_v59 }
 0x181   : > { %v11860_v56 = vpop.eup %11859  ;;  %v1438_v52 = vmul.f32 %v1406_v17, %v13159_v32  ;;  %v1056_v18 = vmul.f32 %v1024_v16, %v13193_v27  ;;  %v866_v26 = vmul.f32 %v834_v42, %v13234_v13  ;;  %v1376_v37 = vmul.f32 0.5, %v13104_v48  ;;  %v1530_v32 = vld [vmem:[#allocation6 + $0x70] sm:$0xff]  ;;  %v12032_v16 = vld [vmem:[%s12427_s12 + $0xd8] sm:$0xff] }
 0x182   : > { %v1311_v5 = vsub.f32 0.0, %v1247_v41  ;;  %v929_v6 = vmul.f32 %v897_v25, %v13225_v39  ;;  %v707_v15 = vmul.f32 %v11860_v56, %v643_v3  ;;  %v13254_v35 = vmul.f32 0.70710677, %v13247_v1  ;;  %v1531_v3 = vld [vmem:[#allocation6 + $0x78] sm:$0xff] }
 0x183   : > { %1471 = vst [vmem:[#allocation2 + $0xf9] sm:$0xff] %v1438_v52  ;;  %9228 = vmatmul.mubr.f32.gmra.mrb[20].mxu0 %v1438_v52  ;;  %v1216_v4 = vmul.f32 %v11858_v14, %v1056_v18  ;;  %v898_v46 = vadd.f32 1.4214138, %v866_v26  ;;  %v1179_v61 = vmul.f32 1.442695, %v1123_v22  ;;  %v1092_v33 = vsub.f32 0.0, %v13222_v57 }
 0x184   : > { %v1343_v27 = vsel %vm1279_vm4, %v1247_v41, %v1311_v5  ;;  %v961_v63 = vadd.f32 -0.28449672, %v929_v6  ;;  %v739_v45 = vsub.f32 2.0, %v707_v15  ;;  %v13260_v43 = vand.u32 2147483647, %v13254_v35  ;;  %v12033_v52 = vld [vmem:[%s12427_s12 + $0xe0] sm:$0xff] }
 0x185   : > { %v1407_v12 = vadd.f32 1.0, %v1343_v27  ;;  %v1248_v10 = vsub.f32 1.0, %v1216_v4  ;;  %v930_v51 = vmul.f32 %v898_v46, %v13234_v13  ;;  %vm1280_vm5 = vcmp.ge.f32.partialorder %v13110_v54, 0.0 }
 0x186   : > { %v993_v48 = vmul.f32 %v961_v63, %v13225_v39  ;;  %v13266_v50 = vmul.f32 %v11860_v56, %v739_v45  ;;  %v613_v49 = vmul.f32 0.3275911, %v13260_v43  ;;  %v10665_v30 = vpack.c.bf16 %v1531_v3, %v1530_v32 }
 0x187   : > { %v11862_v0 = vpop.eup %11861  ;;  %v1439_v47 = vmul.f32 %v1407_v12, %v13183_v60  ;;  %v1312_v7 = vsub.f32 0.0, %v1248_v10  ;;  %v962_v11 = vadd.f32 -0.28449672, %v930_v51  ;;  %11867 = vpow2.f32 %v1179_v61 }
 0x188   : > { %v11864_v14 = vpop.eup %11863  ;;  %v1025_v28 = vadd.f32 0.2548296, %v993_v48  ;;  %v803_v36 = vmul.f32 1.0614054, %v13266_v50  ;;  %v708_v38 = vmul.f32 %v11862_v0, %v644_v21  ;;  %v13271_v24 = vadd.f32 1.0, %v613_v49  ;;  %10666 = vmatprep.subr.bf16.mxu0 %v10665_v30 }
 0x189   : > { %1472 = vst [vmem:[#allocation2 + $0x109] sm:$0xff] %v1439_v47  ;;  %9230 = vmatprep.mubr.f32.mxu0 %v1439_v47  ;;  %v1344_v23 = vsel %vm1280_vm5, %v1248_v10, %v1312_v7  ;;  %v994_v34 = vmul.f32 %v962_v11, %v13234_v13  ;;  %v1124_v60 = vmul.f32 %v1092_v33, %v13222_v57  ;;  %v1377_v5 = vmul.f32 0.5, %v13133_v53 }
 0x18a   : > { %v1408_v59 = vadd.f32 1.0, %v1344_v23  ;;  %v1057_v9 = vmul.f32 %v1025_v28, %v13225_v39  ;;  %v835_v29 = vadd.f32 -1.4531521, %v803_v36  ;;  %v740_v21 = vsub.f32 2.0, %v708_v38  ;;  %10668 = vmatpush3.bf16.msra.mxu0 %v10665_v30  ;;  %v11866_v2 = vpop.eup %11865 }
 0x18b   : > { %v1026_v17 = vadd.f32 0.2548296, %v994_v34  ;;  %11869 = vrcp.f32 %v13271_v24  ;;  %v484_v54 = vsub.f32 %v12032_v16, %v12569_v20  ;;  %v1181_v39 = vmul.f32 1.442695, %v1124_v60 }
 0x18c   : > { %v1440_v42 = vmul.f32 %v1408_v59, %v1376_v37  ;;  %v1217_v22 = vmul.f32 %v11864_v14, %v1057_v9  ;;  %v867_v41 = vmul.f32 %v835_v29, %v13266_v50  ;;  %v13282_v57 = vmul.f32 %v11862_v0, %v740_v21 }
 0x18d   : > { %v1058_v25 = vmul.f32 %v1026_v17, %v13234_v13  ;;  %v13286_v56 = vmul.f32 %v12581_v40, %v484_v54  ;;  %v485_v18 = vsub.f32 %v12033_v52, %v12569_v20  ;;  %vm1281_vm6 = vcmp.ge.f32.partialorder %v13146_v8, 0.0  ;;  %v12034_v8 = vld [vmem:[%s12427_s12 + $0xe8] sm:$0xff] }
 0x18e   : > { %1473 = vst [vmem:[#allocation2 + $0x111] sm:$0xff] %v1440_v42  ;;  %9231 = vmatmul.mubr.f32.gmra.mrb[22].mxu0 %v1440_v42  ;;  %v1249_v26 = vsub.f32 1.0, %v1217_v22  ;;  %v899_v6 = vadd.f32 1.4214138, %v867_v41  ;;  %v804_v15 = vmul.f32 1.0614054, %v13282_v57  ;;  %v486_v45 = vsub.f32 %v12034_v8, %v12569_v20 }
 0x18f   : > { %v1218_v4 = vmul.f32 %v11866_v2, %v1058_v25  ;;  %v13294_v13 = vmul.f32 0.70710677, %v13286_v56  ;;  %v13297_v37 = vmul.f32 %v12581_v40, %v485_v18  ;;  %vm1282_vm7 = vcmp.ge.f32.partialorder %v13162_v58, 0.0  ;;  %v2064_v42 = vld [vmem:[#allocation6 + $0x100] sm:$0xff]  ;;  %v2065_v22 = vld [vmem:[#allocation6 + $0x108] sm:$0xff] }
 0x190   : > { %v1313_v46 = vsub.f32 0.0, %v1249_v26  ;;  %v931_v61 = vmul.f32 %v899_v6, %v13266_v50  ;;  %v836_v32 = vadd.f32 -1.4531521, %v804_v15  ;;  %11871 = vpow2.f32 %v1181_v39 }
 0x191   : > { %v1250_v27 = vsub.f32 1.0, %v1218_v4  ;;  %v13302_v53 = vand.u32 2147483647, %v13294_v13  ;;  %v13305_v63 = vmul.f32 0.70710677, %v13297_v37  ;;  %v11868_v51 = vpop.eup %11867  ;;  %v1093_v49 = vsub.f32 0.0, %v13260_v43 }
 0x192   : > { %v1345_v3 = vsel %vm1281_vm6, %v1249_v26, %v1313_v46  ;;  %v963_v12 = vadd.f32 -0.28449672, %v931_v61  ;;  %v868_v10 = vmul.f32 %v836_v32, %v13282_v57  ;;  %v1378_v47 = vmul.f32 0.5, %v13153_v31 }
 0x193   : > { %v1409_v33 = vadd.f32 1.0, %v1345_v3  ;;  %v1314_v48 = vsub.f32 0.0, %v1250_v27  ;;  %v614_v0 = vmul.f32 0.3275911, %v13302_v53  ;;  %v13315_v30 = vand.u32 2147483647, %v13305_v63 }
 0x194   : > { %v995_v7 = vmul.f32 %v963_v12, %v13266_v50  ;;  %v900_v11 = vadd.f32 1.4214138, %v868_v10  ;;  %v13320_v23 = vmul.f32 %v12581_v40, %v486_v45  ;;  %v1125_v9 = vmul.f32 %v1093_v49, %v13260_v43 }
 0x195   : > { %v11870_v14 = vpop.eup %11869  ;;  %v1441_v28 = vmul.f32 %v1409_v33, %v1377_v5  ;;  %v1346_v36 = vsel %vm1282_vm7, %v1250_v27, %v1314_v48  ;;  %v646_v38 = vadd.f32 1.0, %v614_v0  ;;  %v615_v29 = vmul.f32 0.3275911, %v13315_v30 }
 0x196   : > { %v1410_v34 = vadd.f32 1.0, %v1346_v36  ;;  %v1027_v60 = vadd.f32 0.2548296, %v995_v7  ;;  %v932_v59 = vmul.f32 %v900_v11, %v13282_v57  ;;  %v709_v31 = vmul.f32 %v11870_v14, %v13271_v24 }
 0x197   : > { %1474 = vst [vmem:[#allocation2 + $0x121] sm:$0xff] %v1441_v28  ;;  %9233 = vmatprep.mubr.f32.mxu0 %v1441_v28  ;;  %11873 = vrcp.f32 %v646_v38  ;;  %v647_v16 = vadd.f32 1.0, %v615_v29  ;;  %v13328_v54 = vmul.f32 0.70710677, %v13320_v23  ;;  %v1183_v25 = vmul.f32 1.442695, %v1125_v9 }
 0x198   : > { %v1442_v21 = vmul.f32 %v1410_v34, %v1378_v47  ;;  %v1059_v58 = vmul.f32 %v1027_v60, %v13266_v50  ;;  %v964_v2 = vadd.f32 -0.28449672, %v932_v59  ;;  %v741_v17 = vsub.f32 2.0, %v709_v31 }
 0x199   : > { %11875 = vrcp.f32 %v647_v16  ;;  %v13332_v39 = vand.u32 2147483647, %v13328_v54  ;;  %v13334_v5 = vpack.c.bf16 %v2065_v22, %v2064_v42  ;;  %vm1283_vm8 = vcmp.ge.f32.partialorder %v13196_v62, 0.0 }
 0x19a   : > { %1475 = vst [vmem:[#allocation2 + $0x129] sm:$0xff] %v1442_v21  ;;  %9234 = vmatmul.mubr.f32.gmra.mrb[24].mxu0 %v1442_v21  ;;  %v1219_v24 = vmul.f32 %v11868_v51, %v1059_v58  ;;  %v996_v41 = vmul.f32 %v964_v2, %v13282_v57  ;;  %v773_v43 = vmul.f32 %v11870_v14, %v741_v17  ;;  %v11872_v50 = vpop.eup %11871  ;;  %v1379_v61 = vmul.f32 0.5, %v13189_v19 }
 0x19b   : > { %v616_v6 = vmul.f32 0.3275911, %v13332_v39  ;;  %10670 = vmatprep.subr.bf16.mxu0 %v13334_v5  ;;  %11877 = vpow2.f32 %v1183_v25  ;;  %v1094_v10 = vsub.f32 0.0, %v13302_v53  ;;  %vm1284_vm9 = vcmp.ge.f32.partialorder %v13216_v44, 0.0 }
 0x19c   : > { %v1251_v52 = vsub.f32 1.0, %v1219_v24  ;;  %v1028_v18 = vadd.f32 0.2548296, %v996_v41  ;;  %v805_v26 = vmul.f32 1.0614054, %v773_v43  ;;  %v1380_v47 = vmul.f32 0.5, %v13210_v55 }
 0x19d   : > { %v648_v32 = vadd.f32 1.0, %v616_v6  ;;  %v1126_v7 = vmul.f32 %v1094_v10, %v13302_v53  ;;  %v1095_v11 = vsub.f32 0.0, %v13315_v30  ;;  %v1096_v53 = vsub.f32 0.0, %v13332_v39 }
 0x19e   : > { %v1315_v15 = vsub.f32 0.0, %v1251_v52  ;;  %v1060_v4 = vmul.f32 %v1028_v18, %v13282_v57  ;;  %v837_v46 = vadd.f32 -1.4531521, %v805_v26  ;;  %vm1285_vm10 = vcmp.ge.f32.partialorder %v13254_v35, 0.0 }
 0x19f   : > { %11879 = vrcp.f32 %v648_v32  ;;  %v1185_v9 = vmul.f32 1.442695, %v1126_v7  ;;  %v1127_v29 = vmul.f32 %v1095_v11, %v13315_v30  ;;  %v1128_v30 = vmul.f32 %v1096_v53, %v13332_v39 }
 0x1a0   : > { %v1347_v27 = vsel %vm1283_vm8, %v1251_v52, %v1315_v15  ;;  %v1220_v8 = vmul.f32 %v11872_v50, %v1060_v4  ;;  %v869_v45 = vmul.f32 %v837_v46, %v773_v43  ;;  %vm1286_vm11 = vcmp.ge.f32.partialorder %v13294_v13, 0.0 }
 0x1a1   : > { %v11874_v3 = vpop.eup %11873  ;;  %v1411_v12 = vadd.f32 1.0, %v1347_v27  ;;  %11881 = vpow2.f32 %v1185_v9  ;;  %v1187_v41 = vmul.f32 1.442695, %v1127_v29  ;;  %vm1287_vm12 = vcmp.ge.f32.partialorder %v13305_v63, 0.0 }
 0x1a2   : > { %v1252_v62 = vsub.f32 1.0, %v1220_v8  ;;  %v901_v51 = vadd.f32 1.4214138, %v869_v45  ;;  %v710_v33 = vmul.f32 %v11874_v3, %v646_v38  ;;  %vm1288_vm13 = vcmp.ge.f32.partialorder %v13328_v54, 0.0  ;;  %v2067_v54 = vld [vmem:[#allocation6 + $0x118] sm:$0xff] }
 0x1a3   : > { %v1443_v48 = vmul.f32 %v1411_v12, %v1379_v61  ;;  %v11876_v19 = vpop.eup %11875  ;;  %11883 = vpow2.f32 %v1187_v41  ;;  %v1189_v12 = vmul.f32 1.442695, %v1128_v30  ;;  %v2066_v30 = vld [vmem:[#allocation6 + $0x110] sm:$0xff] }
 0x1a4   : > { %v1316_v57 = vsub.f32 0.0, %v1252_v62  ;;  %v933_v49 = vmul.f32 %v901_v51, %v773_v43  ;;  %v742_v0 = vsub.f32 2.0, %v710_v33  ;;  %v711_v34 = vmul.f32 %v11876_v19, %v647_v16 }
 0x1a5   : > { %1476 = vst [vmem:[#allocation2 + $0x139] sm:$0xff] %v1443_v48  ;;  %9236 = vmatprep.mubr.f32.mxu0 %v1443_v48  ;;  %v11878_v21 = vpop.eup %11877  ;;  %11885 = vpow2.f32 %v1189_v12 }
 0x1a6   : > { %v1348_v14 = vsel %vm1284_vm9, %v1252_v62, %v1316_v57  ;;  %v965_v28 = vadd.f32 -0.28449672, %v933_v49  ;;  %v774_v36 = vmul.f32 %v11874_v3, %v742_v0  ;;  %v743_v44 = vsub.f32 2.0, %v711_v34 }
 0x1a7   : > { %v1412_v38 = vadd.f32 1.0, %v1348_v14 }
 0x1a8   : > { %v997_v60 = vmul.f32 %v965_v28, %v773_v43  ;;  %v806_v59 = vmul.f32 1.0614054, %v774_v36  ;;  %v775_v55 = vmul.f32 %v11876_v19, %v743_v44 }
 0x1a9   : > { %v1444_v31 = vmul.f32 %v1412_v38, %v1380_v47  ;;  %v11880_v17 = vpop.eup %11879 }
 0x1aa   : > { %v1029_v58 = vadd.f32 0.2548296, %v997_v60  ;;  %v838_v2 = vadd.f32 -1.4531521, %v806_v59  ;;  %v807_v16 = vmul.f32 1.0614054, %v775_v55  ;;  %v712_v24 = vmul.f32 %v11880_v17, %v648_v32 }
 0x1ab   : > { %1477 = vst [vmem:[#allocation2 + $0x141] sm:$0xff] %v1444_v31  ;;  %9237 = vmatmul.mubr.f32.gmra.mrb[26].mxu0 %v1444_v31  ;;  %v1381_v32 = vmul.f32 0.5, %v13247_v1  ;;  %v11882_v33 = vpop.eup %11881  ;;  %v1382_v60 = vmul.f32 0.5, %v13286_v56 }
 0x1ac   : > { %v1061_v42 = vmul.f32 %v1029_v58, %v773_v43  ;;  %v870_v22 = vmul.f32 %v838_v2, %v774_v36  ;;  %v839_v52 = vadd.f32 -1.4531521, %v807_v16  ;;  %v744_v18 = vsub.f32 2.0, %v712_v24  ;;  %v12035_v24 = vld [vmem:[%s12427_s12 + $0xf0] sm:$0xff] }
 0x1ad   : > { %v11884_v47 = vpop.eup %11883  ;;  %v1383_v2 = vmul.f32 0.5, %v13297_v37  ;;  %v1384_v37 = vmul.f32 0.5, %v13320_v23  ;;  %v487_v41 = vsub.f32 %v12035_v24, %v12569_v20 }
 0x1ae   : > { %v1221_v25 = vmul.f32 %v11878_v21, %v1061_v42  ;;  %v902_v50 = vadd.f32 1.4214138, %v870_v22  ;;  %v871_v15 = vmul.f32 %v839_v52, %v775_v55  ;;  %v776_v4 = vmul.f32 %v11880_v17, %v744_v18  ;;  %v12036_v52 = vld [vmem:[%s12427_s12 + $0xf8] sm:$0xff] }
 0x1af   : > { %v11886_v29 = vpop.eup %11885  ;;  %v488_v18 = vsub.f32 %v12036_v52, %v12569_v20  ;;  %v13431_v52 = vld [vmem:[#allocation2 + $0xb0] sm:$0xff] }
 0x1b0   : > { %v1253_v26 = vsub.f32 1.0, %v1221_v25  ;;  %v934_v6 = vmul.f32 %v902_v50, %v774_v36  ;;  %v903_v61 = vadd.f32 1.4214138, %v871_v15  ;;  %v808_v27 = vmul.f32 1.0614054, %v776_v4  ;;  %v1484_v50 = vld [vmem:[#allocation2] sm:$0xff] }
 0x1b1   : > { %v13373_v23 = vmul.f32 %v12581_v40, %v488_v18  ;;  %v13378_v15 = vld [vmem:[#allocation2 + $0x18] sm:$0xff] }
 0x1b2   : > { %v1317_v46 = vsub.f32 0.0, %v1253_v26  ;;  %v966_v43 = vadd.f32 -0.28449672, %v934_v6  ;;  %v935_v3 = vmul.f32 %v903_v61, %v775_v55  ;;  %v840_v62 = vadd.f32 -1.4531521, %v808_v27  ;;  %v13391_v27 = vld [vmem:[#allocation2 + $0x20] sm:$0xff] }
 0x1b3   : > { %v13381_v20 = vmul.f32 0.70710677, %v13373_v23 }
 0x1b4   : > { %v1349_v8 = vsel %vm1285_vm10, %v1253_v26, %v1317_v46  ;;  %v998_v45 = vmul.f32 %v966_v43, %v774_v36  ;;  %v967_v51 = vadd.f32 -0.28449672, %v935_v3  ;;  %v872_v57 = vmul.f32 %v840_v62, %v776_v4  ;;  %v2068_v46 = vld [vmem:[#allocation6 + $0x120] sm:$0xff]  ;;  %v2069_v43 = vld [vmem:[#allocation6 + $0x128] sm:$0xff]  ;;  %v2071_v62 = vld [vmem:[#allocation6 + $0x138] sm:$0xff] }
 0x1b5   : > { %v1413_v10 = vadd.f32 1.0, %v1349_v8  ;;  %v13368_v26 = vmul.f32 %v12581_v40, %v487_v41  ;;  %v13387_v40 = vand.u32 2147483647, %v13381_v20  ;;  %v10677_v3 = vpack.c.bf16 %v2069_v43, %v2068_v46 }
 0x1b6   : > { %v1030_v39 = vadd.f32 0.2548296, %v998_v45  ;;  %v999_v35 = vmul.f32 %v967_v51, %v775_v55  ;;  %v904_v0 = vadd.f32 1.4214138, %v872_v57  ;;  %v13394_v45 = vld [vmem:[#allocation2 + $0x30] sm:$0xff]  ;;  %vm1290_vm15 = vcmp.ge.f32.partialorder %v13381_v20, 0.0 }
 0x1b7   : > { %v1445_v48 = vmul.f32 %v1413_v10, %v1381_v32  ;;  %v13376_v6 = vmul.f32 0.70710677, %v13368_v26  ;;  %v12037_v32 = vld [vmem:[#allocation2 + $0x8] sm:$0xff]  ;;  %v618_v12 = vmul.f32 0.3275911, %v13387_v40  ;;  %v2070_v10 = vld [vmem:[#allocation6 + $0x130] sm:$0xff] }
 0x1b8   : > { %v1062_v49 = vmul.f32 %v1030_v39, %v774_v36  ;;  %v1031_v1 = vadd.f32 0.2548296, %v999_v35  ;;  %v936_v7 = vmul.f32 %v904_v0, %v776_v4  ;;  %v2072_v57 = vld [vmem:[#allocation6 + $0x140] sm:$0xff]  ;;  %v13407_v0 = vld [vmem:[#allocation2 + $0x60] sm:$0xff] }
 0x1b9   : > { %1478 = vst [vmem:[#allocation2 + $0x151] sm:$0xff] %v1445_v48  ;;  %9239 = vmatprep.mubr.f32.mxu0 %v1445_v48  ;;  %v13384_v61 = vand.u32 2147483647, %v13376_v6  ;;  %v650_v51 = vadd.f32 1.0, %v618_v12  ;;  %v10681_v48 = vpack.c.bf16 %v2071_v62, %v2070_v10  ;;  %v13405_v35 = vld [vmem:[#allocation2 + $0x50] sm:$0xff]  ;;  %v13441_v10 = vld [vmem:[#allocation2 + $0xc8] sm:$0xff] }
 0x1ba   : > { %v1222_v19 = vmul.f32 %v11882_v33, %v1062_v49  ;;  %v1063_v14 = vmul.f32 %v1031_v1, %v775_v55  ;;  %v968_v28 = vadd.f32 -0.28449672, %v936_v7  ;;  %v13401_v33 = vld [vmem:[#allocation2 + $0x48] sm:$0xff]  ;;  %v2073_v49 = vld [vmem:[#allocation6 + $0x148] sm:$0xff]  ;;  %v2074_v1 = vld [vmem:[#allocation6 + $0x150] sm:$0xff]  ;;  %vm1289_vm14 = vcmp.ge.f32.partialorder %v13376_v6, 0.0 }
 0x1bb   : > { %v617_v8 = vmul.f32 0.3275911, %v13384_v61  ;;  %v13411_v7 = vld [vmem:[#allocation2 + $0x68] sm:$0xff]  ;;  %v13443_v62 = vld [vmem:[#allocation2 + $0xd8] sm:$0xff] }
 0x1bc   : > { %v1254_v11 = vsub.f32 1.0, %v1222_v19  ;;  %v1223_v38 = vmul.f32 %v11884_v47, %v1063_v14  ;;  %v1000_v59 = vmul.f32 %v968_v28, %v776_v4  ;;  %v10685_v19 = vpack.c.bf16 %v2073_v49, %v2072_v57  ;;  %v2075_v47 = vld [vmem:[#allocation6 + $0x158] sm:$0xff]  ;;  %v13450_v49 = vld [vmem:[#allocation2 + $0xf0] sm:$0xff] }
 0x1bd   : > { %v649_v39 = vadd.f32 1.0, %v617_v8  ;;  %v10689_v14 = vpack.c.bf16 %v2075_v47, %v2074_v1 }
 0x1be   : > { %v1318_v34 = vsub.f32 0.0, %v1254_v11  ;;  %v1255_v44 = vsub.f32 1.0, %v1223_v38  ;;  %v1032_v9 = vadd.f32 0.2548296, %v1000_v59  ;;  %v2077_v38 = vld [vmem:[#allocation6 + $0x168] sm:$0xff] }
 0x1bf   : > { %11887 = vrcp.f32 %v649_v39 }
 0x1c0   : > { %v1350_v36 = vsel %vm1286_vm11, %v1254_v11, %v1318_v34  ;;  %v1319_v21 = vsub.f32 0.0, %v1255_v44  ;;  %v1064_v55 = vmul.f32 %v1032_v9, %v776_v4  ;;  %v10673_v4 = vpack.c.bf16 %v2067_v54, %v2066_v30  ;;  %v13413_v11 = vld [vmem:[#allocation2 + $0x78] sm:$0xff]  ;;  %v2076_v34 = vld [vmem:[#allocation6 + $0x160] sm:$0xff]  ;;  %v13434_v54 = vld [vmem:[#allocation2 + $0xc0] sm:$0xff] }
 0x1c1   : > { %v1414_v31 = vadd.f32 1.0, %v1350_v36  ;;  %11889 = vrcp.f32 %v650_v51  ;;  %v13417_v36 = vld [vmem:[#allocation2 + $0x80] sm:$0xff]  ;;  %v10693_v9 = vpack.c.bf16 %v2077_v38, %v2076_v34  ;;  %v13456_v34 = vld [vmem:[#allocation2 + $0x108] sm:$0xff] }
 0x1c2   : > { %v1351_v13 = vsel %vm1287_vm12, %v1255_v44, %v1319_v21  ;;  %v1224_v56 = vmul.f32 %v11886_v29, %v1064_v55  ;;  %v2078_v21 = vld [vmem:[#allocation6 + $0x170] sm:$0xff] }
 0x1c3   : > { %v1446_v58 = vmul.f32 %v1414_v31, %v1382_v60  ;;  %v1415_v17 = vadd.f32 1.0, %v1351_v13  ;;  %v13419_v31 = vld [vmem:[#allocation2 + $0x90] sm:$0xff]  ;;  %v13423_v13 = vld [vmem:[#allocation2 + $0x98] sm:$0xff] }
 0x1c4   : > { %v1256_v42 = vsub.f32 1.0, %v1224_v56  ;;  %v13425_v56 = vld [vmem:[#allocation2 + $0xa8] sm:$0xff] }
 0x1c5   : > { %1479 = vst [vmem:[#allocation2 + $0x159] sm:$0xff] %v1446_v58  ;;  %9240 = vmatmul.mubr.f32.gmra.mrb[28].mxu0 %v1446_v58  ;;  %v13355_v53 = vmul.f32 %v1415_v17, %v1383_v2  ;;  %v2079_v58 = vld [vmem:[#allocation6 + $0x178] sm:$0xff] }
 0x1c6   : > { %v1320_v63 = vsub.f32 0.0, %v1256_v42 }
 0x1c7   : > { %1480 = vst [vmem:[#allocation2 + $0x169] sm:$0xff] %v13355_v53  ;;  %9242 = vmatprep.mubr.f32.mxu0 %v13355_v53 }
 0x1c8   : > { %v1352_v22 = vsel %vm1288_vm13, %v1256_v42, %v1320_v63  ;;  %v10697_v42 = vpack.c.bf16 %v2079_v58, %v2078_v21  ;;  %v13462_v58 = vld [vmem:[#allocation2 + $0x120] sm:$0xff] }
 0x1c9   : > { %v1416_v16 = vadd.f32 1.0, %v1352_v22  ;;  %v11888_v28 = vpop.eup %11887  ;;  %v2371_v22 = vld [vmem:[#allocation6 + $0x188] sm:$0xff] }
 0x1ca   : > { %v713_v59 = vmul.f32 %v11888_v28, %v649_v39 }
 0x1cb   : > { %v13363_v25 = vmul.f32 %v1416_v16, %v1384_v37  ;;  %v11890_v60 = vpop.eup %11889  ;;  %v2370_v37 = vld [vmem:[#allocation6 + $0x180] sm:$0xff]  ;;  %v1097_v16 = vsub.f32 0.0, %v13384_v61 }
 0x1cc   : > { %v714_v44 = vmul.f32 %v11890_v60, %v650_v51  ;;  %v745_v29 = vsub.f32 2.0, %v713_v59 }
 0x1cd   : > { %1481 = vst [vmem:[#allocation2 + $0x171] sm:$0xff] %v13363_v25  ;;  %9243 = vmatmul.mubr.f32.gmra.mrb[30].mxu0 %v13363_v25  ;;  %v1129_v18 = vmul.f32 %v1097_v16, %v13384_v61  ;;  %v1385_v16 = vmul.f32 0.5, %v13368_v26  ;;  %v13488_v26 = vld [vmem:[#allocation2 + $0x158] sm:$0xff] }
 0x1ce   : > { %9277 = vmatprep.mubr.f32.mxu0 %v1484_v50  ;;  %v746_v2 = vsub.f32 2.0, %v714_v44  ;;  %v777_v55 = vmul.f32 %v11888_v28, %v745_v29  ;;  %v1098_v50 = vsub.f32 0.0, %v13387_v40  ;;  %v13460_v29 = vld [vmem:[#allocation2 + $0x110] sm:$0xff] }
 0x1d0   : > { %v778_v17 = vmul.f32 %v11890_v60, %v746_v2  ;;  %v809_v63 = vmul.f32 1.0614054, %v777_v55  ;;  %v1130_v43 = vmul.f32 %v1098_v50, %v13387_v40  ;;  %v1386_v50 = vmul.f32 0.5, %v13373_v23  ;;  %v13490_v23 = vld [vmem:[#allocation2 + $0x168] sm:$0xff] }
 0x1d1   : > { %9278 = vmatmul.mubr.f32.vlgmr.msra.gmra.mrb[0].mxu0 %v12037_v32  ;;  %v1191_v32 = vmul.f32 1.442695, %v1129_v18 }
 0x1d2   : > { %10672 = vmatpush3.bf16.msra.mxu0 %v13334_v5  ;;  %9280 = vmatprep.mubr.f32.mxu0 %v13378_v15  ;;  %v13399_v5 = vld [vmem:[#allocation2 + $0x38] sm:$0xff]  ;;  %v810_v24 = vmul.f32 1.0614054, %v778_v17  ;;  %v841_v41 = vadd.f32 -1.4531521, %v809_v63 }
 0x1d3   : > { %10674 = vmatprep.subr.bf16.mxu0 %v10673_v4  ;;  %v1193_v12 = vmul.f32 1.442695, %v1130_v43  ;;  %11891 = vpow2.f32 %v1191_v32  ;;  %v2031_v32 = vld [vmem:[#allocation2 + $0x2] sm:$0xff] }
 0x1d4   : > { %v842_v30 = vadd.f32 -1.4531521, %v810_v24  ;;  %v873_v46 = vmul.f32 %v841_v41, %v777_v55  ;;  %v13494_v20 = vld [vmem:[#allocation2 + $0x170] sm:$0xff] }
 0x1d5   : > { %9281 = vmatmul.mubr.f32.gmra.mrb[2].mxu0 %v13391_v27  ;;  %11893 = vpow2.f32 %v1193_v12  ;;  %v2032_v12 = vld [vmem:[#allocation2 + $0xa] sm:$0xff] }
 0x1d6   : > { %9283 = vmatprep.mubr.f32.mxu0 %v13394_v45  ;;  %10676 = vmatpush3.bf16.msra.mxu0 %v10673_v4  ;;  %v13436_v4 = vpack.c.bf16 %v2371_v22, %v2370_v37  ;;  %v874_v8 = vmul.f32 %v842_v30, %v778_v17  ;;  %v13469_v37 = vld [vmem:[#allocation2 + $0x138] sm:$0xff]  ;;  %v13476_v30 = vld [vmem:[#allocation2 + $0x140] sm:$0xff] }
 0x1d7   : > { %10678 = vmatprep.subr.bf16.mxu0 %v10677_v3 }
 0x1d8   : > { %v906_v61 = vadd.f32 1.4214138, %v874_v8  ;;  %v2372_v8 = vld [vmem:[#allocation6 + $0x190] sm:$0xff] }
 0x1d9   : > { %9284 = vmatmul.mubr.f32.gmra.mrb[4].mxu0 %v13399_v5 }
 0x1da   : > { %9286 = vmatprep.mubr.f32.mxu0 %v13401_v33  ;;  %10680 = vmatpush3.bf16.msra.mxu0 %v10677_v3  ;;  %v905_v3 = vadd.f32 1.4214138, %v873_v46  ;;  %v938_v40 = vmul.f32 %v906_v61, %v778_v17  ;;  %v13480_v46 = vld [vmem:[#allocation2 + $0x150] sm:$0xff]  ;;  %v13497_v61 = vld [vmem:[#allocation2 + $0x1a] sm:$0xff] }
 0x1db   : > { %10682 = vmatprep.subr.bf16.mxu0 %v10681_v48 }
 0x1dc   : > { %v937_v39 = vmul.f32 %v905_v3, %v777_v55  ;;  %v970_v57 = vadd.f32 -0.28449672, %v938_v40  ;;  %v2373_v3 = vld [vmem:[#allocation6 + $0x198] sm:$0xff]  ;;  %v2374_v40 = vld [vmem:[#allocation6 + $0x1a0] sm:$0xff] }
 0x1dd   : > { %9287 = vmatmul.mubr.f32.gmra.mrb[6].mxu0 %v13405_v35  ;;  %v11892_v60 = vpop.eup %11891 }
 0x1de   : > { %9289 = vmatprep.mubr.f32.mxu0 %v13407_v0  ;;  %10684 = vmatpush3.bf16.msra.mxu0 %v10681_v48  ;;  %v969_v51 = vadd.f32 -0.28449672, %v937_v39  ;;  %v13448_v48 = vld [vmem:[#allocation2 + $0xe0] sm:$0xff]  ;;  %v1002_v1 = vmul.f32 %v970_v57, %v778_v17  ;;  %v10705_v39 = vpack.c.bf16 %v2373_v3, %v2372_v8  ;;  %v2385_v3 = vld [vmem:[#allocation6 + $0x1f8] sm:$0xff] }
 0x1df   : > { %10686 = vmatprep.subr.bf16.mxu0 %v10685_v19  ;;  %v11894_v44 = vpop.eup %11893  ;;  %v13501_v57 = vld [vmem:[#allocation2 + $0x22] sm:$0xff] }
 0x1e0   : > { %v1034_v28 = vadd.f32 0.2548296, %v1002_v1  ;;  %v2384_v8 = vld [vmem:[#allocation6 + $0x1f0] sm:$0xff] }
 0x1e1   : > { %9290 = vmatmul.mubr.f32.gmra.mrb[8].mxu0 %v13411_v7 }
 0x1e2   : > { %9292 = vmatprep.mubr.f32.mxu0 %v13413_v11  ;;  %10688 = vmatpush3.bf16.msra.mxu0 %v10685_v19  ;;  %v1001_v19 = vmul.f32 %v969_v51, %v777_v55  ;;  %v1066_v59 = vmul.f32 %v1034_v28, %v778_v17  ;;  %v2375_v51 = vld [vmem:[#allocation6 + $0x1a8] sm:$0xff]  ;;  %v2377_v28 = vld [vmem:[#allocation6 + $0x1b8] sm:$0xff] }
 0x1e3   : > { %10690 = vmatprep.subr.bf16.mxu0 %v10689_v14  ;;  %v10709_v1 = vpack.c.bf16 %v2375_v51, %v2374_v40  ;;  %v10729_v40 = vpack.c.bf16 %v2385_v3, %v2384_v8  ;;  %v2676_v51 = vld [vmem:[#allocation6 + $0x200] sm:$0xff]  ;;  %v13569_v8 = vld [vmem:[#allocation2 + $0x13a] sm:$0xff]  ;;  %v13573_v3 = vld [vmem:[#allocation2 + $0x142] sm:$0xff] }
 0x1e4   : > { %v1033_v47 = vadd.f32 0.2548296, %v1001_v19  ;;  %v1226_v21 = vmul.f32 %v11894_v44, %v1066_v59  ;;  %v13503_v19 = vld [vmem:[#allocation2 + $0x32] sm:$0xff]  ;;  %16390 = vst [vmem:[#allocation17_spill] sm:$0xff] %v13569_v8  ;;  %16391 = vst [vmem:[#allocation18_spill] sm:$0xff] %v13573_v3 }
 0x1e5   : > { %9293 = vmatmul.mubr.f32.gmra.mrb[10].mxu0 %v13417_v36  ;;  %v2378_v59 = vld [vmem:[#allocation6 + $0x1c0] sm:$0xff]  ;;  %v2379_v44 = vld [vmem:[#allocation6 + $0x1c8] sm:$0xff] }
 0x1e6   : > { %9295 = vmatprep.mubr.f32.mxu0 %v13419_v31  ;;  %10692 = vmatpush3.bf16.msra.mxu0 %v10689_v14  ;;  %v13454_v14 = vld [vmem:[#allocation2 + $0xf8] sm:$0xff]  ;;  %v1065_v38 = vmul.f32 %v1033_v47, %v777_v55  ;;  %v13466_v55 = vld [vmem:[#allocation2 + $0x128] sm:$0xff]  ;;  %v2376_v47 = vld [vmem:[#allocation6 + $0x1b0] sm:$0xff] }
 0x1e7   : > { %10694 = vmatprep.subr.bf16.mxu0 %v10693_v9 }
 0x1e9   : > { %9296 = vmatmul.mubr.f32.gmra.mrb[12].mxu0 %v13423_v13 }
 0x1ea   : > { %9298 = vmatprep.mubr.f32.mxu0 %v13425_v56  ;;  %10696 = vmatpush3.bf16.msra.mxu0 %v10693_v9  ;;  %v1225_v9 = vmul.f32 %v11892_v60, %v1065_v38  ;;  %v13507_v38 = vld [vmem:[#allocation2 + $0x3a] sm:$0xff]  ;;  %v13509_v60 = vld [vmem:[#allocation2 + $0x4a] sm:$0xff] }
 0x1eb   : > { %10698 = vmatprep.subr.bf16.mxu0 %v10697_v42 }
 0x1ec   : > { %v1257_v2 = vsub.f32 1.0, %v1225_v9  ;;  %v13513_v9 = vld [vmem:[#allocation2 + $0x52] sm:$0xff] }
 0x1ed   : > { %9299 = vmatmul.mubr.f32.gmra.mrb[14].mxu0 %v13431_v52 }
 0x1ee   : > { %9301 = vmatprep.mubr.f32.mxu0 %v13434_v54  ;;  %10700 = vmatpush3.bf16.msra.mxu0 %v10697_v42  ;;  %v1258_v42 = vsub.f32 1.0, %v1226_v21  ;;  %v1321_v63 = vsub.f32 0.0, %v1257_v2  ;;  %v13515_v21 = vld [vmem:[#allocation2 + $0x62] sm:$0xff] }
 0x1ef   : > { %10702 = vmatprep.subr.bf16.mxu0 %v13436_v4 }
 0x1f0   : > { %v1322_v17 = vsub.f32 0.0, %v1258_v42  ;;  %v1353_v22 = vsel %vm1289_vm14, %v1257_v2, %v1321_v63  ;;  %v10717_v2 = vpack.c.bf16 %v2379_v44, %v2378_v59  ;;  %v2381_v63 = vld [vmem:[#allocation6 + $0x1d8] sm:$0xff]  ;;  %v13545_v44 = vld [vmem:[#allocation2 + $0xda] sm:$0xff] }
 0x1f1   : > { %9302 = vmatmul.mubr.f32.gmra.mrb[16].mxu0 %v13441_v10  ;;  %v1417_v24 = vadd.f32 1.0, %v1353_v22  ;;  %v13521_v22 = vld [vmem:[#allocation2 + $0x7a] sm:$0xff]  ;;  %v13543_v59 = vld [vmem:[#allocation2 + $0xca] sm:$0xff] }
 0x1f2   : > { %9304 = vmatprep.mubr.f32.mxu0 %v13443_v62  ;;  %v1354_v41 = vsel %vm1290_vm15, %v1258_v42, %v1322_v17  ;;  %v2380_v42 = vld [vmem:[#allocation6 + $0x1d0] sm:$0xff]  ;;  %v13519_v17 = vld [vmem:[#allocation2 + $0x6a] sm:$0xff] }
 0x1f3   : > { %v1418_v18 = vadd.f32 1.0, %v1354_v41  ;;  %v13478_v6 = vmul.f32 %v1417_v24, %v1385_v16  ;;  %v10721_v16 = vpack.c.bf16 %v2381_v63, %v2380_v42  ;;  %v2382_v24 = vld [vmem:[#allocation6 + $0x1e0] sm:$0xff]  ;;  %v2383_v41 = vld [vmem:[#allocation6 + $0x1e8] sm:$0xff] }
 0x1f4   : > { %v13551_v42 = vld [vmem:[#allocation2 + $0xf2] sm:$0xff]  ;;  %v13555_v63 = vld [vmem:[#allocation2 + $0xfa] sm:$0xff] }
 0x1f5   : > { %9305 = vmatmul.mubr.f32.gmra.mrb[18].mxu0 %v13448_v48  ;;  %v13482_v43 = vmul.f32 %v1418_v18, %v1386_v50  ;;  %1482 = vst [vmem:[#allocation2 + $0x181] sm:$0xff] %v13478_v6  ;;  %v13525_v50 = vld [vmem:[#allocation2 + $0x82] sm:$0xff]  ;;  %v13527_v18 = vld [vmem:[#allocation2 + $0x92] sm:$0xff] }
 0x1f6   : > { %9307 = vmatprep.mubr.f32.mxu0 %v13450_v49 }
 0x1f7   : > { %1483 = vst [vmem:[#allocation2 + $0x189] sm:$0xff] %v13482_v43 }
 0x1f9   : > { %9308 = vmatmul.mubr.f32.gmra.mrb[20].mxu0 %v13454_v14 }
 0x1fa   : > { %9310 = vmatprep.mubr.f32.mxu0 %v13456_v34 }
 0x1fd   : > { %9311 = vmatmul.mubr.f32.gmra.mrb[22].mxu0 %v13460_v29 }
 0x1fe   : > { %9313 = vmatprep.mubr.f32.mxu0 %v13462_v58 }
 0x201   : > { %9314 = vmatmul.mubr.f32.gmra.mrb[24].mxu0 %v13466_v55 }
 0x202   : > { %9316 = vmatprep.mubr.f32.mxu0 %v13469_v37 }
 0x205   : > { %9317 = vmatmul.mubr.f32.gmra.mrb[26].mxu0 %v13476_v30 }
 0x206   : > { %9319 = vmatprep.mubr.f32.mxu0 %v13480_v46 }
 0x209   : > { %9320 = vmatmul.mubr.f32.gmra.mrb[28].mxu0 %v13488_v26 }
 0x20a   : > { %9322 = vmatprep.mubr.f32.mxu0 %v13490_v23 }
 0x20d   : > { %9323 = vmatmul.mubr.f32.gmra.mrb[30].mxu0 %v13494_v20 }
 0x20e   : > { %9357 = vmatprep.mubr.f32.mxu0 %v2031_v32  ;;  %v10725_v32 = vpack.c.bf16 %v2383_v41, %v2382_v24  ;;  %v13561_v24 = vld [vmem:[#allocation2 + $0x112] sm:$0xff]  ;;  %v13563_v41 = vld [vmem:[#allocation2 + $0x122] sm:$0xff] }
 0x20f   : > { %16387 = vst [vmem:[#allocation14_spill] sm:$0xff] %v13561_v24  ;;  %16388 = vst [vmem:[#allocation15_spill] sm:$0xff] %v13563_v41 }
 0x211   : > { %9358 = vmatmul.mubr.f32.vlgmr.msra.gmra.mrb[0].mxu0 %v2032_v12  ;;  %v13531_v12 = vld [vmem:[#allocation2 + $0x9a] sm:$0xff] }
 0x212   : > { %10704 = vmatpush3.bf16.msra.mxu0 %v13436_v4  ;;  %9360 = vmatprep.mubr.f32.mxu0 %v13497_v61  ;;  %v10713_v4 = vpack.c.bf16 %v2377_v28, %v2376_v47  ;;  %v13537_v47 = vld [vmem:[#allocation2 + $0xb2] sm:$0xff]  ;;  %v13539_v28 = vld [vmem:[#allocation2 + $0xc2] sm:$0xff] }
 0x213   : > { %10706 = vmatprep.subr.bf16.mxu0 %v10705_v39 }
 0x215   : > { %9361 = vmatmul.mubr.f32.gmra.mrb[2].mxu0 %v13501_v57 }
 0x216   : > { %9363 = vmatprep.mubr.f32.mxu0 %v13503_v19  ;;  %10708 = vmatpush3.bf16.msra.mxu0 %v10705_v39  ;;  %v13533_v39 = vld [vmem:[#allocation2 + $0xaa] sm:$0xff] }
 0x217   : > { %10710 = vmatprep.subr.bf16.mxu0 %v10709_v1 }
 0x219   : > { %9364 = vmatmul.mubr.f32.gmra.mrb[4].mxu0 %v13507_v38 }
 0x21a   : > { %9366 = vmatprep.mubr.f32.mxu0 %v13509_v60  ;;  %10712 = vmatpush3.bf16.msra.mxu0 %v10709_v1  ;;  %v2677_v1 = vld [vmem:[#allocation6 + $0x208] sm:$0xff] }
 0x21b   : > { %10714 = vmatprep.subr.bf16.mxu0 %v10713_v4 }
 0x21d   : > { %9367 = vmatmul.mubr.f32.gmra.mrb[6].mxu0 %v13513_v9 }
 0x21e   : > { %9369 = vmatprep.mubr.f32.mxu0 %v13515_v21  ;;  %10716 = vmatpush3.bf16.msra.mxu0 %v10713_v4  ;;  %v10733_v4 = vpack.c.bf16 %v2677_v1, %v2676_v51  ;;  %v13579_v51 = vld [vmem:[#allocation2 + $0x15a] sm:$0xff]  ;;  %v13581_v1 = vld [vmem:[#allocation2 + $0x16a] sm:$0xff] }
 0x21f   : > { %10718 = vmatprep.subr.bf16.mxu0 %v10717_v2  ;;  %16393 = vst [vmem:[#allocation20_spill] sm:$0xff] %v13579_v51  ;;  %16394 = vst [vmem:[#allocation21_spill] sm:$0xff] %v13581_v1 }
 0x221   : > { %9370 = vmatmul.mubr.f32.gmra.mrb[8].mxu0 %v13519_v17 }
 0x222   : > { %9372 = vmatprep.mubr.f32.mxu0 %v13521_v22  ;;  %10720 = vmatpush3.bf16.msra.mxu0 %v10717_v2  ;;  %v13549_v2 = vld [vmem:[#allocation2 + $0xe2] sm:$0xff] }
 0x223   : > { %10722 = vmatprep.subr.bf16.mxu0 %v10721_v16 }
 0x225   : > { %9373 = vmatmul.mubr.f32.gmra.mrb[10].mxu0 %v13525_v50 }
 0x226   : > { %9375 = vmatprep.mubr.f32.mxu0 %v13527_v18  ;;  %10724 = vmatpush3.bf16.msra.mxu0 %v10721_v16  ;;  %v13557_v16 = vld [vmem:[#allocation2 + $0x10a] sm:$0xff] }
 0x227   : > { %10726 = vmatprep.subr.bf16.mxu0 %v10725_v32  ;;  %16386 = vst [vmem:[#allocation13_spill] sm:$0xff] %v13557_v16 }
 0x229   : > { %9376 = vmatmul.mubr.f32.gmra.mrb[12].mxu0 %v13531_v12 }
 0x22a   : > { %9378 = vmatprep.mubr.f32.mxu0 %v13533_v39  ;;  %10728 = vmatpush3.bf16.msra.mxu0 %v10725_v32  ;;  %v13567_v32 = vld [vmem:[#allocation2 + $0x12a] sm:$0xff] }
 0x22b   : > { %10730 = vmatprep.subr.bf16.mxu0 %v10729_v40  ;;  %16389 = vst [vmem:[#allocation16_spill] sm:$0xff] %v13567_v32 }
 0x22d   : > { %9379 = vmatmul.mubr.f32.gmra.mrb[14].mxu0 %v13537_v47 }
 0x22e   : > { %9381 = vmatprep.mubr.f32.mxu0 %v13539_v28  ;;  %10732 = vmatpush3.bf16.msra.mxu0 %v10729_v40  ;;  %v13575_v40 = vld [vmem:[#allocation2 + $0x152] sm:$0xff] }
 0x22f   : > { %10734 = vmatprep.subr.bf16.mxu0 %v10733_v4  ;;  %16392 = vst [vmem:[#allocation19_spill] sm:$0xff] %v13575_v40 }
 0x231   : > { %9382 = vmatmul.mubr.f32.gmra.mrb[16].mxu0 %v13543_v59 }
 0x232   : > { %9384 = vmatprep.mubr.f32.mxu0 %v13545_v44 }
 0x235   : > { %9385 = vmatmul.mubr.f32.gmra.mrb[18].mxu0 %v13549_v2 }
 0x236   : > { %9387 = vmatprep.mubr.f32.mxu0 %v13551_v42 }
 0x239   : > { %9388 = vmatmul.mubr.f32.gmra.mrb[20].mxu0 %v13555_v63 }
 0x23a   : > { %9390 = vmatprep.mubr.f32.mxu0 %v13557_v16  ;;  %v2681_v16 = vld [vmem:[#allocation6 + $0x228] sm:$0xff] }
 0x23d   : > { %9391 = vmatmul.mubr.f32.gmra.mrb[22].mxu0 %v13561_v24 }
 0x23e   : > { %9393 = vmatprep.mubr.f32.mxu0 %v13563_v41  ;;  %v13585_v41 = vld [vmem:[#allocation2 + $0x172] sm:$0xff] }
 0x23f   : > { %16395 = vst [vmem:[#allocation22_spill] sm:$0xff] %v13585_v41 }
 0x241   : > { %9394 = vmatmul.mubr.f32.gmra.mrb[24].mxu0 %v13567_v32  ;;  %v2678_v32 = vld [vmem:[#allocation6 + $0x210] sm:$0xff] }
 0x242   : > { %9396 = vmatprep.mubr.f32.mxu0 %v13569_v8  ;;  %v2679_v8 = vld [vmem:[#allocation6 + $0x218] sm:$0xff] }
 0x243   : > { %v10737_v24 = vpack.c.bf16 %v2679_v8, %v2678_v32  ;;  %v2685_v32 = vld [vmem:[#allocation6 + $0x248] sm:$0xff]  ;;  %v13639_v8 = vld [vmem:[#allocation2 + $0x69] sm:$0xff] }
 0x245   : > { %9397 = vmatmul.mubr.f32.gmra.mrb[26].mxu0 %v13573_v3  ;;  %v2680_v3 = vld [vmem:[#allocation6 + $0x220] sm:$0xff] }
 0x246   : > { %9399 = vmatprep.mubr.f32.mxu0 %v13575_v40  ;;  %v2682_v40 = vld [vmem:[#allocation6 + $0x230] sm:$0xff] }
 0x249   : > { %9400 = vmatmul.mubr.f32.gmra.mrb[28].mxu0 %v13579_v51  ;;  %v10741_v51 = vpack.c.bf16 %v2681_v16, %v2680_v3  ;;  %v2689_v16 = vld [vmem:[#allocation6 + $0x268] sm:$0xff] }
 0x24a   : > { %9402 = vmatprep.mubr.f32.mxu0 %v13581_v1  ;;  %v2683_v1 = vld [vmem:[#allocation6 + $0x238] sm:$0xff]  ;;  %v13641_v3 = vld [vmem:[#allocation2 + $0x79] sm:$0xff] }
 0x24d   : > { %9403 = vmatmul.mubr.f32.gmra.mrb[30].mxu0 %v13585_v41  ;;  %v10745_v41 = vpack.c.bf16 %v2683_v1, %v2682_v40  ;;  %v2993_v1 = vld [vmem:[#allocation6 + $0x2d8] sm:$0xff] }
 0x24e   : > { %9437 = vmatprep.mubr.f32.mxu0 %v13378_v15  ;;  %v2684_v15 = vld [vmem:[#allocation6 + $0x240] sm:$0xff] }
 0x251   : > { %9438 = vmatmul.mubr.f32.vlgmr.msra.gmra.mrb[0].mxu0 %v13391_v27  ;;  %v10749_v27 = vpack.c.bf16 %v2685_v32, %v2684_v15  ;;  %v13645_v15 = vld [vmem:[#allocation2 + $0x81] sm:$0xff]  ;;  %v13647_v32 = vld [vmem:[#allocation2 + $0x91] sm:$0xff] }
 0x252   : > { %10736 = vmatpush3.bf16.msra.mxu0 %v10733_v4  ;;  %9440 = vmatprep.mubr.f32.mxu0 %v13394_v45  ;;  %v2686_v45 = vld [vmem:[#allocation6 + $0x250] sm:$0xff]  ;;  %v2687_v4 = vld [vmem:[#allocation6 + $0x258] sm:$0xff] }
 0x253   : > { %10738 = vmatprep.subr.bf16.mxu0 %v10737_v24 }
 0x255   : > { %9441 = vmatmul.mubr.f32.gmra.mrb[2].mxu0 %v13399_v5  ;;  %v10753_v5 = vpack.c.bf16 %v2687_v4, %v2686_v45  ;;  %v2994_v45 = vld [vmem:[#allocation6 + $0x2e0] sm:$0xff]  ;;  %v2995_v4 = vld [vmem:[#allocation6 + $0x2e8] sm:$0xff] }
 0x256   : > { %9443 = vmatprep.mubr.f32.mxu0 %v13401_v33  ;;  %10740 = vmatpush3.bf16.msra.mxu0 %v10737_v24  ;;  %v2688_v33 = vld [vmem:[#allocation6 + $0x260] sm:$0xff]  ;;  %v2691_v24 = vld [vmem:[#allocation6 + $0x278] sm:$0xff] }
 0x257   : > { %10742 = vmatprep.subr.bf16.mxu0 %v10741_v51 }
 0x259   : > { %9444 = vmatmul.mubr.f32.gmra.mrb[4].mxu0 %v13405_v35  ;;  %v10757_v35 = vpack.c.bf16 %v2689_v16, %v2688_v33  ;;  %v13653_v33 = vld [vmem:[#allocation2 + $0xa9] sm:$0xff]  ;;  %v10789_v16 = vpack.c.bf16 %v2995_v4, %v2994_v45  ;;  %v3294_v4 = vld [vmem:[#allocation6 + $0x328] sm:$0xff] }
 0x25a   : > { %9446 = vmatprep.mubr.f32.mxu0 %v13407_v0  ;;  %10744 = vmatpush3.bf16.msra.mxu0 %v10741_v51  ;;  %v2690_v0 = vld [vmem:[#allocation6 + $0x270] sm:$0xff]  ;;  %v3293_v45 = vld [vmem:[#allocation6 + $0x320] sm:$0xff] }
 0x25b   : > { %10746 = vmatprep.subr.bf16.mxu0 %v10745_v41  ;;  %v2992_v51 = vld [vmem:[#allocation6 + $0x2d0] sm:$0xff] }
 0x25d   : > { %9447 = vmatmul.mubr.f32.gmra.mrb[6].mxu0 %v13411_v7  ;;  %v10761_v7 = vpack.c.bf16 %v2691_v24, %v2690_v0  ;;  %v2997_v0 = vld [vmem:[#allocation6 + $0x2f8] sm:$0xff]  ;;  %v13657_v24 = vld [vmem:[#allocation2 + $0xb1] sm:$0xff] }
 0x25e   : > { %9449 = vmatprep.mubr.f32.mxu0 %v13413_v11  ;;  %10748 = vmatpush3.bf16.msra.mxu0 %v10745_v41  ;;  %v2982_v11 = vld [vmem:[#allocation6 + $0x280] sm:$0xff]  ;;  %v2983_v41 = vld [vmem:[#allocation6 + $0x288] sm:$0xff] }
 0x25f   : > { %10750 = vmatprep.subr.bf16.mxu0 %v10749_v27 }
 0x261   : > { %9450 = vmatmul.mubr.f32.gmra.mrb[8].mxu0 %v13417_v36  ;;  %v10765_v36 = vpack.c.bf16 %v2983_v41, %v2982_v11  ;;  %v3289_v41 = vld [vmem:[#allocation6 + $0x300] sm:$0xff] }
 0x262   : > { %9452 = vmatprep.mubr.f32.mxu0 %v13419_v31  ;;  %10752 = vmatpush3.bf16.msra.mxu0 %v10749_v27  ;;  %v13617_v31 = vld [vmem:[#allocation2 + $0x180] sm:$0xff]  ;;  %v10785_v27 = vpack.c.bf16 %v2993_v1, %v2992_v51  ;;  %v3292_v1 = vld [vmem:[#allocation6 + $0x318] sm:$0xff] }
 0x263   : > { %10754 = vmatprep.subr.bf16.mxu0 %v10753_v5  ;;  %v3291_v51 = vld [vmem:[#allocation6 + $0x310] sm:$0xff] }
 0x265   : > { %9453 = vmatmul.mubr.f32.gmra.mrb[10].mxu0 %v13423_v13  ;;  %v13621_v13 = vld [vmem:[#allocation2 + $0x188] sm:$0xff] }
 0x266   : > { %9455 = vmatprep.mubr.f32.mxu0 %v13425_v56  ;;  %10756 = vmatpush3.bf16.msra.mxu0 %v10753_v5  ;;  %v2643_v56 = vld [vmem:[#allocation2 + $0x19] sm:$0xff] }
 0x267   : > { %10758 = vmatprep.subr.bf16.mxu0 %v10757_v35  ;;  %v13651_v5 = vld [vmem:[#allocation2 + $0x99] sm:$0xff] }
 0x269   : > { %9456 = vmatmul.mubr.f32.gmra.mrb[12].mxu0 %v13431_v52  ;;  %v2984_v52 = vld [vmem:[#allocation6 + $0x290] sm:$0xff] }
 0x26a   : > { %9458 = vmatprep.mubr.f32.mxu0 %v13434_v54  ;;  %10760 = vmatpush3.bf16.msra.mxu0 %v10757_v35  ;;  %v2985_v54 = vld [vmem:[#allocation6 + $0x298] sm:$0xff]  ;;  %v2996_v35 = vld [vmem:[#allocation6 + $0x2f0] sm:$0xff] }
 0x26b   : > { %10762 = vmatprep.subr.bf16.mxu0 %v10761_v7  ;;  %v10793_v11 = vpack.c.bf16 %v2997_v0, %v2996_v35  ;;  %v3300_v35 = vld [vmem:[#allocation6 + $0x358] sm:$0xff]  ;;  %v3302_v0 = vld [vmem:[#allocation6 + $0x368] sm:$0xff] }
 0x26d   : > { %9459 = vmatmul.mubr.f32.gmra.mrb[14].mxu0 %v13441_v10  ;;  %v2644_v10 = vld [vmem:[#allocation2 + $0x21] sm:$0xff] }
 0x26e   : > { %9461 = vmatprep.mubr.f32.mxu0 %v13443_v62  ;;  %10764 = vmatpush3.bf16.msra.mxu0 %v10761_v7  ;;  %v13624_v62 = vld [vmem:[#allocation2 + $0x31] sm:$0xff]  ;;  %v13659_v7 = vld [vmem:[#allocation2 + $0xc1] sm:$0xff] }
 0x26f   : > { %10766 = vmatprep.subr.bf16.mxu0 %v10765_v36 }
 0x271   : > { %9462 = vmatmul.mubr.f32.gmra.mrb[16].mxu0 %v13448_v48  ;;  %v10769_v48 = vpack.c.bf16 %v2985_v54, %v2984_v52  ;;  %v13665_v52 = vld [vmem:[#allocation2 + $0xd9] sm:$0xff] }
 0x272   : > { %9464 = vmatprep.mubr.f32.mxu0 %v13450_v49  ;;  %v2986_v49 = vld [vmem:[#allocation6 + $0x2a0] sm:$0xff] }
 0x275   : > { %9465 = vmatmul.mubr.f32.gmra.mrb[18].mxu0 %v13454_v14  ;;  %v2987_v14 = vld [vmem:[#allocation6 + $0x2a8] sm:$0xff] }
 0x276   : > { %9467 = vmatprep.mubr.f32.mxu0 %v13456_v34  ;;  %v13627_v34 = vld [vmem:[#allocation2 + $0x39] sm:$0xff] }
 0x279   : > { %9468 = vmatmul.mubr.f32.gmra.mrb[20].mxu0 %v13460_v29  ;;  %v13629_v29 = vld [vmem:[#allocation2 + $0x49] sm:$0xff] }
 0x27a   : > { %9470 = vmatprep.mubr.f32.mxu0 %v13462_v58  ;;  %v10773_v58 = vpack.c.bf16 %v2987_v14, %v2986_v49  ;;  %v13675_v49 = vld [vmem:[#allocation2 + $0xf9] sm:$0xff]  ;;  %v13677_v14 = vld [vmem:[#allocation2 + $0x109] sm:$0xff] }
 0x27d   : > { %9471 = vmatmul.mubr.f32.gmra.mrb[22].mxu0 %v13466_v55  ;;  %v2988_v55 = vld [vmem:[#allocation6 + $0x2b0] sm:$0xff] }
 0x27e   : > { %9473 = vmatprep.mubr.f32.mxu0 %v13469_v37  ;;  %v2989_v37 = vld [vmem:[#allocation6 + $0x2b8] sm:$0xff] }
 0x281   : > { %9474 = vmatmul.mubr.f32.gmra.mrb[24].mxu0 %v13476_v30  ;;  %v13633_v30 = vld [vmem:[#allocation2 + $0x51] sm:$0xff] }
 0x282   : > { %9476 = vmatprep.mubr.f32.mxu0 %v13480_v46  ;;  %v13635_v46 = vld [vmem:[#allocation2 + $0x61] sm:$0xff] }
 0x285   : > { %9477 = vmatmul.mubr.f32.gmra.mrb[26].mxu0 %v13488_v26  ;;  %v10777_v26 = vpack.c.bf16 %v2989_v37, %v2988_v55  ;;  %v13683_v55 = vld [vmem:[#allocation2 + $0x121] sm:$0xff]  ;;  %v13687_v37 = vld [vmem:[#allocation2 + $0x129] sm:$0xff] }
 0x286   : > { %9479 = vmatprep.mubr.f32.mxu0 %v13490_v23  ;;  %v2990_v23 = vld [vmem:[#allocation6 + $0x2c0] sm:$0xff] }
 0x289   : > { %9480 = vmatmul.mubr.f32.gmra.mrb[28].mxu0 %v13494_v20  ;;  %v2991_v20 = vld [vmem:[#allocation6 + $0x2c8] sm:$0xff] }
 0x28a   : > { %9482 = vmatprep.mubr.f32.mxu0 %v13617_v31  ;;  %v10781_v40 = vpack.c.bf16 %v2991_v20, %v2990_v23  ;;  %v13693_v23 = vld [vmem:[#allocation2 + $0x141] sm:$0xff]  ;;  %v13695_v20 = vld [vmem:[#allocation2 + $0x151] sm:$0xff] }
 0x28d   : > { %9483 = vmatmul.mubr.f32.gmra.mrb[30].mxu0 %v13621_v13 }
 0x28e   : > { %9517 = vmatprep.mubr.f32.mxu0 %v2643_v56  ;;  %v13663_v56 = vld [vmem:[#allocation2 + $0xc9] sm:$0xff] }
 0x291   : > { %9518 = vmatmul.mubr.f32.vlgmr.msra.gmra.mrb[0].mxu0 %v2644_v10  ;;  %v13669_v10 = vld [vmem:[#allocation2 + $0xe1] sm:$0xff] }
 0x292   : > { %10768 = vmatpush3.bf16.msra.mxu0 %v10765_v36  ;;  %9520 = vmatprep.mubr.f32.mxu0 %v13624_v62  ;;  %v3290_v36 = vld [vmem:[#allocation6 + $0x308] sm:$0xff] }
 0x293   : > { %10770 = vmatprep.subr.bf16.mxu0 %v10769_v48  ;;  %v10797_v54 = vpack.c.bf16 %v3290_v36, %v3289_v41  ;;  %v3596_v41 = vld [vmem:[#allocation6 + $0x388] sm:$0xff]  ;;  %v16403_v36 = vld [vmem:[#allocation20_spill] sm:$0xff] }
 0x295   : > { %9521 = vmatmul.mubr.f32.gmra.mrb[2].mxu0 %v13627_v34 }
 0x296   : > { %9523 = vmatprep.mubr.f32.mxu0 %v13629_v29  ;;  %10772 = vmatpush3.bf16.msra.mxu0 %v10769_v48  ;;  %v13671_v48 = vld [vmem:[#allocation2 + $0xf1] sm:$0xff] }
 0x297   : > { %10774 = vmatprep.subr.bf16.mxu0 %v10773_v58 }
 0x299   : > { %9524 = vmatmul.mubr.f32.gmra.mrb[4].mxu0 %v13633_v30 }
 0x29a   : > { %9526 = vmatprep.mubr.f32.mxu0 %v13635_v46  ;;  %10776 = vmatpush3.bf16.msra.mxu0 %v10773_v58  ;;  %v13681_v58 = vld [vmem:[#allocation2 + $0x111] sm:$0xff] }
 0x29b   : > { %10778 = vmatprep.subr.bf16.mxu0 %v10777_v26 }
 0x29d   : > { %9527 = vmatmul.mubr.f32.gmra.mrb[6].mxu0 %v13639_v8 }
 0x29e   : > { %9529 = vmatprep.mubr.f32.mxu0 %v13641_v3  ;;  %10780 = vmatpush3.bf16.msra.mxu0 %v10777_v26  ;;  %v13689_v26 = vld [vmem:[#allocation2 + $0x139] sm:$0xff] }
 0x29f   : > { %10782 = vmatprep.subr.bf16.mxu0 %v10781_v40 }
 0x2a1   : > { %9530 = vmatmul.mubr.f32.gmra.mrb[8].mxu0 %v13645_v15 }
 0x2a2   : > { %9532 = vmatprep.mubr.f32.mxu0 %v13647_v32  ;;  %10784 = vmatpush3.bf16.msra.mxu0 %v10781_v40  ;;  %v13699_v40 = vld [vmem:[#allocation2 + $0x159] sm:$0xff] }
 0x2a3   : > { %10786 = vmatprep.subr.bf16.mxu0 %v10785_v27 }
 0x2a5   : > { %9533 = vmatmul.mubr.f32.gmra.mrb[10].mxu0 %v13651_v5 }
 0x2a6   : > { %9535 = vmatprep.mubr.f32.mxu0 %v13653_v33  ;;  %10788 = vmatpush3.bf16.msra.mxu0 %v10785_v27  ;;  %v10801_v27 = vpack.c.bf16 %v3292_v1, %v3291_v51  ;;  %v3256_v51 = vld [vmem:[#allocation2 + $0x30] sm:$0xff]  ;;  %v3597_v1 = vld [vmem:[#allocation6 + $0x390] sm:$0xff] }
 0x2a7   : > { %10790 = vmatprep.subr.bf16.mxu0 %v10789_v16 }
 0x2a9   : > { %9536 = vmatmul.mubr.f32.gmra.mrb[12].mxu0 %v13657_v24 }
 0x2aa   : > { %9538 = vmatprep.mubr.f32.mxu0 %v13659_v7  ;;  %10792 = vmatpush3.bf16.msra.mxu0 %v10789_v16  ;;  %v3295_v16 = vld [vmem:[#allocation6 + $0x330] sm:$0xff] }
 0x2ab   : > { %10794 = vmatprep.subr.bf16.mxu0 %v10793_v11 }
 0x2ad   : > { %9539 = vmatmul.mubr.f32.gmra.mrb[14].mxu0 %v13663_v56 }
 0x2ae   : > { %9541 = vmatprep.mubr.f32.mxu0 %v13665_v52  ;;  %10796 = vmatpush3.bf16.msra.mxu0 %v10793_v11  ;;  %v3304_v11 = vld [vmem:[#allocation6 + $0x378] sm:$0xff] }
 0x2af   : > { %10798 = vmatprep.subr.bf16.mxu0 %v10797_v54 }
 0x2b1   : > { %9542 = vmatmul.mubr.f32.gmra.mrb[16].mxu0 %v13669_v10 }
 0x2b2   : > { %9544 = vmatprep.mubr.f32.mxu0 %v13671_v48 }
 0x2b5   : > { %9545 = vmatmul.mubr.f32.gmra.mrb[18].mxu0 %v13675_v49 }
 0x2b6   : > { %9547 = vmatprep.mubr.f32.mxu0 %v13677_v14 }
 0x2b9   : > { %9548 = vmatmul.mubr.f32.gmra.mrb[20].mxu0 %v13681_v58 }
 0x2ba   : > { %9550 = vmatprep.mubr.f32.mxu0 %v13683_v55 }
 0x2bd   : > { %9551 = vmatmul.mubr.f32.gmra.mrb[22].mxu0 %v13687_v37 }
 0x2be   : > { %9553 = vmatprep.mubr.f32.mxu0 %v13689_v26 }
 0x2c1   : > { %9554 = vmatmul.mubr.f32.gmra.mrb[24].mxu0 %v13693_v23 }
 0x2c2   : > { %9556 = vmatprep.mubr.f32.mxu0 %v13695_v20 }
 0x2c5   : > { %9557 = vmatmul.mubr.f32.gmra.mrb[26].mxu0 %v13699_v40 }
 0x2c6   : > { %9559 = vmatprep.mubr.f32.mxu0 %v13355_v53  ;;  %v10805_v53 = vpack.c.bf16 %v3294_v4, %v3293_v45  ;;  %v3257_v45 = vld [vmem:[#allocation2 + $0x38] sm:$0xff]  ;;  %v3258_v4 = vld [vmem:[#allocation2 + $0x48] sm:$0xff] }
 0x2c9   : > { %9560 = vmatmul.mubr.f32.gmra.mrb[28].mxu0 %v13363_v25  ;;  %v3296_v25 = vld [vmem:[#allocation6 + $0x338] sm:$0xff] }
 0x2ca   : > { %9562 = vmatprep.mubr.f32.mxu0 %v13478_v6  ;;  %v10809_v6 = vpack.c.bf16 %v3296_v25, %v3295_v16  ;;  %v3599_v16 = vld [vmem:[#allocation6 + $0x3a0] sm:$0xff]  ;;  %v3600_v25 = vld [vmem:[#allocation6 + $0x3a8] sm:$0xff] }
 0x2cd   : > { %9563 = vmatmul.mubr.f32.gmra.mrb[30].mxu0 %v13482_v43  ;;  %v3297_v43 = vld [vmem:[#allocation6 + $0x340] sm:$0xff] }
 0x2ce   : > { %9597 = vmatprep.mubr.f32.mxu0 %v13497_v61  ;;  %v3298_v61 = vld [vmem:[#allocation6 + $0x348] sm:$0xff] }
 0x2d1   : > { %9598 = vmatmul.mubr.f32.vlgmr.msra.gmra.mrb[0].mxu0 %v13501_v57  ;;  %v10813_v57 = vpack.c.bf16 %v3298_v61, %v3297_v43  ;;  %v3260_v43 = vld [vmem:[#allocation2 + $0x60] sm:$0xff]  ;;  %v10837_v61 = vpack.c.bf16 %v3600_v25, %v3599_v16  ;;  %v3273_v25 = vld [vmem:[#allocation2 + $0xf8] sm:$0xff] }
 0x2d2   : > { %10800 = vmatpush3.bf16.msra.mxu0 %v10797_v54  ;;  %9600 = vmatprep.mubr.f32.mxu0 %v13503_v19  ;;  %v3299_v19 = vld [vmem:[#allocation6 + $0x350] sm:$0xff]  ;;  %v13739_v54 = vld [vmem:[#allocation2 + $0x18a] sm:$0xff] }
 0x2d3   : > { %10802 = vmatprep.subr.bf16.mxu0 %v10801_v27 }
 0x2d5   : > { %9601 = vmatmul.mubr.f32.gmra.mrb[2].mxu0 %v13507_v38  ;;  %v10817_v38 = vpack.c.bf16 %v3300_v35, %v3299_v19  ;;  %v3602_v19 = vld [vmem:[#allocation6 + $0x3b8] sm:$0xff] }
 0x2d6   : > { %9603 = vmatprep.mubr.f32.mxu0 %v13509_v60  ;;  %10804 = vmatpush3.bf16.msra.mxu0 %v10801_v27  ;;  %v3301_v60 = vld [vmem:[#allocation6 + $0x360] sm:$0xff]  ;;  %v3598_v27 = vld [vmem:[#allocation6 + $0x398] sm:$0xff] }
 0x2d7   : > { %10806 = vmatprep.subr.bf16.mxu0 %v10805_v53  ;;  %v3261_v35 = vld [vmem:[#allocation2 + $0x68] sm:$0xff] }
 0x2d9   : > { %9604 = vmatmul.mubr.f32.gmra.mrb[4].mxu0 %v13513_v9  ;;  %v10821_v9 = vpack.c.bf16 %v3302_v0, %v3301_v60  ;;  %v3603_v0 = vld [vmem:[#allocation6 + $0x3c0] sm:$0xff] }
 0x2da   : > { %9606 = vmatprep.mubr.f32.mxu0 %v13515_v21  ;;  %10808 = vmatpush3.bf16.msra.mxu0 %v10805_v53  ;;  %v3303_v21 = vld [vmem:[#allocation6 + $0x370] sm:$0xff]  ;;  %v10833_v53 = vpack.c.bf16 %v3598_v27, %v3597_v1  ;;  %v3901_v27 = vld [vmem:[#allocation6 + $0x400] sm:$0xff] }
 0x2db   : > { %10810 = vmatprep.subr.bf16.mxu0 %v10809_v6 }
 0x2dd   : > { %9607 = vmatmul.mubr.f32.gmra.mrb[6].mxu0 %v13519_v17  ;;  %v10825_v17 = vpack.c.bf16 %v3304_v11, %v3303_v21  ;;  %v3263_v21 = vld [vmem:[#allocation2 + $0x80] sm:$0xff]  ;;  %v3264_v11 = vld [vmem:[#allocation2 + $0x90] sm:$0xff] }
 0x2de   : > { %9609 = vmatprep.mubr.f32.mxu0 %v13521_v22  ;;  %10812 = vmatpush3.bf16.msra.mxu0 %v10809_v6  ;;  %v3595_v22 = vld [vmem:[#allocation6 + $0x380] sm:$0xff] }
 0x2df   : > { %10814 = vmatprep.subr.bf16.mxu0 %v10813_v57  ;;  %v3259_v6 = vld [vmem:[#allocation2 + $0x50] sm:$0xff] }
 0x2e1   : > { %9610 = vmatmul.mubr.f32.gmra.mrb[8].mxu0 %v13525_v50  ;;  %v10829_v50 = vpack.c.bf16 %v3596_v41, %v3595_v22  ;;  %v3605_v22 = vld [vmem:[#allocation6 + $0x3d0] sm:$0xff]  ;;  %v3606_v41 = vld [vmem:[#allocation6 + $0x3d8] sm:$0xff] }
 0x2e2   : > { %9612 = vmatprep.mubr.f32.mxu0 %v13527_v18  ;;  %10816 = vmatpush3.bf16.msra.mxu0 %v10813_v57  ;;  %v16396_v18 = vld [vmem:[#allocation13_spill] sm:$0xff]  ;;  %v3601_v57 = vld [vmem:[#allocation6 + $0x3b0] sm:$0xff] }
 0x2e3   : > { %10818 = vmatprep.subr.bf16.mxu0 %v10817_v38  ;;  %v10841_v60 = vpack.c.bf16 %v3602_v19, %v3601_v57  ;;  %v3277_v57 = vld [vmem:[#allocation2 + $0x128] sm:$0xff]  ;;  %v3278_v19 = vld [vmem:[#allocation2 + $0x138] sm:$0xff] }
 0x2e5   : > { %9613 = vmatmul.mubr.f32.gmra.mrb[10].mxu0 %v13531_v12  ;;  %v16397_v12 = vld [vmem:[#allocation14_spill] sm:$0xff] }
 0x2e6   : > { %9615 = vmatprep.mubr.f32.mxu0 %v13533_v39  ;;  %10820 = vmatpush3.bf16.msra.mxu0 %v10817_v38  ;;  %v16398_v39 = vld [vmem:[#allocation15_spill] sm:$0xff]  ;;  %v3262_v38 = vld [vmem:[#allocation2 + $0x78] sm:$0xff] }
 0x2e7   : > { %10822 = vmatprep.subr.bf16.mxu0 %v10821_v9 }
 0x2e9   : > { %9616 = vmatmul.mubr.f32.gmra.mrb[12].mxu0 %v13537_v47  ;;  %v16399_v47 = vld [vmem:[#allocation16_spill] sm:$0xff] }
 0x2ea   : > { %9618 = vmatprep.mubr.f32.mxu0 %v13539_v28  ;;  %10824 = vmatpush3.bf16.msra.mxu0 %v10821_v9  ;;  %v16400_v28 = vld [vmem:[#allocation17_spill] sm:$0xff]  ;;  %v3604_v9 = vld [vmem:[#allocation6 + $0x3c8] sm:$0xff] }
 0x2eb   : > { %10826 = vmatprep.subr.bf16.mxu0 %v10825_v17 }
 0x2ed   : > { %9619 = vmatmul.mubr.f32.gmra.mrb[14].mxu0 %v13543_v59  ;;  %v16401_v59 = vld [vmem:[#allocation18_spill] sm:$0xff] }
 0x2ee   : > { %9621 = vmatprep.mubr.f32.mxu0 %v13545_v44  ;;  %10828 = vmatpush3.bf16.msra.mxu0 %v10825_v17  ;;  %v16402_v44 = vld [vmem:[#allocation19_spill] sm:$0xff]  ;;  %v10845_v17 = vpack.c.bf16 %v3604_v9, %v3603_v0  ;;  %v3282_v0 = vld [vmem:[#allocation2 + $0x168] sm:$0xff]  ;;  %v3283_v9 = vld [vmem:[#allocation2 + $0x170] sm:$0xff] }
 0x2ef   : > { %10830 = vmatprep.subr.bf16.mxu0 %v10829_v50 }
 0x2f1   : > { %9622 = vmatmul.mubr.f32.gmra.mrb[16].mxu0 %v13549_v2  ;;  %v16404_v2 = vld [vmem:[#allocation21_spill] sm:$0xff] }
 0x2f2   : > { %9624 = vmatprep.mubr.f32.mxu0 %v13551_v42  ;;  %v13735_v42 = vld [vmem:[#allocation2 + $0x182] sm:$0xff] }
 0x2f5   : > { %9625 = vmatmul.mubr.f32.gmra.mrb[18].mxu0 %v13555_v63  ;;  %v16405_v63 = vld [vmem:[#allocation22_spill] sm:$0xff] }
 0x2f6   : > { %9627 = vmatprep.mubr.f32.mxu0 %v16396_v18  ;;  %v3266_v18 = vld [vmem:[#allocation2 + $0xa8] sm:$0xff] }
 0x2f9   : > { %9628 = vmatmul.mubr.f32.gmra.mrb[20].mxu0 %v16397_v12  ;;  %v10849_v12 = vpack.c.bf16 %v3606_v41, %v3605_v22  ;;  %v12038_v22 = vld [vmem:[#allocation2 + $0x8] sm:$0xff] }
 0x2fa   : > { %9630 = vmatprep.mubr.f32.mxu0 %v16398_v39  ;;  %v3607_v39 = vld [vmem:[#allocation6 + $0x3e0] sm:$0xff] }
 0x2fd   : > { %9631 = vmatmul.mubr.f32.gmra.mrb[22].mxu0 %v16399_v47  ;;  %v3608_v47 = vld [vmem:[#allocation6 + $0x3e8] sm:$0xff] }
 0x2fe   : > { %9633 = vmatprep.mubr.f32.mxu0 %v16400_v28  ;;  %v3267_v28 = vld [vmem:[#allocation2 + $0xb0] sm:$0xff] }
 0x301   : > { %9634 = vmatmul.mubr.f32.gmra.mrb[24].mxu0 %v16401_v59  ;;  %v3268_v59 = vld [vmem:[#allocation2 + $0xc0] sm:$0xff] }
 0x302   : > { %9636 = vmatprep.mubr.f32.mxu0 %v16402_v44  ;;  %v10853_v44 = vpack.c.bf16 %v3608_v47, %v3607_v39  ;;  %v3908_v39 = vld [vmem:[#allocation6 + $0x438] sm:$0xff]  ;;  %v3910_v47 = vld [vmem:[#allocation6 + $0x448] sm:$0xff] }
 0x305   : > { %9637 = vmatmul.mubr.f32.gmra.mrb[26].mxu0 %v16403_v36  ;;  %v3609_v36 = vld [vmem:[#allocation6 + $0x3f0] sm:$0xff] }
 0x306   : > { %9639 = vmatprep.mubr.f32.mxu0 %v16404_v2  ;;  %v3610_v2 = vld [vmem:[#allocation6 + $0x3f8] sm:$0xff] }
 0x307   : > { %v10857_v1 = vpack.c.bf16 %v3610_v2, %v3609_v36  ;;  %v3880_v36 = vld [vmem:[#allocation2 + $0xc2] sm:$0xff]  ;;  %v3881_v2 = vld [vmem:[#allocation2 + $0xca] sm:$0xff] }
 0x309   : > { %9640 = vmatmul.mubr.f32.gmra.mrb[28].mxu0 %v16405_v63  ;;  %v3269_v63 = vld [vmem:[#allocation2 + $0xc8] sm:$0xff] }
 0x30a   : > { %9642 = vmatprep.mubr.f32.mxu0 %v13735_v42 }
 0x30d   : > { %9643 = vmatmul.mubr.f32.gmra.mrb[30].mxu0 %v13739_v54 }
 0x30e   : > { %9677 = vmatprep.mubr.f32.mxu0 %v3256_v51  ;;  %v3270_v51 = vld [vmem:[#allocation2 + $0xd8] sm:$0xff] }
 0x311   : > { %9678 = vmatmul.mubr.f32.vlgmr.msra.gmra.mrb[0].mxu0 %v3257_v45  ;;  %v3902_v45 = vld [vmem:[#allocation6 + $0x408] sm:$0xff] }
 0x312   : > { %10832 = vmatpush3.bf16.msra.mxu0 %v10829_v50  ;;  %9680 = vmatprep.mubr.f32.mxu0 %v3258_v4  ;;  %v3265_v50 = vld [vmem:[#allocation2 + $0x98] sm:$0xff]  ;;  %v3271_v4 = vld [vmem:[#allocation2 + $0xe0] sm:$0xff]  ;;  %v10861_v16 = vpack.c.bf16 %v3902_v45, %v3901_v27  ;;  %v3886_v45 = vld [vmem:[#allocation2 + $0x10a] sm:$0xff] }
 0x313   : > { %10834 = vmatprep.subr.bf16.mxu0 %v10833_v53  ;;  %v3885_v27 = vld [vmem:[#allocation2 + $0xfa] sm:$0xff] }
 0x315   : > { %9681 = vmatmul.mubr.f32.gmra.mrb[2].mxu0 %v3259_v6  ;;  %v3274_v6 = vld [vmem:[#allocation2 + $0x108] sm:$0xff] }
 0x316   : > { %9683 = vmatprep.mubr.f32.mxu0 %v3260_v43  ;;  %10836 = vmatpush3.bf16.msra.mxu0 %v10833_v53  ;;  %v3272_v53 = vld [vmem:[#allocation2 + $0xf0] sm:$0xff] }
 0x317   : > { %10838 = vmatprep.subr.bf16.mxu0 %v10837_v61  ;;  %v3275_v43 = vld [vmem:[#allocation2 + $0x110] sm:$0xff] }
 0x319   : > { %9684 = vmatmul.mubr.f32.gmra.mrb[4].mxu0 %v3261_v35  ;;  %v3279_v35 = vld [vmem:[#allocation2 + $0x140] sm:$0xff] }
 0x31a   : > { %9686 = vmatprep.mubr.f32.mxu0 %v3262_v38  ;;  %10840 = vmatpush3.bf16.msra.mxu0 %v10837_v61  ;;  %v3276_v61 = vld [vmem:[#allocation2 + $0x120] sm:$0xff]  ;;  %v3280_v38 = vld [vmem:[#allocation2 + $0x150] sm:$0xff] }
 0x31b   : > { %10842 = vmatprep.subr.bf16.mxu0 %v10841_v60 }
 0x31d   : > { %9687 = vmatmul.mubr.f32.gmra.mrb[6].mxu0 %v3263_v21  ;;  %v3286_v21 = vld [vmem:[#allocation2 + $0x198] sm:$0xff] }
 0x31e   : > { %9689 = vmatprep.mubr.f32.mxu0 %v3264_v11  ;;  %10844 = vmatpush3.bf16.msra.mxu0 %v10841_v60  ;;  %v3281_v60 = vld [vmem:[#allocation2 + $0x158] sm:$0xff]  ;;  %v3903_v11 = vld [vmem:[#allocation6 + $0x410] sm:$0xff] }
 0x31f   : > { %10846 = vmatprep.subr.bf16.mxu0 %v10845_v17 }
 0x321   : > { %9690 = vmatmul.mubr.f32.gmra.mrb[8].mxu0 %v3265_v50  ;;  %v3905_v50 = vld [vmem:[#allocation6 + $0x420] sm:$0xff] }
 0x322   : > { %9692 = vmatprep.mubr.f32.mxu0 %v3266_v18  ;;  %10848 = vmatpush3.bf16.msra.mxu0 %v10845_v17  ;;  %v3904_v17 = vld [vmem:[#allocation6 + $0x418] sm:$0xff]  ;;  %v3906_v18 = vld [vmem:[#allocation6 + $0x428] sm:$0xff] }
 0x323   : > { %10850 = vmatprep.subr.bf16.mxu0 %v10849_v12  ;;  %v10865_v41 = vpack.c.bf16 %v3904_v17, %v3903_v11 }
 0x325   : > { %9693 = vmatmul.mubr.f32.gmra.mrb[10].mxu0 %v3267_v28  ;;  %v3912_v28 = vld [vmem:[#allocation6 + $0x458] sm:$0xff] }
 0x326   : > { %9695 = vmatprep.mubr.f32.mxu0 %v3268_v59  ;;  %10852 = vmatpush3.bf16.msra.mxu0 %v10849_v12  ;;  %v3907_v12 = vld [vmem:[#allocation6 + $0x430] sm:$0xff]  ;;  %v3914_v59 = vld [vmem:[#allocation6 + $0x468] sm:$0xff] }
 0x327   : > { %10854 = vmatprep.subr.bf16.mxu0 %v10853_v44 }
 0x329   : > { %9696 = vmatmul.mubr.f32.gmra.mrb[12].mxu0 %v3269_v63  ;;  %v3882_v63 = vld [vmem:[#allocation2 + $0xda] sm:$0xff] }
 0x32a   : > { %9698 = vmatprep.mubr.f32.mxu0 %v3270_v51  ;;  %10856 = vmatpush3.bf16.msra.mxu0 %v10853_v44  ;;  %v3916_v44 = vld [vmem:[#allocation6 + $0x478] sm:$0xff] }
 0x32b   : > { %10858 = vmatprep.subr.bf16.mxu0 %v10857_v1  ;;  %v3883_v51 = vld [vmem:[#allocation2 + $0xe2] sm:$0xff] }
 0x32d   : > { %9699 = vmatmul.mubr.f32.gmra.mrb[14].mxu0 %v3271_v4  ;;  %v3887_v4 = vld [vmem:[#allocation2 + $0x112] sm:$0xff] }
 0x32e   : > { %9701 = vmatprep.mubr.f32.mxu0 %v3272_v53  ;;  %10860 = vmatpush3.bf16.msra.mxu0 %v10857_v1  ;;  %v3884_v1 = vld [vmem:[#allocation2 + $0xf2] sm:$0xff]  ;;  %v3888_v53 = vld [vmem:[#allocation2 + $0x122] sm:$0xff] }
 0x32f   : > { %10862 = vmatprep.subr.bf16.mxu0 %v10861_v16 }
 0x331   : > { %9702 = vmatmul.mubr.f32.gmra.mrb[16].mxu0 %v3273_v25  ;;  %v3890_v25 = vld [vmem:[#allocation2 + $0x13a] sm:$0xff] }
 0x332   : > { %9704 = vmatprep.mubr.f32.mxu0 %v3274_v6  ;;  %v3891_v6 = vld [vmem:[#allocation2 + $0x142] sm:$0xff] }
 0x335   : > { %9705 = vmatmul.mubr.f32.gmra.mrb[18].mxu0 %v3275_v43  ;;  %v3892_v43 = vld [vmem:[#allocation2 + $0x152] sm:$0xff] }
 0x336   : > { %9707 = vmatprep.mubr.f32.mxu0 %v3276_v61  ;;  %v3893_v61 = vld [vmem:[#allocation2 + $0x15a] sm:$0xff] }
 0x339   : > { %9708 = vmatmul.mubr.f32.gmra.mrb[20].mxu0 %v3277_v57  ;;  %v3894_v57 = vld [vmem:[#allocation2 + $0x16a] sm:$0xff] }
 0x33a   : > { %9710 = vmatprep.mubr.f32.mxu0 %v3278_v19  ;;  %v3895_v19 = vld [vmem:[#allocation2 + $0x172] sm:$0xff] }
 0x33d   : > { %9711 = vmatmul.mubr.f32.gmra.mrb[22].mxu0 %v3279_v35  ;;  %v3898_v35 = vld [vmem:[#allocation2 + $0x19a] sm:$0xff] }
 0x33e   : > { %9713 = vmatprep.mubr.f32.mxu0 %v3280_v38  ;;  %v3899_v38 = vld [vmem:[#allocation2 + $0x1a2] sm:$0xff] }
 0x341   : > { %9714 = vmatmul.mubr.f32.gmra.mrb[24].mxu0 %v3281_v60  ;;  %v13775_v60 = vld [vmem:[%s16083_s2] ss:$0 sm:$0xff] }
 0x342   : > { %9716 = vmatprep.mubr.f32.mxu0 %v3282_v0 }
 0x345   : > { %9717 = vmatmul.mubr.f32.gmra.mrb[26].mxu0 %v3283_v9 }
 0x346   : > { %9719 = vmatprep.mubr.f32.mxu0 %v13617_v31  ;;  %v10869_v31 = vpack.c.bf16 %v3906_v18, %v3905_v50 }
 0x349   : > { %9720 = vmatmul.mubr.f32.gmra.mrb[28].mxu0 %v13621_v13  ;;  %v10873_v13 = vpack.c.bf16 %v3908_v39, %v3907_v12 }
 0x34a   : > { %9722 = vmatprep.mubr.f32.mxu0 %v3286_v21 }
 0x34d   : > { %9723 = vmatmul.mubr.f32.gmra.mrb[30].mxu0 %v12038_v22 }
 0x34e   : > { %9757 = vmatprep.mubr.f32.mxu0 %v13624_v62  ;;  %v3909_v62 = vld [vmem:[#allocation6 + $0x440] sm:$0xff] }
 0x351   : > { %9758 = vmatmul.mubr.f32.vlgmr.msra.gmra.mrb[0].mxu0 %v13627_v34  ;;  %v10877_v34 = vpack.c.bf16 %v3910_v47, %v3909_v62 }
 0x352   : > { %10864 = vmatpush3.bf16.msra.mxu0 %v10861_v16  ;;  %9760 = vmatprep.mubr.f32.mxu0 %v13629_v29  ;;  %v3911_v29 = vld [vmem:[#allocation6 + $0x450] sm:$0xff]  ;;  %v3889_v16 = vld [vmem:[#allocation2 + $0x12a] sm:$0xff] }
 0x353   : > { %10866 = vmatprep.subr.bf16.mxu0 %v10865_v41 }
 0x355   : > { %9761 = vmatmul.mubr.f32.gmra.mrb[2].mxu0 %v13633_v30  ;;  %v10881_v30 = vpack.c.bf16 %v3912_v28, %v3911_v29 }
 0x356   : > { %9763 = vmatprep.mubr.f32.mxu0 %v13635_v46  ;;  %10868 = vmatpush3.bf16.msra.mxu0 %v10865_v41  ;;  %v3913_v46 = vld [vmem:[#allocation6 + $0x460] sm:$0xff] }
 0x357   : > { %10870 = vmatprep.subr.bf16.mxu0 %v10869_v31 }
 0x359   : > { %9764 = vmatmul.mubr.f32.gmra.mrb[4].mxu0 %v13639_v8  ;;  %v10885_v8 = vpack.c.bf16 %v3914_v59, %v3913_v46 }
 0x35a   : > { %9766 = vmatprep.mubr.f32.mxu0 %v13641_v3  ;;  %10872 = vmatpush3.bf16.msra.mxu0 %v10869_v31  ;;  %v3915_v3 = vld [vmem:[#allocation6 + $0x470] sm:$0xff] }
 0x35b   : > { %10874 = vmatprep.subr.bf16.mxu0 %v10873_v13 }
 0x35d   : > { %9767 = vmatmul.mubr.f32.gmra.mrb[6].mxu0 %v13645_v15  ;;  %v10889_v15 = vpack.c.bf16 %v3916_v44, %v3915_v3 }
 0x35e   : > { %9769 = vmatprep.mubr.f32.mxu0 %v13647_v32  ;;  %10876 = vmatpush3.bf16.msra.mxu0 %v10873_v13  ;;  %v3588_v32 = vld [vmem:[#allocation2 + $0x169] sm:$0xff] }
 0x35f   : > { %10878 = vmatprep.subr.bf16.mxu0 %v10877_v34 }
 0x361   : > { %9770 = vmatmul.mubr.f32.gmra.mrb[8].mxu0 %v13651_v5  ;;  %v3589_v5 = vld [vmem:[#allocation2 + $0x171] sm:$0xff] }
 0x362   : > { %9772 = vmatprep.mubr.f32.mxu0 %v13653_v33  ;;  %10880 = vmatpush3.bf16.msra.mxu0 %v10877_v34  ;;  %v12039_v33 = vld [vmem:[#allocation2 + $0x181] sm:$0xff] }
 0x363   : > { %10882 = vmatprep.subr.bf16.mxu0 %v10881_v30 }
 0x365   : > { %9773 = vmatmul.mubr.f32.gmra.mrb[10].mxu0 %v13657_v24  ;;  %v3592_v24 = vld [vmem:[#allocation2 + $0x199] sm:$0xff] }
 0x366   : > { %9775 = vmatprep.mubr.f32.mxu0 %v13659_v7  ;;  %10884 = vmatpush3.bf16.msra.mxu0 %v10881_v30  ;;  %v12040_v7 = vld [vmem:[#allocation2 + $0x189] sm:$0xff] }
 0x367   : > { %10886 = vmatprep.subr.bf16.mxu0 %v10885_v8 }
 0x369   : > { %9776 = vmatmul.mubr.f32.gmra.mrb[12].mxu0 %v13663_v56  ;;  %v3593_v56 = vld [vmem:[#allocation2 + $0x1a1] sm:$0xff] }
 0x36a   : > { %9778 = vmatprep.mubr.f32.mxu0 %v13665_v52  ;;  %10888 = vmatpush3.bf16.msra.mxu0 %v10885_v8  ;;  %v3868_v52 = vld [vmem:[#allocation2 + $0x32] sm:$0xff] }
 0x36b   : > { %10890 = vmatprep.subr.bf16.mxu0 %v10889_v15 }
 0x36d   : > { %9779 = vmatmul.mubr.f32.gmra.mrb[14].mxu0 %v13669_v10  ;;  %v3869_v10 = vld [vmem:[#allocation2 + $0x3a] sm:$0xff] }
 0x36e   : > { %9781 = vmatprep.mubr.f32.mxu0 %v13671_v48  ;;  %10892 = vmatpush3.bf16.msra.mxu0 %v10889_v15  ;;  %v3870_v48 = vld [vmem:[#allocation2 + $0x4a] sm:$0xff] }
 0x371   : > { %9782 = vmatmul.mubr.f32.gmra.mrb[16].mxu0 %v13675_v49  ;;  %v3871_v49 = vld [vmem:[#allocation2 + $0x52] sm:$0xff] }
 0x372   : > { %9784 = vmatprep.mubr.f32.mxu0 %v13677_v14  ;;  %v3872_v14 = vld [vmem:[#allocation2 + $0x62] sm:$0xff] }
 0x375   : > { %9785 = vmatmul.mubr.f32.gmra.mrb[18].mxu0 %v13681_v58  ;;  %v3873_v58 = vld [vmem:[#allocation2 + $0x6a] sm:$0xff] }
 0x376   : > { %9787 = vmatprep.mubr.f32.mxu0 %v13683_v55  ;;  %v3874_v55 = vld [vmem:[#allocation2 + $0x7a] sm:$0xff] }
 0x379   : > { %9788 = vmatmul.mubr.f32.gmra.mrb[20].mxu0 %v13687_v37  ;;  %v3875_v37 = vld [vmem:[#allocation2 + $0x82] sm:$0xff] }
 0x37a   : > { %9790 = vmatprep.mubr.f32.mxu0 %v13689_v26  ;;  %v3876_v26 = vld [vmem:[#allocation2 + $0x92] sm:$0xff] }
 0x37d   : > { %9791 = vmatmul.mubr.f32.gmra.mrb[22].mxu0 %v13693_v23  ;;  %v3877_v23 = vld [vmem:[#allocation2 + $0x9a] sm:$0xff] }
 0x37e   : > { %9793 = vmatprep.mubr.f32.mxu0 %v13695_v20  ;;  %v3878_v20 = vld [vmem:[#allocation2 + $0xaa] sm:$0xff] }
 0x381   : > { %9794 = vmatmul.mubr.f32.gmra.mrb[24].mxu0 %v13699_v40  ;;  %v3879_v40 = vld [vmem:[#allocation2 + $0xb2] sm:$0xff] }
 0x382   : > { %9796 = vmatprep.mubr.f32.mxu0 %v3588_v32 }
 0x385   : > { %9797 = vmatmul.mubr.f32.gmra.mrb[26].mxu0 %v3589_v5 }
 0x386   : > { %9799 = vmatprep.mubr.f32.mxu0 %v12039_v33 }
 0x389   : > { %9800 = vmatmul.mubr.f32.gmra.mrb[28].mxu0 %v12040_v7 }
 0x38a   : > { %9802 = vmatprep.mubr.f32.mxu0 %v3592_v24 }
 0x38d   : > { %9803 = vmatmul.mubr.f32.gmra.mrb[30].mxu0 %v3593_v56 }
 0x38e   : > { %9837 = vmatprep.mubr.f32.mxu0 %v3868_v52 }
 0x391   : > { %9838 = vmatmul.mubr.f32.vlgmr.msra.gmra.mrb[0].mxu0 %v3869_v10 }
 0x392   : > { %9840 = vmatprep.mubr.f32.mxu0 %v3870_v48 }
 0x395   : > { %9841 = vmatmul.mubr.f32.gmra.mrb[2].mxu0 %v3871_v49 }
 0x396   : > { %9843 = vmatprep.mubr.f32.mxu0 %v3872_v14 }
 0x399   : > { %9844 = vmatmul.mubr.f32.gmra.mrb[4].mxu0 %v3873_v58 }
 0x39a   : > { %9846 = vmatprep.mubr.f32.mxu0 %v3874_v55 }
 0x39d   : > { %9847 = vmatmul.mubr.f32.gmra.mrb[6].mxu0 %v3875_v37 }
 0x39e   : > { %9849 = vmatprep.mubr.f32.mxu0 %v3876_v26 }
 0x3a1   : > { %9850 = vmatmul.mubr.f32.gmra.mrb[8].mxu0 %v3877_v23 }
 0x3a2   : > { %9852 = vmatprep.mubr.f32.mxu0 %v3878_v20 }
 0x3a5   : > { %9853 = vmatmul.mubr.f32.gmra.mrb[10].mxu0 %v3879_v40 }
 0x3a6   : > { %9855 = vmatprep.mubr.f32.mxu0 %v3880_v36 }
 0x3a9   : > { %9856 = vmatmul.mubr.f32.gmra.mrb[12].mxu0 %v3881_v2 }
 0x3aa   : > { %9858 = vmatprep.mubr.f32.mxu0 %v3882_v63 }
 0x3ad   : > { %9859 = vmatmul.mubr.f32.gmra.mrb[14].mxu0 %v3883_v51 }
 0x3ae   : > { %9861 = vmatprep.mubr.f32.mxu0 %v3884_v1 }
 0x3b1   : > { %9862 = vmatmul.mubr.f32.gmra.mrb[16].mxu0 %v3885_v27 }
 0x3b2   : > { %9864 = vmatprep.mubr.f32.mxu0 %v3886_v45 }
 0x3b5   : > { %9865 = vmatmul.mubr.f32.gmra.mrb[18].mxu0 %v3887_v4 }
 0x3b6   : > { %9867 = vmatprep.mubr.f32.mxu0 %v3888_v53 }
 0x3b9   : > { %9868 = vmatmul.mubr.f32.gmra.mrb[20].mxu0 %v3889_v16 }
 0x3ba   : > { %9870 = vmatprep.mubr.f32.mxu0 %v3890_v25 }
 0x3bd   : > { %9871 = vmatmul.mubr.f32.gmra.mrb[22].mxu0 %v3891_v6 }
 0x3be   : > { %9873 = vmatprep.mubr.f32.mxu0 %v3892_v43 }
 0x3c1   : > { %9874 = vmatmul.mubr.f32.gmra.mrb[24].mxu0 %v3893_v61 }
 0x3c2   : > { %9876 = vmatprep.mubr.f32.mxu0 %v3894_v57 }
 0x3c5   : > { %9877 = vmatmul.mubr.f32.gmra.mrb[26].mxu0 %v3895_v19 }
 0x3c6   : > { %9879 = vmatprep.mubr.f32.mxu0 %v13735_v42 }
 0x3c9   : > { %9880 = vmatmul.mubr.f32.gmra.mrb[28].mxu0 %v13739_v54 }
 0x3ca   : > { %9882 = vmatprep.mubr.f32.mxu0 %v3898_v35 }
 0x3cd   : > { %9883 = vmatmul.mubr.f32.gmra.mrb[30].mxu0 %v3899_v38 }
 0x464   : > { %v9839_v0 = vpop.f32.mrb[0].mxu0 }
 0x465   : > { %v13778_v9 = vadd.f32 %v9839_v0, %v13775_v60  ;;  %v3983_v21 = vpop.f32.mrb[1].mxu0 }
 0x466   : > { %v13781_v11 = vadd.f32 %v13775_v60, %v3983_v21 }
 0x467   : > { %v4252_v42 = vmul.f32 %v13778_v9, %v13778_v9 }
 0x468   : > { %v4251_v54 = vmul.f32 %v13781_v11, %v13781_v11  ;;  %v9842_v17 = vpop.f32.mrb[2].mxu0  ;;  %v4213_v41 = vadd.f32 %v13778_v9, %v13781_v11 }
 0x469   : > { %v3993_v22 = vpop.f32.mrb[3].mxu0  ;;  %v13790_v50 = vadd.f32 %v9842_v17, %v13775_v60 }
 0x46a   : > { %v13793_v18 = vadd.f32 %v13775_v60, %v3993_v22  ;;  %v4283_v31 = vadd.f32 %v4252_v42, %v4251_v54 }
 0x46b   : > { %v4254_v34 = vmul.f32 %v13790_v50, %v13790_v50 }
 0x46c   : > { %v4214_v12 = vadd.f32 %v4213_v41, %v13793_v18  ;;  %v4253_v39 = vmul.f32 %v13793_v18, %v13793_v18  ;;  %v9845_v13 = vpop.f32.mrb[4].mxu0 }
 0x46d   : > { %v13799_v62 = vadd.f32 %v9845_v13, %v13775_v60  ;;  %v4003_v47 = vpop.f32.mrb[5].mxu0 }
 0x46e   : > { %v4284_v29 = vadd.f32 %v4283_v31, %v4253_v39  ;;  %v13804_v28 = vadd.f32 %v13775_v60, %v4003_v47  ;;  %v4215_v30 = vadd.f32 %v4214_v12, %v13790_v50 }
 0x46f   : > { %v4256_v44 = vmul.f32 %v13799_v62, %v13799_v62 }
 0x470   : > { %v4216_v46 = vadd.f32 %v4215_v30, %v13804_v28  ;;  %v4255_v59 = vmul.f32 %v13804_v28, %v13804_v28  ;;  %v4285_v8 = vadd.f32 %v4284_v29, %v4254_v34  ;;  %v9848_v3 = vpop.f32.mrb[6].mxu0 }
 0x471   : > { %v4013_v15 = vpop.f32.mrb[7].mxu0  ;;  %v13813_v5 = vadd.f32 %v9848_v3, %v13775_v60 }
 0x472   : > { %v4286_v32 = vadd.f32 %v4285_v8, %v4255_v59  ;;  %v13816_v33 = vadd.f32 %v13775_v60, %v4013_v15  ;;  %v4217_v24 = vadd.f32 %v4216_v46, %v13799_v62 }
 0x473   : > { %v4258_v14 = vmul.f32 %v13813_v5, %v13813_v5 }
 0x474   : > { %v4218_v7 = vadd.f32 %v4217_v24, %v13816_v33  ;;  %v4257_v56 = vmul.f32 %v13816_v33, %v13816_v33  ;;  %v4287_v52 = vadd.f32 %v4286_v32, %v4256_v44  ;;  %v9851_v10 = vpop.f32.mrb[8].mxu0 }
 0x475   : > { %v13823_v48 = vadd.f32 %v9851_v10, %v13775_v60  ;;  %v4023_v49 = vpop.f32.mrb[9].mxu0 }
 0x476   : > { %v4288_v58 = vadd.f32 %v4287_v52, %v4257_v56  ;;  %v13828_v55 = vadd.f32 %v13775_v60, %v4023_v49  ;;  %v4219_v37 = vadd.f32 %v4218_v7, %v13813_v5 }
 0x477   : > { %v4260_v36 = vmul.f32 %v13823_v48, %v13823_v48 }
 0x478   : > { %v4220_v26 = vadd.f32 %v4219_v37, %v13828_v55  ;;  %v4259_v23 = vmul.f32 %v13828_v55, %v13828_v55  ;;  %v4289_v20 = vadd.f32 %v4288_v58, %v4258_v14  ;;  %v9854_v40 = vpop.f32.mrb[10].mxu0 }
 0x479   : > { %v4033_v2 = vpop.f32.mrb[11].mxu0  ;;  %v13837_v51 = vadd.f32 %v9854_v40, %v13775_v60 }
 0x47a   : > { %v4290_v63 = vadd.f32 %v4289_v20, %v4259_v23  ;;  %v13840_v1 = vadd.f32 %v13775_v60, %v4033_v2  ;;  %v4221_v27 = vadd.f32 %v4220_v26, %v13823_v48 }
 0x47b   : > { %v4262_v43 = vmul.f32 %v13837_v51, %v13837_v51 }
 0x47c   : > { %v4222_v45 = vadd.f32 %v4221_v27, %v13840_v1  ;;  %v4261_v4 = vmul.f32 %v13840_v1, %v13840_v1  ;;  %v4291_v53 = vadd.f32 %v4290_v63, %v4260_v36  ;;  %v9857_v16 = vpop.f32.mrb[12].mxu0 }
 0x47d   : > { %v13847_v25 = vadd.f32 %v9857_v16, %v13775_v60  ;;  %v4043_v6 = vpop.f32.mrb[13].mxu0 }
 0x47e   : > { %v4292_v61 = vadd.f32 %v4291_v53, %v4261_v4  ;;  %v13852_v57 = vadd.f32 %v13775_v60, %v4043_v6  ;;  %v4223_v19 = vadd.f32 %v4222_v45, %v13837_v51 }
 0x47f   : > { %v4264_v42 = vmul.f32 %v13847_v25, %v13847_v25 }
 0x480   : > { %v4224_v35 = vadd.f32 %v4223_v19, %v13852_v57  ;;  %v4263_v38 = vmul.f32 %v13852_v57, %v13852_v57  ;;  %v4293_v0 = vadd.f32 %v4292_v61, %v4262_v43  ;;  %v9860_v21 = vpop.f32.mrb[14].mxu0 }
 0x481   : > { %v4053_v54 = vpop.f32.mrb[15].mxu0  ;;  %v13861_v22 = vadd.f32 %v9860_v21, %v13775_v60 }
 0x482   : > { %v4294_v17 = vadd.f32 %v4293_v0, %v4263_v38  ;;  %v13864_v41 = vadd.f32 %v13775_v60, %v4053_v54  ;;  %v4225_v31 = vadd.f32 %v4224_v35, %v13847_v25 }
 0x483   : > { %v4266_v30 = vmul.f32 %v13861_v22, %v13861_v22 }
 0x484   : > { %v4226_v12 = vadd.f32 %v4225_v31, %v13864_v41  ;;  %v4265_v39 = vmul.f32 %v13864_v41, %v13864_v41  ;;  %v4295_v13 = vadd.f32 %v4294_v17, %v4264_v42  ;;  %v9863_v47 = vpop.f32.mrb[16].mxu0 }
 0x485   : > { %v13871_v34 = vadd.f32 %v9863_v47, %v13775_v60  ;;  %v4063_v29 = vpop.f32.mrb[17].mxu0 }
 0x486   : > { %v4296_v46 = vadd.f32 %v4295_v13, %v4265_v39  ;;  %v13876_v59 = vadd.f32 %v13775_v60, %v4063_v29  ;;  %v4227_v8 = vadd.f32 %v4226_v12, %v13861_v22 }
 0x487   : > { %v4268_v24 = vmul.f32 %v13871_v34, %v13871_v34 }
 0x488   : > { %v4228_v3 = vadd.f32 %v4227_v8, %v13876_v59  ;;  %v4267_v44 = vmul.f32 %v13876_v59, %v13876_v59  ;;  %v4297_v15 = vadd.f32 %v4296_v46, %v4266_v30  ;;  %v9866_v32 = vpop.f32.mrb[18].mxu0 }
 0x489   : > { %v4073_v7 = vpop.f32.mrb[19].mxu0  ;;  %v13885_v52 = vadd.f32 %v9866_v32, %v13775_v60 }
 0x48a   : > { %v4298_v56 = vadd.f32 %v4297_v15, %v4267_v44  ;;  %v13888_v10 = vadd.f32 %v13775_v60, %v4073_v7  ;;  %v4229_v49 = vadd.f32 %v4228_v3, %v13871_v34 }
 0x48b   : > { %v4270_v40 = vmul.f32 %v13885_v52, %v13885_v52 }
 0x48c   : > { %v4230_v14 = vadd.f32 %v4229_v49, %v13888_v10  ;;  %v4269_v58 = vmul.f32 %v13888_v10, %v13888_v10  ;;  %v4299_v37 = vadd.f32 %v4298_v56, %v4268_v24  ;;  %v9869_v26 = vpop.f32.mrb[20].mxu0 }
 0x48d   : > { %v13895_v23 = vadd.f32 %v9869_v26, %v13775_v60  ;;  %v4083_v20 = vpop.f32.mrb[21].mxu0 }
 0x48e   : > { %v4300_v36 = vadd.f32 %v4299_v37, %v4269_v58  ;;  %v13900_v2 = vadd.f32 %v13775_v60, %v4083_v20  ;;  %v4231_v63 = vadd.f32 %v4230_v14, %v13885_v52 }
 0x48f   : > { %v4272_v16 = vmul.f32 %v13895_v23, %v13895_v23 }
 0x490   : > { %v4232_v27 = vadd.f32 %v4231_v63, %v13900_v2  ;;  %v4271_v45 = vmul.f32 %v13900_v2, %v13900_v2  ;;  %v4301_v4 = vadd.f32 %v4300_v36, %v4270_v40  ;;  %v9872_v53 = vpop.f32.mrb[22].mxu0 }
 0x491   : > { %v4093_v6 = vpop.f32.mrb[23].mxu0  ;;  %v13909_v61 = vadd.f32 %v9872_v53, %v13775_v60 }
 0x492   : > { %v4302_v43 = vadd.f32 %v4301_v4, %v4271_v45  ;;  %v13912_v19 = vadd.f32 %v13775_v60, %v4093_v6  ;;  %v4233_v35 = vadd.f32 %v4232_v27, %v13895_v23 }
 0x493   : > { %v4274_v31 = vmul.f32 %v13909_v61, %v13909_v61 }
 0x494   : > { %v4234_v38 = vadd.f32 %v4233_v35, %v13912_v19  ;;  %v4273_v0 = vmul.f32 %v13912_v19, %v13912_v19  ;;  %v4303_v21 = vadd.f32 %v4302_v43, %v4272_v16  ;;  %v9875_v42 = vpop.f32.mrb[24].mxu0 }
 0x495   : > { %v13919_v54 = vadd.f32 %v9875_v42, %v13775_v60  ;;  %v4103_v17 = vpop.f32.mrb[25].mxu0 }
 0x496   : > { %v4304_v12 = vadd.f32 %v4303_v21, %v4273_v0  ;;  %v13924_v39 = vadd.f32 %v13775_v60, %v4103_v17  ;;  %v4235_v13 = vadd.f32 %v4234_v38, %v13909_v61 }
 0x497   : > { %v4276_v8 = vmul.f32 %v13919_v54, %v13919_v54 }
 0x498   : > { %v4236_v47 = vadd.f32 %v4235_v13, %v13924_v39  ;;  %v4275_v29 = vmul.f32 %v13924_v39, %v13924_v39  ;;  %v4305_v30 = vadd.f32 %v4304_v12, %v4274_v31  ;;  %v9878_v46 = vpop.f32.mrb[26].mxu0 }
 0x499   : > { %v4113_v3 = vpop.f32.mrb[27].mxu0  ;;  %v13933_v15 = vadd.f32 %v9878_v46, %v13775_v60 }
 0x49a   : > { %v4306_v44 = vadd.f32 %v4305_v30, %v4275_v29  ;;  %v13936_v32 = vadd.f32 %v13775_v60, %v4113_v3  ;;  %v4237_v24 = vadd.f32 %v4236_v47, %v13919_v54 }
 0x49b   : > { %v4278_v26 = vmul.f32 %v13933_v15, %v13933_v15 }
 0x49c   : > { %v4238_v7 = vadd.f32 %v4237_v24, %v13936_v32  ;;  %v4277_v56 = vmul.f32 %v13936_v32, %v13936_v32  ;;  %v4307_v49 = vadd.f32 %v4306_v44, %v4276_v8  ;;  %v9881_v14 = vpop.f32.mrb[28].mxu0 }
 0x49d   : > { %v13943_v58 = vadd.f32 %v9881_v14, %v13775_v60  ;;  %v4123_v37 = vpop.f32.mrb[29].mxu0 }
 0x49e   : > { %v4308_v20 = vadd.f32 %v4307_v49, %v4277_v56  ;;  %v13948_v40 = vadd.f32 %v13775_v60, %v4123_v37  ;;  %v4239_v36 = vadd.f32 %v4238_v7, %v13933_v15 }
 0x49f   : > { %v4280_v53 = vmul.f32 %v13943_v58, %v13943_v58 }
 0x4a0   : > { %v4240_v63 = vadd.f32 %v4239_v36, %v13948_v40  ;;  %v4279_v27 = vmul.f32 %v13948_v40, %v13948_v40  ;;  %v4309_v45 = vadd.f32 %v4308_v20, %v4278_v26  ;;  %v9884_v4 = vpop.f32.mrb[30].mxu0 }
 0x4a1   : > { %v4133_v16 = vpop.f32.mrb[31].mxu0  ;;  %v13957_v43 = vadd.f32 %v9884_v4, %v13775_v60 }
 0x4a2   : > { %v4310_v6 = vadd.f32 %v4309_v45, %v4279_v27  ;;  %v4211_v35 = vadd.f32 %v13775_v60, %v4133_v16  ;;  %v4241_v38 = vadd.f32 %v4240_v63, %v13943_v58 }
 0x4a3   : > { %v4282_v17 = vmul.f32 %v13957_v43, %v13957_v43 }
 0x4a4   : > { %v4242_v0 = vadd.f32 %v4241_v38, %v4211_v35  ;;  %v4281_v21 = vmul.f32 %v4211_v35, %v4211_v35  ;;  %v4311_v42 = vadd.f32 %v4310_v6, %v4280_v53 }
 0x4a6   : > { %v4243_v31 = vadd.f32 %v4242_v0, %v13957_v43  ;;  %v4312_v12 = vadd.f32 %v4311_v42, %v4281_v21 }
 0x4a8   : > { %v4244_v13 = vrot.slane %v4243_v31, 4  ;;  %v4313_v47 = vadd.f32 %v4312_v12, %v4282_v17 }
 0x4aa   : > { %v4245_v29 = vadd.f32 %v4244_v13, %v4243_v31  ;;  %v4314_v30 = vrot.slane %v4313_v47, 4 }
 0x4ac   : > { %v4246_v46 = vrot.slane %v4245_v29, 2  ;;  %v4315_v8 = vadd.f32 %v4314_v30, %v4313_v47 }
 0x4ae   : > { %v4247_v3 = vadd.f32 %v4246_v46, %v4245_v29  ;;  %v4316_v44 = vrot.slane %v4315_v8, 2 }
 0x4b0   : > { %v4248_v60 = vrot.slane %v4247_v3, 1  ;;  %v4317_v24 = vadd.f32 %v4316_v44, %v4315_v8 }
 0x4b2   : > { %v4249_v7 = vadd.f32 %v4248_v60, %v4247_v3  ;;  %v4318_v56 = vrot.slane %v4317_v24, 1 }
 0x4b4   : > { %v13964_v49 = vmul.f32 0.00390625, %v4249_v7  ;;  %v4319_v14 = vadd.f32 %v4318_v56, %v4317_v24 }
 0x4b6   : > { %v4320_v37 = vmul.f32 0.00390625, %v4319_v14  ;;  %v4321_v26 = vmul.f32 %v13964_v49, %v13964_v49  ;;  %v4353_v20 = vsub.f32 %v4211_v35, %v13964_v49  ;;  %v4333_v63 = vsub.f32 %v13840_v1, %v13964_v49 }
 0x4b7   : > { %v4334_v27 = vsub.f32 %v13837_v51, %v13964_v49  ;;  %v4335_v4 = vsub.f32 %v13852_v57, %v13964_v49  ;;  %v4336_v53 = vsub.f32 %v13847_v25, %v13964_v49  ;;  %v4337_v16 = vsub.f32 %v13864_v41, %v13964_v49 }
 0x4b8   : > { %v4322_v36 = vsub.f32 %v4320_v37, %v4321_v26  ;;  %v4338_v6 = vsub.f32 %v13861_v22, %v13964_v49  ;;  %v4339_v35 = vsub.f32 %v13876_v59, %v13964_v49  ;;  %v4340_v1 = vsub.f32 %v13871_v34, %v13964_v49 }
 0x4b9   : > { %v4341_v51 = vsub.f32 %v13888_v10, %v13964_v49  ;;  %v4342_v57 = vsub.f32 %v13885_v52, %v13964_v49  ;;  %v4343_v25 = vsub.f32 %v13900_v2, %v13964_v49  ;;  %v4344_v41 = vsub.f32 %v13895_v23, %v13964_v49 }
 0x4ba   : > { %v4355_v45 = vadd.f32 1e-05, %v4322_v36  ;;  %v4345_v22 = vsub.f32 %v13912_v19, %v13964_v49  ;;  %v4346_v59 = vsub.f32 %v13909_v61, %v13964_v49  ;;  %v4347_v34 = vsub.f32 %v13924_v39, %v13964_v49 }
 0x4bb   : > { %v4348_v10 = vsub.f32 %v13919_v54, %v13964_v49  ;;  %v4349_v52 = vsub.f32 %v13936_v32, %v13964_v49  ;;  %v4350_v2 = vsub.f32 %v13933_v15, %v13964_v49  ;;  %v4351_v23 = vsub.f32 %v13948_v40, %v13964_v49 }
 0x4bc   : > { %11895 = vrsqrt.f32 %v4355_v45  ;;  %v4352_v19 = vsub.f32 %v13943_v58, %v13964_v49  ;;  %v4354_v61 = vsub.f32 %v13957_v43, %v13964_v49  ;;  %v4323_v39 = vsub.f32 %v13781_v11, %v13964_v49 }
 0x4bd   : > { %v4324_v54 = vsub.f32 %v13778_v9, %v13964_v49  ;;  %v4325_v32 = vsub.f32 %v13793_v18, %v13964_v49  ;;  %v4326_v15 = vsub.f32 %v13790_v50, %v13964_v49  ;;  %v4327_v40 = vsub.f32 %v13804_v28, %v13964_v49 }
 0x4be   : > { %v4328_v58 = vsub.f32 %v13799_v62, %v13964_v49  ;;  %v4329_v43 = vsub.f32 %v13816_v33, %v13964_v49  ;;  %v4330_v11 = vsub.f32 %v13813_v5, %v13964_v49  ;;  %v4331_v9 = vsub.f32 %v13828_v55, %v13964_v49 }
 0x4bf   : > { %v4332_v18 = vsub.f32 %v13823_v48, %v13964_v49 }
 0x4c6   : > { %v11896_v38 = vpop.eup %11895 }
 0x4c7   : > { %v14031_v50 = vmul.f32 %v11896_v38, %v4353_v20  ;;  %v14033_v0 = vmul.f32 %v11896_v38, %v4323_v39  ;;  %v14035_v28 = vmul.f32 %v11896_v38, %v4324_v54  ;;  %v14037_v62 = vmul.f32 %v11896_v38, %v4325_v32 }
 0x4c8   : > { %v14039_v21 = vmul.f32 %v11896_v38, %v4326_v15  ;;  %v14041_v33 = vmul.f32 %v11896_v38, %v4327_v40  ;;  %v14043_v42 = vmul.f32 %v11896_v38, %v4328_v58  ;;  %v14045_v5 = vmul.f32 %v11896_v38, %v4329_v43 }
 0x4c9   : > { %16406 = vst [vmem:[#allocation13_spill] sm:$0xff] %v14033_v0  ;;  %16407 = vst [vmem:[#allocation14_spill] sm:$0xff] %v14035_v28  ;;  %v14048_v55 = vmul.f32 0.70710677, %v14031_v50  ;;  %v14050_v48 = vmul.f32 %v11896_v38, %v4330_v11  ;;  %v14052_v17 = vmul.f32 %v11896_v38, %v4331_v9  ;;  %v14054_v31 = vmul.f32 %v11896_v38, %v4332_v18 }
 0x4ca   : > { %16408 = vst [vmem:[#allocation15_spill] sm:$0xff] %v14037_v62  ;;  %16409 = vst [vmem:[#allocation16_spill] sm:$0xff] %v14039_v21  ;;  %v14056_v12 = vmul.f32 %v11896_v38, %v4333_v63  ;;  %v14058_v13 = vmul.f32 %v11896_v38, %v4334_v27  ;;  %v14060_v47 = vmul.f32 %v11896_v38, %v4335_v4 }
 0x4cb   : > { %16410 = vst [vmem:[#allocation17_spill] sm:$0xff] %v14041_v33  ;;  %16411 = vst [vmem:[#allocation18_spill] sm:$0xff] %v14043_v42  ;;  %v4451_v29 = vand.u32 2147483647, %v14048_v55  ;;  %v14063_v30 = vmul.f32 %v11896_v38, %v4336_v53  ;;  %v14065_v46 = vmul.f32 %v11896_v38, %v4337_v16  ;;  %v14067_v8 = vmul.f32 %v11896_v38, %v4338_v6 }
 0x4cc   : > { %16412 = vst [vmem:[#allocation19_spill] sm:$0xff] %v14045_v5  ;;  %16413 = vst [vmem:[#allocation20_spill] sm:$0xff] %v14050_v48  ;;  %v14069_v3 = vmul.f32 %v11896_v38, %v4339_v35  ;;  %v14071_v44 = vmul.f32 %v11896_v38, %v4340_v1  ;;  %v14073_v60 = vmul.f32 %v11896_v38, %v4341_v51  ;;  %v14100_v1 = vmul.f32 0.70710677, %v14033_v0 }
 0x4cd   : > { %16414 = vst [vmem:[#allocation21_spill] sm:$0xff] %v14052_v17  ;;  %16415 = vst [vmem:[#allocation22_spill] sm:$0xff] %v14054_v31  ;;  %v4483_v24 = vmul.f32 0.3275911, %v4451_v29  ;;  %v14075_v7 = vmul.f32 %v11896_v38, %v4342_v57  ;;  %v14077_v56 = vmul.f32 %v11896_v38, %v4343_v25  ;;  %v14079_v49 = vmul.f32 %v11896_v38, %v4344_v41 }
 0x4ce   : > { %16416 = vst [vmem:[#allocation23_spill] sm:$0xff] %v14056_v12  ;;  %16417 = vst [vmem:[#allocation24_spill] sm:$0xff] %v14058_v13  ;;  %v14081_v14 = vmul.f32 %v11896_v38, %v4345_v22  ;;  %v14083_v37 = vmul.f32 %v11896_v38, %v4346_v59  ;;  %v14085_v26 = vmul.f32 %v11896_v38, %v4347_v34  ;;  %v4963_v16 = vsub.f32 0.0, %v4451_v29 }
 0x4cf   : > { %16418 = vst [vmem:[#allocation25_spill] sm:$0xff] %v14060_v47  ;;  %16419 = vst [vmem:[#allocation26_spill] sm:$0xff] %v14063_v30  ;;  %v4515_v20 = vadd.f32 1.0, %v4483_v24  ;;  %v14087_v36 = vmul.f32 %v11896_v38, %v4348_v10  ;;  %v14089_v63 = vmul.f32 %v11896_v38, %v4349_v52  ;;  %v14091_v27 = vmul.f32 %v11896_v38, %v4350_v2 }
 0x4d0   : > { %16420 = vst [vmem:[#allocation27_spill] sm:$0xff] %v14065_v46  ;;  %16421 = vst [vmem:[#allocation28_spill] sm:$0xff] %v14067_v8  ;;  %v14093_v45 = vmul.f32 %v11896_v38, %v4351_v23  ;;  %v14095_v4 = vmul.f32 %v11896_v38, %v4352_v19  ;;  %v14097_v53 = vmul.f32 %v11896_v38, %v4354_v61  ;;  %v14103_v51 = vmul.f32 0.70710677, %v14035_v28 }
 0x4d1   : > { %16422 = vst [vmem:[#allocation29_spill] sm:$0xff] %v14069_v3  ;;  %16423 = vst [vmem:[#allocation30_spill] sm:$0xff] %v14071_v44  ;;  %11897 = vrcp.f32 %v4515_v20  ;;  %v4995_v6 = vmul.f32 %v4963_v16, %v4451_v29  ;;  %v14106_v57 = vmul.f32 0.70710677, %v14037_v62  ;;  %v14109_v25 = vmul.f32 0.70710677, %v14039_v21 }
 0x4d2   : > { %16424 = vst [vmem:[#allocation31_spill] sm:$0xff] %v14073_v60  ;;  %16425 = vst [vmem:[#allocation32_spill] sm:$0xff] %v14075_v7  ;;  %v14112_v41 = vmul.f32 0.70710677, %v14041_v33  ;;  %v14115_v59 = vmul.f32 0.70710677, %v14043_v42 }
 0x4d3   : > { %16426 = vst [vmem:[#allocation33_spill] sm:$0xff] %v14077_v56  ;;  %16427 = vst [vmem:[#allocation34_spill] sm:$0xff] %v14079_v49  ;;  %v5057_v35 = vmul.f32 1.442695, %v4995_v6  ;;  %v14118_v34 = vmul.f32 0.70710677, %v14045_v5 }
 0x4d4   : > { %16428 = vst [vmem:[#allocation35_spill] sm:$0xff] %v14081_v14  ;;  %16429 = vst [vmem:[#allocation36_spill] sm:$0xff] %v14083_v37  ;;  %v14121_v10 = vmul.f32 0.70710677, %v14050_v48  ;;  %v14124_v2 = vmul.f32 0.70710677, %v14052_v17 }
 0x4d5   : > { %16430 = vst [vmem:[#allocation37_spill] sm:$0xff] %v14085_v26  ;;  %16431 = vst [vmem:[#allocation38_spill] sm:$0xff] %v14087_v36  ;;  %v14127_v23 = vmul.f32 0.70710677, %v14054_v31  ;;  %v14130_v19 = vmul.f32 0.70710677, %v14056_v12  ;;  %11899 = vpow2.f32 %v5057_v35 }
 0x4d6   : > { %16432 = vst [vmem:[#allocation39_spill] sm:$0xff] %v14089_v63  ;;  %16433 = vst [vmem:[#allocation40_spill] sm:$0xff] %v14091_v27  ;;  %v14133_v61 = vmul.f32 0.70710677, %v14058_v13  ;;  %v14136_v39 = vmul.f32 0.70710677, %v14060_v47 }
 0x4d7   : > { %16434 = vst [vmem:[#allocation41_spill] sm:$0xff] %v14093_v45  ;;  %16435 = vst [vmem:[#allocation42_spill] sm:$0xff] %v14095_v4  ;;  %v14139_v54 = vmul.f32 0.70710677, %v14063_v30  ;;  %v14142_v15 = vmul.f32 0.70710677, %v14065_v46 }
 0x4d8   : > { %16436 = vst [vmem:[#allocation43_spill] sm:$0xff] %v14097_v53  ;;  %16437 = vst [vmem:[#allocation44_spill] sm:$0xff] %v14100_v1  ;;  %v14145_v40 = vmul.f32 0.70710677, %v14067_v8  ;;  %v14148_v58 = vmul.f32 0.70710677, %v14069_v3 }
 0x4d9   : > { %16438 = vst [vmem:[#allocation45_spill] sm:$0xff] %v14103_v51  ;;  %16439 = vst [vmem:[#allocation46_spill] sm:$0xff] %v14106_v57  ;;  %v14151_v38 = vmul.f32 0.70710677, %v14071_v44  ;;  %v14154_v43 = vmul.f32 0.70710677, %v14073_v60 }
 0x4da   : > { %16440 = vst [vmem:[#allocation47_spill] sm:$0xff] %v14109_v25  ;;  %16441 = vst [vmem:[#allocation48_spill] sm:$0xff] %v14112_v41  ;;  %v14157_v9 = vmul.f32 0.70710677, %v14075_v7  ;;  %v14160_v18 = vmul.f32 0.70710677, %v14077_v56 }
 0x4db   : > { %v11898_v22 = vpop.eup %11897  ;;  %16442 = vst [vmem:[#allocation49_spill] sm:$0xff] %v14115_v59  ;;  %16443 = vst [vmem:[#allocation50_spill] sm:$0xff] %v14118_v34  ;;  %v14163_v29 = vmul.f32 0.70710677, %v14079_v49  ;;  %v14166_v24 = vmul.f32 0.70710677, %v14081_v14 }
 0x4dc   : > { %16444 = vst [vmem:[#allocation51_spill] sm:$0xff] %v14121_v10  ;;  %v4579_v52 = vmul.f32 %v11898_v22, %v4515_v20  ;;  %16445 = vst [vmem:[#allocation52_spill] sm:$0xff] %v14124_v2  ;;  %v14169_v20 = vmul.f32 0.70710677, %v14083_v37  ;;  %v14172_v16 = vmul.f32 0.70710677, %v14085_v26 }
 0x4dd   : > { %16446 = vst [vmem:[#allocation53_spill] sm:$0xff] %v14127_v23  ;;  %16447 = vst [vmem:[#allocation54_spill] sm:$0xff] %v14130_v19  ;;  %v14184_v49 = vmul.f32 0.70710677, %v14093_v45  ;;  %v14187_v14 = vand.u32 2147483647, %v14100_v1 }
 0x4de   : > { %16448 = vst [vmem:[#allocation55_spill] sm:$0xff] %v14133_v61  ;;  %16449 = vst [vmem:[#allocation56_spill] sm:$0xff] %v14136_v39  ;;  %v4611_v32 = vsub.f32 2.0, %v4579_v52  ;;  %v14178_v52 = vmul.f32 0.70710677, %v14089_v63  ;;  %vm5155_vm0 = vcmp.ge.f32.partialorder %v14048_v55, 0.0 }
 0x4df   : > { %16450 = vst [vmem:[#allocation57_spill] sm:$0xff] %v14139_v54  ;;  %16451 = vst [vmem:[#allocation58_spill] sm:$0xff] %v14142_v15  ;;  %v14190_v26 = vmul.f32 0.70710677, %v14095_v4  ;;  %v14193_v56 = vmul.f32 0.70710677, %v14097_v53 }
 0x4e0   : > { %16452 = vst [vmem:[#allocation59_spill] sm:$0xff] %v14145_v40  ;;  %16453 = vst [vmem:[#allocation60_spill] sm:$0xff] %v14148_v58  ;;  %v4643_v11 = vmul.f32 %v11898_v22, %v4611_v32  ;;  %v14175_v22 = vmul.f32 0.70710677, %v14087_v36  ;;  %v14181_v32 = vmul.f32 0.70710677, %v14091_v27 }
 0x4e1   : > { %16454 = vst [vmem:[#allocation61_spill] sm:$0xff] %v14151_v38  ;;  %16455 = vst [vmem:[#allocation62_spill] sm:$0xff] %v14154_v43  ;;  %v14196_v36 = vand.u32 2147483647, %v14103_v51  ;;  %v14199_v63 = vand.u32 2147483647, %v14106_v57 }
 0x4e2   : > { %16456 = vst [vmem:[#allocation63_spill] sm:$0xff] %v14157_v9  ;;  %16457 = vst [vmem:[#allocation64_spill] sm:$0xff] %v14160_v18  ;;  %v4675_v6 = vmul.f32 1.0614054, %v4643_v11  ;;  %v14202_v27 = vand.u32 2147483647, %v14109_v25 }
 0x4e3   : > { %16458 = vst [vmem:[#allocation65_spill] sm:$0xff] %v14163_v29  ;;  %16459 = vst [vmem:[#allocation66_spill] sm:$0xff] %v14166_v24  ;;  %v14205_v7 = vand.u32 2147483647, %v14112_v41  ;;  %v14211_v4 = vand.u32 2147483647, %v14118_v34 }
 0x4e4   : > { %16460 = vst [vmem:[#allocation67_spill] sm:$0xff] %v14169_v20  ;;  %16461 = vst [vmem:[#allocation68_spill] sm:$0xff] %v14172_v16  ;;  %v4707_v37 = vadd.f32 -1.4531521, %v4675_v6  ;;  %v14208_v6 = vand.u32 2147483647, %v14115_v59 }
 0x4e5   : > { %16462 = vst [vmem:[#allocation69_spill] sm:$0xff] %v14175_v22  ;;  %16463 = vst [vmem:[#allocation70_spill] sm:$0xff] %v14178_v52  ;;  %v14214_v53 = vand.u32 2147483647, %v14121_v10  ;;  %v14217_v60 = vand.u32 2147483647, %v14124_v2 }
 0x4e6   : > { %16464 = vst [vmem:[#allocation71_spill] sm:$0xff] %v14181_v32  ;;  %16465 = vst [vmem:[#allocation72_spill] sm:$0xff] %v14184_v49  ;;  %v4739_v45 = vmul.f32 %v4707_v37, %v4643_v11  ;;  %v14221_v37 = vand.u32 2147483647, %v14127_v23  ;;  %v14224_v8 = vand.u32 2147483647, %v14130_v19 }
 0x4e7   : > { %16466 = vst [vmem:[#allocation73_spill] sm:$0xff] %v14190_v26  ;;  %16467 = vst [vmem:[#allocation74_spill] sm:$0xff] %v14193_v56  ;;  %v14227_v46 = vand.u32 2147483647, %v14133_v61  ;;  %v14230_v30 = vand.u32 2147483647, %v14136_v39 }
 0x4e8   : > { %16468 = vst [vmem:[#allocation75_spill] sm:$0xff] %v14214_v53  ;;  %v4771_v3 = vadd.f32 1.4214138, %v4739_v45  ;;  %16469 = vst [vmem:[#allocation76_spill] sm:$0xff] %v14221_v37  ;;  %v14233_v47 = vand.u32 2147483647, %v14139_v54 }
 0x4e9   : > { %16470 = vst [vmem:[#allocation77_spill] sm:$0xff] %v14224_v8  ;;  %16471 = vst [vmem:[#allocation78_spill] sm:$0xff] %v14227_v46  ;;  %v14236_v44 = vand.u32 2147483647, %v14142_v15  ;;  %v14239_v45 = vand.u32 2147483647, %v14145_v40 }
 0x4ea   : > { %16472 = vst [vmem:[#allocation79_spill] sm:$0xff] %v14230_v30  ;;  %16473 = vst [vmem:[#allocation80_spill] sm:$0xff] %v14233_v47  ;;  %v4803_v13 = vmul.f32 %v4771_v3, %v4643_v11  ;;  %v14242_v12 = vand.u32 2147483647, %v14148_v58  ;;  %v14245_v35 = vand.u32 2147483647, %v14151_v38 }
 0x4eb   : > { %16474 = vst [vmem:[#allocation81_spill] sm:$0xff] %v14236_v44  ;;  %16475 = vst [vmem:[#allocation82_spill] sm:$0xff] %v14239_v45  ;;  %v14248_v31 = vand.u32 2147483647, %v14154_v43  ;;  %v14251_v17 = vand.u32 2147483647, %v14157_v9 }
 0x4ec   : > { %16476 = vst [vmem:[#allocation83_spill] sm:$0xff] %v14242_v12  ;;  %16477 = vst [vmem:[#allocation84_spill] sm:$0xff] %v14245_v35  ;;  %v4835_v48 = vadd.f32 -0.28449672, %v4803_v13  ;;  %v14254_v3 = vand.u32 2147483647, %v14160_v18 }
 0x4ed   : > { %16478 = vst [vmem:[#allocation85_spill] sm:$0xff] %v14248_v31  ;;  %16479 = vst [vmem:[#allocation86_spill] sm:$0xff] %v14251_v17  ;;  %v14257_v5 = vand.u32 2147483647, %v14163_v29  ;;  %v14260_v42 = vand.u32 2147483647, %v14166_v24 }
 0x4ee   : > { %16480 = vst [vmem:[#allocation87_spill] sm:$0xff] %v14254_v3  ;;  %v14263_v33 = vand.u32 2147483647, %v14169_v20  ;;  %v14266_v21 = vand.u32 2147483647, %v14172_v16  ;;  %v4867_v62 = vmul.f32 %v4835_v48, %v4643_v11  ;;  %v5251_v23 = vmul.f32 0.5, %v14031_v50 }
 0x4ef   : > { %16481 = vst [vmem:[#allocation88_spill] sm:$0xff] %v14257_v5  ;;  %16482 = vst [vmem:[#allocation89_spill] sm:$0xff] %v14260_v42  ;;  %v14269_v28 = vand.u32 2147483647, %v14175_v22  ;;  %v14272_v13 = vand.u32 2147483647, %v14178_v52 }
 0x4f0   : > { %16483 = vst [vmem:[#allocation90_spill] sm:$0xff] %v14263_v33  ;;  %16484 = vst [vmem:[#allocation91_spill] sm:$0xff] %v14266_v21  ;;  %v14275_v0 = vand.u32 2147483647, %v14181_v32  ;;  %v14278_v29 = vand.u32 2147483647, %v14184_v49 }
 0x4f1   : > { %16485 = vst [vmem:[#allocation92_spill] sm:$0xff] %v14269_v28  ;;  %16486 = vst [vmem:[#allocation93_spill] sm:$0xff] %v14272_v13  ;;  %v14281_v24 = vand.u32 2147483647, %v14190_v26  ;;  %v14284_v20 = vand.u32 2147483647, %v14193_v56  ;;  %v11900_v56 = vpop.eup %11899 }
 0x4f2   : > { %16487 = vst [vmem:[#allocation94_spill] sm:$0xff] %v14275_v0  ;;  %16488 = vst [vmem:[#allocation95_spill] sm:$0xff] %v14278_v29  ;;  %v4899_v16 = vadd.f32 0.2548296, %v4867_v62  ;;  %v4453_v48 = vmul.f32 0.3275911, %v14187_v14 }
 0x4f3   : > { %16489 = vst [vmem:[#allocation96_spill] sm:$0xff] %v14281_v24  ;;  %16490 = vst [vmem:[#allocation97_spill] sm:$0xff] %v14284_v20  ;;  %v4454_v22 = vmul.f32 0.3275911, %v14196_v36  ;;  %v4455_v52 = vmul.f32 0.3275911, %v14199_v63 }
 0x4f4   : > { %v4456_v18 = vmul.f32 0.3275911, %v14202_v27  ;;  %v4457_v32 = vmul.f32 0.3275911, %v14205_v7  ;;  %v4931_v9 = vmul.f32 %v4899_v16, %v4643_v11  ;;  %v4458_v49 = vmul.f32 0.3275911, %v14208_v6 }
 0x4f5   : > { %v4459_v26 = vmul.f32 0.3275911, %v14211_v4  ;;  %v4460_v43 = vmul.f32 0.3275911, %v14214_v53  ;;  %v4461_v62 = vmul.f32 0.3275911, %v14217_v60 }
 0x4f6   : > { %v4462_v38 = vmul.f32 0.3275911, %v14221_v37  ;;  %v4463_v58 = vmul.f32 0.3275911, %v14224_v8  ;;  %v5091_v40 = vmul.f32 %v11900_v56, %v4931_v9  ;;  %v4464_v15 = vmul.f32 0.3275911, %v14227_v46 }
 0x4f7   : > { %v4465_v54 = vmul.f32 0.3275911, %v14230_v30  ;;  %v4466_v11 = vmul.f32 0.3275911, %v14233_v47  ;;  %v4467_v16 = vmul.f32 0.3275911, %v14236_v44 }
 0x4f8   : > { %v4468_v39 = vmul.f32 0.3275911, %v14239_v45  ;;  %v4469_v61 = vmul.f32 0.3275911, %v14242_v12  ;;  %v5123_v19 = vsub.f32 1.0, %v5091_v40  ;;  %v14314_v57 = vadd.f32 1.0, %v4453_v48 }
 0x4f9   : > { %v4470_v2 = vmul.f32 0.3275911, %v14245_v35  ;;  %v4471_v10 = vmul.f32 0.3275911, %v14248_v31  ;;  %v4472_v56 = vmul.f32 0.3275911, %v14251_v17 }
 0x4fa   : > { %v4473_v9 = vmul.f32 0.3275911, %v14254_v3  ;;  %v4474_v34 = vmul.f32 0.3275911, %v14257_v5  ;;  %v5187_v59 = vsub.f32 0.0, %v5123_v19  ;;  %v16491_v51 = vsub.f32 0.0, %v14187_v14 }
 0x4fb   : > { %v4475_v41 = vmul.f32 0.3275911, %v14260_v42  ;;  %v4476_v25 = vmul.f32 0.3275911, %v14263_v33  ;;  %v4477_v40 = vmul.f32 0.3275911, %v14266_v21  ;;  %11901 = vrcp.f32 %v14314_v57 }
 0x4fc   : > { %v4478_v50 = vmul.f32 0.3275911, %v14269_v28  ;;  %v14319_v1 = vmul.f32 %v16491_v51, %v14187_v14  ;;  %v5219_v3 = vsel %vm5155_vm0, %v5123_v19, %v5187_v59  ;;  %v4479_v5 = vmul.f32 0.3275911, %v14272_v13 }
 0x4fd   : > { %v4480_v55 = vmul.f32 0.3275911, %v14275_v0  ;;  %v14323_v17 = vadd.f32 1.0, %v4454_v22  ;;  %v5283_v42 = vadd.f32 1.0, %v5219_v3  ;;  %v4481_v33 = vmul.f32 0.3275911, %v14278_v29 }
 0x4fe   : > { %16492 = vst [vmem:[#allocation98_spill] sm:$0xff] %v14319_v1  ;;  %v4482_v21 = vmul.f32 0.3275911, %v14281_v24  ;;  %v14327_v28 = vadd.f32 1.0, %v4455_v52  ;;  %v4484_v48 = vmul.f32 0.3275911, %v14284_v20 }
 0x4ff   : > { %v14330_v31 = vadd.f32 1.0, %v4456_v18  ;;  %v14332_v14 = vadd.f32 1.0, %v4457_v32  ;;  %v14334_v51 = vadd.f32 1.0, %v4458_v49  ;;  %v5315_v59 = vmul.f32 %v5283_v42, %v5251_v23 }
 0x500   : > { %v14336_v19 = vadd.f32 1.0, %v4459_v26  ;;  %v14338_v22 = vadd.f32 1.0, %v4460_v43  ;;  %v14341_v3 = vadd.f32 1.0, %v4461_v62  ;;  %v14343_v1 = vadd.f32 1.0, %v4462_v38 }
 0x501   : > { %v14345_v52 = vadd.f32 1.0, %v4463_v58  ;;  %11903 = vrcp.f32 %v14323_v17  ;;  %5347 = vst [vmem:[#allocation2 + $0x181] sm:$0xff] %v5315_v59  ;;  %v14348_v18 = vadd.f32 1.0, %v4464_v15  ;;  %v14350_v49 = vadd.f32 1.0, %v4465_v54 }
 0x502   : > { %v14352_v42 = vadd.f32 1.0, %v4466_v11  ;;  %11905 = vrcp.f32 %v14327_v28  ;;  %v14355_v26 = vadd.f32 1.0, %v4467_v16  ;;  %v14357_v23 = vadd.f32 1.0, %v4468_v39 }
 0x503   : > { %v14359_v43 = vadd.f32 1.0, %v4469_v61  ;;  %11907 = vrcp.f32 %v14330_v31  ;;  %v14362_v58 = vadd.f32 1.0, %v4470_v2  ;;  %v14364_v38 = vadd.f32 1.0, %v4471_v10 }
 0x504   : > { %v14366_v15 = vadd.f32 1.0, %v4472_v56  ;;  %11909 = vrcp.f32 %v14332_v14  ;;  %v14369_v54 = vadd.f32 1.0, %v4473_v9  ;;  %v14371_v32 = vadd.f32 1.0, %v4474_v34 }
 0x505   : > { %v14373_v62 = vadd.f32 1.0, %v4475_v41  ;;  %11911 = vrcp.f32 %v14334_v51  ;;  %v14376_v61 = vadd.f32 1.0, %v4476_v25  ;;  %v14378_v39 = vadd.f32 1.0, %v4477_v40 }
 0x506   : > { %v14380_v2 = vadd.f32 1.0, %v4478_v50  ;;  %11913 = vrcp.f32 %v14336_v19  ;;  %v14383_v10 = vadd.f32 1.0, %v4479_v5  ;;  %v14385_v11 = vadd.f32 1.0, %v4480_v55 }
 0x507   : > { %v14387_v16 = vadd.f32 1.0, %v4481_v33  ;;  %11915 = vrcp.f32 %v14338_v22  ;;  %v14390_v41 = vadd.f32 1.0, %v4482_v21  ;;  %v14392_v34 = vadd.f32 1.0, %v4484_v48  ;;  %v14400_v33 = vpop.eup %11901 }
 0x508   : > { %11917 = vrcp.f32 %v14341_v3  ;;  %v4934_v25 = vsub.f32 0.0, %v14196_v36  ;;  %v4935_v56 = vsub.f32 0.0, %v14199_v63  ;;  %v4549_v48 = vmul.f32 %v14400_v33, %v14314_v57 }
 0x509   : > { %11919 = vrcp.f32 %v14343_v1 }
 0x50a   : > { %11921 = vrcp.f32 %v14345_v52  ;;  %v4581_v12 = vsub.f32 2.0, %v4549_v48  ;;  %v14468_v50 = vmul.f32 %v4934_v25, %v14196_v36  ;;  %v14476_v59 = vmul.f32 %v4935_v56, %v14199_v63 }
 0x50b   : > { %v14406_v55 = vpop.eup %11903  ;;  %11923 = vrcp.f32 %v14348_v18  ;;  %v16503_v36 = vsub.f32 0.0, %v14202_v27 }
 0x50c   : > { %v14412_v5 = vpop.eup %11905  ;;  %11925 = vrcp.f32 %v14350_v49  ;;  %v4550_v40 = vmul.f32 %v14406_v55, %v14323_v17  ;;  %16501 = vst [vmem:[#allocation99_spill] sm:$0xff] %v14468_v50  ;;  %16502 = vst [vmem:[#allocation100_spill] sm:$0xff] %v14476_v59  ;;  %v16505_v17 = vsub.f32 0.0, %v14205_v7  ;;  %v14497_v56 = vmul.f32 %v14400_v33, %v4581_v12 }
 0x50d   : > { %v14418_v53 = vpop.eup %11907  ;;  %11927 = vrcp.f32 %v14352_v42  ;;  %v4551_v57 = vmul.f32 %v14412_v5, %v14327_v28  ;;  %v14486_v25 = vmul.f32 %v16503_v36, %v14202_v27 }
 0x50e   : > { %v14424_v8 = vpop.eup %11909  ;;  %11929 = vrcp.f32 %v14355_v26  ;;  %v4552_v28 = vmul.f32 %v14418_v53, %v14330_v31  ;;  %v4582_v45 = vsub.f32 2.0, %v4550_v40 }
 0x50f   : > { %v14430_v47 = vpop.eup %11911  ;;  %11931 = vrcp.f32 %v14357_v23  ;;  %v4553_v31 = vmul.f32 %v14424_v8, %v14332_v14  ;;  %v4583_v48 = vsub.f32 2.0, %v4551_v57  ;;  %16504 = vst [vmem:[#allocation101_spill] sm:$0xff] %v14486_v25  ;;  %v14491_v14 = vmul.f32 %v16505_v17, %v14205_v7 }
 0x510   : > { %v14437_v44 = vpop.eup %11913  ;;  %11933 = vrcp.f32 %v14359_v43  ;;  %v4554_v40 = vmul.f32 %v14430_v47, %v14334_v51  ;;  %v4584_v63 = vsub.f32 2.0, %v4552_v28  ;;  %v16507_v51 = vsub.f32 0.0, %v14208_v6 }
 0x511   : > { %v14444_v35 = vpop.eup %11915  ;;  %11935 = vrcp.f32 %v14362_v58  ;;  %16506 = vst [vmem:[#allocation102_spill] sm:$0xff] %v14491_v14  ;;  %v4555_v7 = vmul.f32 %v14437_v44, %v14336_v19  ;;  %v14512_v28 = vmul.f32 %v14406_v55, %v4582_v45  ;;  %v4585_v33 = vsub.f32 2.0, %v4553_v31 }
 0x512   : > { %v14451_v37 = vpop.eup %11917  ;;  %11937 = vrcp.f32 %v14364_v38  ;;  %v14502_v20 = vmul.f32 %v16507_v51, %v14208_v6  ;;  %v4556_v17 = vmul.f32 %v14444_v35, %v14338_v22  ;;  %v14520_v36 = vmul.f32 %v14412_v5, %v4583_v48 }
 0x513   : > { %v14457_v30 = vpop.eup %11919  ;;  %11939 = vrcp.f32 %v14366_v15  ;;  %v4557_v6 = vmul.f32 %v14451_v37, %v14341_v3  ;;  %v4586_v22 = vsub.f32 2.0, %v4554_v40  ;;  %v14537_v31 = vmul.f32 %v14418_v53, %v4584_v63 }
 0x514   : > { %v14463_v9 = vpop.eup %11921  ;;  %11941 = vrcp.f32 %v14369_v54  ;;  %16508 = vst [vmem:[#allocation103_spill] sm:$0xff] %v14502_v20  ;;  %v4558_v19 = vmul.f32 %v14457_v30, %v14343_v1  ;;  %v4588_v40 = vsub.f32 2.0, %v4556_v17  ;;  %v14559_v20 = vmul.f32 %v14424_v8, %v4585_v33 }
 0x515   : > { %v14470_v46 = vpop.eup %11923  ;;  %11943 = vrcp.f32 %v14371_v32  ;;  %v4559_v45 = vmul.f32 %v14463_v9, %v14345_v52  ;;  %v4587_v52 = vsub.f32 2.0, %v4555_v7  ;;  %v4589_v53 = vsub.f32 2.0, %v4557_v6 }
 0x516   : > { %v14478_v24 = vpop.eup %11925  ;;  %11945 = vrcp.f32 %v14373_v62  ;;  %v4560_v3 = vmul.f32 %v14470_v46, %v14348_v18  ;;  %v14564_v25 = vmul.f32 %v14430_v47, %v4586_v22 }
 0x517   : > { %v14493_v57 = vpop.eup %11927  ;;  %11947 = vrcp.f32 %v14376_v61  ;;  %v4561_v5 = vmul.f32 %v14478_v24, %v14350_v49  ;;  %v4591_v7 = vsub.f32 2.0, %v4559_v45  ;;  %v14574_v59 = vmul.f32 %v14451_v37, %v4589_v53 }
 0x518   : > { %v14504_v27 = vpop.eup %11929  ;;  %11949 = vrcp.f32 %v14378_v39  ;;  %v4562_v1 = vmul.f32 %v14493_v57, %v14352_v42  ;;  %v4590_v42 = vsub.f32 2.0, %v4558_v19  ;;  %v4592_v21 = vsub.f32 2.0, %v4560_v3 }
 0x519   : > { %v14514_v12 = vpop.eup %11931  ;;  %11951 = vrcp.f32 %v14380_v2  ;;  %v4563_v18 = vmul.f32 %v14504_v27, %v14355_v26  ;;  %v4593_v26 = vsub.f32 2.0, %v4561_v5  ;;  %v14571_v5 = vmul.f32 %v14444_v35, %v4588_v40  ;;  %16509 = vst [vmem:[#allocation104_spill] sm:$0xff] %v14574_v59 }
 0x51a   : > { %v14522_v51 = vpop.eup %11933  ;;  %11953 = vrcp.f32 %v14383_v10  ;;  %v4564_v49 = vmul.f32 %v14514_v12, %v14357_v23  ;;  %v4594_v14 = vsub.f32 2.0, %v4562_v1  ;;  %v14580_v47 = vmul.f32 %v14463_v9, %v4591_v7 }
 0x51b   : > { %v14529_v55 = vpop.eup %11935  ;;  %11955 = vrcp.f32 %v14385_v11  ;;  %v4565_v0 = vmul.f32 %v14522_v51, %v14359_v43  ;;  %v14567_v43 = vmul.f32 %v14437_v44, %v4587_v52  ;;  %v14585_v1 = vmul.f32 %v14470_v46, %v4592_v21 }
 0x51c   : > { %v14539_v48 = vpop.eup %11937  ;;  %11957 = vrcp.f32 %v14387_v16  ;;  %v4566_v13 = vmul.f32 %v14529_v55, %v14362_v58  ;;  %v4595_v58 = vsub.f32 2.0, %v4563_v18  ;;  %v4596_v3 = vsub.f32 2.0, %v4564_v49  ;;  %16511 = vst [vmem:[#allocation106_spill] sm:$0xff] %v14580_v47 }
 0x51d   : > { %v11940_v29 = vpop.eup %11939  ;;  %11959 = vrcp.f32 %v14390_v41  ;;  %v4567_v6 = vmul.f32 %v14539_v48, %v14364_v38  ;;  %v4597_v33 = vsub.f32 2.0, %v4565_v0  ;;  %v14577_v38 = vmul.f32 %v14457_v30, %v4590_v42  ;;  %16512 = vst [vmem:[#allocation107_spill] sm:$0xff] %v14585_v1 }
 0x51e   : > { %v14549_v63 = vpop.eup %11941  ;;  %11961 = vrcp.f32 %v14392_v34  ;;  %v4568_v45 = vmul.f32 %v11940_v29, %v14366_v15  ;;  %v4598_v22 = vsub.f32 2.0, %v4566_v13  ;;  %v14588_v35 = vmul.f32 %v14478_v24, %v4593_v26 }
 0x51f   : > { %v14554_v17 = vpop.eup %11943  ;;  %16510 = vst [vmem:[#allocation105_spill] sm:$0xff] %v14577_v38  ;;  %v4569_v15 = vmul.f32 %v14549_v63, %v14369_v54  ;;  %v4599_v52 = vsub.f32 2.0, %v4567_v6  ;;  %v14594_v9 = vmul.f32 %v14493_v57, %v4594_v14  ;;  %v14598_v46 = vmul.f32 %v14504_v27, %v4595_v58 }
 0x520   : > { %v11946_v23 = vpop.eup %11945  ;;  %16513 = vst [vmem:[#allocation108_spill] sm:$0xff] %v14588_v35  ;;  %v4570_v37 = vmul.f32 %v14554_v17, %v14371_v32  ;;  %v4600_v13 = vsub.f32 2.0, %v4568_v45  ;;  %v14601_v24 = vmul.f32 %v14514_v12, %v4596_v3  ;;  %v4645_v14 = vmul.f32 1.0614054, %v14497_v56 }
 0x521   : > { %v11948_v19 = vpop.eup %11947  ;;  %v4571_v30 = vmul.f32 %v11946_v23, %v14373_v62  ;;  %16514 = vst [vmem:[#allocation109_spill] sm:$0xff] %v14594_v9  ;;  %16515 = vst [vmem:[#allocation110_spill] sm:$0xff] %v14598_v46  ;;  %v14606_v62 = vmul.f32 %v14522_v51, %v4597_v33  ;;  %v4601_v49 = vsub.f32 2.0, %v4569_v15  ;;  %v14611_v27 = vmul.f32 %v14529_v55, %v4598_v22 }
 0x522   : > { %v11950_v8 = vpop.eup %11949  ;;  %v4572_v54 = vmul.f32 %v11948_v19, %v14376_v61  ;;  %16516 = vst [vmem:[#allocation111_spill] sm:$0xff] %v14601_v24  ;;  %v4646_v12 = vmul.f32 1.0614054, %v14512_v28  ;;  %v14619_v6 = vmul.f32 %v11940_v29, %v4600_v13  ;;  %v4648_v3 = vmul.f32 1.0614054, %v14537_v31 }
 0x523   : > { %v11952_v44 = vpop.eup %11951  ;;  %v4573_v18 = vmul.f32 %v11950_v8, %v14378_v39  ;;  %16517 = vst [vmem:[#allocation112_spill] sm:$0xff] %v14606_v62  ;;  %16518 = vst [vmem:[#allocation113_spill] sm:$0xff] %v14611_v27  ;;  %v4602_v39 = vsub.f32 2.0, %v4570_v37  ;;  %v4603_v7 = vsub.f32 2.0, %v4571_v30  ;;  %v14626_v15 = vmul.f32 %v14549_v63, %v4601_v49 }
 0x524   : > { %v11954_v0 = vpop.eup %11953  ;;  %v4574_v32 = vmul.f32 %v11952_v44, %v14380_v2  ;;  %v14616_v2 = vmul.f32 %v14539_v48, %v4599_v52  ;;  %v4604_v26 = vsub.f32 2.0, %v4572_v54  ;;  %16520 = vst [vmem:[#allocation115_spill] sm:$0xff] %v14619_v6  ;;  %v4649_v48 = vmul.f32 1.0614054, %v14559_v20 }
 0x525   : > { %v11956_v40 = vpop.eup %11955  ;;  %v4575_v61 = vmul.f32 %v11954_v0, %v14383_v10  ;;  %v4647_v10 = vmul.f32 1.0614054, %v14520_v36  ;;  %v4605_v45 = vsub.f32 2.0, %v4573_v18  ;;  %16521 = vst [vmem:[#allocation116_spill] sm:$0xff] %v14626_v15  ;;  %v14630_v29 = vmul.f32 %v14554_v17, %v4602_v39 }
 0x526   : > { %v11958_v21 = vpop.eup %11957  ;;  %v4576_v42 = vmul.f32 %v11956_v40, %v14385_v11  ;;  %16519 = vst [vmem:[#allocation114_spill] sm:$0xff] %v14616_v2  ;;  %v4606_v58 = vsub.f32 2.0, %v4574_v32  ;;  %v14632_v22 = vmul.f32 %v11946_v23, %v4603_v7  ;;  %v14635_v30 = vmul.f32 %v11948_v19, %v4604_v26 }
 0x527   : > { %v11960_v57 = vpop.eup %11959  ;;  %v4577_v51 = vmul.f32 %v11958_v21, %v14387_v16  ;;  %v4607_v33 = vsub.f32 2.0, %v4575_v61  ;;  %16522 = vst [vmem:[#allocation117_spill] sm:$0xff] %v14630_v29  ;;  %v4651_v52 = vmul.f32 1.0614054, %v14567_v43  ;;  %v14639_v63 = vmul.f32 %v11950_v8, %v4605_v45 }
 0x528   : > { %v11962_v53 = vpop.eup %11961  ;;  %v4578_v55 = vmul.f32 %v11960_v57, %v14390_v41  ;;  %v4608_v16 = vsub.f32 2.0, %v4576_v42  ;;  %16523 = vst [vmem:[#allocation118_spill] sm:$0xff] %v14632_v22  ;;  %v4650_v41 = vmul.f32 1.0614054, %v14564_v25  ;;  %16524 = vst [vmem:[#allocation119_spill] sm:$0xff] %v14635_v30  ;;  %v14641_v13 = vmul.f32 %v11952_v44, %v4606_v58 }
 0x529   : > { %v4580_v11 = vmul.f32 %v11962_v53, %v14392_v34  ;;  %v4609_v37 = vsub.f32 2.0, %v4577_v51  ;;  %v4652_v34 = vmul.f32 1.0614054, %v14571_v5  ;;  %16525 = vst [vmem:[#allocation120_spill] sm:$0xff] %v14639_v63  ;;  %v4653_v18 = vmul.f32 1.0614054, %v14574_v59 }
 0x52a   : > { %v4610_v54 = vsub.f32 2.0, %v4578_v55  ;;  %16526 = vst [vmem:[#allocation121_spill] sm:$0xff] %v14641_v13  ;;  %v14644_v32 = vmul.f32 %v11954_v0, %v4607_v33  ;;  %v4654_v23 = vmul.f32 1.0614054, %v14577_v38  ;;  %v4655_v61 = vmul.f32 1.0614054, %v14580_v47 }
 0x52b   : > { %v4612_v17 = vsub.f32 2.0, %v4580_v11  ;;  %v14648_v19 = vmul.f32 %v11956_v40, %v4608_v16  ;;  %v4656_v49 = vmul.f32 1.0614054, %v14585_v1  ;;  %v4657_v42 = vmul.f32 1.0614054, %v14588_v35 }
 0x52c   : > { %16527 = vst [vmem:[#allocation122_spill] sm:$0xff] %v14644_v32  ;;  %v4658_v8 = vmul.f32 1.0614054, %v14594_v9  ;;  %v14653_v39 = vmul.f32 %v11958_v21, %v4609_v37  ;;  %v4659_v44 = vmul.f32 1.0614054, %v14598_v46  ;;  %v14658_v51 = vmul.f32 %v11960_v57, %v4610_v54 }
 0x52d   : > { %16528 = vst [vmem:[#allocation123_spill] sm:$0xff] %v14648_v19  ;;  %v4660_v7 = vmul.f32 1.0614054, %v14601_v24  ;;  %v4661_v0 = vmul.f32 1.0614054, %v14606_v62  ;;  %v14663_v45 = vmul.f32 %v11962_v53, %v4612_v17  ;;  %v16532_v37 = vsub.f32 0.0, %v14211_v4 }
 0x52e   : > { %16529 = vst [vmem:[#allocation124_spill] sm:$0xff] %v14653_v39  ;;  %16530 = vst [vmem:[#allocation125_spill] sm:$0xff] %v14658_v51  ;;  %v4662_v26 = vmul.f32 1.0614054, %v14611_v27  ;;  %v4663_v40 = vmul.f32 1.0614054, %v14616_v2 }
 0x52f   : > { %v4664_v55 = vmul.f32 1.0614054, %v14619_v6  ;;  %16531 = vst [vmem:[#allocation126_spill] sm:$0xff] %v14663_v45  ;;  %v4665_v58 = vmul.f32 1.0614054, %v14626_v15  ;;  %v14674_v54 = vmul.f32 %v16532_v37, %v14211_v4  ;;  %v16534_v15 = vld [vmem:[#allocation75_spill] sm:$0xff] }
 0x530   : > { %v4666_v21 = vmul.f32 1.0614054, %v14630_v29  ;;  %v4667_v11 = vmul.f32 1.0614054, %v14632_v22  ;;  %v4668_v33 = vmul.f32 1.0614054, %v14635_v30 }
 0x531   : > { %v4669_v16 = vmul.f32 1.0614054, %v14639_v63  ;;  %v4670_v57 = vmul.f32 1.0614054, %v14641_v13  ;;  %16533 = vst [vmem:[#allocation127_spill] sm:$0xff] %v14674_v54  ;;  %v16535_v29 = vsub.f32 0.0, %v16534_v15 }
 0x532   : > { %v4671_v53 = vmul.f32 1.0614054, %v14644_v32  ;;  %v4672_v17 = vmul.f32 1.0614054, %v14648_v19  ;;  %v4677_v50 = vadd.f32 -1.4531521, %v4645_v14 }
 0x533   : > { %v14681_v22 = vmul.f32 %v16535_v29, %v16534_v15  ;;  %v4673_v30 = vmul.f32 1.0614054, %v14653_v39  ;;  %v4674_v63 = vmul.f32 1.0614054, %v14658_v51  ;;  %v4678_v13 = vadd.f32 -1.4531521, %v4646_v12 }
 0x534   : > { %v16537_v6 = vsub.f32 0.0, %v14217_v60  ;;  %v4676_v37 = vmul.f32 1.0614054, %v14663_v45  ;;  %v4679_v54 = vadd.f32 -1.4531521, %v4647_v10  ;;  %v16539_v19 = vld [vmem:[#allocation76_spill] sm:$0xff]  ;;  %v4709_v27 = vmul.f32 %v4677_v50, %v14497_v56 }
 0x535   : > { %16536 = vst [vmem:[#allocation75_spill] sm:$0xff] %v14681_v22  ;;  %v16540_v14 = vsub.f32 0.0, %v16539_v19  ;;  %v16542_v15 = vld [vmem:[#allocation77_spill] sm:$0xff]  ;;  %v4680_v51 = vadd.f32 -1.4531521, %v4648_v3  ;;  %v16545_v2 = vld [vmem:[#allocation78_spill] sm:$0xff]  ;;  %v4710_v62 = vmul.f32 %v4678_v13, %v14512_v28 }
 0x536   : > { %v14688_v4 = vmul.f32 %v16537_v6, %v14217_v60  ;;  %v16543_v29 = vsub.f32 0.0, %v16542_v15  ;;  %v4681_v12 = vadd.f32 -1.4531521, %v4649_v48  ;;  %v4682_v39 = vadd.f32 -1.4531521, %v4650_v41 }
 0x537   : > { %v14694_v32 = vmul.f32 %v16540_v14, %v16539_v19  ;;  %v16546_v60 = vsub.f32 0.0, %v16545_v2  ;;  %v4684_v10 = vadd.f32 -1.4531521, %v4652_v34  ;;  %v4685_v45 = vadd.f32 -1.4531521, %v4653_v18 }
 0x538   : > { %16538 = vst [vmem:[#allocation128_spill] sm:$0xff] %v14688_v4  ;;  %v14699_v22 = vmul.f32 %v16543_v29, %v16542_v15  ;;  %v4683_v4 = vadd.f32 -1.4531521, %v4651_v52  ;;  %v4686_v19 = vadd.f32 -1.4531521, %v4654_v23  ;;  %v4711_v48 = vmul.f32 %v4679_v54, %v14520_v36 }
 0x539   : > { %16541 = vst [vmem:[#allocation76_spill] sm:$0xff] %v14694_v32  ;;  %v14704_v6 = vmul.f32 %v16546_v60, %v16545_v2  ;;  %v4687_v14 = vadd.f32 -1.4531521, %v4655_v61  ;;  %v4688_v32 = vadd.f32 -1.4531521, %v4656_v49  ;;  %v4712_v2 = vmul.f32 %v4680_v51, %v14537_v31 }
 0x53a   : > { %16544 = vst [vmem:[#allocation77_spill] sm:$0xff] %v14699_v22  ;;  %v4689_v15 = vadd.f32 -1.4531521, %v4657_v42  ;;  %v4690_v29 = vadd.f32 -1.4531521, %v4658_v8  ;;  %v4713_v50 = vmul.f32 %v4681_v12, %v14559_v20  ;;  %v4714_v13 = vmul.f32 %v4682_v39, %v14564_v25  ;;  %v16552_v12 = vld [vmem:[#allocation115_spill] sm:$0xff] }
 0x53b   : > { %16547 = vst [vmem:[#allocation78_spill] sm:$0xff] %v14704_v6  ;;  %v4691_v3 = vadd.f32 -1.4531521, %v4659_v44  ;;  %v4692_v41 = vadd.f32 -1.4531521, %v4660_v7  ;;  %v4715_v54 = vmul.f32 %v4683_v4, %v14567_v43  ;;  %v4716_v51 = vmul.f32 %v4684_v10, %v14571_v5  ;;  %v16553_v10 = vld [vmem:[#allocation116_spill] sm:$0xff] }
 0x53c   : > { %v4693_v22 = vadd.f32 -1.4531521, %v4661_v0  ;;  %v4694_v24 = vadd.f32 -1.4531521, %v4662_v26  ;;  %v4695_v52 = vadd.f32 -1.4531521, %v4663_v40  ;;  %v4721_v39 = vmul.f32 %v4689_v15, %v14588_v35 }
 0x53d   : > { %v4696_v34 = vadd.f32 -1.4531521, %v4664_v55  ;;  %v4697_v18 = vadd.f32 -1.4531521, %v4665_v58  ;;  %v4698_v23 = vadd.f32 -1.4531521, %v4666_v21  ;;  %v4717_v55 = vmul.f32 %v4685_v45, %v14574_v59 }
 0x53e   : > { %v4699_v61 = vadd.f32 -1.4531521, %v4667_v11  ;;  %v4700_v49 = vadd.f32 -1.4531521, %v4668_v33  ;;  %v4701_v42 = vadd.f32 -1.4531521, %v4669_v16  ;;  %v4718_v58 = vmul.f32 %v4686_v19, %v14577_v38 }
 0x53f   : > { %v4702_v8 = vadd.f32 -1.4531521, %v4670_v57  ;;  %v4703_v44 = vadd.f32 -1.4531521, %v4671_v53  ;;  %v4704_v7 = vadd.f32 -1.4531521, %v4672_v17  ;;  %v4719_v21 = vmul.f32 %v4687_v14, %v14580_v47 }
 0x540   : > { %v4705_v0 = vadd.f32 -1.4531521, %v4673_v30  ;;  %v4706_v26 = vadd.f32 -1.4531521, %v4674_v63  ;;  %v4708_v40 = vadd.f32 -1.4531521, %v4676_v37  ;;  %v4720_v11 = vmul.f32 %v4688_v32, %v14585_v1 }
 0x541   : > { %v4722_v33 = vmul.f32 %v4690_v29, %v14594_v9  ;;  %v4723_v16 = vmul.f32 %v4691_v3, %v14598_v46  ;;  %v16548_v57 = vld [vmem:[#allocation111_spill] sm:$0xff]  ;;  %v16549_v63 = vld [vmem:[#allocation112_spill] sm:$0xff]  ;;  %v16550_v17 = vld [vmem:[#allocation113_spill] sm:$0xff]  ;;  %v4728_v60 = vmul.f32 %v4696_v34, %v16552_v12  ;;  %v4729_v19 = vmul.f32 %v4697_v18, %v16553_v10 }
 0x542   : > { %v4724_v30 = vmul.f32 %v4692_v41, %v16548_v57  ;;  %v4725_v53 = vmul.f32 %v4693_v22, %v16549_v63  ;;  %v4726_v4 = vmul.f32 %v4694_v24, %v16550_v17  ;;  %v16551_v37 = vld [vmem:[#allocation114_spill] sm:$0xff]  ;;  %v16554_v14 = vld [vmem:[#allocation117_spill] sm:$0xff]  ;;  %v16556_v35 = vld [vmem:[#allocation119_spill] sm:$0xff]  ;;  %v4741_v57 = vadd.f32 1.4214138, %v4709_v27 }
 0x543   : > { %v4727_v45 = vmul.f32 %v4695_v52, %v16551_v37  ;;  %v4730_v32 = vmul.f32 %v4698_v23, %v16554_v14  ;;  %v16555_v6 = vld [vmem:[#allocation118_spill] sm:$0xff]  ;;  %v4732_v29 = vmul.f32 %v4700_v49, %v16556_v35  ;;  %v16557_v9 = vld [vmem:[#allocation120_spill] sm:$0xff]  ;;  %v16558_v46 = vld [vmem:[#allocation121_spill] sm:$0xff]  ;;  %v4742_v34 = vadd.f32 1.4214138, %v4710_v62 }
 0x544   : > { %v4731_v15 = vmul.f32 %v4699_v61, %v16555_v6  ;;  %v4733_v3 = vmul.f32 %v4701_v42, %v16557_v9  ;;  %v4734_v41 = vmul.f32 %v4702_v8, %v16558_v46  ;;  %v16559_v22 = vld [vmem:[#allocation122_spill] sm:$0xff]  ;;  %v16560_v24 = vld [vmem:[#allocation123_spill] sm:$0xff]  ;;  %v16561_v52 = vld [vmem:[#allocation124_spill] sm:$0xff]  ;;  %v4743_v14 = vadd.f32 1.4214138, %v4711_v48 }
 0x545   : > { %v4735_v63 = vmul.f32 %v4703_v44, %v16559_v22  ;;  %v4736_v17 = vmul.f32 %v4704_v7, %v16560_v24  ;;  %v4737_v37 = vmul.f32 %v4705_v0, %v16561_v52  ;;  %v16562_v12 = vld [vmem:[#allocation125_spill] sm:$0xff]  ;;  %v16563_v10 = vld [vmem:[#allocation126_spill] sm:$0xff]  ;;  %v4744_v61 = vadd.f32 1.4214138, %v4712_v2  ;;  %v16564_v42 = vld [vmem:[#allocation79_spill] sm:$0xff] }
 0x546   : > { %v4738_v18 = vmul.f32 %v4706_v26, %v16562_v12  ;;  %v4740_v23 = vmul.f32 %v4708_v40, %v16563_v10  ;;  %v4745_v6 = vadd.f32 1.4214138, %v4713_v50  ;;  %v4746_v49 = vadd.f32 1.4214138, %v4714_v13 }
 0x547   : > { %v4747_v35 = vadd.f32 1.4214138, %v4715_v54  ;;  %v16565_v8 = vsub.f32 0.0, %v16564_v42  ;;  %v4748_v44 = vadd.f32 1.4214138, %v4716_v51  ;;  %v4773_v0 = vmul.f32 %v4741_v57, %v14497_v56 }
 0x548   : > { %v4749_v22 = vadd.f32 1.4214138, %v4717_v55  ;;  %v4750_v7 = vadd.f32 1.4214138, %v4718_v58  ;;  %v4751_v62 = vadd.f32 1.4214138, %v4719_v21  ;;  %v4774_v40 = vmul.f32 %v4742_v34, %v14512_v28 }
 0x549   : > { %v14740_v27 = vmul.f32 %v16565_v8, %v16564_v42  ;;  %v4752_v52 = vadd.f32 1.4214138, %v4720_v11  ;;  %v4753_v26 = vadd.f32 1.4214138, %v4721_v39  ;;  %v4754_v48 = vadd.f32 1.4214138, %v4722_v33 }
 0x54a   : > { %v4755_v2 = vadd.f32 1.4214138, %v4723_v16  ;;  %v4756_v50 = vadd.f32 1.4214138, %v4724_v30  ;;  %v4775_v13 = vmul.f32 %v4743_v14, %v14520_v36  ;;  %v4757_v54 = vadd.f32 1.4214138, %v4725_v53 }
 0x54b   : > { %16566 = vst [vmem:[#allocation79_spill] sm:$0xff] %v14740_v27  ;;  %v4758_v10 = vadd.f32 1.4214138, %v4726_v4  ;;  %v4759_v12 = vadd.f32 1.4214138, %v4727_v45  ;;  %v4776_v42 = vmul.f32 %v4744_v61, %v14537_v31  ;;  %v4777_v57 = vmul.f32 %v4745_v6, %v14559_v20  ;;  %v16574_v27 = vld [vmem:[#allocation115_spill] sm:$0xff] }
 0x54c   : > { %v4760_v51 = vadd.f32 1.4214138, %v4728_v60  ;;  %v4761_v55 = vadd.f32 1.4214138, %v4729_v19  ;;  %v4762_v58 = vadd.f32 1.4214138, %v4730_v32  ;;  %v4778_v34 = vmul.f32 %v4746_v49, %v14564_v25 }
 0x54d   : > { %v4763_v21 = vadd.f32 1.4214138, %v4731_v15  ;;  %v4764_v11 = vadd.f32 1.4214138, %v4732_v29  ;;  %v4765_v39 = vadd.f32 1.4214138, %v4733_v3  ;;  %v4779_v14 = vmul.f32 %v4747_v35, %v14567_v43 }
 0x54e   : > { %v4766_v33 = vadd.f32 1.4214138, %v4734_v41  ;;  %v4767_v16 = vadd.f32 1.4214138, %v4735_v63  ;;  %v4768_v30 = vadd.f32 1.4214138, %v4736_v17  ;;  %v4780_v61 = vmul.f32 %v4748_v44, %v14571_v5 }
 0x54f   : > { %v4769_v53 = vadd.f32 1.4214138, %v4737_v37  ;;  %v4770_v4 = vadd.f32 1.4214138, %v4738_v18  ;;  %v4772_v45 = vadd.f32 1.4214138, %v4740_v23  ;;  %v4781_v60 = vmul.f32 %v4749_v22, %v14574_v59 }
 0x550   : > { %v4782_v19 = vmul.f32 %v4750_v7, %v14577_v38  ;;  %v4783_v6 = vmul.f32 %v4751_v62, %v14580_v47  ;;  %v4784_v32 = vmul.f32 %v4752_v52, %v14585_v1  ;;  %v16567_v15 = vld [vmem:[#allocation108_spill] sm:$0xff]  ;;  %v16568_v3 = vld [vmem:[#allocation109_spill] sm:$0xff]  ;;  %v16569_v17 = vld [vmem:[#allocation110_spill] sm:$0xff]  ;;  %v4792_v7 = vmul.f32 %v4760_v51, %v16574_v27 }
 0x551   : > { %v4785_v29 = vmul.f32 %v4753_v26, %v16567_v15  ;;  %v4786_v63 = vmul.f32 %v4754_v48, %v16568_v3  ;;  %v4787_v41 = vmul.f32 %v4755_v2, %v16569_v17  ;;  %v16570_v35 = vld [vmem:[#allocation111_spill] sm:$0xff]  ;;  %v16571_v18 = vld [vmem:[#allocation112_spill] sm:$0xff]  ;;  %v16572_v49 = vld [vmem:[#allocation113_spill] sm:$0xff]  ;;  %v4797_v2 = vmul.f32 %v4765_v39, %v16557_v9 }
 0x552   : > { %v4788_v37 = vmul.f32 %v4756_v50, %v16570_v35  ;;  %v4789_v23 = vmul.f32 %v4757_v54, %v16571_v18  ;;  %v4790_v8 = vmul.f32 %v4758_v10, %v16572_v49  ;;  %v16573_v44 = vld [vmem:[#allocation114_spill] sm:$0xff]  ;;  %v16575_v38 = vld [vmem:[#allocation116_spill] sm:$0xff]  ;;  %v16576_v47 = vld [vmem:[#allocation117_spill] sm:$0xff]  ;;  %v4798_v50 = vmul.f32 %v4766_v33, %v16558_v46 }
 0x553   : > { %v4791_v22 = vmul.f32 %v4759_v12, %v16573_v44  ;;  %v4793_v62 = vmul.f32 %v4761_v55, %v16575_v38  ;;  %v4794_v52 = vmul.f32 %v4762_v58, %v16576_v47  ;;  %v16577_v1 = vld [vmem:[#allocation118_spill] sm:$0xff]  ;;  %v16578_v15 = vld [vmem:[#allocation119_spill] sm:$0xff]  ;;  %v4800_v10 = vmul.f32 %v4768_v30, %v16560_v24  ;;  %v16580_v49 = vld [vmem:[#allocation124_spill] sm:$0xff] }
 0x554   : > { %v4795_v26 = vmul.f32 %v4763_v21, %v16577_v1  ;;  %v4796_v48 = vmul.f32 %v4764_v11, %v16578_v15  ;;  %v16579_v35 = vld [vmem:[#allocation122_spill] sm:$0xff]  ;;  %v4801_v12 = vmul.f32 %v4769_v53, %v16580_v49  ;;  %v16581_v44 = vld [vmem:[#allocation125_spill] sm:$0xff]  ;;  %v4805_v27 = vadd.f32 -0.28449672, %v4773_v0  ;;  %v16583_v9 = vld [vmem:[#allocation80_spill] sm:$0xff] }
 0x555   : > { %v4799_v54 = vmul.f32 %v4767_v16, %v16579_v35  ;;  %v4802_v51 = vmul.f32 %v4770_v4, %v16581_v44  ;;  %v4806_v55 = vadd.f32 -0.28449672, %v4774_v40  ;;  %v16582_v38 = vld [vmem:[#allocation126_spill] sm:$0xff]  ;;  %v4807_v47 = vadd.f32 -0.28449672, %v4775_v13  ;;  %v16586_v49 = vld [vmem:[#allocation81_spill] sm:$0xff] }
 0x556   : > { %v4804_v58 = vmul.f32 %v4772_v45, %v16582_v38  ;;  %v4808_v21 = vadd.f32 -0.28449672, %v4776_v42  ;;  %v4809_v1 = vadd.f32 -0.28449672, %v4777_v57  ;;  %v4810_v11 = vadd.f32 -0.28449672, %v4778_v34 }
 0x557   : > { %v4811_v15 = vadd.f32 -0.28449672, %v4779_v14  ;;  %v4812_v39 = vadd.f32 -0.28449672, %v4780_v61  ;;  %v16584_v33 = vsub.f32 0.0, %v16583_v9  ;;  %v16587_v0 = vsub.f32 0.0, %v16586_v49 }
 0x558   : > { %v4813_v30 = vadd.f32 -0.28449672, %v4781_v60  ;;  %v4814_v24 = vadd.f32 -0.28449672, %v4782_v19  ;;  %v4815_v53 = vadd.f32 -0.28449672, %v4783_v6  ;;  %v4837_v57 = vmul.f32 %v4805_v27, %v14497_v56 }
 0x559   : > { %v14776_v16 = vmul.f32 %v16584_v33, %v16583_v9  ;;  %v14781_v40 = vmul.f32 %v16587_v0, %v16586_v49  ;;  %v4816_v4 = vadd.f32 -0.28449672, %v4784_v32  ;;  %v4817_v13 = vadd.f32 -0.28449672, %v4785_v29  ;;  %v5397_v61 = vld [vmem:[#allocation2 + $0x1] sm:$0xff] }
 0x55a   : > { %v4818_v42 = vadd.f32 -0.28449672, %v4786_v63  ;;  %v4819_v34 = vadd.f32 -0.28449672, %v4787_v41  ;;  %v4820_v14 = vadd.f32 -0.28449672, %v4788_v37  ;;  %v4838_v45 = vmul.f32 %v4806_v55, %v14512_v28  ;;  %9917 = vmatprep.mubr.f32.mxu1 %v5397_v61 }
 0x55b   : > { %16585 = vst [vmem:[#allocation110_spill] sm:$0xff] %v14776_v16  ;;  %16588 = vst [vmem:[#allocation122_spill] sm:$0xff] %v14781_v40  ;;  %v4839_v9 = vmul.f32 %v4807_v47, %v14520_v36  ;;  %v4821_v60 = vadd.f32 -0.28449672, %v4789_v23  ;;  %v4822_v19 = vadd.f32 -0.28449672, %v4790_v8  ;;  %v4840_v33 = vmul.f32 %v4808_v21, %v14537_v31 }
 0x55c   : > { %v4823_v6 = vadd.f32 -0.28449672, %v4791_v22  ;;  %v4824_v49 = vadd.f32 -0.28449672, %v4792_v7  ;;  %v4825_v0 = vadd.f32 -0.28449672, %v4793_v62  ;;  %v4841_v29 = vmul.f32 %v4809_v1, %v14559_v20 }
 0x55d   : > { %v4826_v32 = vadd.f32 -0.28449672, %v4794_v52  ;;  %v4827_v63 = vadd.f32 -0.28449672, %v4795_v26  ;;  %v4828_v27 = vadd.f32 -0.28449672, %v4796_v48  ;;  %v4842_v37 = vmul.f32 %v4810_v11, %v14564_v25 }
 0x55e   : > { %v4829_v41 = vadd.f32 -0.28449672, %v4797_v2  ;;  %v4830_v55 = vadd.f32 -0.28449672, %v4798_v50  ;;  %v4831_v40 = vadd.f32 -0.28449672, %v4799_v54  ;;  %v4843_v23 = vmul.f32 %v4811_v15, %v14567_v43 }
 0x55f   : > { %v4832_v47 = vadd.f32 -0.28449672, %v4800_v10  ;;  %v4833_v8 = vadd.f32 -0.28449672, %v4801_v12  ;;  %v4834_v22 = vadd.f32 -0.28449672, %v4802_v51  ;;  %v4844_v21 = vmul.f32 %v4812_v39, %v14571_v5 }
 0x560   : > { %v4836_v16 = vadd.f32 -0.28449672, %v4804_v58  ;;  %v4845_v7 = vmul.f32 %v4813_v30, %v14574_v59  ;;  %v16589_v62 = vld [vmem:[#allocation105_spill] sm:$0xff]  ;;  %v16590_v1 = vld [vmem:[#allocation106_spill] sm:$0xff]  ;;  %v16591_v48 = vld [vmem:[#allocation107_spill] sm:$0xff]  ;;  %v4850_v50 = vmul.f32 %v4818_v42, %v16568_v3  ;;  %v4851_v54 = vmul.f32 %v4819_v34, %v16569_v17 }
 0x561   : > { %v4846_v52 = vmul.f32 %v4814_v24, %v16589_v62  ;;  %v4847_v26 = vmul.f32 %v4815_v53, %v16590_v1  ;;  %v4848_v2 = vmul.f32 %v4816_v4, %v16591_v48  ;;  %v16592_v61 = vld [vmem:[#allocation108_spill] sm:$0xff]  ;;  %v16593_v15 = vld [vmem:[#allocation111_spill] sm:$0xff]  ;;  %v4853_v12 = vmul.f32 %v4821_v60, %v16571_v18  ;;  %v16594_v51 = vld [vmem:[#allocation113_spill] sm:$0xff] }
 0x562   : > { %v4849_v11 = vmul.f32 %v4817_v13, %v16592_v61  ;;  %v4852_v10 = vmul.f32 %v4820_v14, %v16593_v15  ;;  %v4854_v58 = vmul.f32 %v4822_v19, %v16594_v51  ;;  %v16595_v39 = vld [vmem:[#allocation114_spill] sm:$0xff]  ;;  %v16596_v59 = vld [vmem:[#allocation115_spill] sm:$0xff]  ;;  %v16597_v62 = vld [vmem:[#allocation116_spill] sm:$0xff]  ;;  %v4862_v14 = vmul.f32 %v4830_v55, %v16558_v46 }
 0x563   : > { %v4855_v30 = vmul.f32 %v4823_v6, %v16595_v39  ;;  %v4856_v24 = vmul.f32 %v4824_v49, %v16596_v59  ;;  %v4857_v53 = vmul.f32 %v4825_v0, %v16597_v62  ;;  %v16598_v1 = vld [vmem:[#allocation117_spill] sm:$0xff]  ;;  %v16599_v48 = vld [vmem:[#allocation118_spill] sm:$0xff]  ;;  %v16600_v61 = vld [vmem:[#allocation119_spill] sm:$0xff]  ;;  %v4863_v60 = vmul.f32 %v4831_v40, %v16579_v35 }
 0x564   : > { %v4858_v4 = vmul.f32 %v4826_v32, %v16598_v1  ;;  %v4859_v13 = vmul.f32 %v4827_v63, %v16599_v48  ;;  %v4860_v42 = vmul.f32 %v4828_v27, %v16600_v61  ;;  %v16601_v3 = vld [vmem:[#allocation120_spill] sm:$0xff]  ;;  %v4869_v18 = vadd.f32 0.2548296, %v4837_v57  ;;  %v16602_v19 = vld [vmem:[#allocation123_spill] sm:$0xff]  ;;  %v16604_v48 = vld [vmem:[#allocation82_spill] sm:$0xff] }
 0x565   : > { %v4861_v34 = vmul.f32 %v4829_v41, %v16601_v3  ;;  %v4864_v51 = vmul.f32 %v4832_v47, %v16602_v19  ;;  %v16603_v6 = vld [vmem:[#allocation124_spill] sm:$0xff]  ;;  %v4866_v49 = vmul.f32 %v4834_v22, %v16581_v44  ;;  %v4870_v0 = vadd.f32 0.2548296, %v4838_v45  ;;  %v16606_v57 = vld [vmem:[#allocation83_spill] sm:$0xff] }
 0x566   : > { %v4865_v39 = vmul.f32 %v4833_v8, %v16603_v6  ;;  %v4868_v32 = vmul.f32 %v4836_v16, %v16582_v38  ;;  %v4871_v1 = vadd.f32 0.2548296, %v4839_v9  ;;  %v4872_v63 = vadd.f32 0.2548296, %v4840_v33 }
 0x567   : > { %v16605_v27 = vsub.f32 0.0, %v16604_v48  ;;  %v4873_v55 = vadd.f32 0.2548296, %v4841_v29  ;;  %v4874_v46 = vadd.f32 0.2548296, %v4842_v37  ;;  %v16607_v47 = vsub.f32 0.0, %v16606_v57 }
 0x568   : > { %v4875_v40 = vadd.f32 0.2548296, %v4843_v23  ;;  %v4876_v8 = vadd.f32 0.2548296, %v4844_v21  ;;  %v4877_v22 = vadd.f32 0.2548296, %v4845_v7  ;;  %v14825_v16 = vmul.f32 %v4869_v18, %v14497_v56 }
 0x569   : > { %v14817_v41 = vmul.f32 %v16605_v27, %v16604_v48  ;;  %v14822_v19 = vmul.f32 %v16607_v47, %v16606_v57  ;;  %v4878_v45 = vadd.f32 0.2548296, %v4846_v52  ;;  %v4879_v9 = vadd.f32 0.2548296, %v4847_v26 }
 0x56a   : > { %v4880_v33 = vadd.f32 0.2548296, %v4848_v2  ;;  %v4881_v38 = vadd.f32 0.2548296, %v4849_v11  ;;  %v14828_v48 = vmul.f32 %v4870_v0, %v14512_v28  ;;  %v4882_v29 = vadd.f32 0.2548296, %v4850_v50 }
 0x56b   : > { %v4883_v37 = vadd.f32 0.2548296, %v4851_v54  ;;  %v4884_v23 = vadd.f32 0.2548296, %v4852_v10  ;;  %v14831_v27 = vmul.f32 %v4871_v1, %v14520_v36  ;;  %v4885_v57 = vadd.f32 0.2548296, %v4853_v12 }
 0x56c   : > { %v4886_v47 = vadd.f32 0.2548296, %v4854_v58  ;;  %v4887_v21 = vadd.f32 0.2548296, %v4855_v30  ;;  %v14834_v7 = vmul.f32 %v4872_v63, %v14537_v31  ;;  %v4888_v56 = vadd.f32 0.2548296, %v4856_v24 }
 0x56d   : > { %v4889_v18 = vadd.f32 0.2548296, %v4857_v53  ;;  %v4890_v52 = vadd.f32 0.2548296, %v4858_v4  ;;  %v14837_v26 = vmul.f32 %v4873_v55, %v14559_v20  ;;  %v4891_v28 = vadd.f32 0.2548296, %v4859_v13 }
 0x56e   : > { %v4892_v2 = vadd.f32 0.2548296, %v4860_v42  ;;  %v4893_v11 = vadd.f32 0.2548296, %v4861_v34  ;;  %v14840_v50 = vmul.f32 %v4874_v46, %v14564_v25  ;;  %v5430_v36 = vld [vmem:[#allocation8 + $0x80] sm:$0xff]  ;;  %v5431_v1 = vld [vmem:[#allocation8 + $0x88] sm:$0xff]  ;;  %v14843_v31 = vmul.f32 %v4875_v40, %v14567_v43 }
 0x56f   : > { %v4894_v54 = vadd.f32 0.2548296, %v4862_v14  ;;  %v4895_v10 = vadd.f32 0.2548296, %v4863_v60  ;;  %v4896_v12 = vadd.f32 0.2548296, %v4864_v51  ;;  %v14846_v20 = vmul.f32 %v4876_v8, %v14571_v5 }
 0x570   : > { %v4897_v58 = vadd.f32 0.2548296, %v4865_v39  ;;  %v4898_v30 = vadd.f32 0.2548296, %v4866_v49  ;;  %v4900_v24 = vadd.f32 0.2548296, %v4868_v32  ;;  %v14869_v63 = vmul.f32 %v4883_v37, %v16569_v17 }
 0x571   : > { %v16608_v53 = vld [vmem:[#allocation104_spill] sm:$0xff]  ;;  %v16609_v13 = vld [vmem:[#allocation105_spill] sm:$0xff]  ;;  %v16610_v46 = vld [vmem:[#allocation106_spill] sm:$0xff] }
 0x572   : > { %v14849_v4 = vmul.f32 %v4877_v22, %v16608_v53  ;;  %v14852_v25 = vmul.f32 %v4878_v45, %v16609_v13  ;;  %v14855_v42 = vmul.f32 %v4879_v9, %v16610_v46  ;;  %v16611_v34 = vld [vmem:[#allocation107_spill] sm:$0xff]  ;;  %v16612_v43 = vld [vmem:[#allocation108_spill] sm:$0xff]  ;;  %v16613_v39 = vld [vmem:[#allocation109_spill] sm:$0xff]  ;;  %v10893_v45 = vpack.c.bf16 %v5431_v1, %v5430_v36 }
 0x573   : > { %v14858_v51 = vmul.f32 %v4880_v33, %v16611_v34  ;;  %v14861_v14 = vmul.f32 %v4881_v38, %v16612_v43  ;;  %v14864_v60 = vmul.f32 %v4882_v29, %v16613_v39  ;;  %v16614_v5 = vld [vmem:[#allocation98_spill] sm:$0xff]  ;;  %v16615_v0 = vld [vmem:[#allocation99_spill] sm:$0xff]  ;;  %v16616_v55 = vld [vmem:[#allocation100_spill] sm:$0xff]  ;;  %v14874_v9 = vmul.f32 %v4884_v23, %v16593_v15 }
 0x574   : > { %v4997_v49 = vmul.f32 1.442695, %v16614_v5  ;;  %v4999_v32 = vmul.f32 1.442695, %v16615_v0  ;;  %v5001_v40 = vmul.f32 1.442695, %v16616_v55  ;;  %10894 = vmatprep.subr.bf16.mxu1 %v10893_v45  ;;  %v14888_v36 = vmul.f32 %v4888_v56, %v16596_v59 }
 0x575   : > { %v16617_v8 = vld [vmem:[#allocation101_spill] sm:$0xff]  ;;  %v16618_v38 = vld [vmem:[#allocation112_spill] sm:$0xff]  ;;  %v16619_v29 = vld [vmem:[#allocation102_spill] sm:$0xff]  ;;  %v14891_v15 = vmul.f32 %v4889_v18, %v16597_v62  ;;  %10896 = vmatpush3.bf16.msra.mxu1 %v10893_v45  ;;  %v14902_v0 = vmul.f32 %v4892_v2, %v16600_v61  ;;  %v14905_v59 = vmul.f32 %v4893_v11, %v16601_v3  ;;  %v14919_v61 = vmul.f32 %v4897_v58, %v16603_v6 }
 0x576   : > { %v5003_v22 = vmul.f32 1.442695, %v16617_v8  ;;  %v14877_v33 = vmul.f32 %v4885_v57, %v16618_v38  ;;  %11963 = vpow2.f32 %v4997_v49  ;;  %v5005_v53 = vmul.f32 1.442695, %v16619_v29  ;;  %v16620_v13 = vld [vmem:[#allocation113_spill] sm:$0xff]  ;;  %v16621_v34 = vld [vmem:[#allocation114_spill] sm:$0xff] }
 0x577   : > { %v14881_v46 = vmul.f32 %v4886_v47, %v16620_v13  ;;  %v14884_v17 = vmul.f32 %v4887_v21, %v16621_v34  ;;  %11965 = vpow2.f32 %v4999_v32  ;;  %v16622_v37 = vld [vmem:[#allocation103_spill] sm:$0xff]  ;;  %v16624_v1 = vld [vmem:[#allocation117_spill] sm:$0xff]  ;;  %v16625_v39 = vld [vmem:[#allocation118_spill] sm:$0xff]  ;;  %16632 = vst [vmem:[#allocation80_spill] sm:$0xff] %v14919_v61  ;;  %v14923_v11 = vmul.f32 %v4898_v30, %v16581_v44 }
 0x578   : > { %v5007_v43 = vmul.f32 1.442695, %v16622_v37  ;;  %11967 = vpow2.f32 %v5001_v40  ;;  %v16623_v23 = vld [vmem:[#allocation127_spill] sm:$0xff]  ;;  %v14895_v47 = vmul.f32 %v4890_v52, %v16624_v1  ;;  %v14898_v21 = vmul.f32 %v4891_v28, %v16625_v39  ;;  %v16627_v62 = vld [vmem:[#allocation128_spill] sm:$0xff]  ;;  %v16628_v18 = vld [vmem:[#allocation121_spill] sm:$0xff] }
 0x579   : > { %v5009_v57 = vmul.f32 1.442695, %v16623_v23  ;;  %11969 = vpow2.f32 %v5003_v22  ;;  %v16626_v5 = vld [vmem:[#allocation75_spill] sm:$0xff]  ;;  %v5013_v56 = vmul.f32 1.442695, %v16627_v62  ;;  %v14909_v32 = vmul.f32 %v4894_v54, %v16628_v18  ;;  %v16629_v28 = vld [vmem:[#allocation76_spill] sm:$0xff] }
 0x57a   : > { %v5011_v49 = vmul.f32 1.442695, %v16626_v5  ;;  %11971 = vpow2.f32 %v5005_v53  ;;  %v14912_v52 = vmul.f32 %v4895_v10, %v16579_v35  ;;  %v5015_v55 = vmul.f32 1.442695, %v16629_v28  ;;  %v16630_v40 = vld [vmem:[#allocation123_spill] sm:$0xff]  ;;  %v16633_v3 = vld [vmem:[#allocation77_spill] sm:$0xff] }
 0x57b   : > { %11973 = vpow2.f32 %v5007_v43  ;;  %v14916_v8 = vmul.f32 %v4896_v12, %v16630_v40  ;;  %v5017_v2 = vmul.f32 1.442695, %v16633_v3  ;;  %16634 = vst [vmem:[#allocation81_spill] sm:$0xff] %v14923_v11  ;;  %v16635_v54 = vld [vmem:[#allocation126_spill] sm:$0xff]  ;;  %v16638_v45 = vld [vmem:[#allocation84_spill] sm:$0xff]  ;;  %v16640_v29 = vld [vmem:[#allocation85_spill] sm:$0xff] }
 0x57c   : > { %11975 = vpow2.f32 %v5009_v57  ;;  %v14926_v22 = vmul.f32 %v4900_v24, %v16635_v54  ;;  %v16637_v35 = vld [vmem:[#allocation78_spill] sm:$0xff]  ;;  %v16639_v38 = vsub.f32 0.0, %v16638_v45  ;;  %v16641_v6 = vsub.f32 0.0, %v16640_v29  ;;  %v16642_v53 = vld [vmem:[#allocation79_spill] sm:$0xff]  ;;  %v16648_v39 = vld [vmem:[#allocation88_spill] sm:$0xff] }
 0x57d   : > { %16631 = vst [vmem:[#allocation125_spill] sm:$0xff] %v14916_v8  ;;  %11977 = vpow2.f32 %v5011_v49  ;;  %v5019_v10 = vmul.f32 1.442695, %v16637_v35  ;;  %v5021_v13 = vmul.f32 1.442695, %v16642_v53  ;;  %v16643_v34 = vld [vmem:[#allocation86_spill] sm:$0xff] }
 0x57e   : > { %16636 = vst [vmem:[#allocation111_spill] sm:$0xff] %v14926_v22  ;;  %v4982_v12 = vmul.f32 %v16639_v38, %v16638_v45  ;;  %v4983_v58 = vmul.f32 %v16641_v6, %v16640_v29  ;;  %11979 = vpow2.f32 %v5013_v56  ;;  %v16644_v44 = vsub.f32 0.0, %v16643_v34  ;;  %v16645_v24 = vld [vmem:[#allocation87_spill] sm:$0xff]  ;;  %v16647_v23 = vld [vmem:[#allocation110_spill] sm:$0xff]  ;;  %v16650_v62 = vld [vmem:[#allocation89_spill] sm:$0xff] }
 0x57f   : > { %v16646_v37 = vsub.f32 0.0, %v16645_v24  ;;  %11981 = vpow2.f32 %v5015_v55  ;;  %v5023_v57 = vmul.f32 1.442695, %v16647_v23  ;;  %v16649_v5 = vsub.f32 0.0, %v16648_v39  ;;  %v16652_v28 = vld [vmem:[#allocation122_spill] sm:$0xff]  ;;  %v16655_v55 = vld [vmem:[#allocation91_spill] sm:$0xff] }
 0x580   : > { %v4984_v30 = vmul.f32 %v16644_v44, %v16643_v34  ;;  %v11964_v1 = vpop.eup %11963  ;;  %v16651_v56 = vsub.f32 0.0, %v16650_v62  ;;  %11983 = vpow2.f32 %v5017_v2  ;;  %v5025_v40 = vmul.f32 1.442695, %v16652_v28  ;;  %v16653_v54 = vld [vmem:[#allocation90_spill] sm:$0xff]  ;;  %v16657_v34 = vld [vmem:[#allocation92_spill] sm:$0xff]  ;;  %v16659_v2 = vld [vmem:[#allocation93_spill] sm:$0xff] }
 0x581   : > { %v4985_v43 = vmul.f32 %v16646_v37, %v16645_v24  ;;  %v4986_v49 = vmul.f32 %v16649_v5, %v16648_v39  ;;  %v11966_v3 = vpop.eup %11965  ;;  %v16654_v35 = vsub.f32 0.0, %v16653_v54  ;;  %v16656_v38 = vsub.f32 0.0, %v16655_v55 }
 0x582   : > { %v4987_v18 = vmul.f32 %v16651_v56, %v16650_v62  ;;  %11985 = vpow2.f32 %v5019_v10  ;;  %v5027_v6 = vmul.f32 1.442695, %v14817_v41  ;;  %v11968_v53 = vpop.eup %11967  ;;  %v16658_v44 = vsub.f32 0.0, %v16657_v34  ;;  %v16661_v62 = vld [vmem:[#allocation94_spill] sm:$0xff]  ;;  %v16663_v10 = vld [vmem:[#allocation95_spill] sm:$0xff] }
 0x583   : > { %v4988_v45 = vmul.f32 %v16654_v35, %v16653_v54  ;;  %v4989_v29 = vmul.f32 %v16656_v38, %v16655_v55  ;;  %v16660_v37 = vsub.f32 0.0, %v16659_v2  ;;  %11987 = vpow2.f32 %v5021_v13  ;;  %v11970_v5 = vpop.eup %11969  ;;  %v16665_v38 = vld [vmem:[#allocation96_spill] sm:$0xff] }
 0x584   : > { %v4990_v24 = vmul.f32 %v16658_v44, %v16657_v34  ;;  %v5029_v39 = vmul.f32 1.442695, %v14822_v19  ;;  %v16662_v56 = vsub.f32 0.0, %v16661_v62  ;;  %v16664_v41 = vsub.f32 0.0, %v16663_v10  ;;  %v11972_v55 = vpop.eup %11971 }
 0x585   : > { %v4991_v23 = vmul.f32 %v16660_v37, %v16659_v2  ;;  %11989 = vpow2.f32 %v5023_v57  ;;  %v5031_v35 = vmul.f32 1.442695, %v4982_v12  ;;  %v16666_v34 = vsub.f32 0.0, %v16665_v38  ;;  %v16667_v2 = vld [vmem:[#allocation97_spill] sm:$0xff]  ;;  %v11974_v22 = vpop.eup %11973 }
 0x586   : > { %v4992_v28 = vmul.f32 %v16662_v56, %v16661_v62  ;;  %v4993_v54 = vmul.f32 %v16664_v41, %v16663_v10  ;;  %v16668_v13 = vsub.f32 0.0, %v16667_v2  ;;  %11991 = vpow2.f32 %v5025_v40  ;;  %v11976_v61 = vpop.eup %11975 }
 0x587   : > { %v4994_v44 = vmul.f32 %v16666_v34, %v16665_v38  ;;  %v5033_v37 = vmul.f32 1.442695, %v4983_v58  ;;  %11993 = vpow2.f32 %v5027_v6  ;;  %v5035_v62 = vmul.f32 1.442695, %v4984_v30  ;;  %v11978_v41 = vpop.eup %11977 }
 0x588   : > { %v4996_v19 = vmul.f32 %v16668_v13, %v16667_v2  ;;  %v5037_v56 = vmul.f32 1.442695, %v4985_v43  ;;  %v5039_v11 = vmul.f32 1.442695, %v4986_v49  ;;  %11995 = vpow2.f32 %v5029_v39  ;;  %v11980_v58 = vpop.eup %11979 }
 0x589   : > { %v5041_v57 = vmul.f32 1.442695, %v4987_v18  ;;  %v5043_v12 = vmul.f32 1.442695, %v4988_v45  ;;  %v5045_v10 = vmul.f32 1.442695, %v4989_v29  ;;  %11997 = vpow2.f32 %v5031_v35  ;;  %v11982_v49 = vpop.eup %11981 }
 0x58a   : > { %v5047_v8 = vmul.f32 1.442695, %v4990_v24  ;;  %v14977_v38 = vmul.f32 %v11964_v1, %v14825_v16  ;;  %v14980_v34 = vmul.f32 %v11966_v3, %v14828_v48  ;;  %11999 = vpow2.f32 %v5033_v37  ;;  %v11984_v16 = vpop.eup %11983 }
 0x58b   : > { %v5049_v40 = vmul.f32 1.442695, %v4991_v23  ;;  %v14983_v30 = vmul.f32 %v11968_v53, %v14831_v27  ;;  %v14986_v43 = vmul.f32 %v11970_v5, %v14834_v7  ;;  %12001 = vpow2.f32 %v5035_v62 }
 0x58c   : > { %v5051_v18 = vmul.f32 1.442695, %v4992_v28  ;;  %v5053_v45 = vmul.f32 1.442695, %v4993_v54  ;;  %v14989_v29 = vmul.f32 %v11972_v55, %v14837_v26  ;;  %12003 = vpow2.f32 %v5037_v56  ;;  %v11986_v6 = vpop.eup %11985 }
 0x58d   : > { %v5055_v48 = vmul.f32 1.442695, %v4994_v44  ;;  %v5059_v1 = vmul.f32 1.442695, %v4996_v19  ;;  %v14992_v3 = vmul.f32 %v11974_v22, %v14840_v50  ;;  %12005 = vpow2.f32 %v5039_v11  ;;  %v11988_v24 = vpop.eup %11987 }
 0x58e   : > { %v14995_v27 = vmul.f32 %v11976_v61, %v14843_v31  ;;  %v16311_v7 = vsub.f32 1.0, %v14977_v38  ;;  %v16310_v53 = vsub.f32 1.0, %v14980_v34  ;;  %12007 = vpow2.f32 %v5041_v57 }
 0x58f   : > { %v15000_v26 = vmul.f32 %v11978_v41, %v14846_v20  ;;  %v16309_v23 = vsub.f32 1.0, %v14983_v30  ;;  %v16308_v39 = vsub.f32 1.0, %v14986_v43  ;;  %v11990_v50 = vpop.eup %11989  ;;  %12009 = vpow2.f32 %v5043_v12 }
 0x590   : > { %v15005_v11 = vmul.f32 %v11980_v58, %v14849_v4  ;;  %v15008_v31 = vmul.f32 %v11982_v49, %v14852_v25  ;;  %v16307_v61 = vsub.f32 1.0, %v14989_v29  ;;  %v11992_v22 = vpop.eup %11991  ;;  %12011 = vpow2.f32 %v5045_v10 }
 0x591   : > { %v15012_v5 = vmul.f32 %v11984_v16, %v14855_v42  ;;  %v15015_v20 = vmul.f32 %v11986_v6, %v14858_v51  ;;  %v16304_v28 = vsub.f32 1.0, %v14992_v3  ;;  %v11994_v54 = vpop.eup %11993  ;;  %12013 = vpow2.f32 %v5047_v8  ;;  %v16694_v6 = vld [vmem:[#allocation53_spill] sm:$0xff] }
 0x592   : > { %v15019_v4 = vmul.f32 %v11988_v24, %v14861_v14  ;;  %v15022_v25 = vmul.f32 %v11990_v50, %v14864_v60  ;;  %v16305_v35 = vsub.f32 1.0, %v14995_v27  ;;  %v11996_v55 = vpop.eup %11995  ;;  %12015 = vpow2.f32 %v5049_v40  ;;  %v16696_v40 = vld [vmem:[#allocation80_spill] sm:$0xff] }
 0x593   : > { %16669 = vst [vmem:[#allocation115_spill] sm:$0xff] %v15012_v5  ;;  %16670 = vst [vmem:[#allocation116_spill] sm:$0xff] %v15015_v20  ;;  %v15026_v42 = vmul.f32 %v11992_v22, %v14869_v63  ;;  %v15029_v51 = vmul.f32 %v11994_v54, %v14874_v9  ;;  %v16306_v44 = vsub.f32 1.0, %v15000_v26  ;;  %v11998_v2 = vpop.eup %11997  ;;  %12017 = vpow2.f32 %v5051_v18  ;;  %v16693_v54 = vld [vmem:[#allocation52_spill] sm:$0xff] }
 0x594   : > { %16671 = vst [vmem:[#allocation119_spill] sm:$0xff] %v15019_v4  ;;  %16672 = vst [vmem:[#allocation120_spill] sm:$0xff] %v15022_v25  ;;  %v15033_v14 = vmul.f32 %v11996_v55, %v14877_v33  ;;  %v16312_v60 = vsub.f32 1.0, %v15005_v11  ;;  %v16313_v8 = vsub.f32 1.0, %v15008_v31  ;;  %v12000_v13 = vpop.eup %11999  ;;  %12019 = vpow2.f32 %v5053_v45 }
 0x595   : > { %16673 = vst [vmem:[#allocation124_spill] sm:$0xff] %v15026_v42  ;;  %16674 = vst [vmem:[#allocation82_spill] sm:$0xff] %v15029_v51  ;;  %v15038_v19 = vmul.f32 %v11998_v2, %v14881_v46  ;;  %v16314_v63 = vsub.f32 1.0, %v15012_v5  ;;  %v16315_v9 = vsub.f32 1.0, %v15015_v20  ;;  %v12002_v37 = vpop.eup %12001  ;;  %12021 = vpow2.f32 %v5055_v48 }
 0x596   : > { %16675 = vst [vmem:[#allocation83_spill] sm:$0xff] %v15033_v14  ;;  %v15043_v62 = vmul.f32 %v12000_v13, %v14884_v17  ;;  %v16317_v33 = vsub.f32 1.0, %v15019_v4  ;;  %v16319_v56 = vsub.f32 1.0, %v15022_v25  ;;  %v12004_v57 = vpop.eup %12003  ;;  %12023 = vpow2.f32 %v5059_v1 }
 0x597   : > { %16676 = vst [vmem:[#allocation104_spill] sm:$0xff] %v15038_v19  ;;  %v15048_v12 = vmul.f32 %v12002_v37, %v14888_v36  ;;  %v12006_v41 = vpop.eup %12005  ;;  %v15053_v58 = vmul.f32 %v12004_v57, %v14891_v15  ;;  %v15064_v16 = vsub.f32 0.0, %v16311_v7  ;;  %v15068_v15 = vsub.f32 0.0, %v16310_v53  ;;  %v16687_v53 = vld [vmem:[#allocation49_spill] sm:$0xff]  ;;  %v16688_v7 = vld [vmem:[#allocation50_spill] sm:$0xff]  ;;  %v16692_v37 = vld [vmem:[#allocation51_spill] sm:$0xff] }
 0x598   : > { %16677 = vst [vmem:[#allocation105_spill] sm:$0xff] %v15043_v62  ;;  %v12008_v18 = vpop.eup %12007  ;;  %v15059_v45 = vmul.f32 %v12006_v41, %v14895_v47  ;;  %v15076_v47 = vsub.f32 0.0, %v16309_v23  ;;  %v15080_v24 = vsub.f32 0.0, %v16308_v39  ;;  %v15092_v55 = vsub.f32 0.0, %v16304_v28  ;;  %v16682_v28 = vld [vmem:[#allocation44_spill] sm:$0xff]  ;;  %v16685_v39 = vld [vmem:[#allocation47_spill] sm:$0xff] }
 0x599   : > { %16678 = vst [vmem:[#allocation106_spill] sm:$0xff] %v15048_v12  ;;  %16679 = vst [vmem:[#allocation107_spill] sm:$0xff] %v15053_v58  ;;  %v12010_v48 = vpop.eup %12009  ;;  %v15071_v1 = vmul.f32 %v12008_v18, %v14898_v21  ;;  %v15088_v21 = vsub.f32 0.0, %v16307_v61  ;;  %v15104_v57 = vsub.f32 0.0, %v16306_v44  ;;  %vm5125_vm1 = vcmp.ge.f32.partialorder %v16682_v28, 0.0  ;;  %v16686_v23 = vld [vmem:[#allocation48_spill] sm:$0xff] }
 0x59a   : > { %16680 = vst [vmem:[#allocation108_spill] sm:$0xff] %v15059_v45  ;;  %v12012_v50 = vpop.eup %12011  ;;  %v15083_v22 = vmul.f32 %v12010_v48, %v14902_v0  ;;  %v15100_v0 = vsub.f32 0.0, %v16305_v35  ;;  %v15115_v35 = vsub.f32 0.0, %v16312_v60  ;;  %v15119_v44 = vsub.f32 0.0, %v16313_v8 }
 0x59b   : > { %16681 = vst [vmem:[#allocation109_spill] sm:$0xff] %v15071_v1  ;;  %v12014_v2 = vpop.eup %12013  ;;  %v15095_v13 = vmul.f32 %v12012_v50, %v14905_v59  ;;  %v16683_v59 = vld [vmem:[#allocation45_spill] sm:$0xff]  ;;  %v16684_v50 = vld [vmem:[#allocation46_spill] sm:$0xff]  ;;  %vm5128_vm4 = vcmp.ge.f32.partialorder %v16685_v39, 0.0  ;;  %vm5129_vm5 = vcmp.ge.f32.partialorder %v16686_v23, 0.0  ;;  %vm5130_vm6 = vcmp.ge.f32.partialorder %v16687_v53, 0.0 }
 0x59c   : > { %v12016_v41 = vpop.eup %12015  ;;  %v15107_v18 = vmul.f32 %v12014_v2, %v14909_v32  ;;  %vm5126_vm2 = vcmp.ge.f32.partialorder %v16683_v59, 0.0  ;;  %vm5127_vm3 = vcmp.ge.f32.partialorder %v16684_v50, 0.0  ;;  %vm5131_vm7 = vcmp.ge.f32.partialorder %v16688_v7, 0.0  ;;  %v16743_v7 = vld [vmem:[#allocation115_spill] sm:$0xff]  ;;  %v16760_v50 = vld [vmem:[#allocation124_spill] sm:$0xff] }
 0x59d   : > { %v12018_v61 = vpop.eup %12017  ;;  %v15122_v32 = vmul.f32 %v12016_v41, %v14912_v52  ;;  %v15131_v60 = vsub.f32 0.0, %v16314_v63  ;;  %v15135_v8 = vsub.f32 0.0, %v16315_v9  ;;  %v16690_v41 = vld [vmem:[#allocation125_spill] sm:$0xff]  ;;  %vm5132_vm8 = vcmp.ge.f32.partialorder %v16692_v37, 0.0 }
 0x59e   : > { %v12020_v52 = vpop.eup %12019  ;;  %v15138_v48 = vmul.f32 %v12018_v61, %v16690_v41  ;;  %vm5133_vm9 = vcmp.ge.f32.partialorder %v16693_v54, 0.0  ;;  %vm5134_vm10 = vcmp.ge.f32.partialorder %v16694_v6, 0.0  ;;  %v5169_v63 = vsub.f32 0.0, %v16317_v33  ;;  %v16713_v41 = vld [vmem:[#allocation65_spill] sm:$0xff]  ;;  %v16752_v54 = vld [vmem:[#allocation119_spill] sm:$0xff] }
 0x59f   : > { %16689 = vst [vmem:[#allocation98_spill] sm:$0xff] %v15135_v8  ;;  %v5170_v9 = vsub.f32 0.0, %v16319_v56  ;;  %v12022_v49 = vpop.eup %12021  ;;  %v15150_v61 = vmul.f32 %v12020_v52, %v16696_v40  ;;  %v16701_v4 = vsub.f32 1.0, %v15026_v42  ;;  %v16702_v25 = vsub.f32 1.0, %v15029_v51  ;;  %v16703_v8 = vld [vmem:[#allocation81_spill] sm:$0xff]  ;;  %v16710_v42 = vld [vmem:[#allocation111_spill] sm:$0xff] }
 0x5a0   : > { %16691 = vst [vmem:[#allocation99_spill] sm:$0xff] %v15138_v48  ;;  %v12024_v20 = vpop.eup %12023  ;;  %v15162_v40 = vmul.f32 %v12022_v49, %v16703_v8  ;;  %v16708_v46 = vsub.f32 1.0, %v15033_v14  ;;  %v16709_v51 = vsub.f32 1.0, %v15038_v19  ;;  %vm5146_vm13 = vcmp.ge.f32.partialorder %v16713_v41, 0.0  ;;  %v16726_v19 = vld [vmem:[#allocation73_spill] sm:$0xff] }
 0x5a1   : > { %v5171_v33 = vsub.f32 0.0, %v16701_v4  ;;  %v5172_v56 = vsub.f32 0.0, %v16702_v25  ;;  %v5092_v36 = vmul.f32 %v12024_v20, %v16710_v42  ;;  %v5121_v8 = vsub.f32 1.0, %v15150_v61  ;;  %v16720_v61 = vld [vmem:[#allocation70_spill] sm:$0xff] }
 0x5a2   : > { %v5173_v4 = vsub.f32 0.0, %v16708_v46  ;;  %v5174_v25 = vsub.f32 0.0, %v16709_v51  ;;  %v16715_v10 = vsub.f32 1.0, %v15043_v62  ;;  %v16716_v46 = vsub.f32 1.0, %v15048_v12  ;;  %v16724_v62 = vld [vmem:[#allocation71_spill] sm:$0xff]  ;;  %v16727_v20 = vld [vmem:[#allocation74_spill] sm:$0xff] }
 0x5a3   : > { %v5122_v51 = vsub.f32 1.0, %v15162_v40  ;;  %vm5151_vm0 = vcmp.ge.f32.partialorder %v16720_v61, 0.0  ;;  %v16721_v41 = vsub.f32 1.0, %v15053_v58  ;;  %v16722_v2 = vsub.f32 1.0, %v15059_v45  ;;  %v16725_v40 = vld [vmem:[#allocation72_spill] sm:$0xff] }
 0x5a4   : > { %v5175_v17 = vsub.f32 0.0, %v16715_v10  ;;  %v5176_v14 = vsub.f32 0.0, %v16716_v46  ;;  %v16723_v10 = vsub.f32 1.0, %v15071_v1  ;;  %v5124_v46 = vsub.f32 1.0, %v5092_v36 }
 0x5a5   : > { %v5177_v52 = vsub.f32 0.0, %v16721_v41  ;;  %v5178_v49 = vsub.f32 0.0, %v16722_v2  ;;  %vm5152_vm14 = vcmp.ge.f32.partialorder %v16724_v62, 0.0  ;;  %vm5153_vm15 = vcmp.ge.f32.partialorder %v16725_v40, 0.0 }
 0x5a6   : > { %v5179_v12 = vsub.f32 0.0, %v16723_v10  ;;  %vm5154_vm11 = vcmp.ge.f32.partialorder %v16726_v19, 0.0  ;;  %vm5156_vm12 = vcmp.ge.f32.partialorder %v16727_v20, 0.0  ;;  %v16728_v61 = vsub.f32 1.0, %v15083_v22 }
 0x5a7   : > { %v16729_v41 = vsub.f32 1.0, %v15095_v13  ;;  %v16730_v2 = vsub.f32 1.0, %v15107_v18  ;;  %v16731_v10 = vsub.f32 1.0, %v15122_v32  ;;  %v16732_v62 = vsub.f32 1.0, %v15138_v48 }
 0x5a8   : > { %v5180_v42 = vsub.f32 0.0, %v16728_v61  ;;  %v5185_v40 = vsub.f32 0.0, %v5121_v8  ;;  %v5186_v5 = vsub.f32 0.0, %v5122_v51  ;;  %v5188_v19 = vsub.f32 0.0, %v5124_v46 }
 0x5a9   : > { %v5181_v58 = vsub.f32 0.0, %v16729_v41  ;;  %v5182_v45 = vsub.f32 0.0, %v16730_v2  ;;  %v5183_v36 = vsub.f32 0.0, %v16731_v10  ;;  %v5184_v1 = vsub.f32 0.0, %v16732_v62 }
 0x5aa   : > { %v16733_v20 = vsub.f32 1.0, %v14977_v38  ;;  %v16734_v41 = vsub.f32 1.0, %v14980_v34  ;;  %v16735_v10 = vsub.f32 1.0, %v14983_v30  ;;  %v16736_v48 = vsub.f32 1.0, %v14986_v43 }
 0x5ab   : > { %v16737_v28 = vsub.f32 1.0, %v14989_v29  ;;  %v16740_v39 = vsub.f32 1.0, %v15000_v26  ;;  %v16741_v23 = vsub.f32 1.0, %v15005_v11  ;;  %v16742_v53 = vsub.f32 1.0, %v15008_v31 }
 0x5ac   : > { %v5189_v61 = vsel %vm5125_vm1, %v16733_v20, %v15064_v16  ;;  %v5190_v2 = vsel %vm5126_vm2, %v16734_v41, %v15068_v15  ;;  %v5191_v62 = vsel %vm5127_vm3, %v16735_v10, %v15076_v47  ;;  %v5192_v38 = vsel %vm5128_vm4, %v16736_v48, %v15080_v24  ;;  %v16745_v24 = vld [vmem:[#allocation54_spill] sm:$0xff]  ;;  %v16756_v48 = vld [vmem:[#allocation120_spill] sm:$0xff] }
 0x5ad   : > { %v5193_v34 = vsel %vm5129_vm5, %v16737_v28, %v15088_v21  ;;  %v16738_v16 = vsub.f32 1.0, %v14992_v3  ;;  %v16739_v15 = vsub.f32 1.0, %v14995_v27  ;;  %v5196_v29 = vsel %vm5132_vm8, %v16740_v39, %v15104_v57  ;;  %v16747_v21 = vld [vmem:[#allocation98_spill] sm:$0xff]  ;;  %v16754_v57 = vld [vmem:[#allocation56_spill] sm:$0xff]  ;;  %v16768_v39 = vld [vmem:[#allocation83_spill] sm:$0xff] }
 0x5ae   : > { %v5197_v3 = vsel %vm5133_vm9, %v16741_v23, %v15115_v35  ;;  %v5198_v27 = vsel %vm5134_vm10, %v16742_v53, %v15119_v44  ;;  %v16744_v47 = vsub.f32 1.0, %v16743_v7  ;;  %vm16746_vm1 = vcmp.ge.f32.partialorder %v16745_v24, 0.0  ;;  %v16758_v44 = vld [vmem:[#allocation57_spill] sm:$0xff]  ;;  %v16762_v41 = vld [vmem:[#allocation58_spill] sm:$0xff]  ;;  %v16770_v53 = vld [vmem:[#allocation60_spill] sm:$0xff] }
 0x5af   : > { %v5194_v30 = vsel %vm5130_vm6, %v16738_v16, %v15092_v55  ;;  %v5195_v43 = vsel %vm5131_vm7, %v16739_v15, %v15100_v0  ;;  %v16748_v55 = vld [vmem:[#allocation116_spill] sm:$0xff]  ;;  %v16750_v0 = vld [vmem:[#allocation55_spill] sm:$0xff]  ;;  %v16753_v35 = vsub.f32 1.0, %v16752_v54  ;;  %vm16755_vm3 = vcmp.ge.f32.partialorder %v16754_v57, 0.0  ;;  %v16764_v10 = vld [vmem:[#allocation82_spill] sm:$0xff] }
 0x5b0   : > { %v5199_v26 = vsel %vm16746_vm1, %v16744_v47, %v15131_v60  ;;  %v16749_v37 = vsub.f32 1.0, %v16748_v55  ;;  %vm16751_vm2 = vcmp.ge.f32.partialorder %v16750_v0, 0.0  ;;  %v16757_v6 = vsub.f32 1.0, %v16756_v48  ;;  %v16766_v16 = vld [vmem:[#allocation59_spill] sm:$0xff]  ;;  %v16772_v7 = vld [vmem:[#allocation104_spill] sm:$0xff]  ;;  %v16774_v24 = vld [vmem:[#allocation61_spill] sm:$0xff] }
 0x5b1   : > { %v5201_v31 = vsel %vm16755_vm3, %v16753_v35, %v5169_v63  ;;  %vm16759_vm4 = vcmp.ge.f32.partialorder %v16758_v44, 0.0  ;;  %v16761_v20 = vsub.f32 1.0, %v16760_v50  ;;  %vm16763_vm5 = vcmp.ge.f32.partialorder %v16762_v41, 0.0  ;;  %v16780_v0 = vld [vmem:[#allocation106_spill] sm:$0xff]  ;;  %v16782_v35 = vld [vmem:[#allocation63_spill] sm:$0xff]  ;;  %v16788_v44 = vld [vmem:[#allocation108_spill] sm:$0xff] }
 0x5b2   : > { %v5200_v11 = vsel %vm16751_vm2, %v16749_v37, %v16747_v21  ;;  %v5202_v59 = vsel %vm16759_vm4, %v16757_v6, %v5170_v9  ;;  %v16765_v28 = vsub.f32 1.0, %v16764_v10  ;;  %vm16767_vm6 = vcmp.ge.f32.partialorder %v16766_v16, 0.0  ;;  %v16776_v21 = vld [vmem:[#allocation105_spill] sm:$0xff]  ;;  %v16778_v37 = vld [vmem:[#allocation62_spill] sm:$0xff]  ;;  %v16784_v57 = vld [vmem:[#allocation107_spill] sm:$0xff] }
 0x5b3   : > { %v5203_v60 = vsel %vm16763_vm5, %v16761_v20, %v5171_v33  ;;  %v16769_v23 = vsub.f32 1.0, %v16768_v39  ;;  %vm16771_vm7 = vcmp.ge.f32.partialorder %v16770_v53, 0.0  ;;  %v16773_v47 = vsub.f32 1.0, %v16772_v7  ;;  %v16786_v6 = vld [vmem:[#allocation64_spill] sm:$0xff]  ;;  %v16791_v41 = vld [vmem:[#allocation109_spill] sm:$0xff]  ;;  %v16796_v39 = vld [vmem:[#allocation67_spill] sm:$0xff] }
 0x5b4   : > { %v5204_v15 = vsel %vm16767_vm6, %v16765_v28, %v5172_v56  ;;  %vm16775_vm8 = vcmp.ge.f32.partialorder %v16774_v24, 0.0  ;;  %v16777_v55 = vsub.f32 1.0, %v16776_v21  ;;  %vm16779_vm9 = vcmp.ge.f32.partialorder %v16778_v37, 0.0  ;;  %v16793_v28 = vld [vmem:[#allocation66_spill] sm:$0xff]  ;;  %v16799_v53 = vld [vmem:[#allocation68_spill] sm:$0xff]  ;;  %v16816_v20 = vld [vmem:[#allocation17_spill] sm:$0xff] }
 0x5b5   : > { %v5205_v63 = vsel %vm16771_vm7, %v16769_v23, %v5173_v4  ;;  %v5206_v9 = vsel %vm16775_vm8, %v16773_v47, %v5174_v25  ;;  %v16781_v54 = vsub.f32 1.0, %v16780_v0  ;;  %vm16783_vm10 = vcmp.ge.f32.partialorder %v16782_v35, 0.0  ;;  %v16802_v47 = vld [vmem:[#allocation69_spill] sm:$0xff]  ;;  %v16825_v21 = vld [vmem:[#allocation26_spill] sm:$0xff]  ;;  %v16829_v0 = vld [vmem:[#allocation28_spill] sm:$0xff] }
 0x5b6   : > { %v5207_v33 = vsel %vm16779_vm9, %v16777_v55, %v5175_v17  ;;  %v16785_v48 = vsub.f32 1.0, %v16784_v57  ;;  %vm16787_vm1 = vcmp.ge.f32.partialorder %v16786_v6, 0.0  ;;  %v16789_v50 = vsub.f32 1.0, %v16788_v44  ;;  %v16806_v55 = vld [vmem:[#allocation99_spill] sm:$0xff]  ;;  %v16815_v44 = vld [vmem:[#allocation16_spill] sm:$0xff] }
 0x5b7   : > { %v5208_v56 = vsel %vm16783_vm10, %v16781_v54, %v5176_v14  ;;  %v16792_v10 = vsub.f32 1.0, %v16791_v41  ;;  %vm16794_vm2 = vcmp.ge.f32.partialorder %v16793_v28, 0.0  ;;  %v16795_v16 = vsub.f32 1.0, %v15083_v22  ;;  %v16814_v6 = vld [vmem:[#allocation15_spill] sm:$0xff] }
 0x5b8   : > { %v5209_v4 = vsel %vm16787_vm1, %v16785_v48, %v5177_v52  ;;  %v5210_v25 = vsel %vm5146_vm13, %v16789_v50, %v5178_v49  ;;  %vm16797_vm3 = vcmp.ge.f32.partialorder %v16796_v39, 0.0  ;;  %v16798_v23 = vsub.f32 1.0, %v15095_v13  ;;  %v16818_v28 = vld [vmem:[#allocation19_spill] sm:$0xff]  ;;  %v16821_v39 = vld [vmem:[#allocation22_spill] sm:$0xff] }
 0x5b9   : > { %v5211_v17 = vsel %vm16794_vm2, %v16792_v10, %v5179_v12  ;;  %v5212_v14 = vsel %vm16797_vm3, %v16795_v16, %v5180_v42  ;;  %vm16800_vm4 = vcmp.ge.f32.partialorder %v16799_v53, 0.0  ;;  %v16801_v7 = vsub.f32 1.0, %v15107_v18  ;;  %v16823_v53 = vld [vmem:[#allocation24_spill] sm:$0xff]  ;;  %v16831_v18 = vld [vmem:[#allocation29_spill] sm:$0xff] }
 0x5ba   : > { %v5213_v52 = vsel %vm16800_vm4, %v16798_v23, %v5181_v58  ;;  %vm16803_vm5 = vcmp.ge.f32.partialorder %v16802_v47, 0.0  ;;  %v16804_v24 = vsub.f32 1.0, %v15122_v32  ;;  %v16807_v22 = vsub.f32 1.0, %v16806_v55  ;;  %v16813_v32 = vld [vmem:[#allocation14_spill] sm:$0xff]  ;;  %v16824_v47 = vld [vmem:[#allocation25_spill] sm:$0xff] }
 0x5bb   : > { %v5214_v49 = vsel %vm16803_vm5, %v16801_v7, %v5182_v45  ;;  %v5217_v13 = vsel %vm5153_vm15, %v5121_v8, %v5185_v40  ;;  %v5218_v58 = vsel %vm5154_vm11, %v5122_v51, %v5186_v5  ;;  %v5220_v35 = vsel %vm5156_vm12, %v5124_v46, %v5188_v19  ;;  %v16812_v45 = vld [vmem:[#allocation13_spill] sm:$0xff]  ;;  %v16819_v40 = vld [vmem:[#allocation20_spill] sm:$0xff]  ;;  %v16822_v46 = vld [vmem:[#allocation23_spill] sm:$0xff] }
 0x5bc   : > { %v5215_v12 = vsel %vm5151_vm0, %v16804_v24, %v5183_v36  ;;  %v5216_v42 = vsel %vm5152_vm14, %v16807_v22, %v5184_v1  ;;  %v5221_v57 = vmul.f32 0.5, %v16812_v45  ;;  %v5222_v48 = vmul.f32 0.5, %v16813_v32  ;;  %v16817_v1 = vld [vmem:[#allocation18_spill] sm:$0xff]  ;;  %v16820_v5 = vld [vmem:[#allocation21_spill] sm:$0xff]  ;;  %v16827_v22 = vld [vmem:[#allocation27_spill] sm:$0xff] }
 0x5bd   : > { %v5223_v36 = vmul.f32 0.5, %v16814_v6  ;;  %v5224_v50 = vmul.f32 0.5, %v16815_v44  ;;  %v5225_v41 = vmul.f32 0.5, %v16816_v20  ;;  %v5226_v10 = vmul.f32 0.5, %v16817_v1  ;;  %v16833_v32 = vld [vmem:[#allocation30_spill] sm:$0xff]  ;;  %v16835_v44 = vld [vmem:[#allocation31_spill] sm:$0xff] }
 0x5be   : > { %v5227_v8 = vmul.f32 0.5, %v16818_v28  ;;  %v5228_v16 = vmul.f32 0.5, %v16819_v40  ;;  %v5229_v51 = vmul.f32 0.5, %v16820_v5  ;;  %v5230_v19 = vmul.f32 0.5, %v16821_v39  ;;  %v16837_v1 = vld [vmem:[#allocation32_spill] sm:$0xff]  ;;  %v16839_v40 = vld [vmem:[#allocation33_spill] sm:$0xff] }
 0x5bf   : > { %v15349_v23 = vmul.f32 0.5, %v16822_v46  ;;  %v15352_v7 = vmul.f32 0.5, %v16823_v53  ;;  %v15355_v24 = vmul.f32 0.5, %v16824_v47  ;;  %v15358_v55 = vmul.f32 0.5, %v16825_v21  ;;  %v16841_v39 = vld [vmem:[#allocation34_spill] sm:$0xff]  ;;  %v16843_v53 = vld [vmem:[#allocation35_spill] sm:$0xff] }
 0x5c0   : > { %v15361_v37 = vmul.f32 0.5, %v16827_v22  ;;  %v15364_v54 = vmul.f32 0.5, %v16829_v0  ;;  %v15367_v45 = vmul.f32 0.5, %v16831_v18  ;;  %v15370_v6 = vmul.f32 0.5, %v16833_v32  ;;  %v16845_v21 = vld [vmem:[#allocation36_spill] sm:$0xff]  ;;  %v16847_v0 = vld [vmem:[#allocation37_spill] sm:$0xff] }
 0x5c1   : > { %16826 = vst [vmem:[#allocation100_spill] sm:$0xff] %v15358_v55  ;;  %v15373_v20 = vmul.f32 0.5, %v16835_v44  ;;  %v15376_v28 = vmul.f32 0.5, %v16837_v1  ;;  %v15379_v5 = vmul.f32 0.5, %v16839_v40  ;;  %v15382_v46 = vmul.f32 0.5, %v16841_v39  ;;  %v16849_v32 = vld [vmem:[#allocation38_spill] sm:$0xff] }
 0x5c2   : > { %16828 = vst [vmem:[#allocation101_spill] sm:$0xff] %v15361_v37  ;;  %16830 = vst [vmem:[#allocation112_spill] sm:$0xff] %v15364_v54  ;;  %v15385_v47 = vmul.f32 0.5, %v16843_v53  ;;  %v15388_v22 = vmul.f32 0.5, %v16845_v21  ;;  %v15391_v18 = vmul.f32 0.5, %v16847_v0  ;;  %v15394_v44 = vmul.f32 0.5, %v16849_v32 }
 0x5c3   : > { %16832 = vst [vmem:[#allocation102_spill] sm:$0xff] %v15367_v45  ;;  %16834 = vst [vmem:[#allocation113_spill] sm:$0xff] %v15370_v6  ;;  %v16851_v1 = vld [vmem:[#allocation39_spill] sm:$0xff]  ;;  %v16853_v40 = vld [vmem:[#allocation40_spill] sm:$0xff]  ;;  %v5253_v0 = vadd.f32 1.0, %v5189_v61  ;;  %v5256_v32 = vadd.f32 1.0, %v5192_v38 }
 0x5c4   : > { %16836 = vst [vmem:[#allocation114_spill] sm:$0xff] %v15373_v20  ;;  %16838 = vst [vmem:[#allocation103_spill] sm:$0xff] %v15376_v28  ;;  %v15397_v28 = vmul.f32 0.5, %v16851_v1  ;;  %v16855_v39 = vld [vmem:[#allocation41_spill] sm:$0xff]  ;;  %v16857_v53 = vld [vmem:[#allocation42_spill] sm:$0xff]  ;;  %v5255_v20 = vadd.f32 1.0, %v5191_v62 }
 0x5c5   : > { %16840 = vst [vmem:[#allocation127_spill] sm:$0xff] %v15379_v5  ;;  %16842 = vst [vmem:[#allocation117_spill] sm:$0xff] %v15382_v46  ;;  %v15400_v5 = vmul.f32 0.5, %v16853_v40  ;;  %v15403_v46 = vmul.f32 0.5, %v16855_v39  ;;  %v16859_v21 = vld [vmem:[#allocation43_spill] sm:$0xff]  ;;  %v5258_v6 = vadd.f32 1.0, %v5194_v30 }
 0x5c6   : > { %16844 = vst [vmem:[#allocation118_spill] sm:$0xff] %v15385_v47  ;;  %16846 = vst [vmem:[#allocation75_spill] sm:$0xff] %v15388_v22  ;;  %v15406_v47 = vmul.f32 0.5, %v16857_v53  ;;  %v15409_v22 = vmul.f32 0.5, %v16859_v21  ;;  %v5259_v1 = vadd.f32 1.0, %v5195_v43  ;;  %v5261_v45 = vadd.f32 1.0, %v5197_v3 }
 0x5c7   : > { %16848 = vst [vmem:[#allocation128_spill] sm:$0xff] %v15391_v18  ;;  %16850 = vst [vmem:[#allocation121_spill] sm:$0xff] %v15394_v44  ;;  %v5254_v18 = vadd.f32 1.0, %v5190_v2  ;;  %v5257_v44 = vadd.f32 1.0, %v5193_v34  ;;  %v5262_v40 = vadd.f32 1.0, %v5198_v27  ;;  %v5264_v54 = vadd.f32 1.0, %v5200_v11 }
 0x5c8   : > { %16852 = vst [vmem:[#allocation76_spill] sm:$0xff] %v15397_v28  ;;  %16854 = vst [vmem:[#allocation123_spill] sm:$0xff] %v15400_v5  ;;  %v5260_v28 = vadd.f32 1.0, %v5196_v29  ;;  %v5263_v5 = vadd.f32 1.0, %v5199_v26  ;;  %v5265_v39 = vadd.f32 1.0, %v5201_v31  ;;  %v5267_v37 = vadd.f32 1.0, %v5203_v60 }
 0x5c9   : > { %16856 = vst [vmem:[#allocation77_spill] sm:$0xff] %v15403_v46  ;;  %16858 = vst [vmem:[#allocation126_spill] sm:$0xff] %v15406_v47  ;;  %v5266_v46 = vadd.f32 1.0, %v5202_v59  ;;  %v5268_v53 = vadd.f32 1.0, %v5204_v15  ;;  %v5269_v47 = vadd.f32 1.0, %v5205_v63  ;;  %v5270_v55 = vadd.f32 1.0, %v5206_v9 }
 0x5ca   : > { %16860 = vst [vmem:[#allocation78_spill] sm:$0xff] %v15409_v22  ;;  %v5271_v21 = vadd.f32 1.0, %v5207_v33  ;;  %v5272_v22 = vadd.f32 1.0, %v5208_v56  ;;  %v5273_v61 = vadd.f32 1.0, %v5209_v4  ;;  %v5274_v2 = vadd.f32 1.0, %v5210_v25 }
 0x5cb   : > { %v5275_v62 = vadd.f32 1.0, %v5211_v17  ;;  %v5276_v38 = vadd.f32 1.0, %v5212_v14  ;;  %v5277_v34 = vadd.f32 1.0, %v5213_v52  ;;  %v5278_v30 = vadd.f32 1.0, %v5214_v49  ;;  %v16861_v52 = vld [vmem:[#allocation100_spill] sm:$0xff] }
 0x5cc   : > { %v5279_v43 = vadd.f32 1.0, %v5215_v12  ;;  %v5280_v29 = vadd.f32 1.0, %v5216_v42  ;;  %v5281_v3 = vadd.f32 1.0, %v5217_v13  ;;  %v5282_v27 = vadd.f32 1.0, %v5218_v58  ;;  %v16862_v12 = vld [vmem:[#allocation101_spill] sm:$0xff]  ;;  %v16863_v13 = vld [vmem:[#allocation112_spill] sm:$0xff] }
 0x5cd   : > { %v5284_v26 = vadd.f32 1.0, %v5220_v35  ;;  %v15411_v11 = vmul.f32 %v5253_v0, %v5221_v57  ;;  %v15413_v31 = vmul.f32 %v5254_v18, %v5222_v48  ;;  %v15415_v59 = vmul.f32 %v5255_v20, %v5223_v36  ;;  %v16864_v35 = vld [vmem:[#allocation102_spill] sm:$0xff]  ;;  %v16865_v48 = vld [vmem:[#allocation113_spill] sm:$0xff] }
 0x5ce   : > { %v15417_v60 = vmul.f32 %v5256_v32, %v5224_v50  ;;  %v15419_v15 = vmul.f32 %v5257_v44, %v5225_v41  ;;  %v15421_v63 = vmul.f32 %v5258_v6, %v5226_v10  ;;  %v15423_v9 = vmul.f32 %v5259_v1, %v5227_v8  ;;  %v5432_v50 = vld [vmem:[#allocation8 + $0x90] sm:$0xff]  ;;  %v16866_v41 = vld [vmem:[#allocation114_spill] sm:$0xff] }
 0x5cf   : > { %v15425_v33 = vmul.f32 %v5260_v28, %v5228_v16  ;;  %v15427_v56 = vmul.f32 %v5261_v45, %v5229_v51  ;;  %v15429_v4 = vmul.f32 %v5262_v40, %v5230_v19  ;;  %5317 = vst [vmem:[#allocation2 + $0x19] sm:$0xff] %v15411_v11  ;;  %5318 = vst [vmem:[#allocation2 + $0x21] sm:$0xff] %v15413_v31  ;;  %v16867_v8 = vld [vmem:[#allocation103_spill] sm:$0xff]  ;;  %v16872_v28 = vld [vmem:[#allocation128_spill] sm:$0xff] }
 0x5d0   : > { %v15434_v25 = vmul.f32 %v5263_v5, %v15349_v23  ;;  %v15437_v17 = vmul.f32 %v5264_v54, %v15352_v7  ;;  %v15440_v14 = vmul.f32 %v5265_v39, %v15355_v24  ;;  %v15443_v49 = vmul.f32 %v5266_v46, %v16861_v52  ;;  %5319 = vst [vmem:[#allocation2 + $0x31] sm:$0xff] %v15415_v59  ;;  %v16868_v51 = vld [vmem:[#allocation127_spill] sm:$0xff]  ;;  %v16869_v23 = vld [vmem:[#allocation117_spill] sm:$0xff]  ;;  %v5433_v24 = vld [vmem:[#allocation8 + $0x98] sm:$0xff] }
 0x5d1   : > { %5320 = vst [vmem:[#allocation2 + $0x39] sm:$0xff] %v15417_v60  ;;  %5321 = vst [vmem:[#allocation2 + $0x49] sm:$0xff] %v15419_v15  ;;  %v15450_v42 = vmul.f32 %v5267_v37, %v16862_v12  ;;  %v15453_v58 = vmul.f32 %v5268_v53, %v16863_v13  ;;  %v15456_v57 = vmul.f32 %v5269_v47, %v16864_v35  ;;  %v5435_v37 = vld [vmem:[#allocation8 + $0xa8] sm:$0xff]  ;;  %v16871_v6 = vld [vmem:[#allocation75_spill] sm:$0xff] }
 0x5d2   : > { %5322 = vst [vmem:[#allocation2 + $0x51] sm:$0xff] %v15421_v63  ;;  %v15459_v36 = vmul.f32 %v5270_v55, %v16865_v48  ;;  %5323 = vst [vmem:[#allocation2 + $0x61] sm:$0xff] %v15423_v9  ;;  %v15466_v10 = vmul.f32 %v5271_v21, %v16866_v41  ;;  %v15469_v16 = vmul.f32 %v5272_v22, %v16867_v8  ;;  %v5434_v55 = vld [vmem:[#allocation8 + $0xa0] sm:$0xff]  ;;  %v16870_v54 = vld [vmem:[#allocation118_spill] sm:$0xff] }
 0x5d3   : > { %5324 = vst [vmem:[#allocation2 + $0x69] sm:$0xff] %v15425_v33  ;;  %5325 = vst [vmem:[#allocation2 + $0x79] sm:$0xff] %v15427_v56  ;;  %v15472_v19 = vmul.f32 %v5273_v61, %v16868_v51  ;;  %v15475_v7 = vmul.f32 %v5274_v2, %v16869_v23  ;;  %v15482_v45 = vmul.f32 %v5275_v62, %v16870_v54  ;;  %v16873_v46 = vld [vmem:[#allocation121_spill] sm:$0xff]  ;;  %v16874_v22 = vld [vmem:[#allocation76_spill] sm:$0xff] }
 0x5d4   : > { %5326 = vst [vmem:[#allocation2 + $0x81] sm:$0xff] %v15429_v4  ;;  %5327 = vst [vmem:[#allocation2 + $0x91] sm:$0xff] %v15434_v25  ;;  %v15485_v20 = vmul.f32 %v5276_v38, %v16871_v6  ;;  %v15488_v5 = vmul.f32 %v5277_v34, %v16872_v28  ;;  %v15491_v47 = vmul.f32 %v5278_v30, %v16873_v46  ;;  %v16875_v44 = vld [vmem:[#allocation123_spill] sm:$0xff]  ;;  %v16876_v32 = vld [vmem:[#allocation77_spill] sm:$0xff] }
 0x5d5   : > { %5328 = vst [vmem:[#allocation2 + $0x99] sm:$0xff] %v15437_v17  ;;  %5329 = vst [vmem:[#allocation2 + $0xa9] sm:$0xff] %v15440_v14  ;;  %v15498_v18 = vmul.f32 %v5279_v43, %v16874_v22  ;;  %v15501_v0 = vmul.f32 %v5280_v29, %v16875_v44  ;;  %v15504_v1 = vmul.f32 %v5281_v3, %v16876_v32  ;;  %v16877_v40 = vld [vmem:[#allocation126_spill] sm:$0xff]  ;;  %v5436_v62 = vld [vmem:[#allocation8 + $0xb0] sm:$0xff] }
 0x5d6   : > { %5330 = vst [vmem:[#allocation2 + $0xb1] sm:$0xff] %v15443_v49  ;;  %5331 = vst [vmem:[#allocation2 + $0xc1] sm:$0xff] %v15450_v42  ;;  %v15507_v39 = vmul.f32 %v5282_v27, %v16877_v40  ;;  %v16878_v53 = vld [vmem:[#allocation78_spill] sm:$0xff]  ;;  %v10897_v61 = vpack.c.bf16 %v5433_v24, %v5432_v50  ;;  %v10901_v2 = vpack.c.bf16 %v5435_v37, %v5434_v55  ;;  %v5437_v38 = vld [vmem:[#allocation8 + $0xb8] sm:$0xff] }
 0x5d7   : > { %5332 = vst [vmem:[#allocation2 + $0xc9] sm:$0xff] %v15453_v58  ;;  %5333 = vst [vmem:[#allocation2 + $0xd9] sm:$0xff] %v15456_v57  ;;  %v5316_v21 = vmul.f32 %v5284_v26, %v16878_v53  ;;  %v10905_v34 = vpack.c.bf16 %v5437_v38, %v5436_v62  ;;  %v5438_v30 = vld [vmem:[#allocation8 + $0xc0] sm:$0xff]  ;;  %v5439_v43 = vld [vmem:[#allocation8 + $0xc8] sm:$0xff] }
 0x5d8   : > { %5334 = vst [vmem:[#allocation2 + $0xe1] sm:$0xff] %v15459_v36  ;;  %5335 = vst [vmem:[#allocation2 + $0xf1] sm:$0xff] %v15466_v10  ;;  %10898 = vmatprep.subr.bf16.mxu1 %v10897_v61  ;;  %v10909_v29 = vpack.c.bf16 %v5439_v43, %v5438_v30  ;;  %v5440_v3 = vld [vmem:[#allocation8 + $0xd0] sm:$0xff]  ;;  %v5441_v27 = vld [vmem:[#allocation8 + $0xd8] sm:$0xff] }
 0x5d9   : > { %5336 = vst [vmem:[#allocation2 + $0xf9] sm:$0xff] %v15469_v16  ;;  %5337 = vst [vmem:[#allocation2 + $0x109] sm:$0xff] %v15472_v19  ;;  %10900 = vmatpush3.bf16.msra.mxu1 %v10897_v61  ;;  %v10913_v26 = vpack.c.bf16 %v5441_v27, %v5440_v3  ;;  %v5442_v52 = vld [vmem:[#allocation8 + $0xe0] sm:$0xff]  ;;  %v5443_v12 = vld [vmem:[#allocation8 + $0xe8] sm:$0xff] }
 0x5da   : > { %5338 = vst [vmem:[#allocation2 + $0x111] sm:$0xff] %v15475_v7  ;;  %5339 = vst [vmem:[#allocation2 + $0x121] sm:$0xff] %v15482_v45  ;;  %10902 = vmatprep.subr.bf16.mxu1 %v10901_v2  ;;  %v10917_v13 = vpack.c.bf16 %v5443_v12, %v5442_v52  ;;  %v5444_v35 = vld [vmem:[#allocation8 + $0xf0] sm:$0xff]  ;;  %v5445_v48 = vld [vmem:[#allocation8 + $0xf8] sm:$0xff] }
 0x5db   : > { %5340 = vst [vmem:[#allocation2 + $0x129] sm:$0xff] %v15485_v20  ;;  %5341 = vst [vmem:[#allocation2 + $0x139] sm:$0xff] %v15488_v5  ;;  %v10921_v50 = vpack.c.bf16 %v5445_v48, %v5444_v35  ;;  %v5381_v41 = vld [vmem:[#allocation8] sm:$0xff]  ;;  %v5382_v8 = vld [vmem:[#allocation8 + $0x8] sm:$0xff] }
 0x5dc   : > { %5342 = vst [vmem:[#allocation2 + $0x141] sm:$0xff] %v15491_v47  ;;  %5343 = vst [vmem:[#allocation2 + $0x151] sm:$0xff] %v15498_v18  ;;  %v10925_v51 = vpack.c.bf16 %v5382_v8, %v5381_v41  ;;  %v5383_v23 = vld [vmem:[#allocation8 + $0x10] sm:$0xff]  ;;  %v5384_v24 = vld [vmem:[#allocation8 + $0x18] sm:$0xff] }
 0x5dd   : > { %5344 = vst [vmem:[#allocation2 + $0x159] sm:$0xff] %v15501_v0  ;;  %5345 = vst [vmem:[#allocation2 + $0x169] sm:$0xff] %v15504_v1  ;;  %10904 = vmatpush3.bf16.msra.mxu1 %v10901_v2  ;;  %v5398_v55 = vld [vmem:[#allocation2 + $0x9] sm:$0xff]  ;;  %v10929_v37 = vpack.c.bf16 %v5384_v24, %v5383_v23  ;;  %v5386_v6 = vld [vmem:[#allocation8 + $0x28] sm:$0xff] }
 0x5de   : > { %5346 = vst [vmem:[#allocation2 + $0x171] sm:$0xff] %v15507_v39  ;;  %5348 = vst [vmem:[#allocation2 + $0x189] sm:$0xff] %v5316_v21  ;;  %10906 = vmatprep.subr.bf16.mxu1 %v10905_v34  ;;  %v5385_v54 = vld [vmem:[#allocation8 + $0x20] sm:$0xff]  ;;  %v5387_v46 = vld [vmem:[#allocation8 + $0x30] sm:$0xff] }
 0x5df   : > { %v10933_v28 = vpack.c.bf16 %v5386_v6, %v5385_v54  ;;  %v5388_v22 = vld [vmem:[#allocation8 + $0x38] sm:$0xff]  ;;  %v5389_v32 = vld [vmem:[#allocation8 + $0x40] sm:$0xff]  ;;  %v5390_v40 = vld [vmem:[#allocation8 + $0x48] sm:$0xff] }
 0x5e0   : > { %v10937_v44 = vpack.c.bf16 %v5388_v22, %v5387_v46  ;;  %v10941_v53 = vpack.c.bf16 %v5390_v40, %v5389_v32  ;;  %v5391_v21 = vld [vmem:[#allocation8 + $0x50] sm:$0xff]  ;;  %v5392_v61 = vld [vmem:[#allocation8 + $0x58] sm:$0xff]  ;;  %v5393_v62 = vld [vmem:[#allocation8 + $0x60] sm:$0xff] }
 0x5e1   : > { %10908 = vmatpush3.bf16.msra.mxu1 %v10905_v34  ;;  %v10945_v2 = vpack.c.bf16 %v5392_v61, %v5391_v21  ;;  %v5394_v38 = vld [vmem:[#allocation8 + $0x68] sm:$0xff]  ;;  %v5395_v30 = vld [vmem:[#allocation8 + $0x70] sm:$0xff]  ;;  %v5396_v43 = vld [vmem:[#allocation8 + $0x78] sm:$0xff] }
 0x5e2   : > { %10910 = vmatprep.subr.bf16.mxu1 %v10909_v29  ;;  %v10949_v34 = vpack.c.bf16 %v5394_v38, %v5393_v62  ;;  %v5929_v3 = vld [vmem:[#allocation8 + $0x100] sm:$0xff]  ;;  %v5930_v27 = vld [vmem:[#allocation8 + $0x108] sm:$0xff]  ;;  %v15564_v52 = vld [vmem:[#allocation2 + $0x48] sm:$0xff] }
 0x5e3   : > { %v5939_v35 = vld [vmem:[#allocation8 + $0x150] sm:$0xff]  ;;  %v5940_v48 = vld [vmem:[#allocation8 + $0x158] sm:$0xff]  ;;  %v5942_v23 = vld [vmem:[#allocation8 + $0x168] sm:$0xff] }
 0x5e4   : > { %v10977_v41 = vpack.c.bf16 %v5940_v48, %v5939_v35  ;;  %v15573_v8 = vld [vmem:[#allocation2 + $0x68] sm:$0xff]  ;;  %v15576_v24 = vld [vmem:[#allocation2 + $0x78] sm:$0xff]  ;;  %v5943_v54 = vld [vmem:[#allocation8 + $0x170] sm:$0xff] }
 0x5e5   : > { %10912 = vmatpush3.bf16.msra.mxu1 %v10909_v29  ;;  %v10953_v29 = vpack.c.bf16 %v5396_v43, %v5395_v30  ;;  %v5944_v6 = vld [vmem:[#allocation8 + $0x178] sm:$0xff]  ;;  %v15585_v22 = vld [vmem:[#allocation2 + $0x98] sm:$0xff]  ;;  %v15591_v21 = vld [vmem:[#allocation2 + $0xb0] sm:$0xff] }
 0x5e6   : > { %10914 = vmatprep.subr.bf16.mxu1 %v10913_v26  ;;  %v10985_v46 = vpack.c.bf16 %v5944_v6, %v5943_v54  ;;  %v6236_v32 = vld [vmem:[#allocation8 + $0x188] sm:$0xff]  ;;  %v15588_v40 = vld [vmem:[#allocation2 + $0xa8] sm:$0xff]  ;;  %v15594_v61 = vld [vmem:[#allocation2 + $0xc0] sm:$0xff] }
 0x5e7   : > { %v15600_v62 = vld [vmem:[#allocation2 + $0xd8] sm:$0xff]  ;;  %v15603_v38 = vld [vmem:[#allocation2 + $0xe0] sm:$0xff]  ;;  %v15612_v43 = vld [vmem:[#allocation2 + $0x108] sm:$0xff] }
 0x5e8   : > { %v15609_v30 = vld [vmem:[#allocation2 + $0xf8] sm:$0xff]  ;;  %v15645_v35 = vld [vmem:[#allocation2 + $0x22] sm:$0xff]  ;;  %v6243_v54 = vld [vmem:[#allocation8 + $0x1c0] sm:$0xff] }
 0x5e9   : > { %10916 = vmatpush3.bf16.msra.mxu1 %v10913_v26  ;;  %v10957_v26 = vpack.c.bf16 %v5930_v27, %v5929_v3  ;;  %v15618_v3 = vld [vmem:[#allocation2 + $0x120] sm:$0xff]  ;;  %v15621_v27 = vld [vmem:[#allocation2 + $0x128] sm:$0xff]  ;;  %v6244_v6 = vld [vmem:[#allocation8 + $0x1c8] sm:$0xff] }
 0x5ea   : > { %10918 = vmatprep.subr.bf16.mxu1 %v10917_v13  ;;  %v6241_v48 = vld [vmem:[#allocation8 + $0x1b0] sm:$0xff] }
 0x5ed   : > { %10920 = vmatpush3.bf16.msra.mxu1 %v10917_v13  ;;  %v15567_v13 = vld [vmem:[#allocation2 + $0x50] sm:$0xff] }
 0x5ee   : > { %10922 = vmatprep.subr.bf16.mxu1 %v10921_v50 }
 0x5f1   : > { %10924 = vmatpush3.bf16.msra.mxu1 %v10921_v50  ;;  %v15570_v50 = vld [vmem:[#allocation2 + $0x60] sm:$0xff] }
 0x5f2   : > { %10926 = vmatprep.subr.bf16.mxu1 %v10925_v51 }
 0x5f4   : > { %9918 = vmatmul.mubr.f32.vlgmr.msra.gmra.mrb[0].mxu1 %v5398_v55 }
 0x5f5   : > { %10928 = vmatpush3.bf16.msra.mxu1 %v10925_v51  ;;  %9920 = vmatprep.mubr.f32.mxu1 %v15411_v11  ;;  %v5941_v51 = vld [vmem:[#allocation8 + $0x160] sm:$0xff] }
 0x5f6   : > { %10930 = vmatprep.subr.bf16.mxu1 %v10929_v37  ;;  %v10981_v55 = vpack.c.bf16 %v5942_v23, %v5941_v51  ;;  %v15648_v51 = vld [vmem:[#allocation2 + $0x32] sm:$0xff] }
 0x5f8   : > { %9921 = vmatmul.mubr.f32.gmra.mrb[2].mxu1 %v15413_v31 }
 0x5f9   : > { %9923 = vmatprep.mubr.f32.mxu1 %v15415_v59  ;;  %10932 = vmatpush3.bf16.msra.mxu1 %v10929_v37  ;;  %v15579_v37 = vld [vmem:[#allocation2 + $0x80] sm:$0xff] }
 0x5fa   : > { %10934 = vmatprep.subr.bf16.mxu1 %v10933_v28 }
 0x5fc   : > { %9924 = vmatmul.mubr.f32.gmra.mrb[4].mxu1 %v15417_v60 }
 0x5fd   : > { %9926 = vmatprep.mubr.f32.mxu1 %v15419_v15  ;;  %10936 = vmatpush3.bf16.msra.mxu1 %v10933_v28  ;;  %v15582_v28 = vld [vmem:[#allocation2 + $0x90] sm:$0xff] }
 0x5fe   : > { %10938 = vmatprep.subr.bf16.mxu1 %v10937_v44 }
 0x600   : > { %9927 = vmatmul.mubr.f32.gmra.mrb[6].mxu1 %v15421_v63 }
 0x601   : > { %9929 = vmatprep.mubr.f32.mxu1 %v15423_v9  ;;  %10940 = vmatpush3.bf16.msra.mxu1 %v10937_v44  ;;  %v6235_v44 = vld [vmem:[#allocation8 + $0x180] sm:$0xff] }
 0x602   : > { %10942 = vmatprep.subr.bf16.mxu1 %v10941_v53 }
 0x604   : > { %9930 = vmatmul.mubr.f32.gmra.mrb[8].mxu1 %v15425_v33 }
 0x605   : > { %9932 = vmatprep.mubr.f32.mxu1 %v15427_v56  ;;  %10944 = vmatpush3.bf16.msra.mxu1 %v10941_v53  ;;  %v10989_v53 = vpack.c.bf16 %v6236_v32, %v6235_v44  ;;  %v11005_v44 = vpack.c.bf16 %v6244_v6, %v6243_v54  ;;  %v15657_v32 = vld [vmem:[#allocation2 + $0x52] sm:$0xff]  ;;  %v6250_v54 = vld [vmem:[#allocation8 + $0x1f8] sm:$0xff] }
 0x606   : > { %10946 = vmatprep.subr.bf16.mxu1 %v10945_v2 }
 0x608   : > { %9933 = vmatmul.mubr.f32.gmra.mrb[10].mxu1 %v15429_v4 }
 0x609   : > { %9935 = vmatprep.mubr.f32.mxu1 %v15434_v25  ;;  %10948 = vmatpush3.bf16.msra.mxu1 %v10945_v2  ;;  %v15597_v2 = vld [vmem:[#allocation2 + $0xc8] sm:$0xff] }
 0x60a   : > { %10950 = vmatprep.subr.bf16.mxu1 %v10949_v34 }
 0x60c   : > { %9936 = vmatmul.mubr.f32.gmra.mrb[12].mxu1 %v15437_v17 }
 0x60d   : > { %9938 = vmatprep.mubr.f32.mxu1 %v15440_v14  ;;  %10952 = vmatpush3.bf16.msra.mxu1 %v10949_v34  ;;  %v15606_v34 = vld [vmem:[#allocation2 + $0xf0] sm:$0xff] }
 0x60e   : > { %10954 = vmatprep.subr.bf16.mxu1 %v10953_v29 }
 0x610   : > { %9939 = vmatmul.mubr.f32.gmra.mrb[14].mxu1 %v15443_v49  ;;  %v5349_v49 = vld [vmem:[#allocation2] sm:$0xff] }
 0x611   : > { %9941 = vmatprep.mubr.f32.mxu1 %v15450_v42  ;;  %10956 = vmatpush3.bf16.msra.mxu1 %v10953_v29  ;;  %v5931_v42 = vld [vmem:[#allocation8 + $0x110] sm:$0xff]  ;;  %v15615_v29 = vld [vmem:[#allocation2 + $0x110] sm:$0xff] }
 0x612   : > { %10958 = vmatprep.subr.bf16.mxu1 %v10957_v26 }
 0x614   : > { %9942 = vmatmul.mubr.f32.gmra.mrb[16].mxu1 %v15453_v58  ;;  %v5932_v58 = vld [vmem:[#allocation8 + $0x118] sm:$0xff] }
 0x615   : > { %9944 = vmatprep.mubr.f32.mxu1 %v15456_v57  ;;  %v10961_v57 = vpack.c.bf16 %v5932_v58, %v5931_v42  ;;  %v15630_v42 = vld [vmem:[#allocation2 + $0x150] sm:$0xff]  ;;  %v15633_v58 = vld [vmem:[#allocation2 + $0x158] sm:$0xff] }
 0x618   : > { %9945 = vmatmul.mubr.f32.gmra.mrb[18].mxu1 %v15459_v36  ;;  %v5933_v36 = vld [vmem:[#allocation8 + $0x120] sm:$0xff] }
 0x619   : > { %9947 = vmatprep.mubr.f32.mxu1 %v15466_v10  ;;  %v5934_v10 = vld [vmem:[#allocation8 + $0x128] sm:$0xff] }
 0x61c   : > { %9948 = vmatmul.mubr.f32.gmra.mrb[20].mxu1 %v15469_v16  ;;  %v12041_v16 = vld [vmem:[#allocation2 + $0x8] sm:$0xff] }
 0x61d   : > { %9950 = vmatprep.mubr.f32.mxu1 %v15472_v19  ;;  %v15552_v19 = vld [vmem:[#allocation2 + $0x18] sm:$0xff] }
 0x620   : > { %9951 = vmatmul.mubr.f32.gmra.mrb[22].mxu1 %v15475_v7  ;;  %v10965_v7 = vpack.c.bf16 %v5934_v10, %v5933_v36  ;;  %v5896_v36 = vld [vmem:[#allocation2 + $0x2] sm:$0xff]  ;;  %v15639_v10 = vld [vmem:[#allocation2 + $0x170] sm:$0xff] }
 0x621   : > { %9953 = vmatprep.mubr.f32.mxu1 %v15482_v45  ;;  %v15555_v45 = vld [vmem:[#allocation2 + $0x20] sm:$0xff] }
 0x624   : > { %9954 = vmatmul.mubr.f32.gmra.mrb[24].mxu1 %v15485_v20  ;;  %v5935_v20 = vld [vmem:[#allocation8 + $0x130] sm:$0xff] }
 0x625   : > { %9956 = vmatprep.mubr.f32.mxu1 %v15488_v5  ;;  %v5936_v5 = vld [vmem:[#allocation8 + $0x138] sm:$0xff] }
 0x628   : > { %9957 = vmatmul.mubr.f32.gmra.mrb[26].mxu1 %v15491_v47  ;;  %v15558_v47 = vld [vmem:[#allocation2 + $0x30] sm:$0xff] }
 0x629   : > { %9959 = vmatprep.mubr.f32.mxu1 %v15498_v18  ;;  %v10969_v18 = vpack.c.bf16 %v5936_v5, %v5935_v20  ;;  %v5897_v20 = vld [vmem:[#allocation2 + $0xa] sm:$0xff] }
 0x62c   : > { %9960 = vmatmul.mubr.f32.gmra.mrb[28].mxu1 %v15501_v0  ;;  %v15561_v0 = vld [vmem:[#allocation2 + $0x38] sm:$0xff] }
 0x62d   : > { %9962 = vmatprep.mubr.f32.mxu1 %v15504_v1  ;;  %v5937_v1 = vld [vmem:[#allocation8 + $0x140] sm:$0xff] }
 0x630   : > { %9963 = vmatmul.mubr.f32.gmra.mrb[30].mxu1 %v15507_v39  ;;  %v5938_v39 = vld [vmem:[#allocation8 + $0x148] sm:$0xff] }
 0x631   : > { %9997 = vmatprep.mubr.f32.mxu1 %v5349_v49  ;;  %v10973_v12 = vpack.c.bf16 %v5938_v39, %v5937_v1  ;;  %v15627_v49 = vld [vmem:[#allocation2 + $0x140] sm:$0xff]  ;;  %v6240_v1 = vld [vmem:[#allocation8 + $0x1a8] sm:$0xff] }
 0x632   : > { %v15642_v39 = vld [vmem:[#allocation2 + $0x1a] sm:$0xff] }
 0x634   : > { %9998 = vmatmul.mubr.f32.vlgmr.msra.gmra.mrb[0].mxu1 %v12041_v16  ;;  %v6237_v16 = vld [vmem:[#allocation8 + $0x190] sm:$0xff] }
 0x635   : > { %10960 = vmatpush3.bf16.msra.mxu1 %v10957_v26  ;;  %10000 = vmatprep.mubr.f32.mxu1 %v15552_v19  ;;  %v15624_v26 = vld [vmem:[#allocation2 + $0x138] sm:$0xff] }
 0x636   : > { %10962 = vmatprep.subr.bf16.mxu1 %v10961_v57 }
 0x638   : > { %10001 = vmatmul.mubr.f32.gmra.mrb[2].mxu1 %v15555_v45 }
 0x639   : > { %10003 = vmatprep.mubr.f32.mxu1 %v15558_v47  ;;  %10964 = vmatpush3.bf16.msra.mxu1 %v10961_v57  ;;  %v15636_v57 = vld [vmem:[#allocation2 + $0x168] sm:$0xff] }
 0x63a   : > { %10966 = vmatprep.subr.bf16.mxu1 %v10965_v7 }
 0x63c   : > { %10004 = vmatmul.mubr.f32.gmra.mrb[4].mxu1 %v15561_v0 }
 0x63d   : > { %10006 = vmatprep.mubr.f32.mxu1 %v15564_v52  ;;  %10968 = vmatpush3.bf16.msra.mxu1 %v10965_v7  ;;  %v6238_v7 = vld [vmem:[#allocation8 + $0x198] sm:$0xff] }
 0x63e   : > { %10970 = vmatprep.subr.bf16.mxu1 %v10969_v18  ;;  %v10993_v5 = vpack.c.bf16 %v6238_v7, %v6237_v16  ;;  %v15660_v16 = vld [vmem:[#allocation2 + $0x62] sm:$0xff] }
 0x640   : > { %10007 = vmatmul.mubr.f32.gmra.mrb[6].mxu1 %v15567_v13 }
 0x641   : > { %10009 = vmatprep.mubr.f32.mxu1 %v15570_v50  ;;  %10972 = vmatpush3.bf16.msra.mxu1 %v10969_v18  ;;  %v6239_v18 = vld [vmem:[#allocation8 + $0x1a0] sm:$0xff] }
 0x642   : > { %10974 = vmatprep.subr.bf16.mxu1 %v10973_v12 }
 0x644   : > { %10010 = vmatmul.mubr.f32.gmra.mrb[8].mxu1 %v15573_v8 }
 0x645   : > { %10012 = vmatprep.mubr.f32.mxu1 %v15576_v24  ;;  %10976 = vmatpush3.bf16.msra.mxu1 %v10973_v12  ;;  %v10997_v12 = vpack.c.bf16 %v6240_v1, %v6239_v18  ;;  %v6248_v18 = vld [vmem:[#allocation8 + $0x1e8] sm:$0xff] }
 0x646   : > { %10978 = vmatprep.subr.bf16.mxu1 %v10977_v41  ;;  %v15666_v1 = vld [vmem:[#allocation2 + $0x7a] sm:$0xff] }
 0x647   : > { %16879 = vst [vmem:[#allocation84_spill] sm:$0xff] %v15666_v1 }
 0x648   : > { %10013 = vmatmul.mubr.f32.gmra.mrb[10].mxu1 %v15579_v37 }
 0x649   : > { %10015 = vmatprep.mubr.f32.mxu1 %v15582_v28  ;;  %10980 = vmatpush3.bf16.msra.mxu1 %v10977_v41  ;;  %v6242_v41 = vld [vmem:[#allocation8 + $0x1b8] sm:$0xff] }
 0x64a   : > { %10982 = vmatprep.subr.bf16.mxu1 %v10981_v55  ;;  %v11001_v23 = vpack.c.bf16 %v6242_v41, %v6241_v48  ;;  %v15669_v48 = vld [vmem:[#allocation2 + $0x82] sm:$0xff] }
 0x64b   : > { %v6249_v41 = vld [vmem:[#allocation8 + $0x1f0] sm:$0xff] }
 0x64c   : > { %10016 = vmatmul.mubr.f32.gmra.mrb[12].mxu1 %v15585_v22  ;;  %v11017_v6 = vpack.c.bf16 %v6250_v54, %v6249_v41  ;;  %v15687_v41 = vld [vmem:[#allocation2 + $0xca] sm:$0xff]  ;;  %v15690_v54 = vld [vmem:[#allocation2 + $0xda] sm:$0xff] }
 0x64d   : > { %10018 = vmatprep.mubr.f32.mxu1 %v15588_v40  ;;  %10984 = vmatpush3.bf16.msra.mxu1 %v10981_v55  ;;  %v15651_v55 = vld [vmem:[#allocation2 + $0x3a] sm:$0xff]  ;;  %16883 = vst [vmem:[#allocation87_spill] sm:$0xff] %v15687_v41  ;;  %16884 = vst [vmem:[#allocation110_spill] sm:$0xff] %v15690_v54 }
 0x64e   : > { %10986 = vmatprep.subr.bf16.mxu1 %v10985_v46 }
 0x650   : > { %10019 = vmatmul.mubr.f32.gmra.mrb[14].mxu1 %v15591_v21 }
 0x651   : > { %10021 = vmatprep.mubr.f32.mxu1 %v15594_v61  ;;  %10988 = vmatpush3.bf16.msra.mxu1 %v10985_v46  ;;  %v15654_v46 = vld [vmem:[#allocation2 + $0x4a] sm:$0xff] }
 0x652   : > { %10990 = vmatprep.subr.bf16.mxu1 %v10989_v53 }
 0x654   : > { %10022 = vmatmul.mubr.f32.gmra.mrb[16].mxu1 %v15597_v2 }
 0x655   : > { %10024 = vmatprep.mubr.f32.mxu1 %v15600_v62 }
 0x658   : > { %10025 = vmatmul.mubr.f32.gmra.mrb[18].mxu1 %v15603_v38 }
 0x659   : > { %10027 = vmatprep.mubr.f32.mxu1 %v15606_v34 }
 0x65c   : > { %10028 = vmatmul.mubr.f32.gmra.mrb[20].mxu1 %v15609_v30 }
 0x65d   : > { %10030 = vmatprep.mubr.f32.mxu1 %v15612_v43 }
 0x660   : > { %10031 = vmatmul.mubr.f32.gmra.mrb[22].mxu1 %v15615_v29 }
 0x661   : > { %10033 = vmatprep.mubr.f32.mxu1 %v15618_v3 }
 0x664   : > { %10034 = vmatmul.mubr.f32.gmra.mrb[24].mxu1 %v15621_v27 }
 0x665   : > { %10036 = vmatprep.mubr.f32.mxu1 %v15624_v26 }
 0x668   : > { %10037 = vmatmul.mubr.f32.gmra.mrb[26].mxu1 %v15627_v49 }
 0x669   : > { %10039 = vmatprep.mubr.f32.mxu1 %v15630_v42 }
 0x66c   : > { %10040 = vmatmul.mubr.f32.gmra.mrb[28].mxu1 %v15633_v58 }
 0x66d   : > { %10042 = vmatprep.mubr.f32.mxu1 %v15636_v57 }
 0x670   : > { %10043 = vmatmul.mubr.f32.gmra.mrb[30].mxu1 %v15639_v10 }
 0x671   : > { %10077 = vmatprep.mubr.f32.mxu1 %v5896_v36  ;;  %v6246_v36 = vld [vmem:[#allocation8 + $0x1d8] sm:$0xff] }
 0x674   : > { %10078 = vmatmul.mubr.f32.vlgmr.msra.gmra.mrb[0].mxu1 %v5897_v20  ;;  %v15663_v20 = vld [vmem:[#allocation2 + $0x6a] sm:$0xff] }
 0x675   : > { %10992 = vmatpush3.bf16.msra.mxu1 %v10989_v53  ;;  %10080 = vmatprep.mubr.f32.mxu1 %v15642_v39  ;;  %v6245_v53 = vld [vmem:[#allocation8 + $0x1d0] sm:$0xff] }
 0x676   : > { %10994 = vmatprep.subr.bf16.mxu1 %v10993_v5  ;;  %v11009_v7 = vpack.c.bf16 %v6246_v36, %v6245_v53  ;;  %v15675_v53 = vld [vmem:[#allocation2 + $0x9a] sm:$0xff]  ;;  %v6541_v36 = vld [vmem:[#allocation8 + $0x200] sm:$0xff] }
 0x678   : > { %10081 = vmatmul.mubr.f32.gmra.mrb[2].mxu1 %v15645_v35 }
 0x679   : > { %10083 = vmatprep.mubr.f32.mxu1 %v15648_v51  ;;  %10996 = vmatpush3.bf16.msra.mxu1 %v10993_v5  ;;  %v6247_v5 = vld [vmem:[#allocation8 + $0x1e0] sm:$0xff] }
 0x67a   : > { %10998 = vmatprep.subr.bf16.mxu1 %v10997_v12 }
 0x67c   : > { %10084 = vmatmul.mubr.f32.gmra.mrb[4].mxu1 %v15651_v55 }
 0x67d   : > { %10086 = vmatprep.mubr.f32.mxu1 %v15654_v46  ;;  %11000 = vmatpush3.bf16.msra.mxu1 %v10997_v12  ;;  %v11013_v12 = vpack.c.bf16 %v6248_v18, %v6247_v5  ;;  %v15681_v18 = vld [vmem:[#allocation2 + $0xb2] sm:$0xff] }
 0x67e   : > { %11002 = vmatprep.subr.bf16.mxu1 %v11001_v23  ;;  %16881 = vst [vmem:[#allocation79_spill] sm:$0xff] %v15681_v18 }
 0x680   : > { %10087 = vmatmul.mubr.f32.gmra.mrb[6].mxu1 %v15657_v32 }
 0x681   : > { %10089 = vmatprep.mubr.f32.mxu1 %v15660_v16  ;;  %11004 = vmatpush3.bf16.msra.mxu1 %v11001_v23  ;;  %v15672_v23 = vld [vmem:[#allocation2 + $0x92] sm:$0xff] }
 0x682   : > { %11006 = vmatprep.subr.bf16.mxu1 %v11005_v44 }
 0x684   : > { %10090 = vmatmul.mubr.f32.gmra.mrb[8].mxu1 %v15663_v20 }
 0x685   : > { %10092 = vmatprep.mubr.f32.mxu1 %v15666_v1  ;;  %11008 = vmatpush3.bf16.msra.mxu1 %v11005_v44  ;;  %v6542_v1 = vld [vmem:[#allocation8 + $0x208] sm:$0xff]  ;;  %v15678_v44 = vld [vmem:[#allocation2 + $0xaa] sm:$0xff] }
 0x686   : > { %11010 = vmatprep.subr.bf16.mxu1 %v11009_v7  ;;  %16880 = vst [vmem:[#allocation85_spill] sm:$0xff] %v15678_v44  ;;  %v11021_v5 = vpack.c.bf16 %v6542_v1, %v6541_v36  ;;  %v15696_v1 = vld [vmem:[#allocation2 + $0xf2] sm:$0xff]  ;;  %v15699_v36 = vld [vmem:[#allocation2 + $0xfa] sm:$0xff] }
 0x687   : > { %16886 = vst [vmem:[#allocation89_spill] sm:$0xff] %v15696_v1  ;;  %16887 = vst [vmem:[#allocation122_spill] sm:$0xff] %v15699_v36 }
 0x688   : > { %10093 = vmatmul.mubr.f32.gmra.mrb[10].mxu1 %v15669_v48 }
 0x689   : > { %10095 = vmatprep.mubr.f32.mxu1 %v15672_v23  ;;  %11012 = vmatpush3.bf16.msra.mxu1 %v11009_v7  ;;  %v15684_v7 = vld [vmem:[#allocation2 + $0xc2] sm:$0xff] }
 0x68a   : > { %11014 = vmatprep.subr.bf16.mxu1 %v11013_v12  ;;  %16882 = vst [vmem:[#allocation86_spill] sm:$0xff] %v15684_v7 }
 0x68c   : > { %10096 = vmatmul.mubr.f32.gmra.mrb[12].mxu1 %v15675_v53 }
 0x68d   : > { %10098 = vmatprep.mubr.f32.mxu1 %v15678_v44  ;;  %11016 = vmatpush3.bf16.msra.mxu1 %v11013_v12  ;;  %v15693_v12 = vld [vmem:[#allocation2 + $0xe2] sm:$0xff]  ;;  %v6546_v44 = vld [vmem:[#allocation8 + $0x228] sm:$0xff] }
 0x68e   : > { %11018 = vmatprep.subr.bf16.mxu1 %v11017_v6  ;;  %16885 = vst [vmem:[#allocation88_spill] sm:$0xff] %v15693_v12 }
 0x690   : > { %10099 = vmatmul.mubr.f32.gmra.mrb[14].mxu1 %v15681_v18  ;;  %v6545_v18 = vld [vmem:[#allocation8 + $0x220] sm:$0xff] }
 0x691   : > { %10101 = vmatprep.mubr.f32.mxu1 %v15684_v7  ;;  %11020 = vmatpush3.bf16.msra.mxu1 %v11017_v6  ;;  %v15702_v6 = vld [vmem:[#allocation2 + $0x10a] sm:$0xff]  ;;  %v6543_v7 = vld [vmem:[#allocation8 + $0x210] sm:$0xff] }
 0x692   : > { %11022 = vmatprep.subr.bf16.mxu1 %v11021_v5  ;;  %16888 = vst [vmem:[#allocation90_spill] sm:$0xff] %v15702_v6 }
 0x694   : > { %10102 = vmatmul.mubr.f32.gmra.mrb[16].mxu1 %v15687_v41  ;;  %v15705_v41 = vld [vmem:[#allocation2 + $0x112] sm:$0xff] }
 0x695   : > { %10104 = vmatprep.mubr.f32.mxu1 %v15690_v54  ;;  %16889 = vst [vmem:[#allocation91_spill] sm:$0xff] %v15705_v41  ;;  %v15708_v54 = vld [vmem:[#allocation2 + $0x122] sm:$0xff] }
 0x696   : > { %16890 = vst [vmem:[#allocation92_spill] sm:$0xff] %v15708_v54 }
 0x698   : > { %10105 = vmatmul.mubr.f32.gmra.mrb[18].mxu1 %v15693_v12  ;;  %v15711_v12 = vld [vmem:[#allocation2 + $0x12a] sm:$0xff] }
 0x699   : > { %10107 = vmatprep.mubr.f32.mxu1 %v15696_v1  ;;  %16891 = vst [vmem:[#allocation93_spill] sm:$0xff] %v15711_v12  ;;  %v15714_v1 = vld [vmem:[#allocation2 + $0x13a] sm:$0xff] }
 0x69a   : > { %16892 = vst [vmem:[#allocation94_spill] sm:$0xff] %v15714_v1 }
 0x69c   : > { %10108 = vmatmul.mubr.f32.gmra.mrb[20].mxu1 %v15699_v36  ;;  %v15717_v36 = vld [vmem:[#allocation2 + $0x142] sm:$0xff] }
 0x69d   : > { %10110 = vmatprep.mubr.f32.mxu1 %v15702_v6  ;;  %16893 = vst [vmem:[#allocation95_spill] sm:$0xff] %v15717_v36  ;;  %v15720_v6 = vld [vmem:[#allocation2 + $0x152] sm:$0xff] }
 0x69e   : > { %16894 = vst [vmem:[#allocation96_spill] sm:$0xff] %v15720_v6 }
 0x6a0   : > { %10111 = vmatmul.mubr.f32.gmra.mrb[22].mxu1 %v15705_v41  ;;  %v15723_v41 = vld [vmem:[#allocation2 + $0x15a] sm:$0xff] }
 0x6a1   : > { %10113 = vmatprep.mubr.f32.mxu1 %v15708_v54  ;;  %16895 = vst [vmem:[#allocation97_spill] sm:$0xff] %v15723_v41  ;;  %v15726_v54 = vld [vmem:[#allocation2 + $0x16a] sm:$0xff] }
 0x6a2   : > { %16896 = vst [vmem:[#allocation44_spill] sm:$0xff] %v15726_v54 }
 0x6a4   : > { %10114 = vmatmul.mubr.f32.gmra.mrb[24].mxu1 %v15711_v12  ;;  %v15729_v12 = vld [vmem:[#allocation2 + $0x172] sm:$0xff] }
 0x6a5   : > { %10116 = vmatprep.mubr.f32.mxu1 %v15714_v1  ;;  %16897 = vst [vmem:[#allocation45_spill] sm:$0xff] %v15729_v12  ;;  %v6544_v1 = vld [vmem:[#allocation8 + $0x218] sm:$0xff] }
 0x6a8   : > { %10117 = vmatmul.mubr.f32.gmra.mrb[26].mxu1 %v15717_v36  ;;  %v11025_v36 = vpack.c.bf16 %v6544_v1, %v6543_v7  ;;  %v6550_v7 = vld [vmem:[#allocation8 + $0x248] sm:$0xff]  ;;  %v6553_v1 = vld [vmem:[#allocation8 + $0x260] sm:$0xff] }
 0x6a9   : > { %10119 = vmatprep.mubr.f32.mxu1 %v15720_v6  ;;  %v6547_v6 = vld [vmem:[#allocation8 + $0x230] sm:$0xff] }
 0x6ac   : > { %10120 = vmatmul.mubr.f32.gmra.mrb[28].mxu1 %v15723_v41  ;;  %v11029_v41 = vpack.c.bf16 %v6546_v44, %v6545_v18  ;;  %v6552_v44 = vld [vmem:[#allocation8 + $0x258] sm:$0xff] }
 0x6ad   : > { %10122 = vmatprep.mubr.f32.mxu1 %v15726_v54  ;;  %v6548_v54 = vld [vmem:[#allocation8 + $0x238] sm:$0xff] }
 0x6b0   : > { %10123 = vmatmul.mubr.f32.gmra.mrb[30].mxu1 %v15729_v12  ;;  %v11033_v12 = vpack.c.bf16 %v6548_v54, %v6547_v6  ;;  %v6554_v54 = vld [vmem:[#allocation8 + $0x268] sm:$0xff]  ;;  %v6556_v6 = vld [vmem:[#allocation8 + $0x278] sm:$0xff] }
 0x6b1   : > { %10157 = vmatprep.mubr.f32.mxu1 %v15552_v19  ;;  %v6549_v19 = vld [vmem:[#allocation8 + $0x240] sm:$0xff] }
 0x6b4   : > { %10158 = vmatmul.mubr.f32.vlgmr.msra.gmra.mrb[0].mxu1 %v15555_v45  ;;  %v11037_v45 = vpack.c.bf16 %v6550_v7, %v6549_v19  ;;  %v6847_v19 = vld [vmem:[#allocation8 + $0x280] sm:$0xff]  ;;  %v6848_v7 = vld [vmem:[#allocation8 + $0x288] sm:$0xff] }
 0x6b5   : > { %11024 = vmatpush3.bf16.msra.mxu1 %v11021_v5  ;;  %10160 = vmatprep.mubr.f32.mxu1 %v15558_v47  ;;  %v6551_v5 = vld [vmem:[#allocation8 + $0x250] sm:$0xff] }
 0x6b6   : > { %11026 = vmatprep.subr.bf16.mxu1 %v11025_v36  ;;  %v11041_v18 = vpack.c.bf16 %v6552_v44, %v6551_v5  ;;  %v15762_v5 = vld [vmem:[#allocation2 + $0x180] sm:$0xff]  ;;  %v15765_v44 = vld [vmem:[#allocation2 + $0x188] sm:$0xff] }
 0x6b8   : > { %10161 = vmatmul.mubr.f32.gmra.mrb[2].mxu1 %v15561_v0 }
 0x6b9   : > { %10163 = vmatprep.mubr.f32.mxu1 %v15564_v52  ;;  %11028 = vmatpush3.bf16.msra.mxu1 %v11025_v36  ;;  %v6555_v36 = vld [vmem:[#allocation8 + $0x270] sm:$0xff] }
 0x6ba   : > { %11030 = vmatprep.subr.bf16.mxu1 %v11029_v41 }
 0x6bc   : > { %10164 = vmatmul.mubr.f32.gmra.mrb[4].mxu1 %v15567_v13 }
 0x6bd   : > { %10166 = vmatprep.mubr.f32.mxu1 %v15570_v50  ;;  %11032 = vmatpush3.bf16.msra.mxu1 %v11029_v41  ;;  %v11045_v41 = vpack.c.bf16 %v6554_v54, %v6553_v1  ;;  %v6850_v1 = vld [vmem:[#allocation8 + $0x298] sm:$0xff] }
 0x6be   : > { %11034 = vmatprep.subr.bf16.mxu1 %v11033_v12 }
 0x6c0   : > { %10167 = vmatmul.mubr.f32.gmra.mrb[6].mxu1 %v15573_v8 }
 0x6c1   : > { %10169 = vmatprep.mubr.f32.mxu1 %v15576_v24  ;;  %11036 = vmatpush3.bf16.msra.mxu1 %v11033_v12  ;;  %v11049_v12 = vpack.c.bf16 %v6556_v6, %v6555_v36  ;;  %v6852_v36 = vld [vmem:[#allocation8 + $0x2a8] sm:$0xff] }
 0x6c2   : > { %11038 = vmatprep.subr.bf16.mxu1 %v11037_v45 }
 0x6c4   : > { %10170 = vmatmul.mubr.f32.gmra.mrb[8].mxu1 %v15579_v37 }
 0x6c5   : > { %10172 = vmatprep.mubr.f32.mxu1 %v15582_v28  ;;  %11040 = vmatpush3.bf16.msra.mxu1 %v11037_v45  ;;  %v11053_v45 = vpack.c.bf16 %v6848_v7, %v6847_v19  ;;  %v6854_v19 = vld [vmem:[#allocation8 + $0x2b8] sm:$0xff] }
 0x6c6   : > { %11042 = vmatprep.subr.bf16.mxu1 %v11041_v18 }
 0x6c8   : > { %10173 = vmatmul.mubr.f32.gmra.mrb[10].mxu1 %v15585_v22 }
 0x6c9   : > { %10175 = vmatprep.mubr.f32.mxu1 %v15588_v40  ;;  %11044 = vmatpush3.bf16.msra.mxu1 %v11041_v18  ;;  %v6849_v18 = vld [vmem:[#allocation8 + $0x290] sm:$0xff] }
 0x6ca   : > { %11046 = vmatprep.subr.bf16.mxu1 %v11045_v41  ;;  %v11057_v54 = vpack.c.bf16 %v6850_v1, %v6849_v18  ;;  %v6856_v18 = vld [vmem:[#allocation8 + $0x2c8] sm:$0xff] }
 0x6cb   : > { %v6860_v1 = vld [vmem:[#allocation8 + $0x2e8] sm:$0xff] }
 0x6cc   : > { %10176 = vmatmul.mubr.f32.gmra.mrb[12].mxu1 %v15591_v21 }
 0x6cd   : > { %10178 = vmatprep.mubr.f32.mxu1 %v15594_v61  ;;  %11048 = vmatpush3.bf16.msra.mxu1 %v11045_v41  ;;  %v6851_v41 = vld [vmem:[#allocation8 + $0x2a0] sm:$0xff] }
 0x6ce   : > { %11050 = vmatprep.subr.bf16.mxu1 %v11049_v12  ;;  %v11061_v6 = vpack.c.bf16 %v6852_v36, %v6851_v41  ;;  %v7153_v41 = vld [vmem:[#allocation8 + $0x300] sm:$0xff]  ;;  %v7154_v36 = vld [vmem:[#allocation8 + $0x308] sm:$0xff] }
 0x6d0   : > { %10179 = vmatmul.mubr.f32.gmra.mrb[14].mxu1 %v15597_v2 }
 0x6d1   : > { %10181 = vmatprep.mubr.f32.mxu1 %v15600_v62  ;;  %11052 = vmatpush3.bf16.msra.mxu1 %v11049_v12  ;;  %v6853_v12 = vld [vmem:[#allocation8 + $0x2b0] sm:$0xff] }
 0x6d2   : > { %11054 = vmatprep.subr.bf16.mxu1 %v11053_v45  ;;  %v11065_v7 = vpack.c.bf16 %v6854_v19, %v6853_v12  ;;  %v15796_v12 = vld [vmem:[#allocation2 + $0xf1] sm:$0xff]  ;;  %v15799_v19 = vld [vmem:[#allocation2 + $0xf9] sm:$0xff] }
 0x6d4   : > { %10182 = vmatmul.mubr.f32.gmra.mrb[16].mxu1 %v15603_v38 }
 0x6d5   : > { %10184 = vmatprep.mubr.f32.mxu1 %v15606_v34 }
 0x6d8   : > { %10185 = vmatmul.mubr.f32.gmra.mrb[18].mxu1 %v15609_v30 }
 0x6d9   : > { %10187 = vmatprep.mubr.f32.mxu1 %v15612_v43 }
 0x6dc   : > { %10188 = vmatmul.mubr.f32.gmra.mrb[20].mxu1 %v15615_v29 }
 0x6dd   : > { %10190 = vmatprep.mubr.f32.mxu1 %v15618_v3 }
 0x6e0   : > { %10191 = vmatmul.mubr.f32.gmra.mrb[22].mxu1 %v15621_v27 }
 0x6e1   : > { %10193 = vmatprep.mubr.f32.mxu1 %v15624_v26 }
 0x6e4   : > { %10194 = vmatmul.mubr.f32.gmra.mrb[24].mxu1 %v15627_v49 }
 0x6e5   : > { %10196 = vmatprep.mubr.f32.mxu1 %v15630_v42 }
 0x6e8   : > { %10197 = vmatmul.mubr.f32.gmra.mrb[26].mxu1 %v15633_v58 }
 0x6e9   : > { %10199 = vmatprep.mubr.f32.mxu1 %v15636_v57 }
 0x6ec   : > { %10200 = vmatmul.mubr.f32.gmra.mrb[28].mxu1 %v15639_v10 }
 0x6ed   : > { %10202 = vmatprep.mubr.f32.mxu1 %v15762_v5 }
 0x6f0   : > { %10203 = vmatmul.mubr.f32.gmra.mrb[30].mxu1 %v15765_v44 }
 0x6f1   : > { %10237 = vmatprep.mubr.f32.mxu1 %v15411_v11  ;;  %v6855_v11 = vld [vmem:[#allocation8 + $0x2c0] sm:$0xff] }
 0x6f4   : > { %10238 = vmatmul.mubr.f32.vlgmr.msra.gmra.mrb[0].mxu1 %v15413_v31  ;;  %v11069_v31 = vpack.c.bf16 %v6856_v18, %v6855_v11  ;;  %v15805_v11 = vld [vmem:[#allocation2 + $0x111] sm:$0xff]  ;;  %v15808_v18 = vld [vmem:[#allocation2 + $0x121] sm:$0xff] }
 0x6f5   : > { %11056 = vmatpush3.bf16.msra.mxu1 %v11053_v45  ;;  %10240 = vmatprep.mubr.f32.mxu1 %v15415_v59  ;;  %v6857_v59 = vld [vmem:[#allocation8 + $0x2d0] sm:$0xff]  ;;  %v6858_v45 = vld [vmem:[#allocation8 + $0x2d8] sm:$0xff] }
 0x6f6   : > { %11058 = vmatprep.subr.bf16.mxu1 %v11057_v54 }
 0x6f8   : > { %10241 = vmatmul.mubr.f32.gmra.mrb[2].mxu1 %v15417_v60  ;;  %v11073_v60 = vpack.c.bf16 %v6858_v45, %v6857_v59  ;;  %v15814_v59 = vld [vmem:[#allocation2 + $0x139] sm:$0xff]  ;;  %v15817_v45 = vld [vmem:[#allocation2 + $0x141] sm:$0xff] }
 0x6f9   : > { %10243 = vmatprep.mubr.f32.mxu1 %v15419_v15  ;;  %11060 = vmatpush3.bf16.msra.mxu1 %v11057_v54  ;;  %v6859_v15 = vld [vmem:[#allocation8 + $0x2e0] sm:$0xff]  ;;  %v6862_v54 = vld [vmem:[#allocation8 + $0x2f8] sm:$0xff] }
 0x6fa   : > { %11062 = vmatprep.subr.bf16.mxu1 %v11061_v6 }
 0x6fc   : > { %10244 = vmatmul.mubr.f32.gmra.mrb[4].mxu1 %v15421_v63  ;;  %v11077_v63 = vpack.c.bf16 %v6860_v1, %v6859_v15  ;;  %v15823_v15 = vld [vmem:[#allocation2 + $0x159] sm:$0xff]  ;;  %v15826_v1 = vld [vmem:[#allocation2 + $0x169] sm:$0xff] }
 0x6fd   : > { %10246 = vmatprep.mubr.f32.mxu1 %v15423_v9  ;;  %11064 = vmatpush3.bf16.msra.mxu1 %v11061_v6  ;;  %v6861_v9 = vld [vmem:[#allocation8 + $0x2f0] sm:$0xff]  ;;  %v15787_v6 = vld [vmem:[#allocation2 + $0xc9] sm:$0xff]  ;;  %16899 = vst [vmem:[#allocation47_spill] sm:$0xff] %v15823_v15  ;;  %16900 = vst [vmem:[#allocation48_spill] sm:$0xff] %v15826_v1 }
 0x6fe   : > { %11066 = vmatprep.subr.bf16.mxu1 %v11065_v7 }
 0x700   : > { %10247 = vmatmul.mubr.f32.gmra.mrb[6].mxu1 %v15425_v33  ;;  %v11081_v33 = vpack.c.bf16 %v6862_v54, %v6861_v9  ;;  %v15832_v9 = vld [vmem:[#allocation2 + $0x181] sm:$0xff]  ;;  %v15835_v54 = vld [vmem:[#allocation2 + $0x189] sm:$0xff] }
 0x701   : > { %10249 = vmatprep.mubr.f32.mxu1 %v15427_v56  ;;  %11068 = vmatpush3.bf16.msra.mxu1 %v11065_v7  ;;  %v15781_v56 = vld [vmem:[#allocation2 + $0xb1] sm:$0xff]  ;;  %v15802_v7 = vld [vmem:[#allocation2 + $0x109] sm:$0xff]  ;;  %16902 = vst [vmem:[#allocation50_spill] sm:$0xff] %v15832_v9  ;;  %16903 = vst [vmem:[#allocation125_spill] sm:$0xff] %v15835_v54 }
 0x702   : > { %11070 = vmatprep.subr.bf16.mxu1 %v11069_v31 }
 0x704   : > { %10250 = vmatmul.mubr.f32.gmra.mrb[8].mxu1 %v15429_v4  ;;  %v15784_v4 = vld [vmem:[#allocation2 + $0xc1] sm:$0xff] }
 0x705   : > { %10252 = vmatprep.mubr.f32.mxu1 %v15434_v25  ;;  %11072 = vmatpush3.bf16.msra.mxu1 %v11069_v31  ;;  %v11085_v25 = vpack.c.bf16 %v7154_v36, %v7153_v41  ;;  %v15811_v31 = vld [vmem:[#allocation2 + $0x129] sm:$0xff] }
 0x706   : > { %11074 = vmatprep.subr.bf16.mxu1 %v11073_v60  ;;  %v7156_v41 = vld [vmem:[#allocation8 + $0x318] sm:$0xff] }
 0x708   : > { %10253 = vmatmul.mubr.f32.gmra.mrb[10].mxu1 %v15437_v17  ;;  %v15790_v17 = vld [vmem:[#allocation2 + $0xd9] sm:$0xff] }
 0x709   : > { %10255 = vmatprep.mubr.f32.mxu1 %v15440_v14  ;;  %11076 = vmatpush3.bf16.msra.mxu1 %v11073_v60  ;;  %v15793_v14 = vld [vmem:[#allocation2 + $0xe1] sm:$0xff]  ;;  %v15820_v60 = vld [vmem:[#allocation2 + $0x151] sm:$0xff] }
 0x70a   : > { %11078 = vmatprep.subr.bf16.mxu1 %v11077_v63  ;;  %16898 = vst [vmem:[#allocation46_spill] sm:$0xff] %v15820_v60 }
 0x70c   : > { %10256 = vmatmul.mubr.f32.gmra.mrb[12].mxu1 %v15781_v56 }
 0x70d   : > { %10258 = vmatprep.mubr.f32.mxu1 %v15784_v4  ;;  %11080 = vmatpush3.bf16.msra.mxu1 %v11077_v63  ;;  %v15829_v63 = vld [vmem:[#allocation2 + $0x171] sm:$0xff] }
 0x70e   : > { %11082 = vmatprep.subr.bf16.mxu1 %v11081_v33  ;;  %16901 = vst [vmem:[#allocation49_spill] sm:$0xff] %v15829_v63 }
 0x710   : > { %10259 = vmatmul.mubr.f32.gmra.mrb[14].mxu1 %v15787_v6 }
 0x711   : > { %10261 = vmatprep.mubr.f32.mxu1 %v15790_v17  ;;  %11084 = vmatpush3.bf16.msra.mxu1 %v11081_v33  ;;  %v7155_v33 = vld [vmem:[#allocation8 + $0x310] sm:$0xff] }
 0x712   : > { %11086 = vmatprep.subr.bf16.mxu1 %v11085_v25  ;;  %v11089_v36 = vpack.c.bf16 %v7156_v41, %v7155_v33  ;;  %v7162_v33 = vld [vmem:[#allocation8 + $0x348] sm:$0xff]  ;;  %v16906_v41 = vld [vmem:[#allocation79_spill] sm:$0xff] }
 0x714   : > { %10262 = vmatmul.mubr.f32.gmra.mrb[16].mxu1 %v15793_v14 }
 0x715   : > { %10264 = vmatprep.mubr.f32.mxu1 %v15796_v12 }
 0x718   : > { %10265 = vmatmul.mubr.f32.gmra.mrb[18].mxu1 %v15799_v19 }
 0x719   : > { %10267 = vmatprep.mubr.f32.mxu1 %v15802_v7 }
 0x71c   : > { %10268 = vmatmul.mubr.f32.gmra.mrb[20].mxu1 %v15805_v11 }
 0x71d   : > { %10270 = vmatprep.mubr.f32.mxu1 %v15808_v18 }
 0x720   : > { %10271 = vmatmul.mubr.f32.gmra.mrb[22].mxu1 %v15811_v31 }
 0x721   : > { %10273 = vmatprep.mubr.f32.mxu1 %v15814_v59 }
 0x724   : > { %10274 = vmatmul.mubr.f32.gmra.mrb[24].mxu1 %v15817_v45 }
 0x725   : > { %10276 = vmatprep.mubr.f32.mxu1 %v15820_v60  ;;  %v7158_v60 = vld [vmem:[#allocation8 + $0x328] sm:$0xff] }
 0x728   : > { %10277 = vmatmul.mubr.f32.gmra.mrb[26].mxu1 %v15823_v15  ;;  %v7157_v15 = vld [vmem:[#allocation8 + $0x320] sm:$0xff] }
 0x729   : > { %10279 = vmatprep.mubr.f32.mxu1 %v15826_v1  ;;  %v7159_v1 = vld [vmem:[#allocation8 + $0x330] sm:$0xff] }
 0x72c   : > { %10280 = vmatmul.mubr.f32.gmra.mrb[28].mxu1 %v15829_v63  ;;  %v11093_v63 = vpack.c.bf16 %v7158_v60, %v7157_v15  ;;  %v16904_v60 = vld [vmem:[#allocation84_spill] sm:$0xff]  ;;  %v7166_v15 = vld [vmem:[#allocation8 + $0x368] sm:$0xff] }
 0x72d   : > { %10282 = vmatprep.mubr.f32.mxu1 %v15832_v9  ;;  %v7160_v9 = vld [vmem:[#allocation8 + $0x338] sm:$0xff] }
 0x730   : > { %10283 = vmatmul.mubr.f32.gmra.mrb[30].mxu1 %v15835_v54  ;;  %v11097_v54 = vpack.c.bf16 %v7160_v9, %v7159_v1  ;;  %v7168_v1 = vld [vmem:[#allocation8 + $0x378] sm:$0xff]  ;;  %v7459_v9 = vld [vmem:[#allocation8 + $0x380] sm:$0xff] }
 0x731   : > { %10317 = vmatprep.mubr.f32.mxu1 %v15642_v39  ;;  %v7161_v39 = vld [vmem:[#allocation8 + $0x340] sm:$0xff] }
 0x734   : > { %10318 = vmatmul.mubr.f32.vlgmr.msra.gmra.mrb[0].mxu1 %v15645_v35  ;;  %v11101_v35 = vpack.c.bf16 %v7162_v33, %v7161_v39  ;;  %v16909_v39 = vld [vmem:[#allocation110_spill] sm:$0xff]  ;;  %v16911_v33 = vld [vmem:[#allocation89_spill] sm:$0xff] }
 0x735   : > { %11088 = vmatpush3.bf16.msra.mxu1 %v11085_v25  ;;  %10320 = vmatprep.mubr.f32.mxu1 %v15648_v51  ;;  %v7163_v51 = vld [vmem:[#allocation8 + $0x350] sm:$0xff]  ;;  %v7164_v25 = vld [vmem:[#allocation8 + $0x358] sm:$0xff] }
 0x736   : > { %11090 = vmatprep.subr.bf16.mxu1 %v11089_v36 }
 0x738   : > { %10321 = vmatmul.mubr.f32.gmra.mrb[2].mxu1 %v15651_v55  ;;  %v11105_v55 = vpack.c.bf16 %v7164_v25, %v7163_v51  ;;  %v16913_v51 = vld [vmem:[#allocation90_spill] sm:$0xff]  ;;  %v16914_v25 = vld [vmem:[#allocation91_spill] sm:$0xff] }
 0x739   : > { %10323 = vmatprep.mubr.f32.mxu1 %v15654_v46  ;;  %11092 = vmatpush3.bf16.msra.mxu1 %v11089_v36  ;;  %v7165_v46 = vld [vmem:[#allocation8 + $0x360] sm:$0xff]  ;;  %v16907_v36 = vld [vmem:[#allocation86_spill] sm:$0xff] }
 0x73a   : > { %11094 = vmatprep.subr.bf16.mxu1 %v11093_v63 }
 0x73c   : > { %10324 = vmatmul.mubr.f32.gmra.mrb[4].mxu1 %v15657_v32  ;;  %v11109_v32 = vpack.c.bf16 %v7166_v15, %v7165_v46  ;;  %v16917_v46 = vld [vmem:[#allocation94_spill] sm:$0xff]  ;;  %v16918_v15 = vld [vmem:[#allocation95_spill] sm:$0xff] }
 0x73d   : > { %10326 = vmatprep.mubr.f32.mxu1 %v15660_v16  ;;  %11096 = vmatpush3.bf16.msra.mxu1 %v11093_v63  ;;  %v7167_v16 = vld [vmem:[#allocation8 + $0x370] sm:$0xff]  ;;  %v16905_v63 = vld [vmem:[#allocation85_spill] sm:$0xff] }
 0x73e   : > { %11098 = vmatprep.subr.bf16.mxu1 %v11097_v54 }
 0x740   : > { %10327 = vmatmul.mubr.f32.gmra.mrb[6].mxu1 %v15663_v20  ;;  %v11113_v20 = vpack.c.bf16 %v7168_v1, %v7167_v16  ;;  %v16920_v16 = vld [vmem:[#allocation97_spill] sm:$0xff]  ;;  %v16921_v1 = vld [vmem:[#allocation44_spill] sm:$0xff] }
 0x741   : > { %10329 = vmatprep.mubr.f32.mxu1 %v16904_v60  ;;  %11100 = vmatpush3.bf16.msra.mxu1 %v11097_v54  ;;  %v7460_v54 = vld [vmem:[#allocation8 + $0x388] sm:$0xff]  ;;  %v16915_v60 = vld [vmem:[#allocation92_spill] sm:$0xff] }
 0x742   : > { %11102 = vmatprep.subr.bf16.mxu1 %v11101_v35 }
 0x744   : > { %10330 = vmatmul.mubr.f32.gmra.mrb[8].mxu1 %v15669_v48  ;;  %v11117_v48 = vpack.c.bf16 %v7460_v54, %v7459_v9  ;;  %v15871_v9 = vld [vmem:[#allocation2 + $0x18a] sm:$0xff]  ;;  %v7461_v54 = vld [vmem:[#allocation8 + $0x390] sm:$0xff] }
 0x745   : > { %10332 = vmatprep.mubr.f32.mxu1 %v15672_v23  ;;  %11104 = vmatpush3.bf16.msra.mxu1 %v11101_v35  ;;  %v16908_v23 = vld [vmem:[#allocation87_spill] sm:$0xff]  ;;  %v16912_v35 = vld [vmem:[#allocation122_spill] sm:$0xff] }
 0x746   : > { %11106 = vmatprep.subr.bf16.mxu1 %v11105_v55 }
 0x748   : > { %10333 = vmatmul.mubr.f32.gmra.mrb[10].mxu1 %v15675_v53  ;;  %v16910_v53 = vld [vmem:[#allocation88_spill] sm:$0xff] }
 0x749   : > { %10335 = vmatprep.mubr.f32.mxu1 %v16905_v63  ;;  %11108 = vmatpush3.bf16.msra.mxu1 %v11105_v55  ;;  %v16916_v55 = vld [vmem:[#allocation93_spill] sm:$0xff] }
 0x74a   : > { %11110 = vmatprep.subr.bf16.mxu1 %v11109_v32  ;;  %v16922_v63 = vld [vmem:[#allocation45_spill] sm:$0xff] }
 0x74c   : > { %10336 = vmatmul.mubr.f32.gmra.mrb[12].mxu1 %v16906_v41  ;;  %v7462_v41 = vld [vmem:[#allocation8 + $0x398] sm:$0xff] }
 0x74d   : > { %10338 = vmatprep.mubr.f32.mxu1 %v16907_v36  ;;  %11112 = vmatpush3.bf16.msra.mxu1 %v11109_v32  ;;  %v16919_v32 = vld [vmem:[#allocation96_spill] sm:$0xff]  ;;  %v11121_v36 = vpack.c.bf16 %v7462_v41, %v7461_v54  ;;  %v7435_v41 = vld [vmem:[#allocation2 + $0x99] sm:$0xff] }
 0x74e   : > { %11114 = vmatprep.subr.bf16.mxu1 %v11113_v20 }
 0x750   : > { %10339 = vmatmul.mubr.f32.gmra.mrb[14].mxu1 %v16908_v23  ;;  %v7463_v23 = vld [vmem:[#allocation8 + $0x3a0] sm:$0xff] }
 0x751   : > { %10341 = vmatprep.mubr.f32.mxu1 %v16909_v39  ;;  %11116 = vmatpush3.bf16.msra.mxu1 %v11113_v20  ;;  %v15868_v20 = vld [vmem:[#allocation2 + $0x182] sm:$0xff]  ;;  %v7464_v39 = vld [vmem:[#allocation8 + $0x3a8] sm:$0xff] }
 0x752   : > { %11118 = vmatprep.subr.bf16.mxu1 %v11117_v48 }
 0x754   : > { %10342 = vmatmul.mubr.f32.gmra.mrb[16].mxu1 %v16910_v53  ;;  %v11125_v53 = vpack.c.bf16 %v7464_v39, %v7463_v23  ;;  %v7778_v23 = vld [vmem:[#allocation8 + $0x468] sm:$0xff]  ;;  %v7436_v39 = vld [vmem:[#allocation2 + $0xa9] sm:$0xff] }
 0x755   : > { %10344 = vmatprep.mubr.f32.mxu1 %v16911_v33  ;;  %v7465_v33 = vld [vmem:[#allocation8 + $0x3b0] sm:$0xff] }
 0x758   : > { %10345 = vmatmul.mubr.f32.gmra.mrb[18].mxu1 %v16912_v35  ;;  %v7466_v35 = vld [vmem:[#allocation8 + $0x3b8] sm:$0xff] }
 0x759   : > { %10347 = vmatprep.mubr.f32.mxu1 %v16913_v51  ;;  %v11129_v51 = vpack.c.bf16 %v7466_v35, %v7465_v33  ;;  %v7779_v33 = vld [vmem:[#allocation8 + $0x470] sm:$0xff]  ;;  %v7780_v35 = vld [vmem:[#allocation8 + $0x478] sm:$0xff] }
 0x75c   : > { %10348 = vmatmul.mubr.f32.gmra.mrb[20].mxu1 %v16914_v25  ;;  %v7468_v25 = vld [vmem:[#allocation8 + $0x3c8] sm:$0xff] }
 0x75d   : > { %10350 = vmatprep.mubr.f32.mxu1 %v16915_v60  ;;  %v7472_v60 = vld [vmem:[#allocation8 + $0x3e8] sm:$0xff] }
 0x760   : > { %10351 = vmatmul.mubr.f32.gmra.mrb[22].mxu1 %v16916_v55  ;;  %v7474_v55 = vld [vmem:[#allocation8 + $0x3f8] sm:$0xff] }
 0x761   : > { %10353 = vmatprep.mubr.f32.mxu1 %v16917_v46  ;;  %v7766_v46 = vld [vmem:[#allocation8 + $0x408] sm:$0xff] }
 0x764   : > { %10354 = vmatmul.mubr.f32.gmra.mrb[24].mxu1 %v16918_v15 }
 0x765   : > { %10356 = vmatprep.mubr.f32.mxu1 %v16919_v32  ;;  %v7433_v32 = vld [vmem:[#allocation2 + $0x81] sm:$0xff] }
 0x768   : > { %10357 = vmatmul.mubr.f32.gmra.mrb[26].mxu1 %v16920_v16  ;;  %v7775_v16 = vld [vmem:[#allocation8 + $0x450] sm:$0xff] }
 0x769   : > { %10359 = vmatprep.mubr.f32.mxu1 %v16921_v1  ;;  %v7776_v1 = vld [vmem:[#allocation8 + $0x458] sm:$0xff] }
 0x76a   : > { %v11169_v54 = vpack.c.bf16 %v7776_v1, %v7775_v16 }
 0x76c   : > { %10360 = vmatmul.mubr.f32.gmra.mrb[28].mxu1 %v16922_v63  ;;  %v7434_v63 = vld [vmem:[#allocation2 + $0x91] sm:$0xff] }
 0x76d   : > { %10362 = vmatprep.mubr.f32.mxu1 %v15868_v20 }
 0x770   : > { %10363 = vmatmul.mubr.f32.gmra.mrb[30].mxu1 %v15871_v9 }
 0x771   : > { %10397 = vmatprep.mubr.f32.mxu1 %v15558_v47  ;;  %v7467_v47 = vld [vmem:[#allocation8 + $0x3c0] sm:$0xff] }
 0x774   : > { %10398 = vmatmul.mubr.f32.vlgmr.msra.gmra.mrb[0].mxu1 %v15561_v0  ;;  %v11133_v0 = vpack.c.bf16 %v7468_v25, %v7467_v47  ;;  %v7737_v47 = vld [vmem:[#allocation2 + $0x6a] sm:$0xff]  ;;  %v7738_v25 = vld [vmem:[#allocation2 + $0x7a] sm:$0xff] }
 0x775   : > { %11120 = vmatpush3.bf16.msra.mxu1 %v11117_v48  ;;  %10400 = vmatprep.mubr.f32.mxu1 %v15564_v52  ;;  %v7469_v52 = vld [vmem:[#allocation8 + $0x3d0] sm:$0xff]  ;;  %v7470_v48 = vld [vmem:[#allocation8 + $0x3d8] sm:$0xff] }
 0x776   : > { %11122 = vmatprep.subr.bf16.mxu1 %v11121_v36 }
 0x778   : > { %10401 = vmatmul.mubr.f32.gmra.mrb[2].mxu1 %v15567_v13  ;;  %v11137_v13 = vpack.c.bf16 %v7470_v48, %v7469_v52  ;;  %v7740_v52 = vld [vmem:[#allocation2 + $0x92] sm:$0xff]  ;;  %v7741_v48 = vld [vmem:[#allocation2 + $0x9a] sm:$0xff] }
 0x779   : > { %10403 = vmatprep.mubr.f32.mxu1 %v15570_v50  ;;  %11124 = vmatpush3.bf16.msra.mxu1 %v11121_v36  ;;  %v7471_v50 = vld [vmem:[#allocation8 + $0x3e0] sm:$0xff] }
 0x77a   : > { %11126 = vmatprep.subr.bf16.mxu1 %v11125_v53  ;;  %v7777_v36 = vld [vmem:[#allocation8 + $0x460] sm:$0xff] }
 0x77c   : > { %10404 = vmatmul.mubr.f32.gmra.mrb[4].mxu1 %v15573_v8  ;;  %v11141_v8 = vpack.c.bf16 %v7472_v60, %v7471_v50  ;;  %v7743_v50 = vld [vmem:[#allocation2 + $0xb2] sm:$0xff]  ;;  %v7744_v60 = vld [vmem:[#allocation2 + $0xc2] sm:$0xff] }
 0x77d   : > { %10406 = vmatprep.mubr.f32.mxu1 %v15576_v24  ;;  %11128 = vmatpush3.bf16.msra.mxu1 %v11125_v53  ;;  %v7473_v24 = vld [vmem:[#allocation8 + $0x3f0] sm:$0xff]  ;;  %v11173_v53 = vpack.c.bf16 %v7778_v23, %v7777_v36 }
 0x77e   : > { %11130 = vmatprep.subr.bf16.mxu1 %v11129_v51 }
 0x780   : > { %10407 = vmatmul.mubr.f32.gmra.mrb[6].mxu1 %v15579_v37  ;;  %v11145_v37 = vpack.c.bf16 %v7474_v55, %v7473_v24  ;;  %v7746_v24 = vld [vmem:[#allocation2 + $0xda] sm:$0xff]  ;;  %v7747_v55 = vld [vmem:[#allocation2 + $0xe2] sm:$0xff] }
 0x781   : > { %10409 = vmatprep.mubr.f32.mxu1 %v15582_v28  ;;  %11132 = vmatpush3.bf16.msra.mxu1 %v11129_v51  ;;  %v7765_v28 = vld [vmem:[#allocation8 + $0x400] sm:$0xff]  ;;  %v11177_v51 = vpack.c.bf16 %v7780_v35, %v7779_v33 }
 0x782   : > { %11134 = vmatprep.subr.bf16.mxu1 %v11133_v0 }
 0x784   : > { %10410 = vmatmul.mubr.f32.gmra.mrb[8].mxu1 %v15585_v22  ;;  %v11149_v22 = vpack.c.bf16 %v7766_v46, %v7765_v28  ;;  %v7749_v28 = vld [vmem:[#allocation2 + $0xfa] sm:$0xff]  ;;  %v7750_v46 = vld [vmem:[#allocation2 + $0x10a] sm:$0xff] }
 0x785   : > { %10412 = vmatprep.mubr.f32.mxu1 %v15588_v40  ;;  %11136 = vmatpush3.bf16.msra.mxu1 %v11133_v0  ;;  %v7150_v40 = vld [vmem:[#allocation2 + $0x198] sm:$0xff]  ;;  %v7739_v0 = vld [vmem:[#allocation2 + $0x82] sm:$0xff] }
 0x786   : > { %11138 = vmatprep.subr.bf16.mxu1 %v11137_v13 }
 0x788   : > { %10413 = vmatmul.mubr.f32.gmra.mrb[10].mxu1 %v15591_v21  ;;  %v7767_v21 = vld [vmem:[#allocation8 + $0x410] sm:$0xff] }
 0x789   : > { %10415 = vmatprep.mubr.f32.mxu1 %v15594_v61  ;;  %11140 = vmatpush3.bf16.msra.mxu1 %v11137_v13  ;;  %v7768_v61 = vld [vmem:[#allocation8 + $0x418] sm:$0xff] }
 0x78a   : > { %11142 = vmatprep.subr.bf16.mxu1 %v11141_v8  ;;  %v7742_v13 = vld [vmem:[#allocation2 + $0xaa] sm:$0xff] }
 0x78c   : > { %10416 = vmatmul.mubr.f32.gmra.mrb[12].mxu1 %v15597_v2  ;;  %v12042_v2 = vld [vmem:[#allocation2 + $0x8] sm:$0xff] }
 0x78d   : > { %10418 = vmatprep.mubr.f32.mxu1 %v15600_v62  ;;  %11144 = vmatpush3.bf16.msra.mxu1 %v11141_v8  ;;  %v7426_v62 = vld [vmem:[#allocation2 + $0x31] sm:$0xff] }
 0x78e   : > { %11146 = vmatprep.subr.bf16.mxu1 %v11145_v37  ;;  %v7745_v8 = vld [vmem:[#allocation2 + $0xca] sm:$0xff] }
 0x790   : > { %10419 = vmatmul.mubr.f32.gmra.mrb[14].mxu1 %v15603_v38  ;;  %v11153_v38 = vpack.c.bf16 %v7768_v61, %v7767_v21  ;;  %v7753_v21 = vld [vmem:[#allocation2 + $0x12a] sm:$0xff]  ;;  %v7754_v61 = vld [vmem:[#allocation2 + $0x13a] sm:$0xff] }
 0x791   : > { %10421 = vmatprep.mubr.f32.mxu1 %v15606_v34  ;;  %11148 = vmatpush3.bf16.msra.mxu1 %v11145_v37  ;;  %v7427_v34 = vld [vmem:[#allocation2 + $0x39] sm:$0xff] }
 0x792   : > { %11150 = vmatprep.subr.bf16.mxu1 %v11149_v22  ;;  %v7748_v37 = vld [vmem:[#allocation2 + $0xf2] sm:$0xff] }
 0x794   : > { %10422 = vmatmul.mubr.f32.gmra.mrb[16].mxu1 %v15609_v30  ;;  %v7769_v30 = vld [vmem:[#allocation8 + $0x420] sm:$0xff] }
 0x795   : > { %10424 = vmatprep.mubr.f32.mxu1 %v15612_v43  ;;  %v7770_v43 = vld [vmem:[#allocation8 + $0x428] sm:$0xff] }
 0x798   : > { %10425 = vmatmul.mubr.f32.gmra.mrb[18].mxu1 %v15615_v29  ;;  %v7428_v29 = vld [vmem:[#allocation2 + $0x49] sm:$0xff] }
 0x799   : > { %10427 = vmatprep.mubr.f32.mxu1 %v15618_v3  ;;  %v11157_v3 = vpack.c.bf16 %v7770_v43, %v7769_v30  ;;  %v7759_v30 = vld [vmem:[#allocation2 + $0x172] sm:$0xff]  ;;  %v7762_v43 = vld [vmem:[#allocation2 + $0x19a] sm:$0xff] }
 0x79c   : > { %10428 = vmatmul.mubr.f32.gmra.mrb[20].mxu1 %v15621_v27  ;;  %v7429_v27 = vld [vmem:[#allocation2 + $0x51] sm:$0xff] }
 0x79d   : > { %10430 = vmatprep.mubr.f32.mxu1 %v15624_v26  ;;  %v7771_v26 = vld [vmem:[#allocation8 + $0x430] sm:$0xff] }
 0x7a0   : > { %10431 = vmatmul.mubr.f32.gmra.mrb[22].mxu1 %v15627_v49  ;;  %v7772_v49 = vld [vmem:[#allocation8 + $0x438] sm:$0xff] }
 0x7a1   : > { %10433 = vmatprep.mubr.f32.mxu1 %v15630_v42  ;;  %v7430_v42 = vld [vmem:[#allocation2 + $0x61] sm:$0xff] }
 0x7a4   : > { %10434 = vmatmul.mubr.f32.gmra.mrb[24].mxu1 %v15633_v58  ;;  %v11161_v58 = vpack.c.bf16 %v7772_v49, %v7771_v26  ;;  %v8078_v26 = vld [vmem:[%s12427_s12 + $0x8] sm:$0xff] }
 0x7a5   : > { %10436 = vmatprep.mubr.f32.mxu1 %v15636_v57  ;;  %v7431_v57 = vld [vmem:[#allocation2 + $0x69] sm:$0xff] }
 0x7a8   : > { %10437 = vmatmul.mubr.f32.gmra.mrb[26].mxu1 %v15639_v10  ;;  %v7773_v10 = vld [vmem:[#allocation8 + $0x440] sm:$0xff] }
 0x7a9   : > { %10439 = vmatprep.mubr.f32.mxu1 %v15762_v5  ;;  %v7774_v5 = vld [vmem:[#allocation8 + $0x448] sm:$0xff] }
 0x7aa   : > { %v11165_v15 = vpack.c.bf16 %v7774_v5, %v7773_v10  ;;  %v8080_v5 = vld [vmem:[%s12427_s12 + $0x18] sm:$0xff] }
 0x7ac   : > { %10440 = vmatmul.mubr.f32.gmra.mrb[28].mxu1 %v15765_v44  ;;  %v7432_v44 = vld [vmem:[#allocation2 + $0x79] sm:$0xff] }
 0x7ad   : > { %10442 = vmatprep.mubr.f32.mxu1 %v7150_v40  ;;  %v7752_v40 = vld [vmem:[#allocation2 + $0x122] sm:$0xff] }
 0x7b0   : > { %10443 = vmatmul.mubr.f32.gmra.mrb[30].mxu1 %v12042_v2  ;;  %v7755_v2 = vld [vmem:[#allocation2 + $0x142] sm:$0xff] }
 0x7b1   : > { %10477 = vmatprep.mubr.f32.mxu1 %v7426_v62  ;;  %v7756_v62 = vld [vmem:[#allocation2 + $0x152] sm:$0xff] }
 0x7b4   : > { %10478 = vmatmul.mubr.f32.vlgmr.msra.gmra.mrb[0].mxu1 %v7427_v34  ;;  %v7758_v34 = vld [vmem:[#allocation2 + $0x16a] sm:$0xff] }
 0x7b5   : > { %11152 = vmatpush3.bf16.msra.mxu1 %v11149_v22  ;;  %10480 = vmatprep.mubr.f32.mxu1 %v7428_v29  ;;  %v7751_v22 = vld [vmem:[#allocation2 + $0x112] sm:$0xff]  ;;  %v7763_v29 = vld [vmem:[#allocation2 + $0x1a2] sm:$0xff] }
 0x7b6   : > { %11154 = vmatprep.subr.bf16.mxu1 %v11153_v38 }
 0x7b8   : > { %10481 = vmatmul.mubr.f32.gmra.mrb[2].mxu1 %v7429_v27 }
 0x7b9   : > { %10483 = vmatprep.mubr.f32.mxu1 %v7430_v42  ;;  %11156 = vmatpush3.bf16.msra.mxu1 %v11153_v38  ;;  %v7757_v38 = vld [vmem:[#allocation2 + $0x15a] sm:$0xff] }
 0x7ba   : > { %11158 = vmatprep.subr.bf16.mxu1 %v11157_v3 }
 0x7bc   : > { %10484 = vmatmul.mubr.f32.gmra.mrb[4].mxu1 %v7431_v57 }
 0x7bd   : > { %10486 = vmatprep.mubr.f32.mxu1 %v7432_v44  ;;  %11160 = vmatpush3.bf16.msra.mxu1 %v11157_v3  ;;  %v15928_v3 = vld [vmem:[%s16085_s4] ss:$0 sm:$0xff] }
 0x7be   : > { %11162 = vmatprep.subr.bf16.mxu1 %v11161_v58 }
 0x7c0   : > { %10487 = vmatmul.mubr.f32.gmra.mrb[6].mxu1 %v7433_v32  ;;  %v8079_v32 = vld [vmem:[%s12427_s12 + $0x10] sm:$0xff] }
 0x7c1   : > { %10489 = vmatprep.mubr.f32.mxu1 %v7434_v63  ;;  %11164 = vmatpush3.bf16.msra.mxu1 %v11161_v58 }
 0x7c2   : > { %11166 = vmatprep.subr.bf16.mxu1 %v11165_v15 }
 0x7c4   : > { %10490 = vmatmul.mubr.f32.gmra.mrb[8].mxu1 %v7435_v41  ;;  %v8082_v41 = vld [vmem:[%s12427_s12 + $0x28] sm:$0xff] }
 0x7c5   : > { %10492 = vmatprep.mubr.f32.mxu1 %v7436_v39  ;;  %11168 = vmatpush3.bf16.msra.mxu1 %v11165_v15  ;;  %v8081_v39 = vld [vmem:[%s12427_s12 + $0x20] sm:$0xff] }
 0x7c6   : > { %11170 = vmatprep.subr.bf16.mxu1 %v11169_v54 }
 0x7c8   : > { %10493 = vmatmul.mubr.f32.gmra.mrb[10].mxu1 %v15781_v56  ;;  %v16923_v56 = vld [vmem:[#allocation46_spill] sm:$0xff] }
 0x7c9   : > { %10495 = vmatprep.mubr.f32.mxu1 %v15784_v4  ;;  %11172 = vmatpush3.bf16.msra.mxu1 %v11169_v54  ;;  %v16924_v4 = vld [vmem:[#allocation47_spill] sm:$0xff] }
 0x7ca   : > { %11174 = vmatprep.subr.bf16.mxu1 %v11173_v53 }
 0x7cc   : > { %10496 = vmatmul.mubr.f32.gmra.mrb[12].mxu1 %v15787_v6  ;;  %v16925_v6 = vld [vmem:[#allocation48_spill] sm:$0xff] }
 0x7cd   : > { %10498 = vmatprep.mubr.f32.mxu1 %v15790_v17  ;;  %11176 = vmatpush3.bf16.msra.mxu1 %v11173_v53  ;;  %v16926_v17 = vld [vmem:[#allocation49_spill] sm:$0xff] }
 0x7ce   : > { %11178 = vmatprep.subr.bf16.mxu1 %v11177_v51 }
 0x7d0   : > { %10499 = vmatmul.mubr.f32.gmra.mrb[14].mxu1 %v15793_v14  ;;  %v16927_v14 = vld [vmem:[#allocation50_spill] sm:$0xff] }
 0x7d1   : > { %10501 = vmatprep.mubr.f32.mxu1 %v15796_v12  ;;  %11180 = vmatpush3.bf16.msra.mxu1 %v11177_v51  ;;  %v7456_v12 = vld [vmem:[#allocation2 + $0x199] sm:$0xff] }
 0x7d4   : > { %10502 = vmatmul.mubr.f32.gmra.mrb[16].mxu1 %v15799_v19  ;;  %v16928_v19 = vld [vmem:[#allocation125_spill] sm:$0xff] }
 0x7d5   : > { %10504 = vmatprep.mubr.f32.mxu1 %v15802_v7  ;;  %v7457_v7 = vld [vmem:[#allocation2 + $0x1a1] sm:$0xff] }
 0x7d8   : > { %10505 = vmatmul.mubr.f32.gmra.mrb[18].mxu1 %v15805_v11  ;;  %v7732_v11 = vld [vmem:[#allocation2 + $0x32] sm:$0xff] }
 0x7d9   : > { %10507 = vmatprep.mubr.f32.mxu1 %v15808_v18  ;;  %v7733_v18 = vld [vmem:[#allocation2 + $0x3a] sm:$0xff] }
 0x7dc   : > { %10508 = vmatmul.mubr.f32.gmra.mrb[20].mxu1 %v15811_v31  ;;  %v7734_v31 = vld [vmem:[#allocation2 + $0x4a] sm:$0xff] }
 0x7dd   : > { %10510 = vmatprep.mubr.f32.mxu1 %v15814_v59  ;;  %v7735_v59 = vld [vmem:[#allocation2 + $0x52] sm:$0xff] }
 0x7e0   : > { %10511 = vmatmul.mubr.f32.gmra.mrb[22].mxu1 %v15817_v45  ;;  %v7736_v45 = vld [vmem:[#allocation2 + $0x62] sm:$0xff] }
 0x7e1   : > { %10513 = vmatprep.mubr.f32.mxu1 %v16923_v56  ;;  %v8084_v56 = vld [vmem:[%s12427_s12 + $0x38] sm:$0xff] }
 0x7e4   : > { %10514 = vmatmul.mubr.f32.gmra.mrb[24].mxu1 %v16924_v4 }
 0x7e5   : > { %10516 = vmatprep.mubr.f32.mxu1 %v16925_v6 }
 0x7e8   : > { %10517 = vmatmul.mubr.f32.gmra.mrb[26].mxu1 %v16926_v17  ;;  %v8083_v17 = vld [vmem:[%s12427_s12 + $0x30] sm:$0xff] }
 0x7e9   : > { %10519 = vmatprep.mubr.f32.mxu1 %v16927_v14 }
 0x7ec   : > { %10520 = vmatmul.mubr.f32.gmra.mrb[28].mxu1 %v16928_v19 }
 0x7ed   : > { %10522 = vmatprep.mubr.f32.mxu1 %v7456_v12 }
 0x7f0   : > { %10523 = vmatmul.mubr.f32.gmra.mrb[30].mxu1 %v7457_v7 }
 0x7f1   : > { %10557 = vmatprep.mubr.f32.mxu1 %v7732_v11  ;;  %v8086_v11 = vld [vmem:[%s12427_s12 + $0x48] sm:$0xff] }
 0x7f4   : > { %10558 = vmatmul.mubr.f32.vlgmr.msra.gmra.mrb[0].mxu1 %v7733_v18 }
 0x7f5   : > { %10560 = vmatprep.mubr.f32.mxu1 %v7734_v31 }
 0x7f8   : > { %10561 = vmatmul.mubr.f32.gmra.mrb[2].mxu1 %v7735_v59  ;;  %v8085_v59 = vld [vmem:[%s12427_s12 + $0x40] sm:$0xff] }
 0x7f9   : > { %10563 = vmatprep.mubr.f32.mxu1 %v7736_v45 }
 0x7fc   : > { %10564 = vmatmul.mubr.f32.gmra.mrb[4].mxu1 %v7737_v47 }
 0x7fd   : > { %10566 = vmatprep.mubr.f32.mxu1 %v7738_v25 }
 0x800   : > { %10567 = vmatmul.mubr.f32.gmra.mrb[6].mxu1 %v7739_v0 }
 0x801   : > { %10569 = vmatprep.mubr.f32.mxu1 %v7740_v52  ;;  %v8088_v52 = vld [vmem:[%s12427_s12 + $0x58] sm:$0xff] }
 0x804   : > { %10570 = vmatmul.mubr.f32.gmra.mrb[8].mxu1 %v7741_v48 }
 0x805   : > { %10572 = vmatprep.mubr.f32.mxu1 %v7742_v13 }
 0x808   : > { %10573 = vmatmul.mubr.f32.gmra.mrb[10].mxu1 %v7743_v50  ;;  %v8087_v50 = vld [vmem:[%s12427_s12 + $0x50] sm:$0xff] }
 0x809   : > { %10575 = vmatprep.mubr.f32.mxu1 %v7744_v60 }
 0x80c   : > { %10576 = vmatmul.mubr.f32.gmra.mrb[12].mxu1 %v7745_v8 }
 0x80d   : > { %10578 = vmatprep.mubr.f32.mxu1 %v7746_v24 }
 0x810   : > { %10579 = vmatmul.mubr.f32.gmra.mrb[14].mxu1 %v7747_v55 }
 0x811   : > { %10581 = vmatprep.mubr.f32.mxu1 %v7748_v37  ;;  %v8090_v37 = vld [vmem:[%s12427_s12 + $0x68] sm:$0xff] }
 0x814   : > { %10582 = vmatmul.mubr.f32.gmra.mrb[16].mxu1 %v7749_v28 }
 0x815   : > { %10584 = vmatprep.mubr.f32.mxu1 %v7750_v46 }
 0x818   : > { %10585 = vmatmul.mubr.f32.gmra.mrb[18].mxu1 %v7751_v22  ;;  %v8089_v22 = vld [vmem:[%s12427_s12 + $0x60] sm:$0xff] }
 0x819   : > { %10587 = vmatprep.mubr.f32.mxu1 %v7752_v40 }
 0x81c   : > { %10588 = vmatmul.mubr.f32.gmra.mrb[20].mxu1 %v7753_v21 }
 0x81d   : > { %10590 = vmatprep.mubr.f32.mxu1 %v7754_v61 }
 0x820   : > { %10591 = vmatmul.mubr.f32.gmra.mrb[22].mxu1 %v7755_v2 }
 0x821   : > { %10593 = vmatprep.mubr.f32.mxu1 %v7756_v62  ;;  %v8092_v62 = vld [vmem:[%s12427_s12 + $0x78] sm:$0xff] }
 0x824   : > { %10594 = vmatmul.mubr.f32.gmra.mrb[24].mxu1 %v7757_v38 }
 0x825   : > { %10596 = vmatprep.mubr.f32.mxu1 %v7758_v34 }
 0x828   : > { %10597 = vmatmul.mubr.f32.gmra.mrb[26].mxu1 %v7759_v30  ;;  %v8091_v30 = vld [vmem:[%s12427_s12 + $0x70] sm:$0xff] }
 0x829   : > { %10599 = vmatprep.mubr.f32.mxu1 %v15868_v20  ;;  %v8077_v20 = vld [vmem:[%s12427_s12] sm:$0xff] }
 0x82c   : > { %10600 = vmatmul.mubr.f32.gmra.mrb[28].mxu1 %v15871_v9 }
 0x82d   : > { %10602 = vmatprep.mubr.f32.mxu1 %v7762_v43 }
 0x830   : > { %10603 = vmatmul.mubr.f32.gmra.mrb[30].mxu1 %v7763_v29 }
 0x8c7   : > { %v10559_v27 = vpop.f32.mrb[0].mxu1 }
 0x8c8   : > { %v8046_v49 = vadd.f32 %v10559_v27, %v15928_v3  ;;  %v7847_v42 = vpop.f32.mrb[1].mxu1 }
 0x8c9   : > { %v8045_v58 = vadd.f32 %v15928_v3, %v7847_v42 }
 0x8ca   : > { %v8110_v57 = vadd.f32 %v8078_v26, %v8046_v49  ;;  %v8094_v49 = vld [vmem:[%s12427_s12 + $0x88] sm:$0xff] }
 0x8cb   : > { %v8109_v9 = vadd.f32 %v8077_v20, %v8045_v58  ;;  %v10562_v10 = vpop.f32.mrb[2].mxu1  ;;  %v8093_v58 = vld [vmem:[%s12427_s12 + $0x80] sm:$0xff] }
 0x8cc   : > { %8142 = vst [vmem:[%s15937_s10 + $0x8] sm:$0xff] %v8110_v57  ;;  %v8048_v44 = vadd.f32 %v10562_v10, %v15928_v3  ;;  %v7857_v15 = vpop.f32.mrb[3].mxu1 }
 0x8cd   : > { %8141 = vst [vmem:[%s15937_s10] sm:$0xff] %v8109_v9  ;;  %v8047_v16 = vadd.f32 %v15928_v3, %v7857_v15 }
 0x8ce   : > { %v8112_v1 = vadd.f32 %v8080_v5, %v8048_v44  ;;  %v8096_v44 = vld [vmem:[%s12427_s12 + $0x98] sm:$0xff] }
 0x8cf   : > { %v8111_v63 = vadd.f32 %v8079_v32, %v8047_v16  ;;  %v10565_v54 = vpop.f32.mrb[4].mxu1  ;;  %v8095_v16 = vld [vmem:[%s12427_s12 + $0x90] sm:$0xff] }
 0x8d0   : > { %8144 = vst [vmem:[%s15937_s10 + $0x18] sm:$0xff] %v8112_v1  ;;  %v8050_v36 = vadd.f32 %v10565_v54, %v15928_v3  ;;  %v7867_v23 = vpop.f32.mrb[5].mxu1 }
 0x8d1   : > { %8143 = vst [vmem:[%s15937_s10 + $0x10] sm:$0xff] %v8111_v63  ;;  %v8049_v53 = vadd.f32 %v15928_v3, %v7867_v23 }
 0x8d2   : > { %v8114_v33 = vadd.f32 %v8082_v41, %v8050_v36  ;;  %v8098_v36 = vld [vmem:[%s12427_s12 + $0xa8] sm:$0xff] }
 0x8d3   : > { %v8113_v35 = vadd.f32 %v8081_v39, %v8049_v53  ;;  %v10568_v51 = vpop.f32.mrb[6].mxu1  ;;  %v8097_v53 = vld [vmem:[%s12427_s12 + $0xa0] sm:$0xff] }
 0x8d4   : > { %8146 = vst [vmem:[%s15937_s10 + $0x28] sm:$0xff] %v8114_v33  ;;  %v8052_v4 = vadd.f32 %v10568_v51, %v15928_v3  ;;  %v7877_v6 = vpop.f32.mrb[7].mxu1 }
 0x8d5   : > { %8145 = vst [vmem:[%s15937_s10 + $0x20] sm:$0xff] %v8113_v35  ;;  %v8051_v14 = vadd.f32 %v15928_v3, %v7877_v6 }
 0x8d6   : > { %v8116_v12 = vadd.f32 %v8084_v56, %v8052_v4  ;;  %v8100_v4 = vld [vmem:[%s12427_s12 + $0xb8] sm:$0xff] }
 0x8d7   : > { %v8115_v19 = vadd.f32 %v8083_v17, %v8051_v14  ;;  %v10571_v7 = vpop.f32.mrb[8].mxu1  ;;  %v8099_v14 = vld [vmem:[%s12427_s12 + $0xb0] sm:$0xff] }
 0x8d8   : > { %8148 = vst [vmem:[%s15937_s10 + $0x38] sm:$0xff] %v8116_v12  ;;  %v8054_v18 = vadd.f32 %v10571_v7, %v15928_v3  ;;  %v7887_v31 = vpop.f32.mrb[9].mxu1 }
 0x8d9   : > { %8147 = vst [vmem:[%s15937_s10 + $0x30] sm:$0xff] %v8115_v19  ;;  %v8053_v45 = vadd.f32 %v15928_v3, %v7887_v31 }
 0x8da   : > { %v8118_v47 = vadd.f32 %v8086_v11, %v8054_v18  ;;  %v8102_v18 = vld [vmem:[%s12427_s12 + $0xc8] sm:$0xff] }
 0x8db   : > { %v8117_v25 = vadd.f32 %v8085_v59, %v8053_v45  ;;  %v10574_v0 = vpop.f32.mrb[10].mxu1  ;;  %v8101_v45 = vld [vmem:[%s12427_s12 + $0xc0] sm:$0xff] }
 0x8dc   : > { %8150 = vst [vmem:[%s15937_s10 + $0x48] sm:$0xff] %v8118_v47  ;;  %v8056_v48 = vadd.f32 %v10574_v0, %v15928_v3  ;;  %v7897_v13 = vpop.f32.mrb[11].mxu1 }
 0x8dd   : > { %8149 = vst [vmem:[%s15937_s10 + $0x40] sm:$0xff] %v8117_v25  ;;  %v8055_v60 = vadd.f32 %v15928_v3, %v7897_v13 }
 0x8de   : > { %v8120_v8 = vadd.f32 %v8088_v52, %v8056_v48  ;;  %v8104_v48 = vld [vmem:[%s12427_s12 + $0xd8] sm:$0xff] }
 0x8df   : > { %v8119_v24 = vadd.f32 %v8087_v50, %v8055_v60  ;;  %v10577_v55 = vpop.f32.mrb[12].mxu1  ;;  %v8103_v60 = vld [vmem:[%s12427_s12 + $0xd0] sm:$0xff] }
 0x8e0   : > { %8152 = vst [vmem:[%s15937_s10 + $0x58] sm:$0xff] %v8120_v8  ;;  %v8058_v28 = vadd.f32 %v10577_v55, %v15928_v3  ;;  %v7907_v46 = vpop.f32.mrb[13].mxu1 }
 0x8e1   : > { %8151 = vst [vmem:[%s15937_s10 + $0x50] sm:$0xff] %v8119_v24  ;;  %v8057_v40 = vadd.f32 %v15928_v3, %v7907_v46 }
 0x8e2   : > { %v8122_v21 = vadd.f32 %v8090_v37, %v8058_v28  ;;  %v8106_v28 = vld [vmem:[%s12427_s12 + $0xe8] sm:$0xff] }
 0x8e3   : > { %v8121_v61 = vadd.f32 %v8089_v22, %v8057_v40  ;;  %v10580_v2 = vpop.f32.mrb[14].mxu1  ;;  %v8105_v40 = vld [vmem:[%s12427_s12 + $0xe0] sm:$0xff] }
 0x8e4   : > { %8154 = vst [vmem:[%s15937_s10 + $0x68] sm:$0xff] %v8122_v21  ;;  %v8060_v38 = vadd.f32 %v10580_v2, %v15928_v3  ;;  %v7917_v34 = vpop.f32.mrb[15].mxu1 }
 0x8e5   : > { %8153 = vst [vmem:[%s15937_s10 + $0x60] sm:$0xff] %v8121_v61  ;;  %v8059_v43 = vadd.f32 %v15928_v3, %v7917_v34 }
 0x8e6   : > { %v8124_v29 = vadd.f32 %v8092_v62, %v8060_v38  ;;  %v8108_v38 = vld [vmem:[%s12427_s12 + $0xf8] sm:$0xff] }
 0x8e7   : > { %v8123_v27 = vadd.f32 %v8091_v30, %v8059_v43  ;;  %v10583_v26 = vpop.f32.mrb[16].mxu1  ;;  %v8107_v43 = vld [vmem:[%s12427_s12 + $0xf0] sm:$0xff] }
 0x8e8   : > { %8156 = vst [vmem:[%s15937_s10 + $0x78] sm:$0xff] %v8124_v29  ;;  %v8062_v42 = vadd.f32 %v10583_v26, %v15928_v3  ;;  %v7927_v20 = vpop.f32.mrb[17].mxu1 }
 0x8e9   : > { %8155 = vst [vmem:[%s15937_s10 + $0x70] sm:$0xff] %v8123_v27  ;;  %v8061_v57 = vadd.f32 %v15928_v3, %v7927_v20 }
 0x8ea   : > { %v8126_v9 = vadd.f32 %v8094_v49, %v8062_v42 }
 0x8eb   : > { %v8125_v10 = vadd.f32 %v8093_v58, %v8061_v57  ;;  %v10586_v5 = vpop.f32.mrb[18].mxu1 }
 0x8ec   : > { %8158 = vst [vmem:[%s15937_s10 + $0x88] sm:$0xff] %v8126_v9  ;;  %v8064_v15 = vadd.f32 %v10586_v5, %v15928_v3  ;;  %v7937_v32 = vpop.f32.mrb[19].mxu1 }
 0x8ed   : > { %8157 = vst [vmem:[%s15937_s10 + $0x80] sm:$0xff] %v8125_v10  ;;  %v8063_v1 = vadd.f32 %v15928_v3, %v7937_v32 }
 0x8ee   : > { %v8128_v63 = vadd.f32 %v8096_v44, %v8064_v15 }
 0x8ef   : > { %v8127_v54 = vadd.f32 %v8095_v16, %v8063_v1  ;;  %v10589_v41 = vpop.f32.mrb[20].mxu1 }
 0x8f0   : > { %8160 = vst [vmem:[%s15937_s10 + $0x98] sm:$0xff] %v8128_v63  ;;  %v8066_v23 = vadd.f32 %v10589_v41, %v15928_v3  ;;  %v7947_v39 = vpop.f32.mrb[21].mxu1 }
 0x8f1   : > { %8159 = vst [vmem:[%s15937_s10 + $0x90] sm:$0xff] %v8127_v54  ;;  %v8065_v33 = vadd.f32 %v15928_v3, %v7947_v39 }
 0x8f2   : > { %v8130_v35 = vadd.f32 %v8098_v36, %v8066_v23 }
 0x8f3   : > { %v8129_v51 = vadd.f32 %v8097_v53, %v8065_v33  ;;  %v10592_v56 = vpop.f32.mrb[22].mxu1 }
 0x8f4   : > { %8162 = vst [vmem:[%s15937_s10 + $0xa8] sm:$0xff] %v8130_v35  ;;  %v8068_v6 = vadd.f32 %v10592_v56, %v15928_v3  ;;  %v7957_v17 = vpop.f32.mrb[23].mxu1 }
 0x8f5   : > { %8161 = vst [vmem:[%s15937_s10 + $0xa0] sm:$0xff] %v8129_v51  ;;  %v8067_v12 = vadd.f32 %v15928_v3, %v7957_v17 }
 0x8f6   : > { %v8132_v19 = vadd.f32 %v8100_v4, %v8068_v6 }
 0x8f7   : > { %v8131_v7 = vadd.f32 %v8099_v14, %v8067_v12  ;;  %v10595_v11 = vpop.f32.mrb[24].mxu1 }
 0x8f8   : > { %8164 = vst [vmem:[%s15937_s10 + $0xb8] sm:$0xff] %v8132_v19  ;;  %v8070_v31 = vadd.f32 %v10595_v11, %v15928_v3  ;;  %v7967_v59 = vpop.f32.mrb[25].mxu1 }
 0x8f9   : > { %8163 = vst [vmem:[%s15937_s10 + $0xb0] sm:$0xff] %v8131_v7  ;;  %v8069_v47 = vadd.f32 %v15928_v3, %v7967_v59 }
 0x8fa   : > { %v8134_v25 = vadd.f32 %v8102_v18, %v8070_v31 }
 0x8fb   : > { %v8133_v0 = vadd.f32 %v8101_v45, %v8069_v47  ;;  %v10598_v52 = vpop.f32.mrb[26].mxu1 }
 0x8fc   : > { %8166 = vst [vmem:[%s15937_s10 + $0xc8] sm:$0xff] %v8134_v25  ;;  %v8072_v13 = vadd.f32 %v10598_v52, %v15928_v3  ;;  %v7977_v50 = vpop.f32.mrb[27].mxu1 }
 0x8fd   : > { %8165 = vst [vmem:[%s15937_s10 + $0xc0] sm:$0xff] %v8133_v0  ;;  %v8071_v8 = vadd.f32 %v15928_v3, %v7977_v50 }
 0x8fe   : > { %v8136_v24 = vadd.f32 %v8104_v48, %v8072_v13 }
 0x8ff   : > { %v8135_v55 = vadd.f32 %v8103_v60, %v8071_v8  ;;  %v10601_v37 = vpop.f32.mrb[28].mxu1 }
 0x900   : > { %8168 = vst [vmem:[%s15937_s10 + $0xd8] sm:$0xff] %v8136_v24  ;;  %v8074_v46 = vadd.f32 %v10601_v37, %v15928_v3  ;;  %v7987_v22 = vpop.f32.mrb[29].mxu1 }
 0x901   : > { %8167 = vst [vmem:[%s15937_s10 + $0xd0] sm:$0xff] %v8135_v55  ;;  %v8073_v21 = vadd.f32 %v15928_v3, %v7987_v22 }
 0x902   : > { %v8138_v61 = vadd.f32 %v8106_v28, %v8074_v46 }
 0x903   : > { %v8137_v2 = vadd.f32 %v8105_v40, %v8073_v21  ;;  %v10604_v62 = vpop.f32.mrb[30].mxu1 }
 0x904   : > { %8170 = vst [vmem:[%s15937_s10 + $0xe8] sm:$0xff] %v8138_v61  ;;  %v8076_v34 = vadd.f32 %v10604_v62, %v15928_v3  ;;  %v7997_v30 = vpop.f32.mrb[31].mxu1 }
 0x905   : > { %8169 = vst [vmem:[%s15937_s10 + $0xe0] sm:$0xff] %v8137_v2  ;;  %v8075_v29 = vadd.f32 %v15928_v3, %v7997_v30 }
 0x906   : > { %v8140_v27 = vadd.f32 %v8108_v38, %v8076_v34 }
 0x907   : > { %v8139_v26 = vadd.f32 %v8107_v43, %v8075_v29 }
 0x908   : > { %8172 = vst [vmem:[%s15937_s10 + $0xf8] sm:$0xff] %v8140_v27 }
 0x909   : > { %8171 = vst [vmem:[%s15937_s10 + $0xf0] sm:$0xff] %v8139_v26 }
 0x90a   : > { %12142 = shalt.err (!%p12139_p1)
}
 0x90b   : > { %s12143_s12 = scalar_lea.hbm %s16033_s11, 4096  ;;  %s12147_s15 = scalar_lea.hbm %s16086_s5, 8192 }
 0x90c   : > { %p12144_p13 = scmp.ne.s32.totalorder %s16033_s11, %s12143_s12  ;;  %p12148_p4 = scmp.lt.u32.totalorder %s16033_s11, %s16086_s5 }
 0x90d   : > { %p12149_p5 = scmp.lt.u32.totalorder %s12147_s15, %s12143_s12  ;;  %p12151_p11 = scmp.lt.u32.totalorder %s12143_s12, %s16033_s11 }
 0x90e   : > { %p12145_p6 = pnand %p12144_p13, %p16929_p0 }
 0x90f   : > { %p12150_p8 = por %p12149_p5, %p12148_p4 }
 0x910   : > { %p12146_p10 = pneg %p12145_p6 }
 0x911   : > { %p12152_p2 = por %p12151_p11, %p12150_p8 }
 0x913   : > { %p12153_p3 = pnand %p12152_p2, %p12146_p10 }
 0x915   : > { %12156 = shalt.err (!%p12153_p3)
}
 0x916   : > { %s12208_s28 = smov 128   ;;  %s12209_s9 = smov 8  }
 0x917   : > { %11703 = dma.vmem_to_hbm [thread:$0]  (%p16929_p0), %s16035_s13, 4096, %s16033_s11, %s8174_s22, %s12208_s28, %s12208_s28, %s12209_s9  }
 0x918 PF: > { %s8202_s30 = sand.u32 1, %s12187_s18   ;;  %p16930_p7 = scmp.ne.s32.totalorder %s16358_s25, 0 }
 0x919   : > { %p16931_p9 = scmp.ge.s32.totalorder %s12199_s21, 2  ;;  %s8203_s17 = scalar_lea.sflag [#allocation5], %s8202_s30 }
 0x91b   : > { %p11717_p12 = pnand %p16931_p9, %p16930_p7 }
 0x91d   : > { %12182 = dma.done.wait (!%p11717_p12), %s8203_s17, 4096  }
 0x91e   : > { %12184 = vsyncadd (!%p11717_p12), %s8203_s17, 4294963200  ;;  %p19_p1 = scmp.ge.s32.totalorder %s12356_s29, 4   ;;  %s16932_s18 = smov %s12191_s19 }
 0x91f   : > { %s16933_s19 = smov %s12195_s20  ;;  %s16934_s20 = smov %s12372_s27 }
 0x920   : > { %s16935_s21 = smov %s12356_s29  ;;  %21 = sbr.rel (!%p19_p1) target bundleno = 6 (0x6), region = 112 }
 0x927   :  { %8208 = vsyncpa [#allocation4], 1 }
 0x928   :  { %8210 = vsyncpa [#allocation4 + $0x1], 1 }
 0x929   :  { %8211 = vsyncpa [#allocation7], 1 }
 0x92a   :  { %8212 = vsyncpa [#allocation5], 1 }
 0x92b   :  { %8214 = vsyncpa [#allocation5 + $0x1], 1 }

</bundles_post_ra>
